<compile_context>
chip_gen: v5e
topology: v5e:2x2
jax: 0.10.0
libtpu: 0.0.40
codegen_flags: <defaults>
</compile_context>

<pallas_src>
import functools
import math

import numpy as np

import jax
import jax.numpy as jnp
from jax import lax
from jax.experimental import pallas as pl
from jax.experimental.pallas import tpu as pltpu


# ---------------------------------------------------------------------------------
# Fixed architecture geometry (28x28x3 input, as implied by the 7x7 bottleneck):
#   enc1: Conv(3 ->16, k3, s2, p1)          28x28 -> 14x14
#   enc2: Conv(16->32, k3, s2, p1)          14x14 ->  7x7
#   enc3: Conv(32->64, k7)                   7x7  ->  1x1   (embedding)
#   dec1: ConvT(64->32, k7)                  1x1  ->  7x7
#   dec2: ConvT(32->16, k3, s2, p1, op1)     7x7  -> 14x14
#   dec3: ConvT(16->3,  k3, s2, p1, op1)    14x14 -> 28x28  (+ sigmoid)
# Column layout of every activation: col = w * C + c.
# ---------------------------------------------------------------------------------

# enc1 output-row ordering ("parity"): even output rows first, then odd ones, so that
# enc2's stride-2 row selection becomes contiguous slices inside the kernel.
_ORDER1 = np.concatenate([np.arange(0, 14, 2), np.arange(1, 14, 2)]).astype(np.int32)
# Host-side im2row indices for enc1 (into the H-zero-padded input, rows 0..29):
# block kh of output row oh reads padded input row 2*oh + kh.
_GATH1 = (2 * _ORDER1[:, None] + np.arange(3)[None, :]).astype(np.int32)   # (14, 3)


# ---------------------------------------------------------------------------------
# One-time host-side weight preprocessing.
# ---------------------------------------------------------------------------------
def _wband(w, kh, *, transposed, stride, padding, wi, wo, cin, cout):
    """(wi*cin, wo*cout) banded matrix for one kernel row kh; the W-direction
    stride/padding (and transposed-conv scatter) is folded into its sparsity."""
    w = np.asarray(w, np.float32)
    k = w.shape[2]
    out = np.zeros((wi * cin, wo * cout), np.float32)
    for kw in range(k):
        if transposed:
            blk = w[:, :, kh, kw]                    # (cin, cout)
            for w_in in range(wi):
                ow = stride * w_in - padding + kw
                if 0 <= ow < wo:
                    out[w_in * cin:(w_in + 1) * cin, ow * cout:(ow + 1) * cout] += blk
        else:
            blk = w[:, :, kh, kw].T                  # (cin, cout) from (cout, cin)
            for ow in range(wo):
                w_in = stride * ow - padding + kw
                if 0 <= w_in < wi:
                    out[w_in * cin:(w_in + 1) * cin, ow * cout:(ow + 1) * cout] += blk
    return out


def build_plan(params):
    """Fold the PyTorch-layout weights into six (K, N) matmul operands (kernel rows
    stacked along K / N) + float32 bias rows.  Weight matrices are bfloat16."""
    p = {k: np.asarray(v, np.float32) for k, v in params.items()}

    def cat_fwd(w, *, stride, padding, wi, wo, cin, cout):
        k = w.shape[2]
        return np.concatenate(
            [_wband(w, kh, transposed=False, stride=stride, padding=padding,
                    wi=wi, wo=wo, cin=cin, cout=cout) for kh in range(k)], axis=0)

    # Forward convs: gathered block j corresponds to kernel row kh = j.
    w1 = cat_fwd(p["enc1_w"], stride=2, padding=1, wi=28, wo=14, cin=3, cout=16)   # (252, 224)
    w2 = cat_fwd(p["enc2_w"], stride=2, padding=1, wi=14, wo=7, cin=16, cout=32)   # (672, 224)
    w3 = cat_fwd(p["enc3_w"], stride=1, padding=0, wi=7, wo=1, cin=32, cout=64)    # (1568, 64)

    # dec1 (ConvT k7, s1, p0, 1x1 -> 7x7): output row oh = emb @ B_{kh=oh};
    # stack the 7 row-blocks along N ("wide" matmul).
    w4 = np.concatenate(
        [_wband(p["dec1_w"], kh, transposed=True, stride=1, padding=0,
                wi=1, wo=7, cin=64, cout=32) for kh in range(7)], axis=1)          # (64, 1568)

    # dec2 / dec3 (ConvT k3, s2, p1, op1) via the zero-dilated-input view:
    # gathered block j reads dilated row (oh + j), which carries kernel row
    # kh = k - 1 - j  -> stack the per-kh blocks in reversed order along K.
    def cat_tr(w, *, wi, wo, cin, cout):
        k = w.shape[2]
        return np.concatenate(
            [_wband(w, k - 1 - j, transposed=True, stride=2, padding=1,
                    wi=wi, wo=wo, cin=cin, cout=cout) for j in range(k)], axis=0)

    w5 = cat_tr(p["dec2_w"], wi=7, wo=14, cin=32, cout=16)                          # (672, 224)
    w6 = cat_tr(p["dec3_w"], wi=14, wo=28, cin=16, cout=3)                          # (672, 84)

    def bias_row(b, reps):
        return np.tile(np.asarray(b, np.float32), reps)[None, :]

    return (
        jnp.asarray(w1, jnp.bfloat16), jnp.asarray(bias_row(p["enc1_b"], 14)),
        jnp.asarray(w2, jnp.bfloat16), jnp.asarray(bias_row(p["enc2_b"], 7)),
        jnp.asarray(w3, jnp.bfloat16), jnp.asarray(bias_row(p["enc3_b"], 1)),
        jnp.asarray(w4, jnp.bfloat16), jnp.asarray(bias_row(p["dec1_b"], 49)),
        jnp.asarray(w5, jnp.bfloat16), jnp.asarray(bias_row(p["dec2_b"], 14)),
        jnp.asarray(w6, jnp.bfloat16), jnp.asarray(bias_row(p["dec3_b"], 28)),
    )


# ---------------------------------------------------------------------------------
# The fused Pallas kernel: whole autoencoder forward for B_TILE samples per grid step.
# Row layout of every 2-D activation: row = spatial_row * B + sample.
# ---------------------------------------------------------------------------------
def _ae_kernel(xg_ref,
               w1_ref, b1_ref, w2_ref, b2_ref, w3_ref, b3_ref,
               w4_ref, b4_ref, w5_ref, b5_ref, w6_ref, b6_ref,
               recon_ref, emb_ref):
    B = xg_ref.shape[0] // 14                       # samples handled by this grid step
    f32 = jnp.float32

    def mm(lhs, w_ref):                             # bf16 MXU matmul, f32 accumulation
        return jnp.dot(lhs.astype(jnp.bfloat16), w_ref[...],
                       preferred_element_type=f32)

    # --- enc1: Conv(3->16, k3, s2, p1).  Input rows were pre-gathered on the host
    #     (kh stacked along K); output rows are in parity order
    #     [oh = 0,2,...,12, 1,3,...,13] x sample.
    h1 = jnp.maximum(mm(xg_ref[...], w1_ref) + b1_ref[...], 0.0)           # (14B, 224)

    zero = jnp.zeros((B, 224), f32)

    # --- enc2: Conv(16->32, k3, s2, p1).  kh blocks from the parity-ordered h1:
    #     rows 2*oh-1 / 2*oh / 2*oh+1  ->  contiguous slices.
    g0 = jnp.concatenate([zero, h1[7 * B:13 * B]], axis=0)                 # rows 2*oh-1
    g1 = h1[0:7 * B]                                                       # rows 2*oh
    g2 = h1[7 * B:14 * B]                                                  # rows 2*oh+1
    g = jnp.concatenate([g0, g1, g2], axis=1)                              # (7B, 672)
    h2 = jnp.maximum(mm(g, w2_ref) + b2_ref[...], 0.0)                     # (7B, 224)

    # --- enc3: Conv(32->64, k7) -> 1x1 embedding.  Whole 7x7 map flattened into K.
    g = jnp.concatenate([h2[j * B:(j + 1) * B] for j in range(7)], axis=1)  # (B, 1568)
    emb = mm(g, w3_ref) + b3_ref[...]                                       # (B, 64)
    emb_ref[...] = emb

    # --- dec1: ConvT(64->32, k7).  All 7 output rows computed "wide" along N.
    y4 = jnp.maximum(mm(emb, w4_ref) + b4_ref[...], 0.0)                    # (B, 1568)
    rows4 = [y4[:, m * 224:(m + 1) * 224] for m in range(7)]                # 7 x (B, 224)

    # --- dec2: ConvT(32->16, k3, s2, p1, op1) via the zero-dilated-input view:
    #     dilated rows = [0, x0, 0, x1, ..., 0, x6, 0, 0]; kh block j = dilated[j:j+14].
    pieces = []
    for r in rows4:
        pieces += [zero, r]
    pieces += [zero, zero]
    d = jnp.concatenate(pieces, axis=0)                                     # (16B, 224)
    g = jnp.concatenate([d[0:14 * B], d[B:15 * B], d[2 * B:16 * B]], axis=1)  # (14B, 672)
    h5 = jnp.maximum(mm(g, w5_ref) + b5_ref[...], 0.0)                      # (14B, 224)

    # --- dec3: ConvT(16->3, k3, s2, p1, op1), same dilated-view trick + sigmoid.
    pieces = []
    for m in range(14):
        pieces += [zero, h5[m * B:(m + 1) * B]]
    pieces += [zero, zero]
    d = jnp.concatenate(pieces, axis=0)                                     # (30B, 224)
    g = jnp.concatenate([d[0:28 * B], d[B:29 * B], d[2 * B:30 * B]], axis=1)  # (28B, 672)
    recon_ref[...] = jax.nn.sigmoid(mm(g, w6_ref) + b6_ref[...])            # (28B, 84)


# ---------------------------------------------------------------------------------
# Host-facing forward (PyTorch NCHW in / out).
# ---------------------------------------------------------------------------------
def conv_autoencoder_forward(x, plan, *, b_tile=16):
    """x: (N, 3, 28, 28).  plan: build_plan(params).
    Returns (reconstruction (N, 3, 28, 28), embedding (N, 64, 1, 1)).
    b_tile: samples per grid step (multiple of 8).  Guidance: 8 on v5e, 16-32 on
    v6e/v7x (fills the 256-row MXU while staying far inside VMEM)."""
    assert x.shape[1:] == (3, 28, 28), x.shape
    assert b_tile % 8 == 0, "b_tile must be a multiple of 8"
    x = x.astype(jnp.float32)
    n = x.shape[0]
    n_pad = ((n + b_tile - 1) // b_tile) * b_tile
    nt = n_pad // b_tile

    # Host-side layout plumbing (one-off XLA ops): NCHW -> (rows, W*C), enc1's
    # H-direction im2row (kh stacked along K), rows grouped as (tile, out-row, sample).
    x_rows = jnp.transpose(x, (0, 2, 3, 1)).reshape(n, 28, 84)
    if n_pad != n:
        x_rows = jnp.pad(x_rows, ((0, n_pad - n), (0, 0), (0, 0)))
    xp = jnp.pad(x_rows, ((0, 0), (1, 1), (0, 0)))                          # pad H by 1
    xg = xp[:, _GATH1, :].reshape(n_pad, 14, 252)
    xg = xg.reshape(nt, b_tile, 14, 252).transpose(0, 2, 1, 3)
    xg = xg.reshape(nt * 14 * b_tile, 252)

    weights = plan
    in_specs = [pl.BlockSpec((14 * b_tile, 252), lambda i: (i, 0))]
    in_specs += [pl.BlockSpec(w.shape, lambda i: (0, 0)) for w in weights]

    out_shape = (
        jax.ShapeDtypeStruct((nt * 28 * b_tile, 84), jnp.float32),   # reconstruction rows
        jax.ShapeDtypeStruct((nt * b_tile, 64), jnp.float32),        # embedding rows
    )
    out_specs = (
        pl.BlockSpec((28 * b_tile, 84), lambda i: (i, 0)),
        pl.BlockSpec((b_tile, 64), lambda i: (i, 0)),
    )

    macs = n_pad * (14 * 252 * 224 + 7 * 672 * 224 + 1568 * 64 + 64 * 1568
                    + 14 * 672 * 224 + 28 * 672 * 84)
    weight_bytes = sum(int(np.prod(w.shape)) * w.dtype.itemsize for w in weights)
    bytes_accessed = int(xg.size * 4 + (nt * 28 * b_tile * 84 + nt * b_tile * 64) * 4
                         + weight_bytes)

    recon_rows, emb_rows = pl.pallas_call(
        _ae_kernel,
        out_shape=out_shape,
        grid=(nt,),
        in_specs=in_specs,
        out_specs=out_specs,
        compiler_params=pltpu.CompilerParams(
            dimension_semantics=("parallel",),       # v7x: batch tiles split over 2 TCs
            vmem_limit_bytes=48 * 1024 * 1024),
        cost_estimate=pl.CostEstimate(
            flops=2 * macs,
            transcendentals=n_pad * 28 * 28 * 3,     # final sigmoid
            bytes_accessed=bytes_accessed),
    )(xg, *weights)

    recon = recon_rows.reshape(nt, 28, b_tile, 84).transpose(0, 2, 1, 3)
    recon = recon.reshape(n_pad, 28, 28, 3)[:n].transpose(0, 3, 1, 2)
    emb = emb_rows.reshape(n_pad, 64)[:n].reshape(n, 64, 1, 1)
    return recon, emb


# ---------------------------------------------------------------------------------
# Pure-JAX (XLA conv) reference, used only for in-script validation.
# ---------------------------------------------------------------------------------
def _reference_forward(x, params):
    dn = ("NCHW", "OIHW", "NCHW")

    def conv(h, w, b, s, p):
        out = lax.conv_general_dilated(h, w, (s, s), ((p, p), (p, p)),
                                       dimension_numbers=dn)
        return out + b.reshape(1, -1, 1, 1)

    def conv_t(h, w, b, s, p, op):
        k = w.shape[2]
        w_f = jnp.flip(w, (2, 3)).transpose(1, 0, 2, 3)
        pad = ((k - 1 - p, k - 1 - p + op), (k - 1 - p, k - 1 - p + op))
        out = lax.conv_general_dilated(h, w_f, (1, 1), pad, lhs_dilation=(s, s),
                                       dimension_numbers=dn)
        return out + b.reshape(1, -1, 1, 1)

    h = jax.nn.relu(conv(x, params["enc1_w"], params["enc1_b"], 2, 1))
    h = jax.nn.relu(conv(h, params["enc2_w"], params["enc2_b"], 2, 1))
    emb = conv(h, params["enc3_w"], params["enc3_b"], 1, 0)
    d = jax.nn.relu(conv_t(emb, params["dec1_w"], params["dec1_b"], 1, 0, 0))
    d = jax.nn.relu(conv_t(d, params["dec2_w"], params["dec2_b"], 2, 1, 1))
    recon = jax.nn.sigmoid(conv_t(d, params["dec3_w"], params["dec3_b"], 2, 1, 1))
    return recon, emb


# ---------------------------------------------------------------------------------
# Deterministic PyTorch-like parameter init.
# ---------------------------------------------------------------------------------
def init_params(key):
    specs = {
        "enc1": ((16, 3, 3, 3), 3 * 9, 16),
        "enc2": ((32, 16, 3, 3), 16 * 9, 32),
        "enc3": ((64, 32, 7, 7), 32 * 49, 64),
        "dec1": ((64, 32, 7, 7), 64 * 49, 32),   # ConvTranspose2d: (Cin, Cout, k, k)
        "dec2": ((32, 16, 3, 3), 32 * 9, 16),
        "dec3": ((16, 3, 3, 3), 16 * 9, 3),
    }
    params = {}
    keys = jax.random.split(key, 2 * len(specs))
    for i, (name, (wshape, fan_in, bdim)) in enumerate(specs.items()):
        bound = 1.0 / math.sqrt(fan_in)
        params[name + "_w"] = jax.random.uniform(keys[2 * i], wshape, jnp.float32,
                                                 -bound, bound)
        params[name + "_b"] = jax.random.uniform(keys[2 * i + 1], (bdim,), jnp.float32,
                                                 -bound, bound)
    return params


if __name__ == "__main__":
    key = jax.random.PRNGKey(0)
    k_x, k_p = jax.random.split(key)
    # 28x28 is the natural input size for this architecture (28 -> 14 -> 7 -> 1).
    x = jax.random.uniform(k_x, (16, 3, 28, 28), jnp.float32)
    params = init_params(k_p)

    plan = build_plan(params)                     # one-time weight preprocessing
    fwd = jax.jit(conv_autoencoder_forward, static_argnames=("b_tile",))
    reconstruction, embedding = fwd(x, plan, b_tile=8)   # grid=(2,): exercises the pipeline
    jax.block_until_ready((reconstruction, embedding))

    assert reconstruction.shape == (16, 3, 28, 28), reconstruction.shape
    assert embedding.shape == (16, 64, 1, 1), embedding.shape
    assert bool(jnp.all(jnp.isfinite(reconstruction)))
    assert bool(jnp.all((reconstruction >= 0.0) & (reconstruction <= 1.0)))

    # Validate against a pure-JAX conv reference.  Tolerance covers the bf16 matmul
    # inputs (f32 accumulation); structural bugs would show up as O(0.1-1) errors.
    ref_recon, ref_emb = jax.jit(_reference_forward)(x, params)
    err_recon = float(jnp.max(jnp.abs(reconstruction - ref_recon)))
    emb_scale = 1.0 + float(jnp.max(jnp.abs(ref_emb)))
    err_emb = float(jnp.max(jnp.abs(embedding - ref_emb.reshape(embedding.shape))))
    assert err_recon < 8e-2, err_recon
    assert err_emb < 8e-2 * emb_scale, (err_emb, emb_scale)

    print("KERNEL_OK")
</pallas_src>

<mosaic_0001>
module attributes {stable_mosaic.version = 11 : i64} {
  func.func @_ae_kernel(%arg0: i32, %arg1: memref<112x252xf32, #tpu.memory_space<vmem>>, %arg2: memref<252x224xbf16, #tpu.memory_space<vmem>>, %arg3: memref<1x224xf32, #tpu.memory_space<vmem>>, %arg4: memref<672x224xbf16, #tpu.memory_space<vmem>>, %arg5: memref<1x224xf32, #tpu.memory_space<vmem>>, %arg6: memref<1568x64xbf16, #tpu.memory_space<vmem>>, %arg7: memref<1x64xf32, #tpu.memory_space<vmem>>, %arg8: memref<64x1568xbf16, #tpu.memory_space<vmem>>, %arg9: memref<1x1568xf32, #tpu.memory_space<vmem>>, %arg10: memref<672x224xbf16, #tpu.memory_space<vmem>>, %arg11: memref<1x224xf32, #tpu.memory_space<vmem>>, %arg12: memref<672x84xbf16, #tpu.memory_space<vmem>>, %arg13: memref<1x84xf32, #tpu.memory_space<vmem>>, %arg14: memref<224x84xf32, #tpu.memory_space<vmem>>, %arg15: memref<8x64xf32, #tpu.memory_space<vmem>>) attributes {dimension_semantics = [#tpu.dimension_semantics<parallel>], iteration_bounds = array<i64: 2>, scalar_prefetch = 0 : i64, scratch_operands = 0 : i64, tpu.core_type = #tpu.core_type<tc>, window_params = [{transform_indices = @transform_0, window_bounds = array<i64: 112, 252>}, {pipeline_mode = #tpu.pipeline_mode<synchronous>, transform_indices = @transform_1, window_bounds = array<i64: 252, 224>}, {pipeline_mode = #tpu.pipeline_mode<synchronous>, transform_indices = @transform_2, window_bounds = array<i64: 1, 224>}, {pipeline_mode = #tpu.pipeline_mode<synchronous>, transform_indices = @transform_3, window_bounds = array<i64: 672, 224>}, {pipeline_mode = #tpu.pipeline_mode<synchronous>, transform_indices = @transform_4, window_bounds = array<i64: 1, 224>}, {pipeline_mode = #tpu.pipeline_mode<synchronous>, transform_indices = @transform_5, window_bounds = array<i64: 1568, 64>}, {pipeline_mode = #tpu.pipeline_mode<synchronous>, transform_indices = @transform_6, window_bounds = array<i64: 1, 64>}, {pipeline_mode = #tpu.pipeline_mode<synchronous>, transform_indices = @transform_7, window_bounds = array<i64: 64, 1568>}, {pipeline_mode = #tpu.pipeline_mode<synchronous>, transform_indices = @transform_8, window_bounds = array<i64: 1, 1568>}, {pipeline_mode = #tpu.pipeline_mode<synchronous>, transform_indices = @transform_9, window_bounds = array<i64: 672, 224>}, {pipeline_mode = #tpu.pipeline_mode<synchronous>, transform_indices = @transform_10, window_bounds = array<i64: 1, 224>}, {pipeline_mode = #tpu.pipeline_mode<synchronous>, transform_indices = @transform_11, window_bounds = array<i64: 672, 84>}, {pipeline_mode = #tpu.pipeline_mode<synchronous>, transform_indices = @transform_12, window_bounds = array<i64: 1, 84>}, {transform_indices = @transform_13, window_bounds = array<i64: 224, 84>}, {transform_indices = @transform_14, window_bounds = array<i64: 8, 64>}]} {
    %c0 = arith.constant 0 : index
    %c0_0 = arith.constant 0 : index
    %0 = vector.load %arg1[%c0, %c0_0] : memref<112x252xf32, #tpu.memory_space<vmem>>, vector<112x252xf32>
    %1 = arith.truncf %0 : vector<112x252xf32> to vector<112x252xbf16>
    %c0_1 = arith.constant 0 : index
    %c0_2 = arith.constant 0 : index
    %2 = vector.load %arg2[%c0_1, %c0_2] : memref<252x224xbf16, #tpu.memory_space<vmem>>, vector<252x224xbf16>
    %cst = arith.constant dense<0.000000e+00> : vector<112x224xf32>
    %3 = tpu.matmul %1, %2, %cst {dimension_numbers = #tpu.dot_dimension_numbers<[1], [0], [0], [1], [0, 0, 1, 1], [], []>} : vector<112x252xbf16>, vector<252x224xbf16>, vector<112x224xf32> -> vector<112x224xf32>
    %c0_3 = arith.constant 0 : index
    %c0_4 = arith.constant 0 : index
    %4 = vector.load %arg3[%c0_3, %c0_4] : memref<1x224xf32, #tpu.memory_space<vmem>>, vector<1x224xf32>
    %5 = vector.broadcast %4 : vector<1x224xf32> to vector<112x224xf32>
    %6 = arith.addf %3, %5 : vector<112x224xf32>
    %cst_5 = arith.constant 0.000000e+00 : f32
    %7 = vector.broadcast %cst_5 : f32 to vector<112x224xf32>
    %8 = arith.maximumf %6, %7 : vector<112x224xf32>
    %cst_6 = arith.constant 0.000000e+00 : f32
    %9 = vector.broadcast %cst_6 : f32 to vector<8x224xf32>
    %10 = vector.extract_strided_slice %8 {offsets = [56, 0], sizes = [48, 224], strides = [1, 1]} : vector<112x224xf32> to vector<48x224xf32>
    %11 = tpu.concatenate %9, %10 in 0 : vector<8x224xf32>, vector<48x224xf32> -> vector<56x224xf32>
    %12 = vector.extract_strided_slice %8 {offsets = [0, 0], sizes = [56, 224], strides = [1, 1]} : vector<112x224xf32> to vector<56x224xf32>
    %13 = vector.extract_strided_slice %8 {offsets = [56, 0], sizes = [56, 224], strides = [1, 1]} : vector<112x224xf32> to vector<56x224xf32>
    %14 = tpu.concatenate %11, %12, %13 in 1 : vector<56x224xf32>, vector<56x224xf32>, vector<56x224xf32> -> vector<56x672xf32>
    %15 = arith.truncf %14 : vector<56x672xf32> to vector<56x672xbf16>
    %c0_7 = arith.constant 0 : index
    %c0_8 = arith.constant 0 : index
    %16 = vector.load %arg4[%c0_7, %c0_8] : memref<672x224xbf16, #tpu.memory_space<vmem>>, vector<672x224xbf16>
    %cst_9 = arith.constant dense<0.000000e+00> : vector<56x224xf32>
    %17 = tpu.matmul %15, %16, %cst_9 {dimension_numbers = #tpu.dot_dimension_numbers<[1], [0], [0], [1], [0, 0, 1, 1], [], []>} : vector<56x672xbf16>, vector<672x224xbf16>, vector<56x224xf32> -> vector<56x224xf32>
    %c0_10 = arith.constant 0 : index
    %c0_11 = arith.constant 0 : index
    %18 = vector.load %arg5[%c0_10, %c0_11] : memref<1x224xf32, #tpu.memory_space<vmem>>, vector<1x224xf32>
    %19 = vector.broadcast %18 : vector<1x224xf32> to vector<56x224xf32>
    %20 = arith.addf %17, %19 : vector<56x224xf32>
    %cst_12 = arith.constant 0.000000e+00 : f32
    %21 = vector.broadcast %cst_12 : f32 to vector<56x224xf32>
    %22 = arith.maximumf %20, %21 : vector<56x224xf32>
    %23 = vector.extract_strided_slice %22 {offsets = [0, 0], sizes = [8, 224], strides = [1, 1]} : vector<56x224xf32> to vector<8x224xf32>
    %24 = vector.extract_strided_slice %22 {offsets = [8, 0], sizes = [8, 224], strides = [1, 1]} : vector<56x224xf32> to vector<8x224xf32>
    %25 = vector.extract_strided_slice %22 {offsets = [16, 0], sizes = [8, 224], strides = [1, 1]} : vector<56x224xf32> to vector<8x224xf32>
    %26 = vector.extract_strided_slice %22 {offsets = [24, 0], sizes = [8, 224], strides = [1, 1]} : vector<56x224xf32> to vector<8x224xf32>
    %27 = vector.extract_strided_slice %22 {offsets = [32, 0], sizes = [8, 224], strides = [1, 1]} : vector<56x224xf32> to vector<8x224xf32>
    %28 = vector.extract_strided_slice %22 {offsets = [40, 0], sizes = [8, 224], strides = [1, 1]} : vector<56x224xf32> to vector<8x224xf32>
    %29 = vector.extract_strided_slice %22 {offsets = [48, 0], sizes = [8, 224], strides = [1, 1]} : vector<56x224xf32> to vector<8x224xf32>
    %30 = tpu.concatenate %23, %24, %25, %26, %27, %28, %29 in 1 : vector<8x224xf32>, vector<8x224xf32>, vector<8x224xf32>, vector<8x224xf32>, vector<8x224xf32>, vector<8x224xf32>, vector<8x224xf32> -> vector<8x1568xf32>
    %31 = arith.truncf %30 : vector<8x1568xf32> to vector<8x1568xbf16>
    %c0_13 = arith.constant 0 : index
    %c0_14 = arith.constant 0 : index
    %32 = vector.load %arg6[%c0_13, %c0_14] : memref<1568x64xbf16, #tpu.memory_space<vmem>>, vector<1568x64xbf16>
    %cst_15 = arith.constant dense<0.000000e+00> : vector<8x64xf32>
    %33 = tpu.matmul %31, %32, %cst_15 {dimension_numbers = #tpu.dot_dimension_numbers<[1], [0], [0], [1], [0, 0, 1, 1], [], []>} : vector<8x1568xbf16>, vector<1568x64xbf16>, vector<8x64xf32> -> vector<8x64xf32>
    %c0_16 = arith.constant 0 : index
    %c0_17 = arith.constant 0 : index
    %34 = vector.load %arg7[%c0_16, %c0_17] : memref<1x64xf32, #tpu.memory_space<vmem>>, vector<1x64xf32>
    %35 = vector.broadcast %34 : vector<1x64xf32> to vector<8x64xf32>
    %36 = arith.addf %33, %35 : vector<8x64xf32>
    %c0_18 = arith.constant 0 : index
    %c0_19 = arith.constant 0 : index
    %37 = vector.load %arg15[%c0_18, %c0_19] : memref<8x64xf32, #tpu.memory_space<vmem>>, vector<8x64xf32>
    tpu.vector_store %arg15[%c0_18, %c0_19], %36 {strides = array<i32>} : memref<8x64xf32, #tpu.memory_space<vmem>>, vector<8x64xf32>,
    %38 = arith.truncf %36 : vector<8x64xf32> to vector<8x64xbf16>
    %c0_20 = arith.constant 0 : index
    %c0_21 = arith.constant 0 : index
    %39 = vector.load %arg8[%c0_20, %c0_21] : memref<64x1568xbf16, #tpu.memory_space<vmem>>, vector<64x1568xbf16>
    %cst_22 = arith.constant dense<0.000000e+00> : vector<8x1568xf32>
    %40 = tpu.matmul %38, %39, %cst_22 {dimension_numbers = #tpu.dot_dimension_numbers<[1], [0], [0], [1], [0, 0, 1, 1], [], []>} : vector<8x64xbf16>, vector<64x1568xbf16>, vector<8x1568xf32> -> vector<8x1568xf32>
    %c0_23 = arith.constant 0 : index
    %c0_24 = arith.constant 0 : index
    %41 = vector.load %arg9[%c0_23, %c0_24] : memref<1x1568xf32, #tpu.memory_space<vmem>>, vector<1x1568xf32>
    %42 = vector.broadcast %41 : vector<1x1568xf32> to vector<8x1568xf32>
    %43 = arith.addf %40, %42 : vector<8x1568xf32>
    %cst_25 = arith.constant 0.000000e+00 : f32
    %44 = vector.broadcast %cst_25 : f32 to vector<8x1568xf32>
    %45 = arith.maximumf %43, %44 : vector<8x1568xf32>
    %46 = vector.extract_strided_slice %45 {offsets = [0, 0], sizes = [8, 224], strides = [1, 1]} : vector<8x1568xf32> to vector<8x224xf32>
    %47 = vector.extract_strided_slice %45 {offsets = [0, 224], sizes = [8, 224], strides = [1, 1]} : vector<8x1568xf32> to vector<8x224xf32>
    %48 = vector.extract_strided_slice %45 {offsets = [0, 448], sizes = [8, 224], strides = [1, 1]} : vector<8x1568xf32> to vector<8x224xf32>
    %49 = vector.extract_strided_slice %45 {offsets = [0, 672], sizes = [8, 224], strides = [1, 1]} : vector<8x1568xf32> to vector<8x224xf32>
    %50 = vector.extract_strided_slice %45 {offsets = [0, 896], sizes = [8, 224], strides = [1, 1]} : vector<8x1568xf32> to vector<8x224xf32>
    %51 = vector.extract_strided_slice %45 {offsets = [0, 1120], sizes = [8, 224], strides = [1, 1]} : vector<8x1568xf32> to vector<8x224xf32>
    %52 = vector.extract_strided_slice %45 {offsets = [0, 1344], sizes = [8, 224], strides = [1, 1]} : vector<8x1568xf32> to vector<8x224xf32>
    %53 = tpu.concatenate %9, %46, %9, %47, %9, %48, %9, %49, %9, %50, %9, %51, %9, %52, %9, %9 in 0 : vector<8x224xf32>, vector<8x224xf32>, vector<8x224xf32>, vector<8x224xf32>, vector<8x224xf32>, vector<8x224xf32>, vector<8x224xf32>, vector<8x224xf32>, vector<8x224xf32>, vector<8x224xf32>, vector<8x224xf32>, vector<8x224xf32>, vector<8x224xf32>, vector<8x224xf32>, vector<8x224xf32>, vector<8x224xf32> -> vector<128x224xf32>
    %54 = vector.extract_strided_slice %53 {offsets = [0, 0], sizes = [112, 224], strides = [1, 1]} : vector<128x224xf32> to vector<112x224xf32>
    %55 = vector.extract_strided_slice %53 {offsets = [8, 0], sizes = [112, 224], strides = [1, 1]} : vector<128x224xf32> to vector<112x224xf32>
    %56 = vector.extract_strided_slice %53 {offsets = [16, 0], sizes = [112, 224], strides = [1, 1]} : vector<128x224xf32> to vector<112x224xf32>
    %57 = tpu.concatenate %54, %55, %56 in 1 : vector<112x224xf32>, vector<112x224xf32>, vector<112x224xf32> -> vector<112x672xf32>
    %58 = arith.truncf %57 : vector<112x672xf32> to vector<112x672xbf16>
    %c0_26 = arith.constant 0 : index
    %c0_27 = arith.constant 0 : index
    %59 = vector.load %arg10[%c0_26, %c0_27] : memref<672x224xbf16, #tpu.memory_space<vmem>>, vector<672x224xbf16>
    %cst_28 = arith.constant dense<0.000000e+00> : vector<112x224xf32>
    %60 = tpu.matmul %58, %59, %cst_28 {dimension_numbers = #tpu.dot_dimension_numbers<[1], [0], [0], [1], [0, 0, 1, 1], [], []>} : vector<112x672xbf16>, vector<672x224xbf16>, vector<112x224xf32> -> vector<112x224xf32>
    %c0_29 = arith.constant 0 : index
    %c0_30 = arith.constant 0 : index
    %61 = vector.load %arg11[%c0_29, %c0_30] : memref<1x224xf32, #tpu.memory_space<vmem>>, vector<1x224xf32>
    %62 = vector.broadcast %61 : vector<1x224xf32> to vector<112x224xf32>
    %63 = arith.addf %60, %62 : vector<112x224xf32>
    %cst_31 = arith.constant 0.000000e+00 : f32
    %64 = vector.broadcast %cst_31 : f32 to vector<112x224xf32>
    %65 = arith.maximumf %63, %64 : vector<112x224xf32>
    %66 = vector.extract_strided_slice %65 {offsets = [0, 0], sizes = [8, 224], strides = [1, 1]} : vector<112x224xf32> to vector<8x224xf32>
    %67 = vector.extract_strided_slice %65 {offsets = [8, 0], sizes = [8, 224], strides = [1, 1]} : vector<112x224xf32> to vector<8x224xf32>
    %68 = vector.extract_strided_slice %65 {offsets = [16, 0], sizes = [8, 224], strides = [1, 1]} : vector<112x224xf32> to vector<8x224xf32>
    %69 = vector.extract_strided_slice %65 {offsets = [24, 0], sizes = [8, 224], strides = [1, 1]} : vector<112x224xf32> to vector<8x224xf32>
    %70 = vector.extract_strided_slice %65 {offsets = [32, 0], sizes = [8, 224], strides = [1, 1]} : vector<112x224xf32> to vector<8x224xf32>
    %71 = vector.extract_strided_slice %65 {offsets = [40, 0], sizes = [8, 224], strides = [1, 1]} : vector<112x224xf32> to vector<8x224xf32>
    %72 = vector.extract_strided_slice %65 {offsets = [48, 0], sizes = [8, 224], strides = [1, 1]} : vector<112x224xf32> to vector<8x224xf32>
    %73 = vector.extract_strided_slice %65 {offsets = [56, 0], sizes = [8, 224], strides = [1, 1]} : vector<112x224xf32> to vector<8x224xf32>
    %74 = vector.extract_strided_slice %65 {offsets = [64, 0], sizes = [8, 224], strides = [1, 1]} : vector<112x224xf32> to vector<8x224xf32>
    %75 = vector.extract_strided_slice %65 {offsets = [72, 0], sizes = [8, 224], strides = [1, 1]} : vector<112x224xf32> to vector<8x224xf32>
    %76 = vector.extract_strided_slice %65 {offsets = [80, 0], sizes = [8, 224], strides = [1, 1]} : vector<112x224xf32> to vector<8x224xf32>
    %77 = vector.extract_strided_slice %65 {offsets = [88, 0], sizes = [8, 224], strides = [1, 1]} : vector<112x224xf32> to vector<8x224xf32>
    %78 = vector.extract_strided_slice %65 {offsets = [96, 0], sizes = [8, 224], strides = [1, 1]} : vector<112x224xf32> to vector<8x224xf32>
    %79 = vector.extract_strided_slice %65 {offsets = [104, 0], sizes = [8, 224], strides = [1, 1]} : vector<112x224xf32> to vector<8x224xf32>
    %80 = tpu.concatenate %9, %66, %9, %67, %9, %68, %9, %69, %9, %70, %9, %71, %9, %72, %9, %73 in 0 : vector<8x224xf32>, vector<8x224xf32>, vector<8x224xf32>, vector<8x224xf32>, vector<8x224xf32>, vector<8x224xf32>, vector<8x224xf32>, vector<8x224xf32>, vector<8x224xf32>, vector<8x224xf32>, vector<8x224xf32>, vector<8x224xf32>, vector<8x224xf32>, vector<8x224xf32>, vector<8x224xf32>, vector<8x224xf32> -> vector<128x224xf32>
    %81 = tpu.concatenate %9, %74, %9, %75, %9, %76, %9, %77, %9, %78, %9, %79, %9, %9 in 0 : vector<8x224xf32>, vector<8x224xf32>, vector<8x224xf32>, vector<8x224xf32>, vector<8x224xf32>, vector<8x224xf32>, vector<8x224xf32>, vector<8x224xf32>, vector<8x224xf32>, vector<8x224xf32>, vector<8x224xf32>, vector<8x224xf32>, vector<8x224xf32>, vector<8x224xf32> -> vector<112x224xf32>
    %82 = tpu.concatenate %80, %81 in 0 : vector<128x224xf32>, vector<112x224xf32> -> vector<240x224xf32>
    %83 = vector.extract_strided_slice %82 {offsets = [0, 0], sizes = [224, 224], strides = [1, 1]} : vector<240x224xf32> to vector<224x224xf32>
    %84 = vector.extract_strided_slice %82 {offsets = [8, 0], sizes = [224, 224], strides = [1, 1]} : vector<240x224xf32> to vector<224x224xf32>
    %85 = vector.extract_strided_slice %82 {offsets = [16, 0], sizes = [224, 224], strides = [1, 1]} : vector<240x224xf32> to vector<224x224xf32>
    %86 = tpu.concatenate %83, %84, %85 in 1 : vector<224x224xf32>, vector<224x224xf32>, vector<224x224xf32> -> vector<224x672xf32>
    %87 = arith.truncf %86 : vector<224x672xf32> to vector<224x672xbf16>
    %c0_32 = arith.constant 0 : index
    %c0_33 = arith.constant 0 : index
    %88 = vector.load %arg12[%c0_32, %c0_33] : memref<672x84xbf16, #tpu.memory_space<vmem>>, vector<672x84xbf16>
    %cst_34 = arith.constant dense<0.000000e+00> : vector<224x84xf32>
    %89 = tpu.matmul %87, %88, %cst_34 {dimension_numbers = #tpu.dot_dimension_numbers<[1], [0], [0], [1], [0, 0, 1, 1], [], []>} : vector<224x672xbf16>, vector<672x84xbf16>, vector<224x84xf32> -> vector<224x84xf32>
    %c0_35 = arith.constant 0 : index
    %c0_36 = arith.constant 0 : index
    %90 = vector.load %arg13[%c0_35, %c0_36] : memref<1x84xf32, #tpu.memory_space<vmem>>, vector<1x84xf32>
    %91 = vector.broadcast %90 : vector<1x84xf32> to vector<224x84xf32>
    %92 = arith.addf %89, %91 : vector<224x84xf32>
    %93 = arith.negf %92 : vector<224x84xf32>
    %94 = math.exp %93 : vector<224x84xf32>
    %cst_37 = arith.constant 1.000000e+00 : f32
    %95 = vector.broadcast %cst_37 : f32 to vector<224x84xf32>
    %96 = arith.addf %95, %94 : vector<224x84xf32>
    %97 = arith.divf %95, %96 : vector<224x84xf32>
    %c0_38 = arith.constant 0 : index
    %c0_39 = arith.constant 0 : index
    %98 = vector.load %arg14[%c0_38, %c0_39] : memref<224x84xf32, #tpu.memory_space<vmem>>, vector<224x84xf32>
    tpu.vector_store %arg14[%c0_38, %c0_39], %97 {strides = array<i32>} : memref<224x84xf32, #tpu.memory_space<vmem>>, vector<224x84xf32>,
    return
  }
  func.func @transform_0(%arg0: i32) -> (i32, i32) {
    %c0_i32 = arith.constant 0 : i32
    %c0_i32_0 = arith.constant 0 : i32
    return %arg0, %c0_i32 : i32, i32
  }
  func.func @transform_1(%arg0: i32) -> (i32, i32) {
    %c0_i32 = arith.constant 0 : i32
    %c0_i32_0 = arith.constant 0 : i32
    %c0_i32_1 = arith.constant 0 : i32
    return %c0_i32, %c0_i32_0 : i32, i32
  }
  func.func @transform_2(%arg0: i32) -> (i32, i32) {
    %c0_i32 = arith.constant 0 : i32
    %c0_i32_0 = arith.constant 0 : i32
    %c0_i32_1 = arith.constant 0 : i32
    return %c0_i32, %c0_i32_0 : i32, i32
  }
  func.func @transform_3(%arg0: i32) -> (i32, i32) {
    %c0_i32 = arith.constant 0 : i32
    %c0_i32_0 = arith.constant 0 : i32
    %c0_i32_1 = arith.constant 0 : i32
    return %c0_i32, %c0_i32_0 : i32, i32
  }
  func.func @transform_4(%arg0: i32) -> (i32, i32) {
    %c0_i32 = arith.constant 0 : i32
    %c0_i32_0 = arith.constant 0 : i32
    %c0_i32_1 = arith.constant 0 : i32
    return %c0_i32, %c0_i32_0 : i32, i32
  }
  func.func @transform_5(%arg0: i32) -> (i32, i32) {
    %c0_i32 = arith.constant 0 : i32
    %c0_i32_0 = arith.constant 0 : i32
    %c0_i32_1 = arith.constant 0 : i32
    return %c0_i32, %c0_i32_0 : i32, i32
  }
  func.func @transform_6(%arg0: i32) -> (i32, i32) {
    %c0_i32 = arith.constant 0 : i32
    %c0_i32_0 = arith.constant 0 : i32
    %c0_i32_1 = arith.constant 0 : i32
    return %c0_i32, %c0_i32_0 : i32, i32
  }
  func.func @transform_7(%arg0: i32) -> (i32, i32) {
    %c0_i32 = arith.constant 0 : i32
    %c0_i32_0 = arith.constant 0 : i32
    %c0_i32_1 = arith.constant 0 : i32
    return %c0_i32, %c0_i32_0 : i32, i32
  }
  func.func @transform_8(%arg0: i32) -> (i32, i32) {
    %c0_i32 = arith.constant 0 : i32
    %c0_i32_0 = arith.constant 0 : i32
    %c0_i32_1 = arith.constant 0 : i32
    return %c0_i32, %c0_i32_0 : i32, i32
  }
  func.func @transform_9(%arg0: i32) -> (i32, i32) {
    %c0_i32 = arith.constant 0 : i32
    %c0_i32_0 = arith.constant 0 : i32
    %c0_i32_1 = arith.constant 0 : i32
    return %c0_i32, %c0_i32_0 : i32, i32
  }
  func.func @transform_10(%arg0: i32) -> (i32, i32) {
    %c0_i32 = arith.constant 0 : i32
    %c0_i32_0 = arith.constant 0 : i32
    %c0_i32_1 = arith.constant 0 : i32
    return %c0_i32, %c0_i32_0 : i32, i32
  }
  func.func @transform_11(%arg0: i32) -> (i32, i32) {
    %c0_i32 = arith.constant 0 : i32
    %c0_i32_0 = arith.constant 0 : i32
    %c0_i32_1 = arith.constant 0 : i32
    return %c0_i32, %c0_i32_0 : i32, i32
  }
  func.func @transform_12(%arg0: i32) -> (i32, i32) {
    %c0_i32 = arith.constant 0 : i32
    %c0_i32_0 = arith.constant 0 : i32
    %c0_i32_1 = arith.constant 0 : i32
    return %c0_i32, %c0_i32_0 : i32, i32
  }
  func.func @transform_13(%arg0: i32) -> (i32, i32) {
    %c0_i32 = arith.constant 0 : i32
    %c0_i32_0 = arith.constant 0 : i32
    return %arg0, %c0_i32 : i32, i32
  }
  func.func @transform_14(%arg0: i32) -> (i32, i32) {
    %c0_i32 = arith.constant 0 : i32
    %c0_i32_0 = arith.constant 0 : i32
    return %arg0, %c0_i32 : i32, i32
  }
}

</mosaic_0001>

<bundles_post_ra>
// kernel: conv_autoencoder_forward.1
= control target key start
LH: loop header
LB: loop body
LE: loop exit
PB: predicated region body
PF: predicated region fallthrough
CT: control target
= control target key end

     0   :  { %s13806_s0 = inlined_call_operand.vmem [shape: f32[224,252], index: 0, kind: input, shape index: {}]   ;;  %s13807_s1 = inlined_call_operand.vmem [shape: bf16[252,224], index: 1, kind: input, shape index: {}]   ;;  %s13808_s2 = inlined_call_operand.vmem [shape: f32[1,224], index: 2, kind: input, shape index: {}]   ;;  %s13809_s3 = inlined_call_operand.vmem [shape: bf16[672,224], index: 3, kind: input, shape index: {}]   ;;  %s13810_s4 = inlined_call_operand.vmem [shape: f32[1,224], index: 4, kind: input, shape index: {}]   ;;  %s13811_s5 = inlined_call_operand.vmem [shape: bf16[1568,64], index: 5, kind: input, shape index: {}]   ;;  %s13812_s6 = inlined_call_operand.vmem [shape: f32[1,64], index: 6, kind: input, shape index: {}]   ;;  %s13813_s7 = inlined_call_operand.vmem [shape: bf16[64,1568], index: 7, kind: input, shape index: {}]   ;;  %s13814_s8 = inlined_call_operand.vmem [shape: f32[1,1568], index: 8, kind: input, shape index: {}]   ;;  %s13815_s9 = inlined_call_operand.vmem [shape: bf16[672,224], index: 9, kind: input, shape index: {}]   ;;  %s13816_s10 = inlined_call_operand.vmem [shape: f32[1,224], index: 10, kind: input, shape index: {}]   ;;  %s13817_s11 = inlined_call_operand.vmem [shape: bf16[672,84], index: 11, kind: input, shape index: {}]   ;;  %s13818_s12 = inlined_call_operand.vmem [shape: f32[1,84], index: 12, kind: input, shape index: {}]   ;;  %s13819_s13 = inlined_call_operand.vmem [shape: f32[448,84], index: 13, kind: output, shape index: {0}]   ;;  %s13820_s14 = inlined_call_operand.hbm [shape: f32[16,64], index: 14, kind: output, shape index: {1}]  }
   0x1   :  { %13849 = sst [smem:[#allocation21_spill]] %s13806_s0 }
   0x2   :  { %13850 = sst [smem:[#allocation22_spill]] %s13807_s1 }
   0x3   :  { %20 = vsyncpa [#allocation3], 0 }
   0x4   :  { %22 = vsyncpa [#allocation3 + $0x1], 0  ;;  %s9482_s29 = smov 0   ;;  %s9484_s30 = smov 0  }
   0x5   :  { %s9486_s15 = smov 0   ;;  %s9488_s16 = smov 0  }
   0x6 LB: > { %13851 = sst [smem:[#allocation5_spill]] %s9388_s29  ;;  %s9503_s17 = sadd.s32 4294967295, %s9400_s16   ;;  %s9400_s16 = sphi %s9488_s16, %s13900_s16   ;;  %s9396_s15 = sphi %s9486_s15, %s13902_s15   ;;  %s9392_s30 = sphi %s9484_s30, %s13904_s30   ;;  %s9388_s29 = sphi %s9482_s29, %s13903_s29  }
   0x7   : > { %13852 = sst [smem:[#allocation6_spill]] %s9396_s15  ;;  %s6805_s18 = sadd.s32 4294967294, %s9400_s16  }
   0x8   : > { %s9507_s19 = sadd.s32 1, %s9400_s16   ;;  %s339_s20 = sadd.s32 1, %s9396_s15 }
   0x9   : > { %13853 = sst [smem:[#allocation7_spill]] %s9507_s19  ;;  %s336_s21 = ssub.s32 %s9400_s16, %s9507_s19 }
   0xa   : > { %p349_p0 = scmp.ne.s32.totalorder %s9396_s15, %s9392_s30  ;;  %p337_p1 = scmp.eq.s32.totalorder %s336_s21, 0 }
   0xb   : > { %p350_p2 = scmp.eq.s32.totalorder %s9503_s17, 1  ;;  %p355_p3 = scmp.ne.s32.totalorder %s9392_s30, %s9388_s29 }
   0xc   : > { %p356_p4 = scmp.eq.s32.totalorder %s6805_s18, 1  ;;  %p6808_p7 = scmp.ge.s32.totalorder %s9400_s16, 1 }
   0xd   : > { %s9518_s22 = scalar_select %p337_p1, %s9396_s15, %s339_s20  }
   0xe   : > { %p9520_p5 = por %p350_p2, %p349_p0  ;;  %p9524_p6 = por %p356_p4, %p355_p3 }
   0xf   : > { %13854 = sst [smem:[#allocation8_spill]] %s9518_s22  ;;  %p420_p8 = scmp.lt.s32.totalorder %s9400_s16, 3 }
  0x10   : > { %s13856_s24 = scalar_select %p9524_p6, 1, 0 }
  0x11   : > { %p421_p9 = pnand %p6808_p7, %p420_p8 }
  0x12   : > { %13857 = sst [smem:[#allocation9_spill]] %s13856_s24 }
  0x13   : > { %424 = sbr.rel (%p421_p9) target bundleno = 2412 (0x96c), region = 72 }
  0x18   : > { %s13858_s1 = sld [smem:[#allocation22_spill]]  ;;  %vm746_vm0 = vcmask 1045504   ;;  %s472_s22 = smul.u32 14, %s9503_s17  ;;  %vm724_vm1 = vcmask 1014784   ;;  %vm999_vm2 = vcmask 785408   ;;  %vm1070_vm4 = vcmask 523264  }
  0x19   : > { %s13859_s0 = sld [smem:[#allocation21_spill]]  ;;  %s13828_s18 = smov 64   ;;  %vm10262_vm3 = vmneg %vm999_vm2  ;;  %vm9405_vm5 = vmmov 1   ;;  %vm1647_vm7 = vcmask 261120   ;;  %vm6667_vm11 = vcmask 687104  }
  0x1a   : > { %p473_p10 = scmp.lt.s32.totalorder %s472_s22, 27  ;;  %s13826_s19 = smov 96   ;;  %vm10280_vm6 = vmpackc.low %vm9405_vm5, %vm10262_vm3 }
  0x1b   : > { %s13864_s21 = smov 96   ;;  %s8594_s25 = sshll.u32 %s9503_s17, 3 }
  0x1c   : > { %s13906_s22 = smov (!%p473_p10, %s472_s22), 27  ;;  %s13896_s20 = sand.u32 1, %s9392_s30  }
  0x1d   : > { %s8597_s28 = sshll.u32 %s13906_s22, 4  ;;  %s13832_s22 = sand.u32 1, %s9392_s30  }
  0x1e   : > { %v6871_v0 = vld [vmem:[%s13858_s1 + $0x70] sm:$0xf]  ;;  %v8613_v1 = vld [vmem:[%s13858_s1 + $0x74] sm:$0xf0]  ;;  %v6863_v5 = vld [vmem:[%s13858_s1 + $0x60] sm:$0xf] }
  0x1f   : > { %v6935_v2 = vld [vmem:[%s13858_s1 + $0xf0] sm:$0xf]  ;;  %v6872_v3 = vor.u32 %v8613_v1, %v6871_v0  ;;  %v8629_v4 = vld [vmem:[%s13858_s1 + $0xf4] sm:$0x30]  ;;  %v8611_v7 = vld [vmem:[%s13858_s1 + $0x64] sm:$0xf0]  ;;  %s9625_s29 = scalar_lea.vmem %s13859_s0, %s8597_s28 }
  0x20   : > { %v6936_v6 = vor.u32 %v8629_v4, %v6935_v2  ;;  %v6927_v8 = vld [vmem:[%s13858_s1 + $0xe0] sm:$0xf]  ;;  %v8627_v9 = vld [vmem:[%s13858_s1 + $0xe4] sm:$0xf0]  ;;  %v6864_v10 = vor.u32 %v8611_v7, %v6863_v5  ;;  %v6855_v12 = vld [vmem:[%s13858_s1 + $0x50] sm:$0xf] }
  0x21   : > { %753 = vmatpush.bf16.msra.mxu0 %v6872_v3  ;;  %v8609_v13 = vld [vmem:[%s13858_s1 + $0x54] sm:$0xf0]  ;;  %v6928_v14 = vor.u32 %v8627_v9, %v6927_v8  ;;  %v6919_v15 = vld [vmem:[%s13858_s1 + $0xd0] sm:$0xf]  ;;  %v6847_v18 = vld [vmem:[%s13858_s1 + $0x40] sm:$0xf] }
  0x22   : > { %v748_v11 = vsel %vm746_vm0, %v6936_v6, 0  ;;  %v8625_v16 = vld [vmem:[%s13858_s1 + $0xd4] sm:$0xf0]  ;;  %v6856_v17 = vor.u32 %v8609_v13, %v6855_v12  ;;  %v8607_v19 = vld [vmem:[%s13858_s1 + $0x44] sm:$0xf0]  ;;  %v486_v52 = vld [vmem:[%s9625_s29] sm:$0xff] }
  0x23   : > { %797 = vmatpush.bf16.msra.mxu1 %v748_v11  ;;  %v6920_v20 = vor.u32 %v8625_v16, %v6919_v15  ;;  %v6911_v21 = vld [vmem:[%s13858_s1 + $0xc0] sm:$0xf]  ;;  %v8623_v22 = vld [vmem:[%s13858_s1 + $0xc4] sm:$0xf0]  ;;  %v6848_v23 = vor.u32 %v8607_v19, %v6847_v18  ;;  %v6839_v24 = vld [vmem:[%s13858_s1 + $0x30] sm:$0xf] }
  0x24   : > { %v8605_v25 = vld [vmem:[%s13858_s1 + $0x34] sm:$0xf0]  ;;  %v6912_v26 = vor.u32 %v8623_v22, %v6911_v21  ;;  %v6903_v27 = vld [vmem:[%s13858_s1 + $0xb0] sm:$0xf]  ;;  %v6831_v30 = vld [vmem:[%s13858_s1 + $0x20] sm:$0xf] }
  0x25   : > { %754 = vmatpush.bf16.msra.mxu0 %v6864_v10  ;;  %v8621_v28 = vld [vmem:[%s13858_s1 + $0xb4] sm:$0xf0]  ;;  %v6840_v29 = vor.u32 %v8605_v25, %v6839_v24  ;;  %v8603_v31 = vld [vmem:[%s13858_s1 + $0x24] sm:$0xf0]  ;;  %v6895_v33 = vld [vmem:[%s13858_s1 + $0xa0] sm:$0xf] }
  0x26   : > { %v6904_v32 = vor.u32 %v8621_v28, %v6903_v27  ;;  %v8619_v34 = vld [vmem:[%s13858_s1 + $0xa4] sm:$0xf0]  ;;  %v6832_v35 = vor.u32 %v8603_v31, %v6831_v30  ;;  %v6823_v36 = vld [vmem:[%s13858_s1 + $0x10] sm:$0xf]  ;;  %v8601_v37 = vld [vmem:[%s13858_s1 + $0x14] sm:$0xf0] }
  0x27   : > { %798 = vmatpush.bf16.msra.mxu1 %v6928_v14  ;;  %v6896_v38 = vor.u32 %v8619_v34, %v6895_v33  ;;  %v6887_v39 = vld [vmem:[%s13858_s1 + $0x90] sm:$0xf]  ;;  %v8617_v40 = vld [vmem:[%s13858_s1 + $0x94] sm:$0xf0]  ;;  %v6824_v41 = vor.u32 %v8601_v37, %v6823_v36  ;;  %v6815_v42 = vld [vmem:[%s13858_s1] sm:$0xf] }
  0x28   : > { %v8599_v43 = vld [vmem:[%s13858_s1 + $0x4] sm:$0xf0]  ;;  %v8628_v44 = vld [vmem:[%s13858_s1 + $0xf4] sm:$0xf]  ;;  %v6937_v45 = vld [vmem:[%s13858_s1 + $0xf8] sm:$0x30]  ;;  %v6888_v46 = vor.u32 %v8617_v40, %v6887_v39 }
  0x29   : > { %755 = vmatpush.bf16.msra.mxu0 %v6856_v17  ;;  %v8612_v47 = vld [vmem:[%s13858_s1 + $0x74] sm:$0xf]  ;;  %v6873_v48 = vld [vmem:[%s13858_s1 + $0x78] sm:$0xf0]  ;;  %v6879_v49 = vld [vmem:[%s13858_s1 + $0x80] sm:$0xf]  ;;  %v6816_v51 = vor.u32 %v8599_v43, %v6815_v42  ;;  %v6940_v54 = vor.u32 %v8628_v44, %v6937_v45 }
  0x2a   : > { %v8615_v50 = vld [vmem:[%s13858_s1 + $0x84] sm:$0xf0]  ;;  %v488_v53 = vld [vmem:[%s9625_s29 + $0x10] sm:$0xff]  ;;  %v6876_v55 = vor.u32 %v8612_v47, %v6873_v48  ;;  %v8610_v56 = vld [vmem:[%s13858_s1 + $0x64] sm:$0xf]  ;;  %s13830_s28 = smov 32  }
  0x2b   : > { %799 = vmatpush.bf16.msra.mxu1 %v6920_v20  ;;  %v6880_v57 = vor.u32 %v8615_v50, %v6879_v49  ;;  %v487_v58 = vld [vmem:[%s9625_s29 + $0x8] sm:$0xff]  ;;  %v489_v59 = vld [vmem:[%s9625_s29 + $0x18] sm:$0xff]  ;;  %v9655_v61 = vpack.c.bf16 %v488_v53, %v486_v52  ;;  %v751_v62 = vsel %vm746_vm0, %v6940_v54, 0  ;;  %v8626_v63 = vld [vmem:[%s13858_s1 + $0xe4] sm:$0xf]  ;;  %s11287_s24 = sshll.u32 %s13832_s22, 3 }
  0x2c   : > { %v6865_v60 = vld [vmem:[%s13858_s1 + $0x68] sm:$0xf0]  ;;  %v9664_v1 = vpack.c.bf16 %v489_v59, %v487_v58  ;;  %v8608_v3 = vld [vmem:[%s13858_s1 + $0x54] sm:$0xf]  ;;  %v6857_v4 = vld [vmem:[%s13858_s1 + $0x58] sm:$0xf0] }
  0x2d   : > { %756 = vmatpush.bf16.msra.mxu0 %v6848_v23  ;;  %v6929_v0 = vld [vmem:[%s13858_s1 + $0xe8] sm:$0xf0]  ;;  %v6868_v2 = vor.u32 %v8610_v56, %v6865_v60  ;;  %v8624_v6 = vld [vmem:[%s13858_s1 + $0xd4] sm:$0xf]  ;;  %v6921_v7 = vld [vmem:[%s13858_s1 + $0xd8] sm:$0xf0]  ;;  %v6860_v8 = vor.u32 %v8608_v3, %v6857_v4 }
  0x2e   : > { %v6932_v5 = vor.u32 %v8626_v63, %v6929_v0  ;;  %v8606_v9 = vld [vmem:[%s13858_s1 + $0x44] sm:$0xf]  ;;  %v6849_v10 = vld [vmem:[%s13858_s1 + $0x48] sm:$0xf0]  ;;  %v6924_v11 = vor.u32 %v8624_v6, %v6921_v7  ;;  %v492_v17 = vld [vmem:[%s9625_s29 + $0x30] sm:$0xff]  ;;  %s13833_s27 = scalar_lea.vmem [#allocation2], %s11287_s24 }
  0x2f   : > { %800 = vmatpush.bf16.msra.mxu1 %v6912_v26  ;;  %v8622_v12 = vld [vmem:[%s13858_s1 + $0xc4] sm:$0xf]  ;;  %v6913_v13 = vld [vmem:[%s13858_s1 + $0xc8] sm:$0xf0]  ;;  %v6852_v14 = vor.u32 %v8606_v9, %v6849_v10  ;;  %v493_v19 = vld [vmem:[%s9625_s29 + $0x38] sm:$0xff]  ;;  %s13895_s0 = scalar_lea.vmem [#allocation2], %s11287_s24 }
  0x30   : > { %v6916_v15 = vor.u32 %v8622_v12, %v6913_v13  ;;  %v490_v16 = vld [vmem:[%s9625_s29 + $0x20] sm:$0xff]  ;;  %v491_v18 = vld [vmem:[%s9625_s29 + $0x28] sm:$0xff]  ;;  %v8604_v22 = vld [vmem:[%s13858_s1 + $0x34] sm:$0xf]  ;;  %s6702_s24 = scalar_lea.sflag [#allocation3], %s13896_s20  ;;  %s9358_s22 = scalar_lea.hbm %s13820_s14, 16 }
  0x31   : > { %757 = vmatpush.bf16.msra.mxu0 %v6840_v29  ;;  %v9697_v20 = vpack.c.bf16 %v492_v17, %v490_v16  ;;  %v9699_v21 = vpack.c.bf16 %v493_v19, %v491_v18  ;;  %v6841_v23 = vld [vmem:[%s13858_s1 + $0x38] sm:$0xf0]  ;;  %v8620_v24 = vld [vmem:[%s13858_s1 + $0xb4] sm:$0xf]  ;;  %v494_v28 = vld [vmem:[%s9625_s29 + $0x40] sm:$0xff] }
  0x32   : > { %v6844_v25 = vor.u32 %v8604_v22, %v6841_v23  ;;  %v6905_v26 = vld [vmem:[%s13858_s1 + $0xb8] sm:$0xf0]  ;;  %v496_v29 = vld [vmem:[%s9625_s29 + $0x50] sm:$0xff]  ;;  %v495_v30 = vld [vmem:[%s9625_s29 + $0x48] sm:$0xff] }
  0x33   : > { %801 = vmatpush.bf16.msra.mxu1 %v6904_v32  ;;  %v6908_v27 = vor.u32 %v8620_v24, %v6905_v26  ;;  %v497_v31 = vld [vmem:[%s9625_s29 + $0x58] sm:$0xff]  ;;  %v9720_v32 = vpack.c.bf16 %v496_v29, %v494_v28  ;;  %v8602_v34 = vld [vmem:[%s13858_s1 + $0x24] sm:$0xf]  ;;  %v499_v42 = vld [vmem:[%s9625_s29 + $0x68] sm:$0xff] }
  0x34   : > { %v9722_v33 = vpack.c.bf16 %v497_v31, %v495_v30  ;;  %v8618_v36 = vld [vmem:[%s13858_s1 + $0xa4] sm:$0xf]  ;;  %v501_v43 = vld [vmem:[%s9625_s29 + $0x78] sm:$0xff]  ;;  %v8616_v48 = vld [vmem:[%s13858_s1 + $0x94] sm:$0xf] }
  0x35   : > { %758 = vmatpush.bf16.msra.mxu0 %v6832_v35  ;;  %v6833_v35 = vld [vmem:[%s13858_s1 + $0x28] sm:$0xf0]  ;;  %v498_v40 = vld [vmem:[%s9625_s29 + $0x60] sm:$0xff]  ;;  %v9745_v45 = vpack.c.bf16 %v501_v43, %v499_v42  ;;  %v6825_v47 = vld [vmem:[%s13858_s1 + $0x18] sm:$0xf0] }
  0x36   : > { %v6836_v37 = vor.u32 %v8602_v34, %v6833_v35  ;;  %v6889_v50 = vld [vmem:[%s13858_s1 + $0x98] sm:$0xf0]  ;;  %v502_v52 = vld [vmem:[%s9625_s29 + $0x80] sm:$0xff]  ;;  %v504_v53 = vld [vmem:[%s9625_s29 + $0x90] sm:$0xff] }
  0x37   : > { %802 = vmatpush.bf16.msra.mxu1 %v6896_v38  ;;  %v6897_v38 = vld [vmem:[%s13858_s1 + $0xa8] sm:$0xf0]  ;;  %v9766_v56 = vpack.c.bf16 %v504_v53, %v502_v52  ;;  %v8598_v58 = vld [vmem:[%s13858_s1 + $0x4] sm:$0xf]  ;;  %v508_v3 = vld [vmem:[%s9625_s29 + $0xb0] sm:$0xff] }
  0x38   : > { %v6900_v39 = vor.u32 %v8618_v36, %v6897_v38  ;;  %v503_v54 = vld [vmem:[%s9625_s29 + $0x88] sm:$0xff]  ;;  %v8614_v60 = vld [vmem:[%s13858_s1 + $0x84] sm:$0xf]  ;;  %v512_v9 = vld [vmem:[%s9625_s29 + $0xd0] sm:$0xff] }
  0x39   : > { %759 = vmatpush.bf16.msra.mxu0 %v6824_v41  ;;  %v500_v41 = vld [vmem:[%s9625_s29 + $0x70] sm:$0xff]  ;;  %v6817_v59 = vld [vmem:[%s13858_s1 + $0x8] sm:$0xf0]  ;;  %v8643_v38 = vld [vmem:[%s13809_s3 + $0x64] sm:$0xf0] }
  0x3a   : > { %v9743_v44 = vpack.c.bf16 %v500_v41, %v498_v40  ;;  %v6881_v63 = vld [vmem:[%s13858_s1 + $0x88] sm:$0xf0]  ;;  %v7013_v35 = vld [vmem:[%s13809_s3 + $0x70] sm:$0xf]  ;;  %v8641_v43 = vld [vmem:[%s13809_s3 + $0x54] sm:$0xf0] }
  0x3b   : > { %803 = vmatpush.bf16.msra.mxu1 %v6888_v46  ;;  %v8600_v46 = vld [vmem:[%s13858_s1 + $0x14] sm:$0xf]  ;;  %v6884_v0 = vor.u32 %v8614_v60, %v6881_v63  ;;  %v507_v4 = vld [vmem:[%s9625_s29 + $0xa8] sm:$0xff]  ;;  %v6997_v42 = vld [vmem:[%s13809_s3 + $0x50] sm:$0xf]  ;;  %s13865_s1 = smov 32  }
  0x3c   : > { %v6828_v49 = vor.u32 %v8600_v46, %v6825_v47  ;;  %v511_v10 = vld [vmem:[%s9625_s29 + $0xc8] sm:$0xff]  ;;  %v8637_v52 = vld [vmem:[%s13809_s3 + $0x34] sm:$0xf0] }
  0x3d   : > { %760 = vmatpush.bf16.msra.mxu0 %v6816_v51  ;;  %v6892_v51 = vor.u32 %v8616_v48, %v6889_v50  ;;  %v8639_v46 = vld [vmem:[%s13809_s3 + $0x44] sm:$0xf0] }
  0x3f   : > { %804 = vmatpush.bf16.msra.mxu1 %v6880_v57 }
  0x40   : > { %761 = vmatmul.bf16.vlgmr.msra.gmra.mxu0 %v9655_v61 }
  0x41   : > { %841 = vmatpush.bf16.msrb.mxu0 %v6876_v55  ;;  %v505_v55 = vld [vmem:[%s9625_s29 + $0x98] sm:$0xff] }
  0x42   : > { %6941 = vmatmul.msk.bf16.vlgmr.msra.gmra.mxu1 %vm724_vm1, %v9664_v1  ;;  %v9768_v57 = vpack.c.bf16 %v505_v55, %v503_v54  ;;  %v6973_v55 = vld [vmem:[%s13809_s3 + $0x20] sm:$0xf] }
  0x43   : > { %885 = vmatpush.bf16.msrb.mxu1 %v751_v62  ;;  %v6820_v62 = vor.u32 %v8598_v58, %v6817_v59  ;;  %v8635_v58 = vld [vmem:[%s13809_s3 + $0x24] sm:$0xf0] }
  0x44   : > { %v6974_v59 = vor.u32 %v8635_v58, %v6973_v55 }
  0x45   : > { %842 = vmatpush.bf16.msrb.mxu0 %v6868_v2  ;;  %v506_v2 = vld [vmem:[%s9625_s29 + $0xa0] sm:$0xff] }
  0x46   : > { %v9789_v6 = vpack.c.bf16 %v508_v3, %v506_v2  ;;  %v6957_v2 = vld [vmem:[%s13809_s3] sm:$0xf]  ;;  %v8631_v3 = vld [vmem:[%s13809_s3 + $0x4] sm:$0xf0] }
  0x47   : > { %886 = vmatpush.bf16.msrb.mxu1 %v6932_v5  ;;  %v509_v5 = vld [vmem:[%s9625_s29 + $0xb8] sm:$0xff] }
  0x48   : > { %v9791_v7 = vpack.c.bf16 %v509_v5, %v507_v4  ;;  %v6958_v4 = vor.u32 %v8631_v3, %v6957_v2 }
  0x49   : > { %843 = vmatpush.bf16.msrb.mxu0 %v6860_v8  ;;  %v510_v8 = vld [vmem:[%s9625_s29 + $0xc0] sm:$0xff] }
  0x4a   : > { %v9800_v12 = vpack.c.bf16 %v512_v9, %v510_v8 }
  0x4b   : > { %887 = vmatpush.bf16.msrb.mxu1 %v6924_v11  ;;  %v513_v11 = vld [vmem:[%s9625_s29 + $0xd8] sm:$0xff] }
  0x4c   : > { %v9802_v13 = vpack.c.bf16 %v513_v11, %v511_v10 }
  0x4d   : > { %844 = vmatpush.bf16.msrb.mxu0 %v6852_v14  ;;  %v9813_v14 = vld [vmem:[%s13808_s2] sm:$0x3] }
  0x4f   : > { %888 = vmatpush.bf16.msrb.mxu1 %v6916_v15  ;;  %v9816_v15 = vperm.slane %v9813_v14, 0 }
  0x50   : > { %766 = vmatmul.bf16.gmra.mxu0 %v9697_v20 }
  0x51   : > { %845 = vmatpush.bf16.msrb.mxu0 %v6844_v25 }
  0x52   : > { %6942 = vmatmul.msk.bf16.gmra.mxu1 %vm724_vm1, %v9699_v21 }
  0x53   : > { %889 = vmatpush.bf16.msrb.mxu1 %v6908_v27 }
  0x55   : > { %846 = vmatpush.bf16.msrb.mxu0 %v6836_v37  ;;  %v7005_v37 = vld [vmem:[%s13809_s3 + $0x60] sm:$0xf] }
  0x57   : > { %890 = vmatpush.bf16.msrb.mxu1 %v6900_v39  ;;  %v7006_v39 = vor.u32 %v8643_v38, %v7005_v37 }
  0x59   : > { %847 = vmatpush.bf16.msrb.mxu0 %v6828_v49 }
  0x5b   : > { %891 = vmatpush.bf16.msrb.mxu1 %v6892_v51  ;;  %v6981_v51 = vld [vmem:[%s13809_s3 + $0x30] sm:$0xf] }
  0x5c   : > { %v6982_v54 = vor.u32 %v8637_v52, %v6981_v51 }
  0x5d   : > { %848 = vmatpush.bf16.msrb.mxu0 %v6820_v62 }
  0x5f   : > { %892 = vmatpush.bf16.msrb.mxu1 %v6884_v0 }
  0x60   : > { %771 = vmatmul.bf16.gmra.mxu0 %v9720_v32 }
  0x62   : > { %6943 = vmatmul.msk.bf16.gmra.mxu1 %vm724_vm1, %v9722_v33 }
  0x70   : > { %776 = vmatmul.bf16.gmra.mxu0 %v9743_v44 }
  0x72   : > { %6944 = vmatmul.msk.bf16.gmra.mxu1 %vm724_vm1, %v9745_v45 }
  0x80   : > { %781 = vmatmul.bf16.gmra.mxu0 %v9766_v56 }
  0x82   : > { %6945 = vmatmul.msk.bf16.gmra.mxu1 %vm724_vm1, %v9768_v57 }
  0x90   : > { %786 = vmatmul.bf16.gmra.mxu0 %v9789_v6 }
  0x92   : > { %6946 = vmatmul.msk.bf16.gmra.mxu1 %vm724_vm1, %v9791_v7 }
  0xa0   : > { %791 = vmatmul.bf16.gmra.mxu0 %v9800_v12 }
  0xa2   : > { %6947 = vmatmul.msk.bf16.gmra.mxu1 %vm724_vm1, %v9802_v13 }
  0xb0   : > { %849 = vmatmul.bf16.vlgmr.msrb.gmra.mxu0 %v9655_v61 }
  0xb2   : > { %6948 = vmatmul.msk.bf16.vlgmr.msrb.gmra.mxu1 %vm724_vm1, %v9664_v1 }
  0xbd   : > { %v762_v16 = vpop.f32.mrf.mxu0 }
  0xbe   : > { %v763_v17 = vadd.f32 %v762_v16, %v9816_v15 }
  0xbf   : > { %v806_v18 = vpop.f32.mrf.mxu1 }
  0xc0   : > { %v9819_v19 = vadd.f32 %v806_v18, %v763_v17  ;;  %854 = vmatmul.bf16.gmra.mxu0 %v9697_v20 }
  0xc2   : > { %6949 = vmatmul.msk.bf16.gmra.mxu1 %vm724_vm1, %v9699_v21 }
  0xc5   : > { %v764_v61 = vpop.f32.mrf.mxu0 }
  0xc6   : > { %v765_v1 = vadd.f32 %v764_v61, %v9816_v15 }
  0xc7   : > { %v808_v22 = vpop.f32.mrf.mxu1 }
  0xc8   : > { %v9825_v23 = vadd.f32 %v808_v22, %v765_v1 }
  0xca   : > { %v931_v55 = vmax.f32 %v9825_v23, 0.0 }
  0xcd   : > { %v767_v24 = vpop.f32.mrf.mxu0 }
  0xce   : > { %v768_v25 = vadd.f32 %v767_v24, %v9816_v15 }
  0xcf   : > { %v811_v26 = vpop.f32.mrf.mxu1 }
  0xd0   : > { %v9828_v27 = vadd.f32 %v811_v26, %v768_v25  ;;  %859 = vmatmul.bf16.gmra.mxu0 %v9720_v32  ;;  %v8645_v32 = vld [vmem:[%s13809_s3 + $0x74] sm:$0xf0] }
  0xd2   : > { %6950 = vmatmul.msk.bf16.gmra.mxu1 %vm724_vm1, %v9722_v33  ;;  %v7014_v33 = vor.u32 %v8645_v32, %v7013_v35  ;;  %v7077_v35 = vld [vmem:[%s13809_s3 + $0xf0] sm:$0xf]  ;;  %v8661_v32 = vld [vmem:[%s13809_s3 + $0xf4] sm:$0xf0] }
  0xd4   : > { %1660 = vmatpush.bf16.msra.mxu0 %v7014_v33  ;;  %v7078_v33 = vor.u32 %v8661_v32, %v7077_v35 }
  0xd5   : > { %v769_v20 = vpop.f32.mrf.mxu0 }
  0xd6   : > { %v770_v21 = vadd.f32 %v769_v20, %v9816_v15  ;;  %v13834_v20 = vmov 0.0   ;;  %1688 = vmatpush.bf16.msra.mxu1 %v7078_v33 }
  0xd7   : > { %v813_v28 = vpop.f32.mrf.mxu1 }
  0xd8   : > { %v9834_v29 = vadd.f32 %v813_v28, %v770_v21  ;;  %1661 = vmatpush.bf16.msra.mxu0 %v7006_v39 }
  0xdd   : > { %v772_v30 = vpop.f32.mrf.mxu0 }
  0xde   : > { %v773_v31 = vadd.f32 %v772_v30, %v9816_v15 }
  0xdf   : > { %v816_v34 = vpop.f32.mrf.mxu1 }
  0xe0   : > { %v9843_v36 = vadd.f32 %v816_v34, %v773_v31  ;;  %864 = vmatmul.bf16.gmra.mxu0 %v9743_v44  ;;  %v6998_v44 = vor.u32 %v8641_v43, %v6997_v42  ;;  %v9922_v34 = vperm.slane %v9813_v14, 1  ;;  %v929_v43 = vmax.f32 %v9819_v19, 0.0 }
  0xe2   : > { %6951 = vmatmul.msk.bf16.gmra.mxu1 %vm724_vm1, %v9745_v45  ;;  %1662 = vmatpush.bf16.msra.mxu0 %v6998_v44  ;;  %v6989_v45 = vld [vmem:[%s13809_s3 + $0x40] sm:$0xf]  ;;  %v937_v33 = vmax.f32 %v9843_v36, 0.0 }
  0xe3   : > { %v6990_v47 = vor.u32 %v8639_v46, %v6989_v45 }
  0xe5   : > { %v9854_v40 = vpop.f32.mrf.mxu0 }
  0xe6   : > { %1663 = vmatpush.bf16.msra.mxu0 %v6990_v47 }
  0xe7   : > { %v9856_v41 = vpop.f32.mrf.mxu1 }
  0xea   : > { %1664 = vmatpush.bf16.msra.mxu0 %v6982_v54 }
  0xed   : > { %v777_v48 = vpop.f32.mrf.mxu0 }
  0xee   : > { %v778_v49 = vadd.f32 %v777_v48, %v9816_v15  ;;  %1665 = vmatpush.bf16.msra.mxu0 %v6974_v59  ;;  %v7069_v59 = vld [vmem:[%s13809_s3 + $0xe0] sm:$0xf] }
  0xef   : > { %v821_v50 = vpop.f32.mrf.mxu1 }
  0xf0   : > { %v9877_v53 = vadd.f32 %v821_v50, %v778_v49  ;;  %869 = vmatmul.bf16.gmra.mxu0 %v9766_v56  ;;  %v6965_v56 = vld [vmem:[%s13809_s3 + $0x10] sm:$0xf] }
  0xf2   : > { %6952 = vmatmul.msk.bf16.gmra.mxu1 %vm724_vm1, %v9768_v57  ;;  %v8633_v57 = vld [vmem:[%s13809_s3 + $0x14] sm:$0xf0] }
  0xf3   : > { %v6966_v63 = vor.u32 %v8633_v57, %v6965_v56 }
  0xf5   : > { %v779_v60 = vpop.f32.mrf.mxu0  ;;  %1666 = vmatpush.bf16.msra.mxu0 %v6966_v63 }
  0xf6   : > { %v780_v0 = vadd.f32 %v779_v60, %v9816_v15  ;;  %v8659_v60 = vld [vmem:[%s13809_s3 + $0xe4] sm:$0xf0] }
  0xf7   : > { %v823_v62 = vpop.f32.mrf.mxu1 }
  0xf8   : > { %v824_v8 = vadd.f32 %v823_v62, %v780_v0  ;;  %v7070_v62 = vor.u32 %v8659_v60, %v7069_v59 }
  0xf9   : > { %1667 = vmatpush.bf16.msra.mxu0 %v6958_v4  ;;  %v933_v4 = vmax.f32 %v9828_v27, 0.0 }
  0xfa   : > { %v943_v16 = vmax.f32 %v824_v8, 0.0  ;;  %1689 = vmatpush.bf16.msra.mxu1 %v7070_v62 }
  0xfc   : > { %v9910_v21 = vpack.c.bf16 %v943_v16, %v13834_v20 }
  0xfd   : > { %v782_v5 = vpop.f32.mrf.mxu0 }
  0xfe   : > { %v783_v9 = vadd.f32 %v782_v5, %v9816_v15 }
  0xff   : > { %v826_v10 = vpop.f32.mrf.mxu1 }
 0x100   : > { %v827_v11 = vadd.f32 %v826_v10, %v783_v9  ;;  %874 = vmatmul.bf16.gmra.mxu0 %v9789_v6 }
 0x102   : > { %v945_v17 = vmax.f32 %v827_v11, 0.0  ;;  %6953 = vmatmul.msk.bf16.gmra.mxu1 %vm724_vm1, %v9791_v7 }
 0x104   : > { %v9044_v18 = vpack.i.bf16 %v945_v17, %v943_v16 }
 0x105   : > { %v784_v61 = vpop.f32.mrf.mxu0 }
 0x106   : > { %9045 = vrot.lane.b32.xlu1 %v9044_v18, %s13828_s18  ;;  %v785_v28 = vadd.f32 %v784_v61, %v9816_v15  ;;  %v8657_v18 = vld [vmem:[%s13809_s3 + $0xd4] sm:$0xf0] }
 0x107   : > { %v828_v1 = vpop.f32.mrf.mxu1 }
 0x108   : > { %v9916_v31 = vadd.f32 %v828_v1, %v785_v28 }
 0x10d   : > { %v787_v22 = vpop.f32.mrf.mxu0 }
 0x10e   : > { %v788_v46 = vadd.f32 %v787_v22, %v9816_v15  ;;  %v935_v22 = vmax.f32 %v9834_v29, 0.0 }
 0x10f   : > { %v831_v24 = vpop.f32.mrf.mxu1 }
 0x110   : > { %879 = vmatmul.bf16.gmra.mxu0 %v9800_v12  ;;  %v832_v52 = vadd.f32 %v831_v24, %v788_v46 }
 0x112   : > { %6954 = vmatmul.msk.bf16.gmra.mxu1 %vm724_vm1, %v9802_v13  ;;  %v947_v13 = vmax.f32 %v9916_v31, 0.0  ;;  %v949_v56 = vmax.f32 %v832_v52, 0.0 }
 0x114   : > { %v9933_v39 = vpack.c.bf16 %v947_v13, %v945_v17  ;;  %v7061_v17 = vld [vmem:[%s13809_s3 + $0xd0] sm:$0xf] }
 0x115   : > { %v789_v25 = vpop.f32.mrf.mxu0  ;;  %v7062_v27 = vor.u32 %v8657_v18, %v7061_v17  ;;  %v7141_v17 = vld [vmem:[%s13809_s3 + $0x170] sm:$0xf]  ;;  %v8677_v18 = vld [vmem:[%s13809_s3 + $0x174] sm:$0xf0] }
 0x116   : > { %v790_v44 = vadd.f32 %v789_v25, %v9816_v15 }
 0x117   : > { %v833_v6 = vpop.f32.mrf.mxu1  ;;  %1690 = vmatpush.bf16.msra.mxu1 %v7062_v27  ;;  %v7142_v27 = vor.u32 %v8677_v18, %v7141_v17 }
 0x118   : > { %v9939_v49 = vadd.f32 %v833_v6, %v790_v44 }
 0x119   : > { %1716 = vmatpush.bf16.msra.mxu2 %v7142_v27  ;;  %v8665_v27 = vld [vmem:[%s13809_s3 + $0x114] sm:$0xf0] }
 0x11a   : > { %v951_v19 = vmax.f32 %v9939_v49, 0.0 }
 0x11c   : > { %v9953_v23 = vpack.c.bf16 %v951_v19, %v949_v56 }
 0x11d   : > { %v792_v26 = vpop.f32.mrf.mxu0 }
 0x11e   : > { %v793_v5 = vadd.f32 %v792_v26, %v9816_v15 }
 0x11f   : > { %v836_v7 = vpop.f32.mrf.mxu1 }
 0x120   : > { %1668 = vmatmul.bf16.vlgmr.msra.gmra.mxu0 %v9910_v21  ;;  %v837_v11 = vadd.f32 %v836_v7, %v793_v5 }
 0x122   : > { %v953_v24 = vmax.f32 %v837_v11, 0.0 }
 0x124   : > { %v9967_v7 = vpack.c.bf16 %v953_v24, %v953_v24 }
 0x125   : > { %v9914_v30 = vpop.f32.mrf.mxu0 }
 0x126   : > { %v795_v49 = vadd.f32 %v9914_v30, %v9816_v15  ;;  %v8653_v30 = vld [vmem:[%s13809_s3 + $0xb4] sm:$0xf0] }
 0x127   : > { %v9918_v12 = vpop.f32.mrf.mxu1 }
 0x12d   : > { %v850_v37 = vpop.f32.mrf.mxu0 }
 0x12e   : > { %v851_v38 = vadd.f32 %v850_v37, %v9922_v34  ;;  %v775_v37 = vadd.f32 %v9854_v40, %v9816_v15  ;;  %v7045_v15 = vld [vmem:[%s13809_s3 + $0xb0] sm:$0xf] }
 0x12f   : > { %v894_v42 = vpop.f32.mrf.mxu1 }
 0x130   : > { %v895_v14 = vadd.f32 %v894_v42, %v851_v38  ;;  %1673 = vmatmul.bf16.gmra.mxu0 %v9933_v39  ;;  %v9059_v38 = vpack.i.bf16 %v949_v56, %v947_v13  ;;  %v819_v36 = vadd.f32 %v9856_v41, %v775_v37  ;;  %v7046_v56 = vor.u32 %v8653_v30, %v7045_v15  ;;  %v7173_v15 = vld [vmem:[%s13809_s3 + $0x1b0] sm:$0xf] }
 0x132   : > { %v930_v45 = vmax.f32 %v895_v14, 0.0  ;;  %v7053_v14 = vld [vmem:[%s13809_s3 + $0xc0] sm:$0xf]  ;;  %v939_v13 = vmax.f32 %v819_v36, 0.0  ;;  %v7189_v36 = vld [vmem:[%s13809_s3 + $0x1d0] sm:$0xf] }
 0x134   : > { %v9034_v47 = vpack.i.bf16 %v930_v45, %v929_v43  ;;  %v8655_v43 = vld [vmem:[%s13809_s3 + $0xc4] sm:$0xf0] }
 0x135   : > { %v852_v48 = vpop.f32.mrf.mxu0  ;;  %v7054_v45 = vor.u32 %v8655_v43, %v7053_v14  ;;  %v7029_v43 = vld [vmem:[%s13809_s3 + $0x90] sm:$0xf] }
 0x136   : > { %v853_v50 = vadd.f32 %v852_v48, %v9922_v34  ;;  %9035 = vrot.lane.b32.xlu0 %v9034_v47, %s13826_s19  ;;  %v9074_v48 = vpack.i.bf16 %v953_v24, %v951_v19 }
 0x137   : > { %v896_v51 = vpop.f32.mrf.mxu1  ;;  %1691 = vmatpush.bf16.msra.mxu1 %v7054_v45 }
 0x138   : > { %v897_v54 = vadd.f32 %v896_v51, %v853_v50 }
 0x13a   : > { %v932_v58 = vmax.f32 %v897_v54, 0.0  ;;  %v839_v54 = vadd.f32 %v9918_v12, %v795_v49 }
 0x13b   : > { %1692 = vmatpush.bf16.msra.mxu1 %v7046_v56 }
 0x13c   : > { %v9039_v57 = vpack.i.bf16 %v932_v58, %v931_v55  ;;  %v941_v58 = vmax.f32 %v9877_v53, 0.0  ;;  %v955_v60 = vmax.f32 %v839_v54, 0.0 }
 0x13d   : > { %v855_v63 = vpop.f32.mrf.mxu0 }
 0x13e   : > { %v856_v0 = vadd.f32 %v855_v63, %v9922_v34  ;;  %9040 = vrot.lane.b32.xlu0 %v9039_v57, %s13826_s19 }
 0x13f   : > { %v899_v2 = vpop.f32.mrf.mxu1 }
 0x140   : > { %v900_v3 = vadd.f32 %v899_v2, %v856_v0  ;;  %1678 = vmatmul.bf16.gmra.mxu0 %v9953_v23 }
 0x142   : > { %v934_v8 = vmax.f32 %v900_v3, 0.0 }
 0x144   : > { %v9049_v9 = vpack.i.bf16 %v934_v8, %v933_v4 }
 0x145   : > { %v857_v10 = vpop.f32.mrf.mxu0 }
 0x146   : > { %v858_v16 = vadd.f32 %v857_v10, %v9922_v34  ;;  %9050 = vrot.lane.b32.xlu1 %v9049_v9, %s13826_s19  ;;  %v7037_v9 = vld [vmem:[%s13809_s3 + $0xa0] sm:$0xf]  ;;  %v8651_v10 = vld [vmem:[%s13809_s3 + $0xa4] sm:$0xf0] }
 0x147   : > { %v901_v61 = vpop.f32.mrf.mxu1 }
 0x148   : > { %v902_v1 = vadd.f32 %v901_v61, %v858_v16  ;;  %v7038_v16 = vor.u32 %v8651_v10, %v7037_v9  ;;  %v7205_v61 = vld [vmem:[%s13809_s3 + $0x1f0] sm:$0xf]  ;;  %v8683_v9 = vld [vmem:[%s13809_s3 + $0x1a4] sm:$0xf0]  ;;  %v7021_v10 = vld [vmem:[%s13809_s3 + $0x80] sm:$0xf] }
 0x14a   : > { %v936_v25 = vmax.f32 %v902_v1, 0.0  ;;  %v8693_v1 = vld [vmem:[%s13809_s3 + $0x1f4] sm:$0xf0]  ;;  %1693 = vmatpush.bf16.msra.mxu1 %v7038_v16  ;;  %v8647_v16 = vld [vmem:[%s13809_s3 + $0x84] sm:$0xf0] }
 0x14b   : > { %v7206_v24 = vor.u32 %v8693_v1, %v7205_v61  ;;  %v7022_v17 = vor.u32 %v8647_v16, %v7021_v10  ;;  %v7093_v61 = vld [vmem:[%s13809_s3 + $0x110] sm:$0xf]  ;;  %v7245_v16 = vld [vmem:[%s13809_s3 + $0x240] sm:$0xf] }
 0x14c   : > { %v9054_v6 = vpack.i.bf16 %v936_v25, %v935_v22  ;;  %v7133_v25 = vld [vmem:[%s13809_s3 + $0x160] sm:$0xf]  ;;  %v7157_v1 = vld [vmem:[%s13809_s3 + $0x190] sm:$0xf] }
 0x14d   : > { %v860_v26 = vpop.f32.mrf.mxu0  ;;  %1744 = vmatpush.bf16.msra.mxu3 %v7206_v24 }
 0x14e   : > { %v861_v28 = vadd.f32 %v860_v26, %v9922_v34  ;;  %9055 = vrot.lane.b32.xlu2 %v9054_v6, %s13826_s19  ;;  %v8675_v6 = vld [vmem:[%s13809_s3 + $0x164] sm:$0xf0]  ;;  %v7197_v26 = vld [vmem:[%s13809_s3 + $0x1e0] sm:$0xf] }
 0x14f   : > { %v904_v35 = vpop.f32.mrf.mxu1 }
 0x150   : > { %v905_v32 = vadd.f32 %v904_v35, %v861_v28  ;;  %1683 = vmatmul.bf16.gmra.mxu0 %v9967_v7  ;;  %v7134_v35 = vor.u32 %v8675_v6, %v7133_v25  ;;  %v7094_v25 = vor.u32 %v8665_v27, %v7093_v61  ;;  %v8681_v6 = vld [vmem:[%s13809_s3 + $0x194] sm:$0xf0] }
 0x152   : > { %v938_v29 = vmax.f32 %v905_v32, 0.0  ;;  %v8691_v32 = vld [vmem:[%s13809_s3 + $0x1e4] sm:$0xf0]  ;;  %1717 = vmatpush.bf16.msra.mxu2 %v7134_v35 }
 0x154   : > { %v9064_v42 = vpack.i.bf16 %v938_v29, %v937_v33  ;;  %v7198_v33 = vor.u32 %v8691_v32, %v7197_v26  ;;  %v7125_v29 = vld [vmem:[%s13809_s3 + $0x150] sm:$0xf]  ;;  %v7085_v32 = vld [vmem:[%s13809_s3 + $0x100] sm:$0xf] }
 0x155   : > { %v862_v44 = vpop.f32.mrf.mxu0 }
 0x156   : > { %v863_v46 = vadd.f32 %v862_v44, %v9922_v34  ;;  %9060 = vrot.lane.b32.xlu2 %v9059_v38, %s13828_s18  ;;  %9065 = vrot.lane.b32.xlu0 %v9064_v42, %s13826_s19  ;;  %v8673_v38 = vld [vmem:[%s13809_s3 + $0x154] sm:$0xf0] }
 0x157   : > { %v906_v40 = vpop.f32.mrf.mxu1  ;;  %1745 = vmatpush.bf16.msra.mxu3 %v7198_v33  ;;  %v8649_v44 = vld [vmem:[%s13809_s3 + $0x94] sm:$0xf0]  ;;  %v7126_v45 = vor.u32 %v8673_v38, %v7125_v29  ;;  %v8663_v33 = vld [vmem:[%s13809_s3 + $0x104] sm:$0xf0] }
 0x158   : > { %v907_v31 = vadd.f32 %v906_v40, %v863_v46  ;;  %v7030_v40 = vor.u32 %v8649_v44, %v7029_v43  ;;  %v8679_v43 = vld [vmem:[%s13809_s3 + $0x184] sm:$0xf0] }
 0x159   : > { %1718 = vmatpush.bf16.msra.mxu2 %v7126_v45 }
 0x15a   : > { %v940_v47 = vmax.f32 %v907_v31, 0.0  ;;  %v8689_v31 = vld [vmem:[%s13809_s3 + $0x1d4] sm:$0xf0]  ;;  %1694 = vmatpush.bf16.msra.mxu1 %v7030_v40 }
 0x15b   : > { %v7190_v49 = vor.u32 %v8689_v31, %v7189_v36  ;;  %v8709_v40 = vld [vmem:[%s13809_s3 + $0x274] sm:$0xf0] }
 0x15c   : > { %v9069_v50 = vpack.i.bf16 %v940_v47, %v939_v13  ;;  %v7117_v13 = vld [vmem:[%s13809_s3 + $0x140] sm:$0xf]  ;;  %v8671_v47 = vld [vmem:[%s13809_s3 + $0x144] sm:$0xf0] }
 0x15d   : > { %v865_v51 = vpop.f32.mrf.mxu0  ;;  %1746 = vmatpush.bf16.msra.mxu3 %v7190_v49  ;;  %v8644_v49 = vld [vmem:[%s13809_s3 + $0x74] sm:$0xf] }
 0x15e   : > { %v866_v52 = vadd.f32 %v865_v51, %v9922_v34  ;;  %9075 = vrot.lane.b32.xlu2 %v9074_v48, %s13828_s18  ;;  %9070 = vrot.lane.b32.xlu1 %v9069_v50, %s13826_s19  ;;  %v7118_v50 = vor.u32 %v8671_v47, %v7117_v13  ;;  %v7181_v51 = vld [vmem:[%s13809_s3 + $0x1c0] sm:$0xf] }
 0x15f   : > { %v909_v41 = vpop.f32.mrf.mxu1  ;;  %1695 = vmatpush.bf16.msra.mxu1 %v7022_v17  ;;  %v8703_v17 = vld [vmem:[%s13809_s3 + $0x244] sm:$0xf0] }
 0x160   : > { %v910_v55 = vadd.f32 %v909_v41, %v866_v52  ;;  %v8687_v52 = vld [vmem:[%s13809_s3 + $0x1c4] sm:$0xf0]  ;;  %1719 = vmatpush.bf16.msra.mxu2 %v7118_v50  ;;  %v7015_v50 = vld [vmem:[%s13809_s3 + $0x78] sm:$0xf0]  ;;  %v7246_v61 = vor.u32 %v8703_v17, %v7245_v16 }
 0x162   : > { %v942_v59 = vmax.f32 %v910_v55, 0.0  ;;  %v7182_v55 = vor.u32 %v8687_v52, %v7181_v51  ;;  %v8660_v51 = vld [vmem:[%s13809_s3 + $0xf4] sm:$0xf] }
 0x164   : > { %v9079_v19 = vpack.i.bf16 %v942_v59, %v941_v58  ;;  %1747 = vmatpush.bf16.msra.mxu3 %v7182_v55  ;;  %v7018_v55 = vor.u32 %v8644_v49, %v7015_v50  ;;  %v8638_v49 = vld [vmem:[%s13809_s3 + $0x44] sm:$0xf]  ;;  %v6991_v50 = vld [vmem:[%s13809_s3 + $0x48] sm:$0xf0] }
 0x165   : > { %v867_v62 = vpop.f32.mrf.mxu0 }
 0x166   : > { %1066 = vrot.lane.b32.xlu1 %v955_v60, %s13828_s18  ;;  %9080 = vrot.lane.b32.xlu0 %v9079_v19, %s13826_s19  ;;  %v868_v53 = vadd.f32 %v867_v62, %v9922_v34  ;;  %v7109_v60 = vld [vmem:[%s13809_s3 + $0x130] sm:$0xf]  ;;  %v8669_v19 = vld [vmem:[%s13809_s3 + $0x134] sm:$0xf0]  ;;  %s479_s19 = smul.u32 28, %s9503_s17 }
 0x167   : > { %v911_v12 = vpop.f32.mrf.mxu1  ;;  %v7110_v30 = vor.u32 %v8669_v19, %v7109_v60  ;;  %v8685_v62 = vld [vmem:[%s13809_s3 + $0x1b4] sm:$0xf0]  ;;  %v7261_v19 = vld [vmem:[%s13809_s3 + $0x260] sm:$0xf] }
 0x168   : > { %v10003_v63 = vadd.f32 %v911_v12, %v868_v53  ;;  %v7174_v12 = vor.u32 %v8685_v62, %v7173_v15  ;;  %v7101_v53 = vld [vmem:[%s13809_s3 + $0x120] sm:$0xf]  ;;  %v8713_v60 = vld [vmem:[%s13809_s3 + $0x294] sm:$0xf0]  ;;  %v8707_v62 = vld [vmem:[%s13809_s3 + $0x264] sm:$0xf0] }
 0x169   : > { %1720 = vmatpush.bf16.msra.mxu2 %v7110_v30  ;;  %p480_p11 = scmp.lt.s32.totalorder %s479_s19, 55 }
 0x16a   : > { %v944_v4 = vmax.f32 %v10003_v63, 0.0  ;;  %1748 = vmatpush.bf16.msra.mxu3 %v7174_v12 }
 0x16b   : > { %s13908_s19 = smov (!%p480_p11, %s479_s19), 55 }
 0x16d   : > { %v870_v57 = vpop.f32.mrf.mxu0 }
 0x16e   : > { %v871_v0 = vadd.f32 %v870_v57, %v9922_v34  ;;  %v8667_v57 = vld [vmem:[%s13809_s3 + $0x124] sm:$0xf0] }
 0x16f   : > { %v914_v2 = vpop.f32.mrf.mxu1 }
 0x170   : > { %v10006_v3 = vadd.f32 %v914_v2, %v871_v0  ;;  %v7165_v0 = vld [vmem:[%s13809_s3 + $0x1a0] sm:$0xf] }
 0x172   : > { %v946_v5 = vmax.f32 %v10006_v3, 0.0 }
 0x174   : > { %v9084_v8 = vpack.i.bf16 %v946_v5, %v944_v4 }
 0x175   : > { %v872_v11 = vpop.f32.mrf.mxu0 }
 0x176   : > { %9085 = vrot.lane.b32.xlu2 %v9084_v8, %s13828_s18  ;;  %v873_v28 = vadd.f32 %v872_v11, %v9922_v34  ;;  %v7102_v8 = vor.u32 %v8667_v57, %v7101_v53  ;;  %v7166_v11 = vor.u32 %v8683_v9, %v7165_v0  ;;  %v7253_v53 = vld [vmem:[%s13809_s3 + $0x250] sm:$0xf]  ;;  %v8705_v57 = vld [vmem:[%s13809_s3 + $0x254] sm:$0xf0]  ;;  %v8642_v0 = vld [vmem:[%s13809_s3 + $0x64] sm:$0xf] }
 0x177   : > { %v916_v22 = vpop.f32.mrf.mxu1  ;;  %v8658_v9 = vld [vmem:[%s13809_s3 + $0xe4] sm:$0xf] }
 0x178   : > { %v10052_v42 = vadd.f32 %v916_v22, %v873_v28  ;;  %1721 = vmatpush.bf16.msra.mxu2 %v7102_v8  ;;  %1749 = vmatpush.bf16.msra.mxu3 %v7166_v11  ;;  %v7158_v28 = vor.u32 %v8681_v6, %v7157_v1  ;;  %v7254_v8 = vor.u32 %v8705_v57, %v7253_v53  ;;  %v7071_v11 = vld [vmem:[%s13809_s3 + $0xe8] sm:$0xf0]  ;;  %v7237_v1 = vld [vmem:[%s13809_s3 + $0x230] sm:$0xf]  ;;  %v8640_v6 = vld [vmem:[%s13809_s3 + $0x54] sm:$0xf] }
 0x179   : > { %v8695_v53 = vld [vmem:[%s13809_s3 + $0x204] sm:$0xf0] }
 0x17a   : > { %v948_v41 = vmax.f32 %v10052_v42, 0.0  ;;  %v8632_v42 = vld [vmem:[%s13809_s3 + $0x14] sm:$0xf] }
 0x17c   : > { %1722 = vmatpush.bf16.msra.mxu2 %v7094_v25  ;;  %1750 = vmatpush.bf16.msra.mxu3 %v7158_v28  ;;  %v8656_v28 = vld [vmem:[%s13809_s3 + $0xd4] sm:$0xf] }
 0x17d   : > { %v875_v37 = vpop.f32.mrf.mxu0 }
 0x17e   : > { %v876_v14 = vadd.f32 %v875_v37, %v9922_v34  ;;  %v7149_v37 = vld [vmem:[%s13809_s3 + $0x180] sm:$0xf] }
 0x17f   : > { %v919_v46 = vpop.f32.mrf.mxu1  ;;  %v7150_v44 = vor.u32 %v8679_v43, %v7149_v37  ;;  %v7063_v37 = vld [vmem:[%s13809_s3 + $0xd8] sm:$0xf0]  ;;  %v8699_v43 = vld [vmem:[%s13809_s3 + $0x224] sm:$0xf0] }
 0x180   : > { %v10073_v48 = vadd.f32 %v919_v46, %v876_v14  ;;  %v7086_v14 = vor.u32 %v8663_v33, %v7085_v32  ;;  %v7269_v46 = vld [vmem:[%s13809_s3 + $0x270] sm:$0xf] }
 0x181   : > { %1751 = vmatpush.bf16.msra.mxu3 %v7150_v44  ;;  %v7270_v13 = vor.u32 %v8709_v40, %v7269_v46  ;;  %v7066_v44 = vor.u32 %v8656_v28, %v7063_v37  ;;  %v7221_v46 = vld [vmem:[%s13809_s3 + $0x210] sm:$0xf]  ;;  %v8697_v40 = vld [vmem:[%s13809_s3 + $0x214] sm:$0xf0]  ;;  %v7277_v28 = vld [vmem:[%s13809_s3 + $0x280] sm:$0xf] }
 0x182   : > { %v950_v54 = vmax.f32 %v10073_v48, 0.0  ;;  %1723 = vmatpush.bf16.msra.mxu2 %v7086_v14  ;;  %v7229_v14 = vld [vmem:[%s13809_s3 + $0x220] sm:$0xf] }
 0x183   : > { %1772 = vmatpush.bf16.msrb.mxu0 %v7270_v13 }
 0x184   : > { %v9089_v58 = vpack.i.bf16 %v950_v54, %v948_v41 }
 0x185   : > { %v877_v59 = vpop.f32.mrf.mxu0 }
 0x186   : > { %9090 = vrot.lane.b32.xlu0 %v9089_v58, %s13828_s18  ;;  %v878_v2 = vadd.f32 %v877_v59, %v9922_v34  ;;  %v7285_v59 = vld [vmem:[%s13809_s3 + $0x290] sm:$0xf]  ;;  %1828 = vmatpush.bf16.msrb.mxu2 %v7018_v55  ;;  %v6994_v55 = vor.u32 %v8638_v49, %v6991_v50 }
 0x187   : > { %v921_v56 = vpop.f32.mrf.mxu1  ;;  %v7286_v30 = vor.u32 %v8713_v60, %v7285_v59 }
 0x188   : > { %v10128_v22 = vadd.f32 %v921_v56, %v878_v2  ;;  %v7262_v56 = vor.u32 %v8707_v62, %v7261_v19  ;;  %v7007_v2 = vld [vmem:[%s13809_s3 + $0x68] sm:$0xf0] }
 0x189   : > { %1806 = vmatpush.bf16.msrb.mxu1 %v7286_v30  ;;  %v7010_v10 = vor.u32 %v8642_v0, %v7007_v2 }
 0x18a   : > { %v952_v29 = vmax.f32 %v10128_v22, 0.0  ;;  %1773 = vmatpush.bf16.msrb.mxu0 %v7262_v56  ;;  %v7213_v56 = vld [vmem:[%s13809_s3 + $0x200] sm:$0xf] }
 0x18b   : > { %1829 = vmatpush.bf16.msrb.mxu2 %v7010_v10  ;;  %v7214_v0 = vor.u32 %v8695_v53, %v7213_v56 }
 0x18d   : > { %v880_v18 = vpop.f32.mrf.mxu0 }
 0x18e   : > { %v881_v24 = vadd.f32 %v880_v18, %v9922_v34  ;;  %v7074_v18 = vor.u32 %v8658_v9, %v7071_v11  ;;  %1774 = vmatpush.bf16.msrb.mxu0 %v7254_v8 }
 0x18f   : > { %v924_v26 = vpop.f32.mrf.mxu1 }
 0x190   : > { %v10134_v35 = vadd.f32 %v924_v26, %v881_v24  ;;  %v8701_v24 = vld [vmem:[%s13809_s3 + $0x234] sm:$0xf0]  ;;  %v6999_v26 = vld [vmem:[%s13809_s3 + $0x58] sm:$0xf0] }
 0x191   : > { %v7238_v25 = vor.u32 %v8701_v24, %v7237_v1  ;;  %v7002_v33 = vor.u32 %v8640_v6, %v6999_v26  ;;  %v6983_v1 = vld [vmem:[%s13809_s3 + $0x38] sm:$0xf0]  ;;  %v8652_v24 = vld [vmem:[%s13809_s3 + $0xb4] sm:$0xf] }
 0x192   : > { %v954_v38 = vmax.f32 %v10134_v35, 0.0  ;;  %1775 = vmatpush.bf16.msrb.mxu0 %v7246_v61  ;;  %v8636_v61 = vld [vmem:[%s13809_s3 + $0x34] sm:$0xf]  ;;  %v7047_v26 = vld [vmem:[%s13809_s3 + $0xb8] sm:$0xf0] }
 0x193   : > { %1830 = vmatpush.bf16.msrb.mxu2 %v7002_v33  ;;  %v6986_v6 = vor.u32 %v8636_v61, %v6983_v1  ;;  %v8634_v33 = vld [vmem:[%s13809_s3 + $0x24] sm:$0xf]  ;;  %v7031_v61 = vld [vmem:[%s13809_s3 + $0x98] sm:$0xf0]  ;;  %v8704_v35 = vld [vmem:[%s13809_s3 + $0x254] sm:$0xf] }
 0x194   : > { %v9094_v45 = vpack.i.bf16 %v954_v38, %v952_v29  ;;  %v8630_v1 = vld [vmem:[%s13809_s3 + $0x4] sm:$0xf] }
 0x195   : > { %v882_v36 = vpop.f32.mrf.mxu0 }
 0x196   : > { %v883_v31 = vadd.f32 %v882_v36, %v9922_v34  ;;  %9095 = vrot.lane.b32.xlu1 %v9094_v45, %s13828_s18  ;;  %v7079_v34 = vld [vmem:[%s13809_s3 + $0xf8] sm:$0xf0]  ;;  %1776 = vmatpush.bf16.msrb.mxu0 %v7238_v25  ;;  %v7230_v45 = vor.u32 %v8699_v43, %v7229_v14  ;;  %v10316_v25 = vld [vmem:[%s13810_s4] sm:$0x3]  ;;  %v7050_v14 = vor.u32 %v8652_v24, %v7047_v26  ;;  %v6959_v24 = vld [vmem:[%s13809_s3 + $0x8] sm:$0xf0] }
 0x197   : > { %v926_v47 = vpop.f32.mrf.mxu1  ;;  %v7082_v58 = vor.u32 %v8660_v51, %v7079_v34  ;;  %v7222_v51 = vor.u32 %v8697_v40, %v7221_v46  ;;  %v7055_v34 = vld [vmem:[%s13809_s3 + $0xc8] sm:$0xf0]  ;;  %1831 = vmatpush.bf16.msrb.mxu2 %v6994_v55  ;;  %v8646_v26 = vld [vmem:[%s13809_s3 + $0x84] sm:$0xf] }
 0x198   : > { %v927_v52 = vadd.f32 %v926_v47, %v883_v31  ;;  %v10247_v31 = vpop.permute.xlu1 %9045  ;;  %v7039_v46 = vld [vmem:[%s13809_s3 + $0xa8] sm:$0xf0] }
 0x199   : > { %1856 = vmatpush.bf16.msrb.mxu3 %v7082_v58  ;;  %v9048_v19 = vunpack.i.h.bf16 %v10247_v31 }
 0x19a   : > { %v956_v15 = vmax.f32 %v927_v52, 0.0  ;;  %1777 = vmatpush.bf16.msrb.mxu0 %v7230_v45  ;;  %v8654_v52 = vld [vmem:[%s13809_s3 + $0xc4] sm:$0xf] }
 0x19b   : > { %v7058_v60 = vor.u32 %v8654_v52, %v7055_v34  ;;  %1832 = vmatpush.bf16.msrb.mxu2 %v6986_v6  ;;  %v8650_v45 = vld [vmem:[%s13809_s3 + $0xa4] sm:$0xf] }
 0x19c   : > { %1068 = vrot.lane.b32.xlu2 %v956_v15, %s13828_s18  ;;  %v9047_v15 = vunpack.i.l.bf16 %v10247_v31  ;;  %v7042_v52 = vor.u32 %v8650_v45, %v7039_v46 }
 0x19d   : > { %v10187_v12 = vpop.f32.mrf.mxu0  ;;  %1857 = vmatpush.bf16.msrb.mxu3 %v7074_v18 }
 0x19e   : > { %1778 = vmatpush.bf16.msrb.mxu0 %v7222_v51 }
 0x1a1   : > { %1858 = vmatpush.bf16.msrb.mxu3 %v7066_v44  ;;  %v6975_v44 = vld [vmem:[%s13809_s3 + $0x28] sm:$0xf0] }
 0x1a2   : > { %1779 = vmatpush.bf16.msrb.mxu0 %v7214_v0  ;;  %v6978_v40 = vor.u32 %v8634_v33, %v6975_v44 }
 0x1a4   : > { %1833 = vmatpush.bf16.msrb.mxu2 %v6978_v40 }
 0x1a5   : > { %v10213_v27 = vpop.f32.mrf.mxu0  ;;  %1859 = vmatpush.bf16.msrb.mxu3 %v7058_v60 }
 0x1a8   : > { %v9036_v32 = vpop.permute.xlu0 %9035  ;;  %v9056_v2 = vpop.permute.xlu2 %9055 }
 0x1a9   : > { %v9038_v13 = vunpack.i.h.bf16 %v9036_v32  ;;  %v9037_v47 = vunpack.i.l.bf16 %v9036_v32  ;;  %v8711_v32 = vld [vmem:[%s13809_s3 + $0x284] sm:$0xf0]  ;;  %1860 = vmatpush.bf16.msrb.mxu3 %v7050_v14  ;;  %v9058_v34 = vunpack.i.h.bf16 %v9056_v2 }
 0x1aa   : > { %v7278_v43 = vor.u32 %v8711_v32, %v7277_v28  ;;  %v7023_v28 = vld [vmem:[%s13809_s3 + $0x88] sm:$0xf0]  ;;  %v6962_v32 = vor.u32 %v8630_v1, %v6959_v24 }
 0x1ab   : > { %v1000_v57 = vsel %vm999_vm2, %v9037_v47, %v9038_v13  ;;  %v1106_v11 = vsel %vm1070_vm4, %v9038_v13, %v9047_v15  ;;  %v10340_v13 = vperm.slane %v10316_v25, 0 }
 0x1ac   : > { %1807 = vmatpush.bf16.msrb.mxu1 %v7278_v43 }
 0x1ad   : > { %v10239_v36 = vpop.f32.mrf.mxu0  ;;  %1861 = vmatpush.bf16.msrb.mxu3 %v7042_v52 }
 0x1b0   : > { %v9041_v58 = vpop.permute.xlu0 %9040 }
 0x1b1   : > { %v9043_v30 = vunpack.i.h.bf16 %v9041_v58  ;;  %v9042_v62 = vunpack.i.l.bf16 %v9041_v58  ;;  %v9057_v58 = vunpack.i.l.bf16 %v9056_v2 }
 0x1b3   : > { %v1100_v8 = vsel %vm999_vm2, %v944_v4, %v9042_v62  ;;  %v1001_v10 = vsel %vm999_vm2, %v9042_v62, %v9043_v30  ;;  %v1107_v16 = vsel %vm1070_vm4, %v9043_v30, %v9048_v19  ;;  %v1102_v53 = vsel %vm999_vm2, %v948_v41, %v9057_v58  ;;  %v6967_v41 = vld [vmem:[%s13809_s3 + $0x18] sm:$0xf0] }
 0x1b4   : > { %v10291_v63 = vpack.c.bf16 %v1100_v8, %v9037_v47  ;;  %v10293_v4 = vpack.c.bf16 %v1001_v10, %v1000_v57  ;;  %v10295_v17 = vpack.c.bf16 %v1107_v16, %v1106_v11  ;;  %v10342_v47 = vpop.permute.xlu2 %9060  ;;  %v1003_v57 = vsel %vm999_vm2, %v9057_v58, %v9058_v34  ;;  %v8648_v10 = vld [vmem:[%s13809_s3 + $0x94] sm:$0xf] }
 0x1b5   : > { %v10297_v18 = vpop.f32.mrf.mxu0  ;;  %v9063_v59 = vunpack.i.h.bf16 %v10342_v47  ;;  %v9062_v60 = vunpack.i.l.bf16 %v10342_v47  ;;  %v6970_v16 = vor.u32 %v8632_v42, %v6967_v41  ;;  %v7034_v6 = vor.u32 %v8648_v10, %v7031_v61  ;;  %v7271_v41 = vld [vmem:[%s13809_s3 + $0x278] sm:$0xf0]  ;;  %v8676_v10 = vld [vmem:[%s13809_s3 + $0x174] sm:$0xf]  ;;  %v8666_v47 = vld [vmem:[%s13809_s3 + $0x124] sm:$0xf] }
 0x1b6   : > { %7294 = vmatmul.msk.bf16.vlgmr.msra.gmra.mxu1 %vm10280_vm6, %v10291_v63  ;;  %1724 = vmatmul.bf16.vlgmr.msra.gmra.mxu2 %v10293_v4  ;;  %v7143_v61 = vld [vmem:[%s13809_s3 + $0x178] sm:$0xf0] }
 0x1b7   : > { %1752 = vmatmul.bf16.vlgmr.msra.gmra.mxu3 %v10295_v17  ;;  %v1109_v3 = vsel %vm1070_vm4, %v9058_v34, %v9063_v59  ;;  %1834 = vmatpush.bf16.msrb.mxu2 %v6970_v16  ;;  %v7146_v24 = vor.u32 %v8676_v10, %v7143_v61 }
 0x1b8   : > { %v9051_v37 = vpop.permute.xlu1 %9050  ;;  %1862 = vmatpush.bf16.msrb.mxu3 %v7034_v6  ;;  %v8712_v6 = vld [vmem:[%s13809_s3 + $0x294] sm:$0xf] }
 0x1b9   : > { %v9053_v49 = vunpack.i.h.bf16 %v9051_v37  ;;  %v9052_v50 = vunpack.i.l.bf16 %v9051_v37  ;;  %v7026_v37 = vor.u32 %v8646_v26, %v7023_v28  ;;  %v7287_v26 = vld [vmem:[%s13809_s3 + $0x298] sm:$0xf0]  ;;  %v8692_v28 = vld [vmem:[%s13809_s3 + $0x1f4] sm:$0xf]  ;;  %1884 = vmatpush.bf16.msra.mxu0 %v7146_v24 }
 0x1bb   : > { %v1101_v30 = vsel %vm999_vm2, %v946_v5, %v9052_v50  ;;  %v1002_v62 = vsel %vm999_vm2, %v9052_v50, %v9053_v49  ;;  %v1108_v56 = vsel %vm1070_vm4, %v9053_v49, %v9062_v60  ;;  %1835 = vmatpush.bf16.msrb.mxu2 %v6962_v32  ;;  %v7290_v32 = vor.u32 %v8712_v6, %v7287_v26  ;;  %v8688_v6 = vld [vmem:[%s13809_s3 + $0x1d4] sm:$0xf]  ;;  %v7191_v26 = vld [vmem:[%s13809_s3 + $0x1d8] sm:$0xf0] }
 0x1bc   : > { %v10360_v0 = vpack.c.bf16 %v1102_v53, %v1101_v30  ;;  %v10362_v2 = vpack.c.bf16 %v1003_v57, %v1002_v62  ;;  %v10369_v8 = vpack.c.bf16 %v1109_v3, %v1108_v56  ;;  %v10383_v11 = vpop.permute.xlu2 %9075  ;;  %1863 = vmatpush.bf16.msrb.mxu3 %v7026_v37 }
 0x1bd   : > { %v1679_v51 = vpop.f32.mrf.mxu0  ;;  %v9077_v46 = vunpack.i.l.bf16 %v10383_v11  ;;  %v9078_v58 = vunpack.i.h.bf16 %v10383_v11  ;;  %v7151_v11 = vld [vmem:[%s13809_s3 + $0x188] sm:$0xf0] }
 0x1be   : > { %v10345_v55 = vadd.f32 %v1679_v51, %v10340_v13 }
 0x1c0   : > { %1974 = vmatpush.bf16.msra.mxu3 %v7290_v32  ;;  %v8702_v32 = vld [vmem:[%s13809_s3 + $0x244] sm:$0xf] }
 0x1c5   : > { %v10367_v5 = vpop.f32.mrf.mxu0 }
 0x1c6   : > { %1701 = vmatmul.bf16.gmra.mxu1 %v10360_v0  ;;  %1729 = vmatmul.bf16.gmra.mxu2 %v10362_v2 }
 0x1c7   : > { %1757 = vmatmul.bf16.gmra.mxu3 %v10369_v8 }
 0x1c8   : > { %v9066_v33 = vpop.permute.xlu0 %9065 }
 0x1c9   : > { %v9068_v43 = vunpack.i.h.bf16 %v9066_v33  ;;  %v9067_v44 = vunpack.i.l.bf16 %v9066_v33  ;;  %v7207_v33 = vld [vmem:[%s13809_s3 + $0x1f8] sm:$0xf0] }
 0x1cb   : > { %v1103_v30 = vsel %vm999_vm2, %v950_v54, %v9067_v44  ;;  %v1004_v62 = vsel %vm999_vm2, %v9067_v44, %v9068_v43  ;;  %v1110_v54 = vsel %vm1070_vm4, %v9068_v43, %v9077_v46  ;;  %v8706_v44 = vld [vmem:[%s13809_s3 + $0x264] sm:$0xf] }
 0x1cd   : > { %v1684_v14 = vpop.f32.mrf.mxu0 }
 0x1ce   : > { %v10401_v45 = vadd.f32 %v1684_v14, %v10340_v13  ;;  %v7210_v14 = vor.u32 %v8692_v28, %v7207_v33  ;;  %v7194_v28 = vor.u32 %v8688_v6, %v7191_v26  ;;  %v7247_v33 = vld [vmem:[%s13809_s3 + $0x248] sm:$0xf0]  ;;  %v8698_v6 = vld [vmem:[%s13809_s3 + $0x224] sm:$0xf] }
 0x1cf   : > { %v7231_v26 = vld [vmem:[%s13809_s3 + $0x228] sm:$0xf0] }
 0x1d0   : > { %v10404_v40 = vpop.permute.xlu2 %9085  ;;  %v9071_v49 = vpop.permute.xlu1 %9070  ;;  %1912 = vmatpush.bf16.msra.mxu1 %v7210_v14  ;;  %v7250_v14 = vor.u32 %v8702_v32, %v7247_v33  ;;  %v7167_v32 = vld [vmem:[%s13809_s3 + $0x1a8] sm:$0xf0] }
 0x1d1   : > { %v9088_v50 = vunpack.i.h.bf16 %v10404_v40  ;;  %v9087_v51 = vunpack.i.l.bf16 %v10404_v40  ;;  %v9073_v52 = vunpack.i.h.bf16 %v9071_v49  ;;  %v9072_v34 = vunpack.i.l.bf16 %v9071_v49  ;;  %v7263_v49 = vld [vmem:[%s13809_s3 + $0x268] sm:$0xf0]  ;;  %v8668_v40 = vld [vmem:[%s13809_s3 + $0x134] sm:$0xf] }
 0x1d3   : > { %v1072_v56 = vsel %vm1070_vm4, %v9048_v19, %v9088_v50  ;;  %v1071_v53 = vsel %vm1070_vm4, %v9047_v15, %v9087_v51  ;;  %v1104_v48 = vsel %vm999_vm2, %v952_v29, %v9072_v34  ;;  %v1005_v19 = vsel %vm999_vm2, %v9072_v34, %v9073_v52  ;;  %v8708_v29 = vld [vmem:[%s13809_s3 + $0x274] sm:$0xf] }
 0x1d4   : > { %v10429_v57 = vpack.c.bf16 %v1072_v56, %v1071_v53  ;;  %v10431_v3 = vpack.c.bf16 %v1104_v48, %v1103_v30  ;;  %v1111_v31 = vsel %vm1070_vm4, %v9073_v52, %v9078_v58  ;;  %v10437_v15 = vpack.c.bf16 %v1005_v19, %v1004_v62  ;;  %v8674_v52 = vld [vmem:[%s13809_s3 + $0x164] sm:$0xf]  ;;  %v7135_v30 = vld [vmem:[%s13809_s3 + $0x168] sm:$0xf0] }
 0x1d5   : > { %v1686_v42 = vpop.f32.mrf.mxu0  ;;  %v10439_v22 = vpack.c.bf16 %v1111_v31, %v1110_v54  ;;  %v7274_v16 = vor.u32 %v8708_v29, %v7271_v41  ;;  %v7266_v34 = vor.u32 %v8706_v44, %v7263_v49  ;;  %v8690_v62 = vld [vmem:[%s13809_s3 + $0x1e4] sm:$0xf]  ;;  %v7199_v56 = vld [vmem:[%s13809_s3 + $0x1e8] sm:$0xf0]  ;;  %v7138_v53 = vor.u32 %v8674_v52, %v7135_v30 }
 0x1d6   : > { %1706 = vmatmul.bf16.gmra.mxu1 %v10431_v3  ;;  %1780 = vmatmul.bf16.vlgmr.msrb.gmra.mxu0 %v10429_v57  ;;  %v7202_v48 = vor.u32 %v8690_v62, %v7199_v56  ;;  %v8686_v44 = vld [vmem:[%s13809_s3 + $0x1c4] sm:$0xf]  ;;  %v7183_v49 = vld [vmem:[%s13809_s3 + $0x1c8] sm:$0xf0]  ;;  %v10544_v30 = vpack.c.bf16 %v9088_v50, %v9087_v51  ;;  %v8700_v62 = vld [vmem:[%s13809_s3 + $0x234] sm:$0xf] }
 0x1d7   : > { %1734 = vmatmul.bf16.gmra.mxu2 %v10437_v15  ;;  %1762 = vmatmul.bf16.gmra.mxu3 %v10439_v22  ;;  %v7239_v56 = vld [vmem:[%s13809_s3 + $0x238] sm:$0xf0] }
 0x1d8   : > { %v9081_v1 = vpop.permute.xlu0 %9080  ;;  %1940 = vmatpush.bf16.msra.mxu2 %v7274_v16  ;;  %v10487_v54 = vpop.permute.xlu1 %1066  ;;  %1885 = vmatpush.bf16.msra.mxu0 %v7138_v53  ;;  %v8672_v16 = vld [vmem:[%s13809_s3 + $0x154] sm:$0xf]  ;;  %v7242_v51 = vor.u32 %v8700_v62, %v7239_v56  ;;  %v7279_v53 = vld [vmem:[%s13809_s3 + $0x288] sm:$0xf0] }
 0x1d9   : > { %v9082_v37 = vunpack.i.l.bf16 %v9081_v1  ;;  %v9083_v43 = vunpack.i.h.bf16 %v9081_v1  ;;  %1913 = vmatpush.bf16.msra.mxu1 %v7202_v48  ;;  %v7127_v1 = vld [vmem:[%s13809_s3 + $0x158] sm:$0xf0]  ;;  %v8680_v62 = vld [vmem:[%s13809_s3 + $0x194] sm:$0xf] }
 0x1da   : > { %v7130_v24 = vor.u32 %v8672_v16, %v7127_v1 }
 0x1db   : > { %v1105_v19 = vsel %vm999_vm2, %v954_v38, %v9082_v37  ;;  %v1006_v31 = vsel %vm999_vm2, %v9082_v37, %v9083_v43  ;;  %v1112_v42 = vsel %vm1070_vm4, %v9083_v43, %v10487_v54  ;;  %v7255_v38 = vld [vmem:[%s13809_s3 + $0x258] sm:$0xf0]  ;;  %v8670_v37 = vld [vmem:[%s13809_s3 + $0x144] sm:$0xf]  ;;  %v7119_v43 = vld [vmem:[%s13809_s3 + $0x148] sm:$0xf0] }
 0x1dc   : > { %1941 = vmatpush.bf16.msra.mxu2 %v7266_v34  ;;  %v10495_v29 = vpack.c.bf16 %v1105_v19, %v1105_v19  ;;  %v10497_v41 = vpack.c.bf16 %v1006_v31, %v1006_v31  ;;  %v10499_v10 = vpack.c.bf16 %v1112_v42, %v1112_v42  ;;  %v7258_v61 = vor.u32 %v8704_v35, %v7255_v38  ;;  %v8684_v35 = vld [vmem:[%s13809_s3 + $0x1b4] sm:$0xf]  ;;  %v7175_v38 = vld [vmem:[%s13809_s3 + $0x1b8] sm:$0xf0] }
 0x1dd   : > { %1886 = vmatpush.bf16.msra.mxu0 %v7130_v24  ;;  %1914 = vmatpush.bf16.msra.mxu1 %v7194_v28  ;;  %v7122_v52 = vor.u32 %v8670_v37, %v7119_v43  ;;  %v7186_v34 = vor.u32 %v8686_v44, %v7183_v49  ;;  %v7178_v16 = vor.u32 %v8684_v35, %v7175_v38  ;;  %v8682_v28 = vld [vmem:[%s13809_s3 + $0x1a4] sm:$0xf]  ;;  %v8664_v43 = vld [vmem:[%s13809_s3 + $0x114] sm:$0xf]  ;;  %v7095_v44 = vld [vmem:[%s13809_s3 + $0x118] sm:$0xf0] }
 0x1de   : > { %v7170_v37 = vor.u32 %v8682_v28, %v7167_v32  ;;  %v7098_v49 = vor.u32 %v8664_v43, %v7095_v44  ;;  %v7215_v35 = vld [vmem:[%s13809_s3 + $0x208] sm:$0xf0]  ;;  %v8717_v28 = vld [vmem:[%s13811_s5 + $0x18] sm:$0xff]  ;;  %v8714_v44 = vld [vmem:[%s13811_s5] sm:$0xff] }
 0x1e0   : > { %1942 = vmatpush.bf16.msra.mxu2 %v7258_v61 }
 0x1e1   : > { %1887 = vmatpush.bf16.msra.mxu0 %v7122_v52  ;;  %1915 = vmatpush.bf16.msra.mxu1 %v7186_v34  ;;  %v8696_v52 = vld [vmem:[%s13809_s3 + $0x214] sm:$0xf]  ;;  %v7223_v34 = vld [vmem:[%s13809_s3 + $0x218] sm:$0xf0] }
 0x1e4   : > { %1943 = vmatpush.bf16.msra.mxu2 %v7250_v14 }
 0x1e5   : > { %1916 = vmatpush.bf16.msra.mxu1 %v7178_v16 }
 0x1e6   : > { %1711 = vmatmul.bf16.gmra.mxu1 %v10495_v29 }
 0x1e7   : > { %1739 = vmatmul.bf16.gmra.mxu2 %v10497_v41  ;;  %1767 = vmatmul.bf16.gmra.mxu3 %v10499_v10 }
 0x1e8   : > { %1944 = vmatpush.bf16.msra.mxu2 %v7242_v51 }
 0x1e9   : > { %1917 = vmatpush.bf16.msra.mxu1 %v7170_v37  ;;  %v8715_v37 = vld [vmem:[%s13811_s5 + $0x8] sm:$0xff] }
 0x1f6   : > { %7295 = vmatmul.msk.bf16.vlgmr.msrb.gmra.mxu1 %vm1647_vm7, %v10544_v30 }
 0x1f7   : > { %1836 = vmatmul.bf16.vlgmr.msrb.gmra.mxu2 %v9910_v21  ;;  %7302 = vmatmul.msk.bf16.vlgmr.msrb.gmra.mxu3 %vm10280_vm6, %v10291_v63  ;;  %v7111_v21 = vld [vmem:[%s13809_s3 + $0x138] sm:$0xf0]  ;;  %v8710_v63 = vld [vmem:[%s13809_s3 + $0x284] sm:$0xf] }
 0x1f8   : > { %v9091_v50 = vpop.permute.xlu0 %9090  ;;  %v7114_v31 = vor.u32 %v8668_v40, %v7111_v21  ;;  %v7282_v42 = vor.u32 %v8710_v63, %v7279_v53  ;;  %v7226_v40 = vor.u32 %v8696_v52, %v7223_v34 }
 0x1f9   : > { %v9093_v48 = vunpack.i.h.bf16 %v9091_v50  ;;  %v9092_v19 = vunpack.i.l.bf16 %v9091_v50  ;;  %v7087_v50 = vld [vmem:[%s13809_s3 + $0x108] sm:$0xf0] }
 0x1fa   : > { %1888 = vmatpush.bf16.msra.mxu0 %v7114_v31  ;;  %1975 = vmatpush.bf16.msra.mxu3 %v7282_v42  ;;  %v8694_v42 = vld [vmem:[%s13809_s3 + $0x204] sm:$0xf] }
 0x1fb   : > { %v1073_v61 = vsel %vm1070_vm4, %v9062_v60, %v9092_v19  ;;  %v1074_v1 = vsel %vm1070_vm4, %v9063_v59, %v9093_v48  ;;  %v7234_v59 = vor.u32 %v8698_v6, %v7231_v26  ;;  %v7103_v60 = vld [vmem:[%s13809_s3 + $0x128] sm:$0xf0]  ;;  %v10603_v14 = vpack.c.bf16 %v9093_v48, %v9092_v19 }
 0x1fc   : > { %v10582_v24 = vpack.c.bf16 %v1074_v1, %v1073_v61  ;;  %v7106_v33 = vor.u32 %v8666_v47, %v7103_v60  ;;  %v7218_v38 = vor.u32 %v8694_v42, %v7215_v35  ;;  %v1069_v61 = vpop.permute.xlu2 %1068 }
 0x1fd   : > { %1945 = vmatpush.bf16.msra.mxu2 %v7234_v59  ;;  %v1077_v1 = vsel %vm1070_vm4, %v10487_v54, %v1069_v61  ;;  %v1136_v26 = vpack.c.bf16 %v1069_v61, %v1069_v61  ;;  %v8721_v54 = vld [vmem:[%s13811_s5 + $0x38] sm:$0xff] }
 0x1fe   : > { %1785 = vmatmul.bf16.gmra.mxu0 %v10582_v24  ;;  %v1135_v6 = vpack.c.bf16 %v1077_v1, %v1077_v1 }
 0x1ff   : > { %1889 = vmatpush.bf16.msra.mxu0 %v7106_v33 }
 0x201   : > { %1946 = vmatpush.bf16.msra.mxu2 %v7226_v40 }
 0x203   : > { %1890 = vmatpush.bf16.msra.mxu0 %v7098_v49 }
 0x205   : > { %1947 = vmatpush.bf16.msra.mxu2 %v7218_v38 }
 0x206   : > { %7296 = vmatmul.msk.bf16.gmra.mxu1 %vm1647_vm7, %v10603_v14 }
 0x207   : > { %1841 = vmatmul.bf16.gmra.mxu2 %v9933_v39  ;;  %1869 = vmatmul.bf16.gmra.mxu3 %v10360_v0  ;;  %v7159_v39 = vld [vmem:[%s13809_s3 + $0x198] sm:$0xf0]  ;;  %v8662_v0 = vld [vmem:[%s13809_s3 + $0x104] sm:$0xf] }
 0x208   : > { %v9096_v56 = vpop.permute.xlu1 %9095  ;;  %v7162_v63 = vor.u32 %v8680_v62, %v7159_v39  ;;  %v7090_v53 = vor.u32 %v8662_v0, %v7087_v50  ;;  %v1670_v39 = vadd.f32 %v10187_v12, %v10340_v13  ;;  %v1675_v12 = vadd.f32 %v10239_v36, %v10340_v13 }
 0x209   : > { %v9098_v51 = vunpack.i.h.bf16 %v9096_v56  ;;  %v9097_v21 = vunpack.i.l.bf16 %v9096_v56 }
 0x20a   : > { %1918 = vmatpush.bf16.msra.mxu1 %v7162_v63  ;;  %1891 = vmatpush.bf16.msra.mxu0 %v7090_v53 }
 0x20b   : > { %v1075_v48 = vsel %vm1070_vm4, %v9077_v46, %v9097_v21  ;;  %v1076_v19 = vsel %vm1070_vm4, %v9078_v58, %v9098_v51  ;;  %v8678_v46 = vld [vmem:[%s13809_s3 + $0x184] sm:$0xf]  ;;  %v1130_v16 = vpack.c.bf16 %v9098_v51, %v9097_v21 }
 0x20c   : > { %v1129_v31 = vpack.c.bf16 %v1076_v19, %v1075_v48  ;;  %v7154_v58 = vor.u32 %v8678_v46, %v7151_v11  ;;  %v10724_v11 = vperm.slane %v10316_v25, 1 }
 0x20e   : > { %1790 = vmatmul.bf16.gmra.mxu0 %v1129_v31  ;;  %1919 = vmatpush.bf16.msra.mxu1 %v7154_v58 }
 0x20f   : > { %2868 = vmatpush.bf16.msrb.mxu0 %v8721_v54 }
 0x216   : > { %7297 = vmatmul.msk.bf16.gmra.mxu1 %vm1647_vm7, %v1130_v16 }
 0x217   : > { %1846 = vmatmul.bf16.gmra.mxu2 %v9953_v23  ;;  %1874 = vmatmul.bf16.gmra.mxu3 %v10431_v3 }
 0x21e   : > { %1795 = vmatmul.bf16.gmra.mxu0 %v1135_v6 }
 0x226   : > { %7298 = vmatmul.msk.bf16.gmra.mxu1 %vm1647_vm7, %v1136_v26 }
 0x227   : > { %1851 = vmatmul.bf16.gmra.mxu2 %v9967_v7  ;;  %1879 = vmatmul.bf16.gmra.mxu3 %v10495_v29  ;;  %v8720_v7 = vld [vmem:[%s13811_s5 + $0x30] sm:$0xff] }
 0x228   : > { %2869 = vmatpush.bf16.msrb.mxu0 %v8720_v7 }
 0x22e   : > { %1892 = vmatmul.bf16.vlgmr.msra.gmra.mxu0 %v10293_v4 }
 0x233   : > { %v1697_v47 = vpop.f32.mrf.mxu1 }
 0x234   : > { %v1698_v50 = vadd.f32 %v1697_v47, %v1670_v39 }
 0x236   : > { %1920 = vmatmul.bf16.vlgmr.msra.gmra.mxu1 %v10295_v17 }
 0x237   : > { %1948 = vmatmul.bf16.vlgmr.msra.gmra.mxu2 %v10429_v57  ;;  %7303 = vmatmul.msk.bf16.vlgmr.msra.gmra.mxu3 %vm1647_vm7, %v10544_v30  ;;  %v8719_v57 = vld [vmem:[%s13811_s5 + $0x28] sm:$0xff] }
 0x238   : > { %2870 = vmatpush.bf16.msrb.mxu0 %v8719_v57 }
 0x239   : > { %v1725_v23 = vpop.f32.mrf.mxu2 }
 0x23a   : > { %v1753_v3 = vpop.f32.mrf.mxu3  ;;  %v1726_v53 = vadd.f32 %v1725_v23, %v1698_v50 }
 0x23b   : > { %v10667_v59 = vpop.f32.mrf.mxu1 }
 0x23c   : > { %v1754_v19 = vadd.f32 %v1753_v3, %v1726_v53 }
 0x23e   : > { %1897 = vmatmul.bf16.gmra.mxu0 %v10362_v2  ;;  %v8718_v2 = vld [vmem:[%s13811_s5 + $0x20] sm:$0xff] }
 0x23f   : > { %2871 = vmatpush.bf16.msrb.mxu0 %v8718_v2 }
 0x241   : > { %v10673_v4 = vpop.f32.mrf.mxu2 }
 0x242   : > { %v10675_v17 = vpop.f32.mrf.mxu3 }
 0x243   : > { %v1702_v29 = vpop.f32.mrf.mxu1  ;;  %2872 = vmatpush.bf16.msrb.mxu0 %v8717_v28 }
 0x246   : > { %1925 = vmatmul.bf16.gmra.mxu1 %v10369_v8  ;;  %v8716_v8 = vld [vmem:[%s13811_s5 + $0x10] sm:$0xff] }
 0x247   : > { %1953 = vmatmul.bf16.gmra.mxu2 %v10582_v24  ;;  %7304 = vmatmul.msk.bf16.gmra.mxu3 %vm1647_vm7, %v10603_v14 }
 0x248   : > { %2873 = vmatpush.bf16.msrb.mxu0 %v8716_v8 }
 0x249   : > { %v1730_v30 = vpop.f32.mrf.mxu2 }
 0x24a   : > { %v1758_v60 = vpop.f32.mrf.mxu3 }
 0x24b   : > { %v10690_v32 = vpop.f32.mrf.mxu1 }
 0x24c   : > { %2874 = vmatpush.bf16.msrb.mxu0 %v8715_v37 }
 0x24e   : > { %1902 = vmatmul.bf16.gmra.mxu0 %v10437_v15 }
 0x250   : > { %2875 = vmatpush.bf16.msrb.mxu0 %v8714_v44 }
 0x251   : > { %v10696_v24 = vpop.f32.mrf.mxu2 }
 0x252   : > { %v10698_v33 = vpop.f32.mrf.mxu3 }
 0x253   : > { %v1707_v14 = vpop.f32.mrf.mxu1  ;;  %v1781_v0 = vpop.f32.mrf.mxu0 }
 0x254   : > { %v1708_v43 = vadd.f32 %v1707_v14, %v10345_v55 }
 0x256   : > { %1930 = vmatmul.bf16.gmra.mxu1 %v10439_v22 }
 0x257   : > { %1958 = vmatmul.bf16.gmra.mxu2 %v1129_v31  ;;  %7305 = vmatmul.msk.bf16.gmra.mxu3 %vm1647_vm7, %v1130_v16  ;;  %v1782_v31 = vadd.f32 %v1781_v0, %v1754_v19  ;;  %v1703_v16 = vadd.f32 %v1702_v29, %v1675_v12 }
 0x259   : > { %v1731_v23 = vadd.f32 %v1730_v30, %v1703_v16 }
 0x25a   : > { %v1735_v15 = vpop.f32.mrf.mxu2  ;;  %v1763_v49 = vpop.f32.mrf.mxu3 }
 0x25b   : > { %v1736_v52 = vadd.f32 %v1735_v15, %v1708_v43  ;;  %v10709_v34 = vpop.f32.mrf.mxu1  ;;  %v10721_v35 = vpop.f32.mrf.mxu0  ;;  %v1759_v54 = vadd.f32 %v1758_v60, %v1731_v23 }
 0x25d   : > { %v1764_v62 = vadd.f32 %v1763_v49, %v1736_v52 }
 0x25e   : > { %1907 = vmatmul.bf16.gmra.mxu0 %v10497_v41 }
 0x262   : > { %v10712_v55 = vpop.f32.mrf.mxu2  ;;  %v10714_v56 = vpop.f32.mrf.mxu3 }
 0x263   : > { %v1712_v22 = vpop.f32.mrf.mxu1 }
 0x264   : > { %v1713_v40 = vadd.f32 %v1712_v22, %v10401_v45 }
 0x266   : > { %1935 = vmatmul.bf16.gmra.mxu1 %v10499_v10 }
 0x267   : > { %1963 = vmatmul.bf16.gmra.mxu2 %v1135_v6  ;;  %7306 = vmatmul.msk.bf16.gmra.mxu3 %vm1647_vm7, %v1136_v26 }
 0x26a   : > { %v1740_v51 = vpop.f32.mrf.mxu2  ;;  %v1768_v21 = vpop.f32.mrf.mxu3 }
 0x26b   : > { %v1741_v41 = vadd.f32 %v1740_v51, %v1713_v40  ;;  %v1714_v63 = vpop.f32.mrf.mxu1 }
 0x26d   : > { %v1769_v48 = vadd.f32 %v1768_v21, %v1741_v41 }
 0x272   : > { %v1742_v42 = vpop.f32.mrf.mxu2  ;;  %v1770_v45 = vpop.f32.mrf.mxu3 }
 0x273   : > { %v1809_v10 = vpop.f32.mrf.mxu1 }
 0x274   : > { %v1810_v46 = vadd.f32 %v1809_v10, %v1782_v31 }
 0x276   : > { %v1996_v38 = vmax.f32 %v1810_v46, 0.0 }
 0x278   : > { %v2064_v58 = vpack.c.bf16 %v1996_v38, %v1996_v38 }
 0x27a   : > { %v1837_v61 = vpop.f32.mrf.mxu2  ;;  %v1865_v1 = vpop.f32.mrf.mxu3  ;;  %2876 = vmatmul.bf16.vlgmr.msrb.gmra.mxu0 %v2064_v58 }
 0x27b   : > { %v1838_v6 = vadd.f32 %v1837_v61, %v10724_v11  ;;  %v1786_v26 = vpop.f32.mrf.mxu0  ;;  %v1811_v47 = vpop.f32.mrf.mxu1  ;;  %v1672_v61 = vadd.f32 %v10213_v27, %v10340_v13 }
 0x27c   : > { %v1787_v7 = vadd.f32 %v1786_v26, %v1759_v54 }
 0x27d   : > { %v1866_v3 = vadd.f32 %v1865_v1, %v1838_v6  ;;  %v1700_v1 = vadd.f32 %v10667_v59, %v1672_v61 }
 0x27f   : > { %v1728_v54 = vadd.f32 %v10673_v4, %v1700_v1 }
 0x282   : > { %v1839_v57 = vpop.f32.mrf.mxu2  ;;  %v1867_v2 = vpop.f32.mrf.mxu3 }
 0x283   : > { %v10729_v25 = vpop.f32.mrf.mxu0  ;;  %v1814_v28 = vpop.f32.mrf.mxu1  ;;  %v1840_v6 = vadd.f32 %v1839_v57, %v10724_v11 }
 0x284   : > { %v1815_v8 = vadd.f32 %v1814_v28, %v1787_v7 }
 0x286   : > { %v2000_v36 = vmax.f32 %v1815_v8, 0.0 }
 0x288   : > { %2022 = vrot.lane.b32.xlu1 %v2000_v36, %s13828_s18 }
 0x28a   : > { %v1842_v29 = vpop.f32.mrf.mxu2  ;;  %v1870_v37 = vpop.f32.mrf.mxu3 }
 0x28b   : > { %v1791_v14 = vpop.f32.mrf.mxu0  ;;  %v10732_v43 = vpop.f32.mrf.mxu1  ;;  %v1843_v27 = vadd.f32 %v1842_v29, %v10724_v11 }
 0x28c   : > { %v1792_v44 = vadd.f32 %v1791_v14, %v1764_v62  ;;  %v1756_v14 = vadd.f32 %v10675_v17, %v1728_v54 }
 0x292   : > { %v1844_v15 = vpop.f32.mrf.mxu2  ;;  %v10734_v30 = vpop.f32.mrf.mxu3 }
 0x293   : > { %v10736_v60 = vpop.f32.mrf.mxu0  ;;  %v1819_v49 = vpop.f32.mrf.mxu1 }
 0x294   : > { %v10738_v52 = vadd.f32 %v1819_v49, %v1792_v44  ;;  %v1784_v49 = vadd.f32 %v10721_v35, %v1756_v14  ;;  %v1845_v35 = vadd.f32 %v1844_v15, %v10724_v11 }
 0x29a   : > { %v1847_v22 = vpop.f32.mrf.mxu2  ;;  %v1875_v40 = vpop.f32.mrf.mxu3 }
 0x29b   : > { %v1848_v39 = vadd.f32 %v1847_v22, %v10724_v11  ;;  %v1796_v0 = vpop.f32.mrf.mxu0  ;;  %v10741_v50 = vpop.f32.mrf.mxu1 }
 0x29c   : > { %v1797_v51 = vadd.f32 %v1796_v0, %v1769_v48 }
 0x29d   : > { %v1876_v21 = vadd.f32 %v1875_v40, %v1848_v39  ;;  %v1812_v40 = vadd.f32 %v1811_v47, %v1784_v49 }
 0x2a2   : > { %v10743_v41 = vpop.f32.mrf.mxu2  ;;  %v10745_v62 = vpop.f32.mrf.mxu3 }
 0x2a3   : > { %v1798_v63 = vpop.f32.mrf.mxu0  ;;  %v1824_v53 = vpop.f32.mrf.mxu1 }
 0x2a4   : > { %v10747_v19 = vadd.f32 %v1824_v53, %v1797_v51  ;;  %v1871_v51 = vadd.f32 %v1870_v37, %v1843_v27  ;;  %v1998_v53 = vmax.f32 %v1812_v40, 0.0 }
 0x2aa   : > { %v10749_v31 = vpop.f32.mrf.mxu2  ;;  %v10751_v42 = vpop.f32.mrf.mxu3 }
 0x2ab   : > { %v1826_v45 = vpop.f32.mrf.mxu1  ;;  %v1893_v10 = vpop.f32.mrf.mxu0 }
 0x2ac   : > { %v1894_v46 = vadd.f32 %v1893_v10, %v1866_v3  ;;  %v1868_v3 = vadd.f32 %v1867_v2, %v1840_v6  ;;  %v1677_v2 = vadd.f32 %v10297_v18, %v10340_v13  ;;  %v1873_v18 = vadd.f32 %v10734_v30, %v1845_v35  ;;  %v8752_v35 = vld [vmem:[%s13811_s5 + $0x130] sm:$0xff] }
 0x2ad   : > { %v1682_v30 = vadd.f32 %v10367_v5, %v10340_v13 }
 0x2ae   : > { %v1705_v10 = vadd.f32 %v10690_v32, %v1677_v2  ;;  %v8753_v2 = vld [vmem:[%s13811_s5 + $0x138] sm:$0xff] }
 0x2af   : > { %2920 = vmatpush.bf16.msra.mxu0 %v8753_v2  ;;  %v8767_v2 = vld [vmem:[%s13811_s5 + $0x1a8] sm:$0xff] }
 0x2b0   : > { %v1733_v47 = vadd.f32 %v10696_v24, %v1705_v10 }
 0x2b2   : > { %v1854_v38 = vpop.f32.mrf.mxu2  ;;  %v1882_v12 = vpop.f32.mrf.mxu3  ;;  %v1761_v1 = vadd.f32 %v10698_v33, %v1733_v47 }
 0x2b3   : > { %v1895_v58 = vpop.f32.mrf.mxu0  ;;  %v1921_v48 = vpop.f32.mrf.mxu1  ;;  %2921 = vmatpush.bf16.msra.mxu0 %v8752_v35  ;;  %v8756_v35 = vld [vmem:[%s13811_s5 + $0x150] sm:$0xff] }
 0x2b4   : > { %v1922_v16 = vadd.f32 %v1921_v48, %v1894_v46  ;;  %v1896_v44 = vadd.f32 %v1895_v58, %v1868_v3  ;;  %v1789_v15 = vadd.f32 %v10729_v25, %v1761_v1  ;;  %v1850_v25 = vadd.f32 %v10743_v41, %v10724_v11  ;;  %v8737_v41 = vld [vmem:[%s13811_s5 + $0xb8] sm:$0xff] }
 0x2b5   : > { %2894 = vmatpush.bf16.msrb.mxu2 %v8737_v41  ;;  %v8769_v41 = vld [vmem:[%s13811_s5 + $0x1b8] sm:$0xff] }
 0x2b6   : > { %v1817_v54 = vadd.f32 %v10732_v43, %v1789_v15  ;;  %v1878_v13 = vadd.f32 %v10745_v62, %v1850_v25  ;;  %v1853_v62 = vadd.f32 %v10749_v31, %v10724_v11  ;;  %v8744_v11 = vld [vmem:[%s13811_s5 + $0xf0] sm:$0xff] }
 0x2b8   : > { %v2002_v33 = vmax.f32 %v1817_v54, 0.0  ;;  %v8725_v54 = vld [vmem:[%s13811_s5 + $0x58] sm:$0xff] }
 0x2ba   : > { %v1949_v26 = vpop.f32.mrf.mxu2  ;;  %v1977_v23 = vpop.f32.mrf.mxu3 }
 0x2bb   : > { %v1950_v7 = vadd.f32 %v1949_v26, %v1922_v16  ;;  %v1898_v28 = vpop.f32.mrf.mxu0  ;;  %v1923_v8 = vpop.f32.mrf.mxu1 }
 0x2bc   : > { %v1924_v59 = vadd.f32 %v1923_v8, %v1896_v44  ;;  %v1899_v45 = vadd.f32 %v1898_v28, %v1871_v51  ;;  %v1710_v44 = vadd.f32 %v10709_v34, %v1682_v30 }
 0x2bd   : > { %v10758_v36 = vadd.f32 %v1977_v23, %v1950_v7 }
 0x2be   : > { %v1738_v43 = vadd.f32 %v10712_v55, %v1710_v44  ;;  %v8729_v55 = vld [vmem:[%s13811_s5 + $0x78] sm:$0xff] }
 0x2bf   : > { %2881 = vmatpush.bf16.msrb.mxu1 %v8729_v55  ;;  %v8777_v55 = vld [vmem:[%s13811_s5 + $0x1f8] sm:$0xff] }
 0x2c0   : > { %v1766_v34 = vadd.f32 %v10714_v56, %v1738_v43  ;;  %v8728_v56 = vld [vmem:[%s13811_s5 + $0x70] sm:$0xff]  ;;  %v8739_v43 = vld [vmem:[%s13811_s5 + $0xc8] sm:$0xff] }
 0x2c2   : > { %v1951_v22 = vpop.f32.mrf.mxu2  ;;  %v1979_v57 = vpop.f32.mrf.mxu3 }
 0x2c3   : > { %v1952_v39 = vadd.f32 %v1951_v22, %v1924_v59  ;;  %v1900_v0 = vpop.f32.mrf.mxu0  ;;  %v1926_v4 = vpop.f32.mrf.mxu1  ;;  %2882 = vmatpush.bf16.msrb.mxu1 %v8728_v56  ;;  %v8746_v56 = vld [vmem:[%s13811_s5 + $0x100] sm:$0xff] }
 0x2c4   : > { %v1927_v29 = vadd.f32 %v1926_v4, %v1899_v45  ;;  %v1901_v32 = vadd.f32 %v1900_v0, %v1873_v18  ;;  %v8745_v0 = vld [vmem:[%s13811_s5 + $0xf8] sm:$0xff]  ;;  %v1794_v4 = vadd.f32 %v10736_v60, %v1766_v34  ;;  %v8726_v18 = vld [vmem:[%s13811_s5 + $0x60] sm:$0xff] }
 0x2c5   : > { %v1980_v63 = vadd.f32 %v1979_v57, %v1952_v39  ;;  %2907 = vmatpush.bf16.msrb.mxu3 %v8745_v0  ;;  %v8738_v34 = vld [vmem:[%s13811_s5 + $0xc0] sm:$0xff]  ;;  %v8760_v0 = vld [vmem:[%s13811_s5 + $0x170] sm:$0xff] }
 0x2c6   : > { %v1822_v31 = vadd.f32 %v10741_v50, %v1794_v4  ;;  %v8735_v50 = vld [vmem:[%s13811_s5 + $0xa8] sm:$0xff] }
 0x2c7   : > { %v1999_v17 = vmax.f32 %v1980_v63, 0.0  ;;  %v8736_v63 = vld [vmem:[%s13811_s5 + $0xb0] sm:$0xff] }
 0x2c8   : > { %2895 = vmatpush.bf16.msrb.mxu2 %v8736_v63  ;;  %v2006_v47 = vmax.f32 %v1822_v31, 0.0  ;;  %v8759_v63 = vld [vmem:[%s13811_s5 + $0x168] sm:$0xff]  ;;  %v8774_v31 = vld [vmem:[%s13811_s5 + $0x1e0] sm:$0xff] }
 0x2c9   : > { %v9099_v46 = vpack.i.bf16 %v1999_v17, %v1998_v53  ;;  %2908 = vmatpush.bf16.msrb.mxu3 %v8744_v11  ;;  %v8766_v11 = vld [vmem:[%s13811_s5 + $0x1a0] sm:$0xff] }
 0x2ca   : > { %v1954_v38 = vpop.f32.mrf.mxu2  ;;  %v1982_v12 = vpop.f32.mrf.mxu3 }
 0x2cb   : > { %v1955_v58 = vadd.f32 %v1954_v38, %v1927_v29  ;;  %9100 = vrot.lane.b32.xlu0 %v9099_v46, %s13864_s21  ;;  %v1903_v37 = vpop.f32.mrf.mxu0  ;;  %v1928_v48 = vpop.f32.mrf.mxu1  ;;  %v1881_v29 = vadd.f32 %v10751_v42, %v1853_v62  ;;  %v8727_v38 = vld [vmem:[%s13811_s5 + $0x68] sm:$0xff]  ;;  %v8768_v62 = vld [vmem:[%s13811_s5 + $0x1b0] sm:$0xff] }
 0x2cc   : > { %v1904_v16 = vadd.f32 %v1903_v37, %v1876_v21  ;;  %v1929_v26 = vadd.f32 %v1928_v48, %v1901_v32  ;;  %v8751_v42 = vld [vmem:[%s13811_s5 + $0x128] sm:$0xff]  ;;  %2883 = vmatpush.bf16.msrb.mxu1 %v8727_v38  ;;  %2896 = vmatpush.bf16.msrb.mxu2 %v8735_v50 }
 0x2cd   : > { %v1983_v61 = vadd.f32 %v1982_v12, %v1955_v58  ;;  %v8743_v12 = vld [vmem:[%s13811_s5 + $0xe8] sm:$0xff]  ;;  %2922 = vmatpush.bf16.msra.mxu0 %v8751_v42  ;;  %v8785_v42 = vld [vmem:[%s13811_s5 + $0x238] sm:$0xff] }
 0x2ce   : > { %2909 = vmatpush.bf16.msrb.mxu3 %v8743_v12  ;;  %v8755_v38 = vld [vmem:[%s13811_s5 + $0x148] sm:$0xff] }
 0x2cf   : > { %v2001_v6 = vmax.f32 %v1983_v61, 0.0  ;;  %v8734_v61 = vld [vmem:[%s13811_s5 + $0xa0] sm:$0xff]  ;;  %v8763_v50 = vld [vmem:[%s13811_s5 + $0x188] sm:$0xff] }
 0x2d0   : > { %2884 = vmatpush.bf16.msrb.mxu1 %v8726_v18  ;;  %2897 = vmatpush.bf16.msrb.mxu2 %v8734_v61  ;;  %v8771_v12 = vld [vmem:[%s13811_s5 + $0x1c8] sm:$0xff] }
 0x2d1   : > { %2024 = vrot.lane.b32.xlu2 %v2001_v6, %s13828_s18  ;;  %v8742_v6 = vld [vmem:[%s13811_s5 + $0xe0] sm:$0xff] }
 0x2d2   : > { %v1956_v23 = vpop.f32.mrf.mxu2  ;;  %v1984_v24 = vpop.f32.mrf.mxu3  ;;  %2910 = vmatpush.bf16.msrb.mxu3 %v8742_v6  ;;  %v8782_v6 = vld [vmem:[%s13811_s5 + $0x220] sm:$0xff] }
 0x2d3   : > { %v1957_v7 = vadd.f32 %v1956_v23, %v1929_v26  ;;  %v1905_v28 = vpop.f32.mrf.mxu0  ;;  %v1931_v8 = vpop.f32.mrf.mxu1  ;;  %v8750_v23 = vld [vmem:[%s13811_s5 + $0x120] sm:$0xff] }
 0x2d4   : > { %v1932_v21 = vadd.f32 %v1931_v8, %v1904_v16  ;;  %v1906_v39 = vadd.f32 %v1905_v28, %v1878_v13  ;;  %v8741_v28 = vld [vmem:[%s13811_s5 + $0xd8] sm:$0xff]  ;;  %v2008_v8 = vmax.f32 %v10747_v19, 0.0  ;;  %2923 = vmatpush.bf16.msra.mxu0 %v8750_v23  ;;  %2885 = vmatpush.bf16.msrb.mxu1 %v8725_v54  ;;  %v8740_v19 = vld [vmem:[%s13811_s5 + $0xd0] sm:$0xff]  ;;  %v8730_v13 = vld [vmem:[%s13811_s5 + $0x80] sm:$0xff]  ;;  %v1997_v54 = vmax.f32 %v10758_v36, 0.0 }
 0x2d5   : > { %v1985_v3 = vadd.f32 %v1984_v24, %v1957_v7  ;;  %v8733_v7 = vld [vmem:[%s13811_s5 + $0x98] sm:$0xff]  ;;  %v8779_v23 = vld [vmem:[%s13811_s5 + $0x208] sm:$0xff] }
 0x2d6   : > { %2898 = vmatpush.bf16.msrb.mxu2 %v8733_v7  ;;  %2911 = vmatpush.bf16.msrb.mxu3 %v8741_v28  ;;  %v8801_v36 = vld [vmem:[%s13811_s5 + $0x2b8] sm:$0xff] }
 0x2d7   : > { %v2003_v14 = vmax.f32 %v1985_v3, 0.0  ;;  %v8749_v3 = vld [vmem:[%s13811_s5 + $0x118] sm:$0xff] }
 0x2d8   : > { %2924 = vmatpush.bf16.msra.mxu0 %v8749_v3 }
 0x2d9   : > { %v9104_v49 = vpack.i.bf16 %v2003_v14, %v2002_v33  ;;  %v8724_v33 = vld [vmem:[%s13811_s5 + $0x50] sm:$0xff] }
 0x2da   : > { %v1959_v27 = vpop.f32.mrf.mxu2  ;;  %v1987_v59 = vpop.f32.mrf.mxu3  ;;  %v8732_v14 = vld [vmem:[%s13811_s5 + $0x90] sm:$0xff]  ;;  %2886 = vmatpush.bf16.msrb.mxu1 %v8724_v33  ;;  %2912 = vmatpush.bf16.msrb.mxu3 %v8740_v19  ;;  %v8793_v33 = vld [vmem:[%s13811_s5 + $0x278] sm:$0xff] }
 0x2db   : > { %v1960_v22 = vadd.f32 %v1959_v27, %v1932_v21  ;;  %9105 = vrot.lane.b32.xlu0 %v9104_v49, %s13830_s28  ;;  %v1908_v57 = vpop.f32.mrf.mxu0  ;;  %v1933_v40 = vpop.f32.mrf.mxu1  ;;  %v8748_v49 = vld [vmem:[%s13811_s5 + $0x110] sm:$0xff]  ;;  %2899 = vmatpush.bf16.msrb.mxu2 %v8732_v14  ;;  %v8723_v27 = vld [vmem:[%s13811_s5 + $0x48] sm:$0xff]  ;;  %v8809_v19 = vld [vmem:[%s13811_s5 + $0x2f8] sm:$0xff]  ;;  %s6812_s28 = sshll.u32 %s13908_s19, 3 }
 0x2dc   : > { %v1934_v51 = vadd.f32 %v1933_v40, %v1906_v39  ;;  %v1909_v58 = vadd.f32 %v1908_v57, %v1881_v29  ;;  %2925 = vmatpush.bf16.msra.mxu0 %v8748_v49  ;;  %v8747_v57 = vld [vmem:[%s13811_s5 + $0x108] sm:$0xff]  ;;  %v8722_v40 = vld [vmem:[%s13811_s5 + $0x40] sm:$0xff]  ;;  %v8761_v39 = vld [vmem:[%s13811_s5 + $0x178] sm:$0xff] }
 0x2dd   : > { %v10782_v5 = vadd.f32 %v1987_v59, %v1960_v22  ;;  %v8731_v59 = vld [vmem:[%s13811_s5 + $0x88] sm:$0xff]  ;;  %v8764_v29 = vld [vmem:[%s13811_s5 + $0x190] sm:$0xff] }
 0x2de   : > { %2887 = vmatpush.bf16.msrb.mxu1 %v8723_v27  ;;  %2913 = vmatpush.bf16.msrb.mxu3 %v8739_v43  ;;  %v8792_v49 = vld [vmem:[%s13811_s5 + $0x270] sm:$0xff]  ;;  %v8811_v27 = vld [vmem:[%s13811_s5 + $0x308] sm:$0xff] }
 0x2df   : > { %2900 = vmatpush.bf16.msrb.mxu2 %v8731_v59  ;;  %v8800_v59 = vld [vmem:[%s13811_s5 + $0x2b0] sm:$0xff] }
 0x2e0   : > { %2926 = vmatpush.bf16.msra.mxu0 %v8747_v57  ;;  %v8808_v43 = vld [vmem:[%s13811_s5 + $0x2f0] sm:$0xff]  ;;  %v8810_v57 = vld [vmem:[%s13811_s5 + $0x300] sm:$0xff] }
 0x2e2   : > { %v1961_v53 = vpop.f32.mrf.mxu2  ;;  %v1989_v60 = vpop.f32.mrf.mxu3  ;;  %2888 = vmatpush.bf16.msrb.mxu1 %v8722_v40  ;;  %2914 = vmatpush.bf16.msrb.mxu3 %v8738_v34  ;;  %v8791_v40 = vld [vmem:[%s13811_s5 + $0x268] sm:$0xff] }
 0x2e3   : > { %v1962_v45 = vadd.f32 %v1961_v53, %v1934_v51  ;;  %v1910_v17 = vpop.f32.mrf.mxu0  ;;  %v1936_v10 = vpop.f32.mrf.mxu1  ;;  %2901 = vmatpush.bf16.msrb.mxu2 %v8730_v13  ;;  %v8776_v51 = vld [vmem:[%s13811_s5 + $0x1f0] sm:$0xff]  ;;  %v8775_v53 = vld [vmem:[%s13811_s5 + $0x1e8] sm:$0xff] }
 0x2e4   : > { %v1937_v48 = vadd.f32 %v1936_v10, %v1909_v58  ;;  %2927 = vmatpush.bf16.msra.mxu0 %v8746_v56  ;;  %v8765_v17 = vld [vmem:[%s13811_s5 + $0x198] sm:$0xff]  ;;  %v8762_v58 = vld [vmem:[%s13811_s5 + $0x180] sm:$0xff]  ;;  %v8799_v13 = vld [vmem:[%s13811_s5 + $0x2a8] sm:$0xff] }
 0x2e5   : > { %v1990_v46 = vadd.f32 %v1989_v60, %v1962_v45  ;;  %v8758_v60 = vld [vmem:[%s13811_s5 + $0x160] sm:$0xff]  ;;  %v8757_v45 = vld [vmem:[%s13811_s5 + $0x158] sm:$0xff]  ;;  %v8807_v34 = vld [vmem:[%s13811_s5 + $0x2e8] sm:$0xff] }
 0x2e6   : > { %2933 = vmatpush.bf16.msra.mxu1 %v8761_v39  ;;  %2959 = vmatpush.bf16.msra.mxu3 %v8777_v55  ;;  %v8773_v10 = vld [vmem:[%s13811_s5 + $0x1d8] sm:$0xff]  ;;  %v8790_v39 = vld [vmem:[%s13811_s5 + $0x260] sm:$0xff] }
 0x2e7   : > { %v2007_v37 = vmax.f32 %v1990_v46, 0.0  ;;  %2946 = vmatpush.bf16.msra.mxu2 %v8769_v41  ;;  %v8772_v46 = vld [vmem:[%s13811_s5 + $0x1d0] sm:$0xff]  ;;  %v8798_v55 = vld [vmem:[%s13811_s5 + $0x2a0] sm:$0xff] }
 0x2e8   : > { %2972 = vmatpush.bf16.msrb.mxu0 %v8785_v42  ;;  %v8802_v42 = vld [vmem:[%s13811_s5 + $0x2c0] sm:$0xff] }
 0x2e9   : > { %v9109_v16 = vpack.i.bf16 %v2007_v37, %v2006_v47  ;;  %v8754_v47 = vld [vmem:[%s13811_s5 + $0x140] sm:$0xff] }
 0x2ea   : > { %v1964_v1 = vpop.f32.mrf.mxu2  ;;  %v1992_v32 = vpop.f32.mrf.mxu3  ;;  %2934 = vmatpush.bf16.msra.mxu1 %v8760_v0  ;;  %2960 = vmatpush.bf16.msra.mxu3 %v8776_v51  ;;  %v8770_v37 = vld [vmem:[%s13811_s5 + $0x1c0] sm:$0xff] }
 0x2eb   : > { %v1965_v15 = vadd.f32 %v1964_v1, %v1937_v48  ;;  %9110 = vrot.lane.b32.xlu1 %v9109_v16, %s13864_s21  ;;  %v1938_v26 = vpop.f32.mrf.mxu1  ;;  %2947 = vmatpush.bf16.msra.mxu2 %v8768_v62  ;;  %v8784_v48 = vld [vmem:[%s13811_s5 + $0x230] sm:$0xff]  ;;  %v8783_v16 = vld [vmem:[%s13811_s5 + $0x228] sm:$0xff]  ;;  %v8806_v0 = vld [vmem:[%s13811_s5 + $0x2e0] sm:$0xff] }
 0x2ec   : > { %2973 = vmatpush.bf16.msrb.mxu0 %v8784_v48  ;;  %v8780_v26 = vld [vmem:[%s13811_s5 + $0x210] sm:$0xff]  ;;  %v2005_v48 = vmax.f32 %v10782_v5, 0.0 }
 0x2ed   : > { %v1993_v24 = vadd.f32 %v1992_v32, %v1965_v15  ;;  %v8781_v15 = vld [vmem:[%s13811_s5 + $0x218] sm:$0xff] }
 0x2ee   : > { %2935 = vmatpush.bf16.msra.mxu1 %v8759_v63  ;;  %2961 = vmatpush.bf16.msra.mxu3 %v8775_v53 }
 0x2ef   : > { %v2009_v21 = vmax.f32 %v1993_v24, 0.0  ;;  %2948 = vmatpush.bf16.msra.mxu2 %v8767_v2  ;;  %v8789_v2 = vld [vmem:[%s13811_s5 + $0x258] sm:$0xff] }
 0x2f0   : > { %2974 = vmatpush.bf16.msrb.mxu0 %v8783_v16 }
 0x2f1   : > { %v9114_v30 = vpack.i.bf16 %v2009_v21, %v2008_v8  ;;  %v8778_v8 = vld [vmem:[%s13811_s5 + $0x200] sm:$0xff] }
 0x2f2   : > { %v1966_v44 = vpop.f32.mrf.mxu2  ;;  %v1994_v25 = vpop.f32.mrf.mxu3  ;;  %2936 = vmatpush.bf16.msra.mxu1 %v8758_v60  ;;  %2962 = vmatpush.bf16.msra.mxu3 %v8774_v31 }
 0x2f3   : > { %9115 = vrot.lane.b32.xlu2 %v9114_v30, %s13828_s18  ;;  %2949 = vmatpush.bf16.msra.mxu2 %v8766_v11  ;;  %v8797_v11 = vld [vmem:[%s13811_s5 + $0x298] sm:$0xff]  ;;  %s6718_s18 = sshll.u32 %s13895_s0, 4  ;;  %s6719_s18 = int_to_ptr.vmem [resolvable:$true] %s6718_s18 }
 0x2f4   : > { %2975 = vmatpush.bf16.msrb.mxu0 %v8782_v6 }
 0x2f6   : > { %2937 = vmatpush.bf16.msra.mxu1 %v8757_v45  ;;  %2963 = vmatpush.bf16.msra.mxu3 %v8773_v10  ;;  %v8788_v45 = vld [vmem:[%s13811_s5 + $0x250] sm:$0xff] }
 0x2f7   : > { %v10874_v22 = vpop.f32.mrf.mxu0  ;;  %2950 = vmatpush.bf16.msra.mxu2 %v8765_v17  ;;  %v8796_v17 = vld [vmem:[%s13811_s5 + $0x290] sm:$0xff] }
 0x2f8   : > { %2976 = vmatpush.bf16.msrb.mxu0 %v8781_v15  ;;  %v8804_v10 = vld [vmem:[%s13811_s5 + $0x2d0] sm:$0xff] }
 0x2fa   : > { %2938 = vmatpush.bf16.msra.mxu1 %v8756_v35  ;;  %2964 = vmatpush.bf16.msra.mxu3 %v8772_v46  ;;  %v2023_v18 = vpop.permute.xlu1 %2022  ;;  %v8795_v46 = vld [vmem:[%s13811_s5 + $0x288] sm:$0xff] }
 0x2fb   : > { %2951 = vmatpush.bf16.msra.mxu2 %v8764_v29  ;;  %v8787_v29 = vld [vmem:[%s13811_s5 + $0x248] sm:$0xff] }
 0x2fc   : > { %2977 = vmatpush.bf16.msrb.mxu0 %v8780_v26 }
 0x2fe   : > { %2939 = vmatpush.bf16.msra.mxu1 %v8755_v38  ;;  %2965 = vmatpush.bf16.msra.mxu3 %v8771_v12  ;;  %v8803_v38 = vld [vmem:[%s13811_s5 + $0x2c8] sm:$0xff] }
 0x2ff   : > { %v2879_v4 = vpop.f32.mrf.mxu0  ;;  %2952 = vmatpush.bf16.msra.mxu2 %v8763_v50 }
 0x300   : > { %2978 = vmatpush.bf16.msrb.mxu0 %v8779_v23  ;;  %v2004_v4 = vmax.f32 %v10738_v52, 0.0  ;;  %v8805_v52 = vld [vmem:[%s13811_s5 + $0x2d8] sm:$0xff] }
 0x302   : > { %2940 = vmatpush.bf16.msra.mxu1 %v8754_v47  ;;  %2966 = vmatpush.bf16.msra.mxu3 %v8770_v37  ;;  %v2071_v31 = vpack.c.bf16 %v2004_v4, %v2004_v4  ;;  %v8786_v47 = vld [vmem:[%s13811_s5 + $0x240] sm:$0xff] }
 0x303   : > { %2953 = vmatpush.bf16.msra.mxu2 %v8762_v58  ;;  %v8794_v37 = vld [vmem:[%s13811_s5 + $0x280] sm:$0xff] }
 0x304   : > { %2979 = vmatpush.bf16.msrb.mxu0 %v8778_v8  ;;  %v8851_v8 = vld [vmem:[%s13813_s7 + $0x13c] sm:$0xf]  ;;  %v8844_v4 = vld [vmem:[%s13813_s7 + $0x100] sm:$0xf0] }
 0x32b   : > { %v2025_v61 = vpop.permute.xlu2 %2024 }
 0x32c   : > { %v2026_v1 = vsel %vm1070_vm4, %v2023_v18, %v2025_v61 }
 0x32d   : > { %v2068_v32 = vpack.c.bf16 %v2026_v1, %v2026_v1 }
 0x32f   : > { %2928 = vmatmul.bf16.vlgmr.msra.gmra.mxu0 %v2068_v32 }
 0x330   : > { %3030 = vmatpush.bf16.msra.mxu0 %v8811_v27 }
 0x334   : > { %3031 = vmatpush.bf16.msra.mxu0 %v8810_v57 }
 0x33d   : > { %v9101_v24 = vpop.permute.xlu0 %9100 }
 0x33e   : > { %v9103_v7 = vunpack.i.h.bf16 %v9101_v24  ;;  %v9102_v28 = vunpack.i.l.bf16 %v9101_v24 }
 0x340   : > { %v2060_v21 = vsel %vm1070_vm4, %v9103_v7, %v2023_v18  ;;  %v2016_v3 = vsel %vm999_vm2, %v9102_v28, %v9103_v7  ;;  %v2059_v30 = vsel %vm999_vm2, %v1997_v54, %v9102_v28 }
 0x341   : > { %v2067_v14 = vpack.c.bf16 %v2060_v21, %v2060_v21  ;;  %v2065_v44 = vpack.c.bf16 %v2059_v30, %v2059_v30  ;;  %v2066_v25 = vpack.c.bf16 %v2016_v3, %v2016_v3  ;;  %v7860_v21 = vld [vmem:[%s13813_s7 + $0x16c] sm:$0xf0]  ;;  %v7866_v3 = vld [vmem:[%s13813_s7 + $0x140] sm:$0xf] }
 0x342   : > { %v7863_v30 = vor.u32 %v8851_v8, %v7860_v21  ;;  %v7876_v21 = vld [vmem:[%s13813_s7 + $0x17c] sm:$0xf0] }
 0x343   : > { %2889 = vmatmul.bf16.vlgmr.msrb.gmra.mxu1 %v2065_v44  ;;  %2902 = vmatmul.bf16.vlgmr.msrb.gmra.mxu2 %v2066_v25  ;;  %v8857_v44 = vld [vmem:[%s13813_s7 + $0x168] sm:$0xf0] }
 0x344   : > { %2915 = vmatmul.bf16.vlgmr.msrb.gmra.mxu3 %v2067_v14  ;;  %2985 = vmatpush.bf16.msrb.mxu1 %v8793_v33  ;;  %v8858_v33 = vld [vmem:[%s13813_s7 + $0x170] sm:$0xf0]  ;;  %v7858_v14 = vld [vmem:[%s13813_s7 + $0x138] sm:$0xf] }
 0x345   : > { %2998 = vmatpush.bf16.msrb.mxu2 %v8801_v36  ;;  %3011 = vmatpush.bf16.msrb.mxu3 %v8809_v19  ;;  %v7867_v25 = vor.u32 %v8858_v33, %v7866_v3  ;;  %v7859_v36 = vor.u32 %v8857_v44, %v7858_v14  ;;  %v8852_v19 = vld [vmem:[%s13813_s7 + $0x144] sm:$0xf]  ;;  %v7882_v3 = vld [vmem:[%s13813_s7 + $0x150] sm:$0xf] }
 0x348   : > { %2986 = vmatpush.bf16.msrb.mxu1 %v8792_v49  ;;  %v7868_v49 = vld [vmem:[%s13813_s7 + $0x174] sm:$0xf0] }
 0x349   : > { %2999 = vmatpush.bf16.msrb.mxu2 %v8800_v59  ;;  %3012 = vmatpush.bf16.msrb.mxu3 %v8808_v43  ;;  %v7871_v59 = vor.u32 %v8852_v19, %v7868_v49 }
 0x34c   : > { %2987 = vmatpush.bf16.msrb.mxu1 %v8791_v40  ;;  %v8838_v40 = vld [vmem:[%s13813_s7 + $0xd4] sm:$0xf] }
 0x34d   : > { %3000 = vmatpush.bf16.msrb.mxu2 %v8799_v13  ;;  %3013 = vmatpush.bf16.msrb.mxu3 %v8807_v34  ;;  %v9106_v41 = vpop.permute.xlu0 %9105  ;;  %v9116_v35 = vpop.permute.xlu2 %9115  ;;  %v7808_v13 = vld [vmem:[%s13813_s7 + $0x104] sm:$0xf0]  ;;  %v7814_v34 = vld [vmem:[%s13813_s7 + $0xd8] sm:$0xf] }
 0x34e   : > { %v9108_v62 = vunpack.i.h.bf16 %v9106_v41  ;;  %v9107_v51 = vunpack.i.l.bf16 %v9106_v41  ;;  %v9118_v50 = vunpack.i.h.bf16 %v9116_v35  ;;  %v9117_v12 = vunpack.i.l.bf16 %v9116_v35  ;;  %v8826_v35 = vld [vmem:[%s13813_s7 + $0x74] sm:$0xf] }
 0x34f   : > { %v7811_v41 = vor.u32 %v8838_v40, %v7808_v13  ;;  %v8846_v40 = vld [vmem:[%s13813_s7 + $0x110] sm:$0xf0]  ;;  %v8840_v13 = vld [vmem:[%s13813_s7 + $0xe4] sm:$0xf] }
 0x350   : > { %v2036_v56 = vsel %vm1647_vm7, %v9107_v51, %v9108_v62  ;;  %v2061_v63 = vsel %vm1647_vm7, %v2025_v61, %v9107_v51  ;;  %2988 = vmatpush.bf16.msrb.mxu1 %v8790_v39  ;;  %v2055_v61 = vsel %vm1070_vm4, %v9117_v12, %v9118_v50  ;;  %v2076_v5 = vpack.c.bf16 %v9118_v50, %v9118_v50  ;;  %v9224_v39 = vld [vmem:[%s13812_s6] ss:$0 sm:$0xff] }
 0x351   : > { %v2069_v53 = vpack.c.bf16 %v2061_v63, %v2061_v63  ;;  %v2070_v60 = vpack.c.bf16 %v2036_v56, %v2036_v56  ;;  %3001 = vmatpush.bf16.msrb.mxu2 %v8798_v55  ;;  %3014 = vmatpush.bf16.msrb.mxu3 %v8806_v0  ;;  %v2075_v24 = vpack.c.bf16 %v2055_v61, %v2055_v61  ;;  %v8845_v55 = vld [vmem:[%s13813_s7 + $0x108] sm:$0xf0]  ;;  %v7806_v0 = vld [vmem:[%s13813_s7 + $0xd0] sm:$0xf]  ;;  %v8839_v56 = vld [vmem:[%s13813_s7 + $0xdc] sm:$0xf] }
 0x352   : > { %v7815_v62 = vor.u32 %v8845_v55, %v7814_v34  ;;  %v7807_v51 = vor.u32 %v8844_v4, %v7806_v0  ;;  %v7816_v63 = vld [vmem:[%s13813_s7 + $0x10c] sm:$0xf0]  ;;  %v7702_v61 = vld [vmem:[%s13813_s7] sm:$0xf]  ;;  %v7824_v34 = vld [vmem:[%s13813_s7 + $0x114] sm:$0xf0] }
 0x353   : > { %2941 = vmatmul.bf16.vlgmr.msra.gmra.mxu1 %v2069_v53  ;;  %2954 = vmatmul.bf16.vlgmr.msra.gmra.mxu2 %v2070_v60  ;;  %v7819_v53 = vor.u32 %v8839_v56, %v7816_v63  ;;  %v7756_v60 = vld [vmem:[%s13813_s7 + $0x9c] sm:$0xf0]  ;;  %v7827_v55 = vor.u32 %v8840_v13, %v7824_v34  ;;  %v8841_v4 = vld [vmem:[%s13813_s7 + $0xec] sm:$0xf] }
 0x354   : > { %2967 = vmatmul.bf16.vlgmr.msra.gmra.mxu3 %v2071_v31  ;;  %2989 = vmatpush.bf16.msrb.mxu1 %v8789_v2  ;;  %v8825_v2 = vld [vmem:[%s13813_s7 + $0x6c] sm:$0xf] }
 0x355   : > { %3002 = vmatpush.bf16.msrb.mxu2 %v8797_v11  ;;  %3015 = vmatpush.bf16.msrb.mxu3 %v8805_v52  ;;  %v7762_v11 = vld [vmem:[%s13813_s7 + $0x70] sm:$0xf]  ;;  %v8832_v52 = vld [vmem:[%s13813_s7 + $0xa0] sm:$0xf0]  ;;  %v7759_v31 = vor.u32 %v8825_v2, %v7756_v60  ;;  %v8833_v2 = vld [vmem:[%s13813_s7 + $0xa8] sm:$0xf0] }
 0x356   : > { %v7772_v60 = vld [vmem:[%s13813_s7 + $0xac] sm:$0xf0] }
 0x358   : > { %2990 = vmatpush.bf16.msrb.mxu1 %v8788_v45  ;;  %v7763_v45 = vor.u32 %v8832_v52, %v7762_v11 }
 0x359   : > { %3003 = vmatpush.bf16.msrb.mxu2 %v8796_v17  ;;  %3016 = vmatpush.bf16.msrb.mxu3 %v8804_v10  ;;  %v7754_v17 = vld [vmem:[%s13813_s7 + $0x68] sm:$0xf]  ;;  %v8831_v10 = vld [vmem:[%s13813_s7 + $0x98] sm:$0xf0] }
 0x35c   : > { %2991 = vmatpush.bf16.msrb.mxu1 %v8787_v29  ;;  %v7755_v29 = vor.u32 %v8831_v10, %v7754_v17 }
 0x35d   : > { %3004 = vmatpush.bf16.msrb.mxu2 %v8795_v46  ;;  %3017 = vmatpush.bf16.msrb.mxu3 %v8803_v38  ;;  %v9111_v58 = vpop.permute.xlu1 %9110  ;;  %v7764_v46 = vld [vmem:[%s13813_s7 + $0xa4] sm:$0xf0] }
 0x35e   : > { %v9113_v16 = vunpack.i.h.bf16 %v9111_v58  ;;  %v9112_v18 = vunpack.i.l.bf16 %v9111_v58  ;;  %v7767_v50 = vor.u32 %v8826_v35, %v7764_v46  ;;  %v7780_v35 = vld [vmem:[%s13813_s7 + $0xb4] sm:$0xf0]  ;;  %v8820_v46 = vld [vmem:[%s13813_s7 + $0x40] sm:$0xf0] }
 0x360   : > { %v2063_v1 = vsel %vm1070_vm4, %v9113_v16, %v9117_v12  ;;  %v2045_v32 = vsel %vm999_vm2, %v9112_v18, %v9113_v16  ;;  %v2062_v6 = vsel %vm999_vm2, %v2005_v48, %v9112_v18  ;;  %2992 = vmatpush.bf16.msrb.mxu1 %v8786_v47  ;;  %v2878_v12 = vadd.f32 %v9224_v39, %v10874_v22  ;;  %v7710_v48 = vld [vmem:[%s13813_s7 + $0x8] sm:$0xf]  ;;  %v8819_v18 = vld [vmem:[%s13813_s7 + $0x38] sm:$0xf0] }
 0x361   : > { %v2074_v15 = vpack.c.bf16 %v2063_v1, %v2063_v1  ;;  %v2072_v26 = vpack.c.bf16 %v2062_v6, %v2062_v6  ;;  %v2073_v23 = vpack.c.bf16 %v2045_v32, %v2045_v32  ;;  %3005 = vmatpush.bf16.msrb.mxu2 %v8794_v37  ;;  %3018 = vmatpush.bf16.msrb.mxu3 %v8802_v42  ;;  %v8812_v37 = vld [vmem:[%s13813_s7 + $0x4] sm:$0xf]  ;;  %v7704_v42 = vld [vmem:[%s13813_s7 + $0x34] sm:$0xf0]  ;;  %v8818_v1 = vld [vmem:[%s13813_s7 + $0x30] sm:$0xf0] }
 0x362   : > { %v7707_v22 = vor.u32 %v8812_v37, %v7704_v42  ;;  %v7711_v32 = vor.u32 %v8819_v18, %v7710_v48  ;;  %v7703_v6 = vor.u32 %v8818_v1, %v7702_v61  ;;  %v7830_v39 = vld [vmem:[%s13813_s7 + $0xe8] sm:$0xf]  ;;  %v7728_v18 = vld [vmem:[%s13813_s7 + $0x4c] sm:$0xf0] }
 0x363   : > { %2980 = vmatmul.bf16.vlgmr.msrb.gmra.mxu0 %v2072_v26  ;;  %2993 = vmatmul.bf16.vlgmr.msrb.gmra.mxu1 %v2073_v23  ;;  %v7712_v26 = vld [vmem:[%s13813_s7 + $0x3c] sm:$0xf0] }
 0x364   : > { %3006 = vmatmul.bf16.vlgmr.msrb.gmra.mxu2 %v2074_v15  ;;  %3019 = vmatmul.bf16.vlgmr.msrb.gmra.mxu3 %v2075_v24  ;;  %v8813_v15 = vld [vmem:[%s13813_s7 + $0xc] sm:$0xf] }
 0x365   : > { %3409 = vmatpush.bf16.msra.mxu2 %v7863_v30  ;;  %3422 = vmatpush.bf16.msra.mxu3 %v7867_v25  ;;  %v7715_v24 = vor.u32 %v8813_v15, %v7712_v26  ;;  %v8860_v30 = vld [vmem:[%s13813_s7 + $0x180] sm:$0xf0]  ;;  %v8854_v25 = vld [vmem:[%s13813_s7 + $0x154] sm:$0xf] }
 0x366   : > { %3396 = vmatpush.bf16.msra.mxu1 %v7859_v36  ;;  %3435 = vmatpush.bf16.msrb.mxu0 %v7871_v59  ;;  %v7883_v44 = vor.u32 %v8860_v30, %v7882_v3  ;;  %v7884_v36 = vld [vmem:[%s13813_s7 + $0x184] sm:$0xf0] }
 0x369   : > { %3410 = vmatpush.bf16.msra.mxu2 %v7811_v41  ;;  %3423 = vmatpush.bf16.msra.mxu3 %v7815_v62  ;;  %v8847_v41 = vld [vmem:[%s13813_s7 + $0x118] sm:$0xf0]  ;;  %v7832_v62 = vld [vmem:[%s13813_s7 + $0x11c] sm:$0xf0] }
 0x36a   : > { %3397 = vmatpush.bf16.msra.mxu1 %v7807_v51  ;;  %3436 = vmatpush.bf16.msrb.mxu0 %v7819_v53  ;;  %v7831_v0 = vor.u32 %v8847_v41, %v7830_v39  ;;  %v7770_v51 = vld [vmem:[%s13813_s7 + $0x78] sm:$0xf]  ;;  %v7835_v63 = vor.u32 %v8841_v4, %v7832_v62  ;;  %v8827_v53 = vld [vmem:[%s13813_s7 + $0x7c] sm:$0xf]  ;;  %v7838_v39 = vld [vmem:[%s13813_s7 + $0xf0] sm:$0xf] }
 0x36b   : > { %v7771_v11 = vor.u32 %v8833_v2, %v7770_v51  ;;  %v7775_v52 = vor.u32 %v8827_v53, %v7772_v60  ;;  %v8848_v41 = vld [vmem:[%s13813_s7 + $0x120] sm:$0xf0]  ;;  %v8842_v4 = vld [vmem:[%s13813_s7 + $0xf4] sm:$0xf]  ;;  %v7840_v62 = vld [vmem:[%s13813_s7 + $0x124] sm:$0xf0] }
 0x36c   : > { %v7846_v51 = vld [vmem:[%s13813_s7 + $0xf8] sm:$0xf]  ;;  %v7848_v2 = vld [vmem:[%s13813_s7 + $0x12c] sm:$0xf0]  ;;  %v7839_v53 = vor.u32 %v8848_v41, %v7838_v39  ;;  %v7843_v60 = vor.u32 %v8842_v4, %v7840_v62  ;;  %v7939_v62 = vld [vmem:[%s13815_s9 + $0x20] sm:$0xf] }
 0x36d   : > { %3411 = vmatpush.bf16.msra.mxu2 %v7759_v31  ;;  %3424 = vmatpush.bf16.msra.mxu3 %v7763_v45  ;;  %v8834_v31 = vld [vmem:[%s13813_s7 + $0xb0] sm:$0xf0]  ;;  %v8828_v45 = vld [vmem:[%s13813_s7 + $0x84] sm:$0xf] }
 0x36e   : > { %3398 = vmatpush.bf16.msra.mxu1 %v7755_v29  ;;  %3437 = vmatpush.bf16.msrb.mxu0 %v7767_v50  ;;  %v7718_v29 = vld [vmem:[%s13813_s7 + $0x10] sm:$0xf]  ;;  %v7783_v50 = vor.u32 %v8828_v45, %v7780_v35 }
 0x36f   : > { %v7719_v48 = vor.u32 %v8820_v46, %v7718_v29  ;;  %v7794_v35 = vld [vmem:[%s13813_s7 + $0x90] sm:$0xf]  ;;  %v8836_v29 = vld [vmem:[%s13813_s7 + $0xc0] sm:$0xf0]  ;;  %v8830_v46 = vld [vmem:[%s13813_s7 + $0x94] sm:$0xf] }
 0x371   : > { %3412 = vmatpush.bf16.msra.mxu2 %v7707_v22  ;;  %3425 = vmatpush.bf16.msra.mxu3 %v7711_v32  ;;  %v8815_v22 = vld [vmem:[%s13813_s7 + $0x1c] sm:$0xf] }
 0x372   : > { %3399 = vmatpush.bf16.msra.mxu1 %v7703_v6  ;;  %3438 = vmatpush.bf16.msrb.mxu0 %v7715_v24  ;;  %v7731_v15 = vor.u32 %v8815_v22, %v7728_v18  ;;  %v7742_v22 = vld [vmem:[%s13813_s7 + $0x28] sm:$0xf]  ;;  %v8823_v18 = vld [vmem:[%s13813_s7 + $0x58] sm:$0xf0] }
 0x373   : > { %7699 = vmatmul.msk.bf16.vlgmr.msra.gmra.mxu0 %vm1647_vm7, %v2076_v5  ;;  %v7874_v5 = vld [vmem:[%s13813_s7 + $0x148] sm:$0xf] }
 0x375   : > { %3474 = vmatpush.bf16.msrb.mxu3 %v7883_v44  ;;  %v8861_v44 = vld [vmem:[%s13813_s7 + $0x188] sm:$0xf0] }
 0x379   : > { %3475 = vmatpush.bf16.msrb.mxu3 %v7831_v0 }
 0x3ac   : > { %v11079_v54 = vpop.f32.mrf.mxu0 }
 0x3b4   : > { %v2931_v7 = vpop.f32.mrf.mxu0 }
 0x3b5   : > { %v8859_v7 = vld [vmem:[%s13813_s7 + $0x178] sm:$0xf0] }
 0x3b6   : > { %v7875_v8 = vor.u32 %v8859_v7, %v7874_v5 }
 0x3b8   : > { %3448 = vmatpush.bf16.msrb.mxu1 %v7875_v8 }
 0x3c0   : > { %v2890_v28 = vpop.f32.mrf.mxu1 }
 0x3c1   : > { %v2891_v16 = vadd.f32 %v2890_v28, %v2878_v12  ;;  %v8853_v28 = vld [vmem:[%s13813_s7 + $0x14c] sm:$0xf]  ;;  %v8814_v12 = vld [vmem:[%s13813_s7 + $0x14] sm:$0xf] }
 0x3c2   : > { %v7879_v14 = vor.u32 %v8853_v28, %v7876_v21 }
 0x3c4   : > { %3461 = vmatpush.bf16.msrb.mxu2 %v7879_v14  ;;  %v7890_v14 = vld [vmem:[%s13813_s7 + $0x158] sm:$0xf] }
 0x3c6   : > { %v2903_v27 = vpop.f32.mrf.mxu2 }
 0x3c7   : > { %v11105_v43 = vpop.f32.mrf.mxu3  ;;  %v2904_v23 = vadd.f32 %v2903_v27, %v2891_v16  ;;  %v7887_v27 = vor.u32 %v8854_v25, %v7884_v36  ;;  %v8821_v16 = vld [vmem:[%s13813_s7 + $0x48] sm:$0xf0]  ;;  %v8855_v36 = vld [vmem:[%s13813_s7 + $0x15c] sm:$0xf] }
 0x3c8   : > { %v2892_v57 = vpop.f32.mrf.mxu1  ;;  %3462 = vmatpush.bf16.msrb.mxu2 %v7827_v55 }
 0x3c9   : > { %v2917_v19 = vadd.f32 %v11105_v43, %v2904_v23  ;;  %v7822_v57 = vld [vmem:[%s13813_s7 + $0xe0] sm:$0xf]  ;;  %3487 = vmatpush.bf16.msra.mxu0 %v7887_v27 }
 0x3ca   : > { %v7823_v43 = vor.u32 %v8846_v40, %v7822_v57  ;;  %v8856_v57 = vld [vmem:[%s13813_s7 + $0x164] sm:$0xf]  ;;  %v7900_v40 = vld [vmem:[%s13813_s7 + $0x194] sm:$0xf0] }
 0x3cb   : > { %v2930_v56 = vadd.f32 %v11079_v54, %v2917_v19  ;;  %v7778_v54 = vld [vmem:[%s13813_s7 + $0x80] sm:$0xf]  ;;  %v7892_v19 = vld [vmem:[%s13813_s7 + $0x18c] sm:$0xf0]  ;;  %v7903_v0 = vor.u32 %v8856_v57, %v7900_v40  ;;  %v8824_v57 = vld [vmem:[%s13813_s7 + $0x60] sm:$0xf0] }
 0x3cc   : > { %3449 = vmatpush.bf16.msrb.mxu1 %v7823_v43  ;;  %v7779_v10 = vor.u32 %v8834_v31, %v7778_v54  ;;  %3463 = vmatpush.bf16.msrb.mxu2 %v7775_v52  ;;  %v7891_v43 = vor.u32 %v8861_v44, %v7890_v14  ;;  %v7895_v34 = vor.u32 %v8855_v36, %v7892_v19  ;;  %v8835_v52 = vld [vmem:[%s13813_s7 + $0xb8] sm:$0xf0]  ;;  %v7802_v44 = vld [vmem:[%s13813_s7 + $0x98] sm:$0xf]  ;;  %v7963_v19 = vld [vmem:[%s13815_s9 + $0x50] sm:$0xf] }
 0x3cd   : > { %3488 = vmatpush.bf16.msra.mxu0 %v7835_v63  ;;  %v8843_v63 = vld [vmem:[%s13813_s7 + $0xfc] sm:$0xf] }
 0x3ce   : > { %v2905_v38 = vpop.f32.mrf.mxu2  ;;  %3476 = vmatpush.bf16.msrb.mxu3 %v7779_v10  ;;  %v7851_v45 = vor.u32 %v8843_v63, %v7848_v2  ;;  %v7788_v10 = vld [vmem:[%s13813_s7 + $0xbc] sm:$0xf0]  ;;  %v7931_v63 = vld [vmem:[%s13815_s9 + $0x10] sm:$0xf]  ;;  %v8867_v2 = vld [vmem:[%s13815_s9 + $0x14] sm:$0xf0] }
 0x3cf   : > { %v2918_v47 = vpop.f32.mrf.mxu3 }
 0x3d0   : > { %v11159_v58 = vpop.f32.mrf.mxu1  ;;  %v7720_v47 = vld [vmem:[%s13813_s7 + $0x44] sm:$0xf0]  ;;  %3450 = vmatpush.bf16.msrb.mxu1 %v7771_v11 }
 0x3d1   : > { %v2943_v17 = vadd.f32 %v11159_v58, %v2930_v56  ;;  %v7726_v58 = vld [vmem:[%s13813_s7 + $0x18] sm:$0xf]  ;;  %v7723_v32 = vor.u32 %v8814_v12, %v7720_v47  ;;  %3489 = vmatpush.bf16.msra.mxu0 %v7783_v50  ;;  %v8849_v56 = vld [vmem:[%s13813_s7 + $0x128] sm:$0xf0]  ;;  %v7786_v11 = vld [vmem:[%s13813_s7 + $0x88] sm:$0xf] }
 0x3d2   : > { %v7727_v6 = vor.u32 %v8821_v16, %v7726_v58  ;;  %v7847_v31 = vor.u32 %v8849_v56, %v7846_v51  ;;  %v7787_v50 = vor.u32 %v8835_v52, %v7786_v11  ;;  %v7734_v47 = vld [vmem:[%s13813_s7 + $0x20] sm:$0xf]  ;;  %v8822_v58 = vld [vmem:[%s13813_s7 + $0x50] sm:$0xf0]  ;;  %v7736_v16 = vld [vmem:[%s13813_s7 + $0x54] sm:$0xf0] }
 0x3d3   : > { %3464 = vmatpush.bf16.msrb.mxu2 %v7723_v32  ;;  %v7735_v32 = vor.u32 %v8822_v58, %v7734_v47  ;;  %v8869_v51 = vld [vmem:[%s13815_s9 + $0x24] sm:$0xf0] }
 0x3d4   : > { %3451 = vmatpush.bf16.msrb.mxu1 %v7719_v48  ;;  %3477 = vmatpush.bf16.msrb.mxu3 %v7727_v6  ;;  %v8816_v48 = vld [vmem:[%s13813_s7 + $0x24] sm:$0xf]  ;;  %v7940_v56 = vor.u32 %v8869_v51, %v7939_v62  ;;  %v8865_v11 = vld [vmem:[%s13815_s9 + $0x4] sm:$0xf0] }
 0x3d5   : > { %3490 = vmatpush.bf16.msra.mxu0 %v7731_v15  ;;  %v7739_v6 = vor.u32 %v8816_v48, %v7736_v16  ;;  %v7743_v15 = vor.u32 %v8823_v18, %v7742_v22 }
 0x3d6   : > { %v2955_v33 = vpop.f32.mrf.mxu2 }
 0x3d7   : > { %v2968_v49 = vpop.f32.mrf.mxu3  ;;  %v2956_v37 = vadd.f32 %v2955_v33, %v2943_v17  ;;  %v8829_v17 = vld [vmem:[%s13813_s7 + $0x8c] sm:$0xf] }
 0x3d8   : > { %v2944_v59 = vpop.f32.mrf.mxu1  ;;  %v7791_v12 = vor.u32 %v8829_v17, %v7788_v10 }
 0x3d9   : > { %v2969_v26 = vadd.f32 %v2968_v49, %v2956_v37  ;;  %v7898_v49 = vld [vmem:[%s13813_s7 + $0x160] sm:$0xf]  ;;  %v8862_v59 = vld [vmem:[%s13813_s7 + $0x190] sm:$0xf0]  ;;  %v7795_v37 = vor.u32 %v8836_v29, %v7794_v35 }
 0x3da   : > { %v7899_v55 = vor.u32 %v8862_v59, %v7898_v49  ;;  %v8875_v49 = vld [vmem:[%s13815_s9 + $0x54] sm:$0xf0]  ;;  %v7750_v59 = vld [vmem:[%s13813_s7 + $0x30] sm:$0xf] }
 0x3db   : > { %v7964_v40 = vor.u32 %v8875_v49, %v7963_v19  ;;  %v7751_v39 = vor.u32 %v8824_v57, %v7750_v59  ;;  %v8893_v59 = vld [vmem:[%s13815_s9 + $0xe4] sm:$0xf0] }
 0x3de   : > { %v2957_v38 = vpop.f32.mrf.mxu2 }
 0x3df   : > { %v2970_v42 = vpop.f32.mrf.mxu3  ;;  %v7796_v38 = vld [vmem:[%s13813_s7 + $0xc4] sm:$0xf0] }
 0x3e0   : > { %v2981_v61 = vpop.f32.mrf.mxu0  ;;  %v2994_v1 = vpop.f32.mrf.mxu1  ;;  %v7799_v42 = vor.u32 %v8830_v46, %v7796_v38 }
 0x3e1   : > { %v2982_v23 = vadd.f32 %v2981_v61, %v2969_v26  ;;  %v8817_v61 = vld [vmem:[%s13813_s7 + $0x2c] sm:$0xf] }
 0x3e3   : > { %v2995_v8 = vadd.f32 %v2994_v1, %v2982_v23  ;;  %v7744_v1 = vld [vmem:[%s13813_s7 + $0x5c] sm:$0xf0]  ;;  %v7906_v23 = vld [vmem:[%s13813_s7 + $0x168] sm:$0xf] }
 0x3e4   : > { %v7747_v26 = vor.u32 %v8817_v61, %v7744_v1 }
 0x3e7   : > { %v3007_v24 = vpop.f32.mrf.mxu2  ;;  %v3020_v5 = vpop.f32.mrf.mxu3 }
 0x3e8   : > { %v2983_v7 = vpop.f32.mrf.mxu0  ;;  %v2996_v28 = vpop.f32.mrf.mxu1  ;;  %v3008_v21 = vadd.f32 %v3007_v24, %v2995_v8  ;;  %v8863_v24 = vld [vmem:[%s13813_s7 + $0x198] sm:$0xf0]  ;;  %v7979_v8 = vld [vmem:[%s13815_s9 + $0x70] sm:$0xf] }
 0x3e9   : > { %v7854_v7 = vld [vmem:[%s13813_s7 + $0x100] sm:$0xf]  ;;  %v8850_v28 = vld [vmem:[%s13813_s7 + $0x130] sm:$0xf0] }
 0x3ea   : > { %v3021_v3 = vadd.f32 %v3020_v5, %v3008_v21  ;;  %v7907_v5 = vor.u32 %v8863_v24, %v7906_v23  ;;  %v8879_v21 = vld [vmem:[%s13815_s9 + $0x74] sm:$0xf0]  ;;  %v7855_v14 = vor.u32 %v8850_v28, %v7854_v7 }
 0x3ef   : > { %v3009_v30 = vpop.f32.mrf.mxu2  ;;  %v3022_v33 = vpop.f32.mrf.mxu3 }
 0x3f0   : > { %v3033_v25 = vpop.f32.mrf.mxu0  ;;  %v7980_v30 = vor.u32 %v8879_v21, %v7979_v8  ;;  %v8877_v33 = vld [vmem:[%s13815_s9 + $0x64] sm:$0xf0] }
 0x3f1   : > { %v3034_v27 = vadd.f32 %v3033_v25, %v3021_v3  ;;  %v7971_v3 = vld [vmem:[%s13815_s9 + $0x60] sm:$0xf]  ;;  %v8837_v25 = vld [vmem:[%s13813_s7 + $0xc8] sm:$0xf0] }
 0x3f2   : > { %v7972_v36 = vor.u32 %v8877_v33, %v7971_v3 }
 0x3f3   : > { %v11313_v13 = vpack.c.bf16 %v3034_v27, %v3034_v27  ;;  %3037 = vst.msk [vmem:[%s13833_s27] sm:$0xff] %vm1070_vm4, %v3034_v27  ;;  %v7803_v27 = vor.u32 %v8837_v25, %v7802_v44  ;;  %s13866_s27 = smov 64   ;;  %v8043_v44 = vld [vmem:[%s13815_s9 + $0xf0] sm:$0xf]  ;;  %v8895_v25 = vld [vmem:[%s13815_s9 + $0xf4] sm:$0xf0] }
 0x3f5   : > { %7908 = vmatmul.msk.bf16.vlgmr.msra.gmra.mxu1 %vm1070_vm4, %v11313_v13  ;;  %7909 = vmatmul.msk.bf16.vlgmr.msra.gmra.mxu2 %vm1070_vm4, %v11313_v13 }
 0x3f6   : > { %7910 = vmatmul.msk.bf16.vlgmr.msra.gmra.mxu3 %vm1070_vm4, %v11313_v13  ;;  %7911 = vmatmul.msk.bf16.vlgmr.msrb.gmra.mxu0 %vm1070_vm4, %v11313_v13 }
 0x3f7   : > { %3500 = vmatpush.bf16.msra.mxu1 %v7891_v43  ;;  %3513 = vmatpush.bf16.msra.mxu2 %v7895_v34  ;;  %v7955_v43 = vld [vmem:[%s13815_s9 + $0x40] sm:$0xf]  ;;  %v8873_v34 = vld [vmem:[%s13815_s9 + $0x44] sm:$0xf0] }
 0x3f8   : > { %v3035_v54 = vpop.f32.mrf.mxu0  ;;  %3526 = vmatpush.bf16.msra.mxu3 %v7899_v55  ;;  %3539 = vmatpush.bf16.msrb.mxu0 %v7903_v0  ;;  %v7956_v41 = vor.u32 %v8873_v34, %v7955_v43  ;;  %v7947_v55 = vld [vmem:[%s13815_s9 + $0x30] sm:$0xf]  ;;  %v8871_v0 = vld [vmem:[%s13815_s9 + $0x34] sm:$0xf0] }
 0x3f9   : > { %v7948_v4 = vor.u32 %v8871_v0, %v7947_v55  ;;  %v8027_v43 = vld [vmem:[%s13815_s9 + $0xd0] sm:$0xf]  ;;  %v8891_v34 = vld [vmem:[%s13815_s9 + $0xd4] sm:$0xf0]  ;;  %v11538_v0 = vld [vmem:[%s13814_s8 + $0x8] sm:$0x1f] }
 0x3fb   : > { %3501 = vmatpush.bf16.msra.mxu1 %v7839_v53  ;;  %3514 = vmatpush.bf16.msra.mxu2 %v7843_v60  ;;  %v7932_v53 = vor.u32 %v8867_v2, %v7931_v63  ;;  %v7923_v60 = vld [vmem:[%s13815_s9] sm:$0xf]  ;;  %v3109_v63 = vperm.slane %v11538_v0, 2 }
 0x3fc   : > { %3527 = vmatpush.bf16.msra.mxu3 %v7847_v31  ;;  %3540 = vmatpush.bf16.msrb.mxu0 %v7851_v45  ;;  %v7924_v52 = vor.u32 %v8865_v11, %v7923_v60 }
 0x3ff   : > { %3502 = vmatpush.bf16.msra.mxu1 %v7787_v50  ;;  %3515 = vmatpush.bf16.msra.mxu2 %v7791_v12 }
 0x400   : > { %3528 = vmatpush.bf16.msra.mxu3 %v7795_v37  ;;  %3541 = vmatpush.bf16.msrb.mxu0 %v7799_v42 }
 0x403   : > { %3503 = vmatpush.bf16.msra.mxu1 %v7735_v32  ;;  %3516 = vmatpush.bf16.msra.mxu2 %v7739_v6 }
 0x404   : > { %3529 = vmatpush.bf16.msra.mxu3 %v7743_v15  ;;  %3542 = vmatpush.bf16.msrb.mxu0 %v7747_v26 }
 0x405   : > { %7912 = vmatmul.msk.bf16.vlgmr.msrb.gmra.mxu1 %vm1070_vm4, %v11313_v13  ;;  %7913 = vmatmul.msk.bf16.vlgmr.msrb.gmra.mxu2 %vm1070_vm4, %v11313_v13 }
 0x406   : > { %7914 = vmatmul.msk.bf16.vlgmr.msrb.gmra.mxu3 %vm1070_vm4, %v11313_v13  ;;  %7915 = vmatmul.msk.bf16.vlgmr.msra.gmra.mxu0 %vm1070_vm4, %v11313_v13 }
 0x407   : > { %3552 = vmatpush.bf16.msrb.mxu1 %v7907_v5  ;;  %4345 = vmatpush.bf16.msrb.mxu2 %v7980_v30 }
 0x40b   : > { %3553 = vmatpush.bf16.msrb.mxu1 %v7855_v14  ;;  %4346 = vmatpush.bf16.msrb.mxu2 %v7972_v36  ;;  %v8035_v36 = vld [vmem:[%s13815_s9 + $0xe0] sm:$0xf] }
 0x40f   : > { %3554 = vmatpush.bf16.msrb.mxu1 %v7803_v27  ;;  %4347 = vmatpush.bf16.msrb.mxu2 %v7964_v40  ;;  %v8044_v27 = vor.u32 %v8895_v25, %v8043_v44  ;;  %v8036_v40 = vor.u32 %v8893_v59, %v8035_v36  ;;  %v8905_v44 = vld [vmem:[%s13815_s9 + $0x144] sm:$0xf0]  ;;  %v8075_v36 = vld [vmem:[%s13815_s9 + $0x130] sm:$0xf] }
 0x410   : > { %v8901_v59 = vld [vmem:[%s13815_s9 + $0x124] sm:$0xf0] }
 0x411   : > { %4389 = vmatpush.bf16.msrb.mxu3 %v8044_v27  ;;  %v8067_v27 = vld [vmem:[%s13815_s9 + $0x120] sm:$0xf] }
 0x413   : > { %3555 = vmatpush.bf16.msrb.mxu1 %v7751_v39  ;;  %4348 = vmatpush.bf16.msrb.mxu2 %v7956_v41 }
 0x415   : > { %7916 = vmatmul.msk.bf16.vlgmr.msra.gmra.mxu1 %vm1070_vm4, %v11313_v13  ;;  %7917 = vmatmul.msk.bf16.vlgmr.msra.gmra.mxu2 %vm1070_vm4, %v11313_v13 }
 0x416   : > { %7918 = vmatmul.msk.bf16.vlgmr.msra.gmra.mxu3 %vm1070_vm4, %v11313_v13  ;;  %7919 = vmatmul.msk.bf16.vlgmr.msrb.gmra.mxu0 %vm1070_vm4, %v11313_v13 }
 0x417   : > { %4349 = vmatpush.bf16.msrb.mxu2 %v7948_v4  ;;  %4390 = vmatpush.bf16.msrb.mxu3 %v8036_v40  ;;  %v8028_v4 = vor.u32 %v8891_v34, %v8027_v43  ;;  %v8059_v40 = vld [vmem:[%s13815_s9 + $0x110] sm:$0xf]  ;;  %v8899_v43 = vld [vmem:[%s13815_s9 + $0x114] sm:$0xf0] }
 0x418   : > { %v8060_v34 = vor.u32 %v8899_v43, %v8059_v40  ;;  %v8139_v40 = vld [vmem:[%s13815_s9 + $0x1b0] sm:$0xf]  ;;  %v8919_v43 = vld [vmem:[%s13815_s9 + $0x1b4] sm:$0xf0] }
 0x41b   : > { %4350 = vmatpush.bf16.msrb.mxu2 %v7940_v56  ;;  %v3110_v56 = vperm.slane %v11538_v0, 3  ;;  %4391 = vmatpush.bf16.msrb.mxu3 %v8028_v4 }
 0x41f   : > { %4351 = vmatpush.bf16.msrb.mxu2 %v7932_v53 }
 0x423   : > { %4352 = vmatpush.bf16.msrb.mxu2 %v7924_v52 }
 0x425   : > { %7920 = vmatmul.msk.bf16.vlgmr.msrb.gmra.mxu1 %vm1070_vm4, %v11313_v13  ;;  %v11492_v13 = vld [vmem:[%s13814_s8] sm:$0xff] }
 0x426   : > { %v3099_v54 = vperm.slane %v11492_v13, 0  ;;  %v3102_v31 = vperm.slane %v11492_v13, 3  ;;  %v3100_v46 = vperm.slane %v11492_v13, 1  ;;  %v3101_v50 = vperm.slane %v11492_v13, 2 }
 0x427   : > { %v3103_v32 = vperm.slane %v11492_v13, 4  ;;  %v3104_v7 = vperm.slane %v11492_v13, 5  ;;  %v3105_v28 = vperm.slane %v11492_v13, 6 }
 0x472   : > { %v3401_v45 = vpop.f32.mrf.mxu1 }
 0x473   : > { %v3402_v17 = vadd.f32 %v3401_v45, %v3099_v54  ;;  %v3440_v10 = vpop.f32.mrf.mxu0 }
 0x474   : > { %v3441_v35 = vadd.f32 %v3440_v10, %v3102_v31 }
 0x475   : > { %v3561_v29 = vmax.f32 %v3402_v17, 0.0 }
 0x476   : > { %v3564_v38 = vmax.f32 %v3441_v35, 0.0 }
 0x477   : > { %v11499_v12 = vpack.c.bf16 %v3561_v29, %v13834_v20  ;;  %v9129_v61 = vpack.i.bf16 %v3561_v29, %v13834_v20 }
 0x478   : > { %3581 = vrot.lane.b32.xlu1 %v3564_v38, %s13865_s1  ;;  %v3414_v47 = vpop.f32.mrf.mxu2 }
 0x479   : > { %v3415_v58 = vadd.f32 %v3414_v47, %v3100_v46  ;;  %v3427_v37 = vpop.f32.mrf.mxu3  ;;  %4353 = vmatmul.bf16.vlgmr.msrb.gmra.mxu2 %v11499_v12 }
 0x47a   : > { %v3428_v42 = vadd.f32 %v3427_v37, %v3101_v50  ;;  %v3403_v48 = vpop.f32.mrf.mxu1  ;;  %v8889_v50 = vld [vmem:[%s13815_s9 + $0xc4] sm:$0xf0]  ;;  %v8887_v37 = vld [vmem:[%s13815_s9 + $0xb4] sm:$0xf0] }
 0x47b   : > { %v11503_v16 = vmax.f32 %v3415_v58, 0.0  ;;  %v3442_v22 = vpop.f32.mrf.mxu0  ;;  %v8011_v58 = vld [vmem:[%s13815_s9 + $0xb0] sm:$0xf]  ;;  %v8003_v48 = vld [vmem:[%s13815_s9 + $0xa0] sm:$0xf] }
 0x47c   : > { %v3563_v18 = vmax.f32 %v3428_v42, 0.0  ;;  %v8012_v42 = vor.u32 %v8887_v37, %v8011_v58  ;;  %v8885_v22 = vld [vmem:[%s13815_s9 + $0xa4] sm:$0xf0] }
 0x47e   : > { %v9119_v1 = vpack.i.bf16 %v3563_v18, %v11503_v16  ;;  %v8107_v18 = vld [vmem:[%s13815_s9 + $0x170] sm:$0xf] }
 0x480   : > { %9120 = vrot.lane.b32.xlu0 %v9119_v1, %s13865_s1  ;;  %9130 = vrot.lane.b32.xlu1 %v9129_v61, %s13864_s21  ;;  %v3416_v6 = vpop.f32.mrf.mxu2  ;;  %v8004_v61 = vor.u32 %v8885_v22, %v8003_v48  ;;  %v8911_v1 = vld [vmem:[%s13815_s9 + $0x174] sm:$0xf0] }
 0x481   : > { %v3429_v15 = vpop.f32.mrf.mxu3  ;;  %v7995_v6 = vld [vmem:[%s13815_s9 + $0x90] sm:$0xf] }
 0x482   : > { %v3453_v26 = vpop.f32.mrf.mxu1  ;;  %v8883_v15 = vld [vmem:[%s13815_s9 + $0x94] sm:$0xf0] }
 0x483   : > { %v3454_v23 = vadd.f32 %v3453_v26, %v3103_v32  ;;  %v11510_v24 = vpop.f32.mrf.mxu0  ;;  %v8108_v32 = vor.u32 %v8911_v1, %v8107_v18  ;;  %v8099_v26 = vld [vmem:[%s13815_s9 + $0x160] sm:$0xf] }
 0x485   : > { %v3565_v5 = vmax.f32 %v3454_v23, 0.0  ;;  %v7996_v23 = vor.u32 %v8883_v15, %v7995_v6  ;;  %4433 = vmatpush.bf16.msra.mxu0 %v8108_v32 }
 0x487   : > { %v9124_v8 = vpack.i.bf16 %v3565_v5, %v3564_v38  ;;  %v8019_v38 = vld [vmem:[%s13815_s9 + $0xc0] sm:$0xf]  ;;  %v8909_v5 = vld [vmem:[%s13815_s9 + $0x164] sm:$0xf0] }
 0x488   : > { %v3466_v21 = vpop.f32.mrf.mxu2  ;;  %v8020_v47 = vor.u32 %v8889_v50, %v8019_v38 }
 0x489   : > { %v3467_v3 = vadd.f32 %v3466_v21, %v3104_v7  ;;  %v3479_v30 = vpop.f32.mrf.mxu3  ;;  %9125 = vrot.lane.b32.xlu2 %v9124_v8, %s13866_s27  ;;  %v8100_v7 = vor.u32 %v8909_v5, %v8099_v26  ;;  %v8881_v8 = vld [vmem:[%s13815_s9 + $0x84] sm:$0xf0]  ;;  %v8091_v21 = vld [vmem:[%s13815_s9 + $0x150] sm:$0xf] }
 0x48a   : > { %v3480_v33 = vadd.f32 %v3479_v30, %v3105_v28  ;;  %v3455_v14 = vpop.f32.mrf.mxu1  ;;  %4392 = vmatpush.bf16.msrb.mxu3 %v8020_v47  ;;  %v7987_v28 = vld [vmem:[%s13815_s9 + $0x80] sm:$0xf]  ;;  %v8907_v30 = vld [vmem:[%s13815_s9 + $0x154] sm:$0xf0] }
 0x48b   : > { %v3566_v19 = vmax.f32 %v3467_v3, 0.0  ;;  %v3494_v49 = vpop.f32.mrf.mxu0  ;;  %4434 = vmatpush.bf16.msra.mxu0 %v8100_v7  ;;  %v7988_v3 = vor.u32 %v8881_v8, %v7987_v28  ;;  %v8083_v14 = vld [vmem:[%s13815_s9 + $0x140] sm:$0xf] }
 0x48c   : > { %v3567_v57 = vmax.f32 %v3480_v33, 0.0  ;;  %v8092_v33 = vor.u32 %v8907_v30, %v8091_v21  ;;  %v8084_v25 = vor.u32 %v8905_v44, %v8083_v14  ;;  %v8163_v14 = vld [vmem:[%s13815_s9 + $0x1e0] sm:$0xf]  ;;  %v8925_v44 = vld [vmem:[%s13815_s9 + $0x1e4] sm:$0xf0] }
 0x48d   : > { %3593 = vrot.lane.b32.xlu0 %v3566_v19, %s13866_s27 }
 0x48e   : > { %v9134_v39 = vpack.i.bf16 %v3567_v57, %v3566_v19  ;;  %4393 = vmatpush.bf16.msrb.mxu3 %v8012_v42  ;;  %v8903_v19 = vld [vmem:[%s13815_s9 + $0x134] sm:$0xf0]  ;;  %v8068_v57 = vor.u32 %v8901_v59, %v8067_v27  ;;  %v8147_v27 = vld [vmem:[%s13815_s9 + $0x1c0] sm:$0xf]  ;;  %v8921_v59 = vld [vmem:[%s13815_s9 + $0x1c4] sm:$0xf0] }
 0x48f   : > { %4435 = vmatpush.bf16.msra.mxu0 %v8092_v33  ;;  %v8076_v49 = vor.u32 %v8903_v19, %v8075_v36  ;;  %v8155_v36 = vld [vmem:[%s13815_s9 + $0x1d0] sm:$0xf]  ;;  %v8923_v19 = vld [vmem:[%s13815_s9 + $0x1d4] sm:$0xf0] }
 0x490   : > { %v3468_v41 = vpop.f32.mrf.mxu2 }
 0x491   : > { %v3481_v55 = vpop.f32.mrf.mxu3  ;;  %9135 = vrot.lane.b32.xlu2 %v9134_v39, %s13864_s21  ;;  %v8051_v39 = vld [vmem:[%s13815_s9 + $0x100] sm:$0xf]  ;;  %v8897_v41 = vld [vmem:[%s13815_s9 + $0x104] sm:$0xf0] }
 0x492   : > { %v11540_v62 = vpop.f32.mrf.mxu1  ;;  %4394 = vmatpush.bf16.msrb.mxu3 %v8004_v61  ;;  %v8052_v55 = vor.u32 %v8897_v41, %v8051_v39  ;;  %v8131_v39 = vld [vmem:[%s13815_s9 + $0x1a0] sm:$0xf]  ;;  %v8917_v41 = vld [vmem:[%s13815_s9 + $0x1a4] sm:$0xf0] }
 0x493   : > { %v3544_v51 = vpop.f32.mrf.mxu0  ;;  %4436 = vmatpush.bf16.msra.mxu0 %v8084_v25  ;;  %v8164_v25 = vor.u32 %v8925_v44, %v8163_v14 }
 0x494   : > { %v3545_v2 = vadd.f32 %v3544_v51, %v3110_v56  ;;  %v3107_v56 = vperm.slane %v11538_v0, 0 }
 0x495   : > { %3637 = vrot.lane.b32.xlu0 %v11503_v16, %s13864_s21 }
 0x496   : > { %v3572_v31 = vmax.f32 %v3545_v2, 0.0  ;;  %4395 = vmatpush.bf16.msrb.mxu3 %v7996_v23  ;;  %v3506_v38 = vadd.f32 %v11540_v62, %v3107_v56  ;;  %v3106_v23 = vperm.slane %v11492_v13, 7 }
 0x497   : > { %4437 = vmatpush.bf16.msra.mxu0 %v8076_v49  ;;  %v8156_v49 = vor.u32 %v8923_v19, %v8155_v36 }
 0x498   : > { %v11546_v53 = vpop.f32.mrf.mxu2  ;;  %v3493_v13 = vadd.f32 %v11510_v24, %v3106_v23 }
 0x499   : > { %v3531_v60 = vpop.f32.mrf.mxu3 }
 0x49a   : > { %v11548_v11 = vadd.f32 %v3531_v60, %v3109_v63  ;;  %v3507_v52 = vpop.f32.mrf.mxu1  ;;  %4396 = vmatpush.bf16.msrb.mxu3 %v7988_v3  ;;  %v3108_v63 = vperm.slane %v11538_v0, 1 }
 0x49b   : > { %v3546_v54 = vpop.f32.mrf.mxu0  ;;  %4438 = vmatpush.bf16.msra.mxu0 %v8068_v57  ;;  %v8148_v57 = vor.u32 %v8921_v59, %v8147_v27 }
 0x49c   : > { %v3571_v45 = vmax.f32 %v11548_v11, 0.0  ;;  %v3519_v50 = vadd.f32 %v11546_v53, %v3108_v63  ;;  %v3111_v11 = vperm.slane %v11538_v0, 4  ;;  %v8115_v63 = vld [vmem:[%s13815_s9 + $0x180] sm:$0xf] }
 0x49e   : > { %v11553_v17 = vpack.i.bf16 %v3572_v31, %v3571_v45  ;;  %v3570_v18 = vmax.f32 %v3519_v50, 0.0 }
 0x49f   : > { %4439 = vmatpush.bf16.msra.mxu0 %v8060_v34  ;;  %v8140_v34 = vor.u32 %v8919_v43, %v8139_v40 }
 0x4a0   : > { %v3520_v10 = vpop.f32.mrf.mxu2 }
 0x4a1   : > { %v3533_v35 = vpop.f32.mrf.mxu3 }
 0x4a2   : > { %v11555_v29 = vpop.f32.mrf.mxu1 }
 0x4a3   : > { %4440 = vmatpush.bf16.msra.mxu0 %v8052_v55  ;;  %v3558_v3 = vadd.f32 %v11555_v29, %v3111_v11  ;;  %v8927_v29 = vld [vmem:[%s13815_s9 + $0x1f4] sm:$0xf0]  ;;  %v8132_v55 = vor.u32 %v8917_v41, %v8131_v39  ;;  %v8235_v39 = vld [vmem:[%s13815_s9 + $0x270] sm:$0xf] }
 0x4a4   : > { %v8943_v41 = vld [vmem:[%s13815_s9 + $0x274] sm:$0xf0] }
 0x4a5   : > { %v3573_v30 = vmax.f32 %v3558_v3, 0.0 }
 0x4aa   : > { %v3559_v46 = vpop.f32.mrf.mxu1 }
 0x4e3   : > { %v9126_v51 = vpop.permute.xlu2 %9125 }
 0x4e4   : > { %v9128_v2 = vunpack.i.h.bf16 %v9126_v51  ;;  %v9127_v60 = vunpack.i.l.bf16 %v9126_v51  ;;  %v8915_v51 = vld [vmem:[%s13815_s9 + $0x194] sm:$0xf0] }
 0x4e6   : > { %v3595_v42 = vsel %vm1070_vm4, %v9127_v60, %v9128_v2 }
 0x4e7   : > { %v11684_v28 = vpack.c.bf16 %v3595_v42, %v13834_v20 }
 0x4ea   : > { %v3582_v4 = vpop.permute.xlu1 %3581 }
 0x4eb   : > { %v9136_v32 = vpop.permute.xlu2 %9135 }
 0x4ec   : > { %v11673_v15 = vunpack.i.h.bf16 %v9136_v32  ;;  %v9137_v26 = vunpack.i.l.bf16 %v9136_v32 }
 0x4ee   : > { %v3604_v7 = vsel %vm999_vm2, %v9137_v26, %v11673_v15 }
 0x4ef   : > { %v11705_v24 = vpack.c.bf16 %v3604_v7, %v13834_v20 }
 0x4f2   : > { %v9121_v52 = vpop.permute.xlu0 %9120  ;;  %v9131_v54 = vpop.permute.xlu1 %9130 }
 0x4f3   : > { %v9123_v31 = vunpack.i.h.bf16 %v9121_v52  ;;  %v9122_v10 = vunpack.i.l.bf16 %v9121_v52  ;;  %v9133_v35 = vunpack.i.h.bf16 %v9131_v54  ;;  %v11637_v46 = vunpack.i.l.bf16 %v9131_v54 }
 0x4f5   : > { %13867 = vst [vmem:[#allocation10_spill] sm:$0xff] %v11637_v46  ;;  %v3746_v47 = vsel %vm999_vm2, %v11503_v16, %v11637_v46  ;;  %v3583_v58 = vsel %vm1647_vm7, %v9122_v10, %v9123_v31  ;;  %v11646_v37 = vsel %vm1647_vm7, %v9123_v31, %v3582_v4  ;;  %v11663_v16 = vmax.f32 %v3506_v38, 0.0  ;;  %v8123_v4 = vld [vmem:[%s13815_s9 + $0x190] sm:$0xf] }
 0x4f6   : > { %v11649_v48 = vpack.c.bf16 %v3746_v47, %v9133_v35  ;;  %3641 = vrot.lane.b32.xlu2 %v3583_v58, %s13864_s21  ;;  %v9144_v22 = vpack.i.bf16 %v3595_v42, %v11646_v37  ;;  %v9139_v62 = vpack.i.bf16 %v3583_v58, %v13834_v20  ;;  %v11655_v53 = vpack.c.bf16 %v3583_v58, %v13834_v20 }
 0x4f7   : > { %v9149_v61 = vpack.i.bf16 %v3570_v18, %v11663_v16  ;;  %v8124_v56 = vor.u32 %v8915_v51, %v8123_v4  ;;  %v3748_v54 = vsel %vm999_vm2, %v11646_v37, %v11637_v46  ;;  %v3752_v36 = vsel %vm999_vm2, %v11673_v15, %v11637_v46 }
 0x4f8   : > { %9145 = vrot.lane.b32.xlu0 %v9144_v22, %s13864_s21  ;;  %9140 = vrot.lane.b32.xlu1 %v9139_v62, %s13866_s27  ;;  %v8236_v51 = vor.u32 %v8943_v41, %v8235_v39 }
 0x4f9   : > { %4358 = vmatmul.bf16.gmra.mxu2 %v11655_v53  ;;  %8260 = vmatmul.msk.bf16.vlgmr.msrb.gmra.mxu3 %vm10280_vm6, %v11649_v48 }
 0x4fa   : > { %4521 = vmatpush.bf16.msra.mxu2 %v8236_v51  ;;  %v8939_v51 = vld [vmem:[%s13815_s9 + $0x254] sm:$0xf0] }
 0x4fe   : > { %9150 = vrot.lane.b32.xlu2 %v9149_v61, %s13865_s1 }
 0x4ff   : > { %v3594_v1 = vpop.permute.xlu0 %3593 }
 0x500   : > { %3700 = vrot.lane.b32.xlu1 %v3595_v42, %s13866_s27  ;;  %v11669_v6 = vsel %vm1070_vm4, %v9128_v2, %v3594_v1  ;;  %v8913_v2 = vld [vmem:[%s13815_s9 + $0x184] sm:$0xf0] }
 0x501   : > { %3647 = vrot.lane.b32.xlu0 %v11669_v6, %s13864_s21  ;;  %v8116_v60 = vor.u32 %v8913_v2, %v8115_v63  ;;  %v3750_v26 = vsel %vm999_vm2, %v11669_v6, %v11637_v46 }
 0x506   : > { %3614 = vrot.lane.b32.xlu2 %v3571_v45, %s13865_s1  ;;  %v3568_v45 = vmax.f32 %v3493_v13, 0.0  ;;  %s13553_s1 = scalar_lea.vmem %s13819_s13, %s6812_s28 }
 0x507   : > { %v11679_v5 = vpop.permute.xlu0 %3637 }
 0x508   : > { %v3665_v8 = vsel %vm999_vm2, %v9133_v35, %v11679_v5  ;;  %3704 = vrot.lane.b32.xlu1 %v3604_v7, %s13866_s27  ;;  %v11712_v0 = vpack.c.bf16 %v3568_v45, %v13834_v20 }
 0x509   : > { %v11690_v21 = vpack.c.bf16 %v11637_v46, %v3665_v8  ;;  %4363 = vmatmul.bf16.gmra.mxu2 %v11684_v28  ;;  %3649 = vrot.lane.b32.xlu0 %v3604_v7, %s13864_s21 }
 0x50b   : > { %4441 = vmatmul.bf16.vlgmr.msra.gmra.mxu0 %v11690_v21 }
 0x50e   : > { %3651 = vrot.lane.b32.xlu2 %v11673_v15, %s13864_s21 }
 0x510   : > { %9155 = vrot.lane.b32.xlu1 %v11553_v17, %s13866_s27  ;;  %v8171_v17 = vld [vmem:[%s13815_s9 + $0x1f0] sm:$0xf] }
 0x511   : > { %3708 = vrot.lane.b32.xlu0 %v3568_v45, %s13866_s27  ;;  %v8172_v33 = vor.u32 %v8927_v29, %v8171_v17  ;;  %v4354_v29 = vpop.f32.mrf.mxu2 }
 0x513   : > { %4477 = vmatpush.bf16.msra.mxu1 %v8172_v33 }
 0x516   : > { %3653 = vrot.lane.b32.xlu2 %v3568_v45, %s13864_s21 }
 0x517   : > { %4478 = vmatpush.bf16.msra.mxu1 %v8164_v25 }
 0x518   : > { %3626 = vrot.lane.b32.xlu1 %v3573_v30, %s13866_s27  ;;  %v11817_v30 = vld [vmem:[%s13816_s10] sm:$0x3] }
 0x519   : > { %4368 = vmatmul.bf16.gmra.mxu2 %v11705_v24  ;;  %3655 = vrot.lane.b32.xlu0 %v11663_v16, %s13864_s21  ;;  %v11820_v17 = vperm.slane %v11817_v30, 0 }
 0x51b   : > { %4479 = vmatpush.bf16.msra.mxu1 %v8156_v49  ;;  %v4355_v14 = vadd.f32 %v4354_v29, %v11820_v17 }
 0x51f   : > { %4480 = vmatpush.bf16.msra.mxu1 %v8148_v57 }
 0x523   : > { %4481 = vmatpush.bf16.msra.mxu1 %v8140_v34 }
 0x527   : > { %4482 = vmatpush.bf16.msra.mxu1 %v8132_v55  ;;  %v8251_v55 = vld [vmem:[%s13815_s9 + $0x290] sm:$0xf] }
 0x529   : > { %4373 = vmatmul.bf16.gmra.mxu2 %v11712_v0 }
 0x52b   : > { %4483 = vmatpush.bf16.msra.mxu1 %v8124_v56  ;;  %v8947_v56 = vld [vmem:[%s13815_s9 + $0x294] sm:$0xf0] }
 0x52f   : > { %4484 = vmatpush.bf16.msra.mxu1 %v8116_v60  ;;  %v8252_v60 = vor.u32 %v8947_v56, %v8251_v55  ;;  %v8037_v55 = vld [vmem:[%s13815_s9 + $0xe8] sm:$0xf0]  ;;  %v8874_v56 = vld [vmem:[%s13815_s9 + $0x54] sm:$0xf] }
 0x531   : > { %4571 = vmatpush.bf16.msra.mxu3 %v8252_v60 }
 0x550   : > { %v3642_v52 = vpop.permute.xlu2 %3641 }
 0x551   : > { %v11766_v31 = vpack.c.bf16 %v3748_v54, %v3642_v52  ;;  %v8878_v54 = vld [vmem:[%s13815_s9 + $0x74] sm:$0xf] }
 0x553   : > { %8264 = vmatmul.msk.bf16.gmra.mxu3 %vm10280_vm6, %v11766_v31 }
 0x558   : > { %v9151_v10 = vpop.permute.xlu2 %9150 }
 0x559   : > { %v9153_v35 = vunpack.i.h.bf16 %v9151_v10  ;;  %v9152_v38 = vunpack.i.l.bf16 %v9151_v10  ;;  %v7981_v10 = vld [vmem:[%s13815_s9 + $0x78] sm:$0xf0] }
 0x55b   : > { %v3616_v50 = vsel %vm1647_vm7, %v9152_v38, %v9153_v35  ;;  %v7984_v38 = vor.u32 %v8878_v54, %v7981_v10  ;;  %v8890_v54 = vld [vmem:[%s13815_s9 + $0xd4] sm:$0xf]  ;;  %v8029_v10 = vld [vmem:[%s13815_s9 + $0xd8] sm:$0xf0] }
 0x55c   : > { %3657 = vrot.lane.b32.xlu2 %v3616_v50, %s13864_s21  ;;  %3712 = vrot.lane.b32.xlu1 %v3616_v50, %s13866_s27  ;;  %v11775_v47 = vpack.c.bf16 %v3616_v50, %v13834_v20 }
 0x55d   : > { %4609 = vmatpush.bf16.msrb.mxu0 %v7984_v38  ;;  %v8211_v38 = vld [vmem:[%s13815_s9 + $0x240] sm:$0xf] }
 0x55e   : > { %4378 = vmatmul.bf16.gmra.mxu2 %v11775_v47 }
 0x560   : > { %v3615_v58 = vpop.permute.xlu2 %3614 }
 0x561   : > { %v11779_v42 = vsel %vm1647_vm7, %v9153_v35, %v3615_v58 }
 0x562   : > { %3659 = vrot.lane.b32.xlu0 %v11779_v42, %s13864_s21 }
 0x568   : > { %v11844_v34 = vpop.permute.xlu2 %3651 }
 0x56a   : > { %v9146_v22 = vpop.permute.xlu0 %9145  ;;  %v11783_v62 = vpop.permute.xlu1 %9140 }
 0x56b   : > { %v9148_v18 = vunpack.i.h.bf16 %v9146_v22  ;;  %v9147_v61 = vunpack.i.l.bf16 %v9146_v22  ;;  %v9143_v1 = vunpack.i.h.bf16 %v11783_v62  ;;  %v11787_v32 = vunpack.i.l.bf16 %v11783_v62 }
 0x56d   : > { %v11792_v23 = vpack.c.bf16 %v3750_v26, %v9148_v18  ;;  %v3759_v7 = vsel %vm1070_vm4, %v11679_v5, %v11787_v32  ;;  %v3760_v8 = vsel %vm1070_vm4, %v11637_v46, %v9143_v1  ;;  %v3666_v11 = vsel %vm999_vm2, %v3642_v52, %v9147_v61 }
 0x56e   : > { %v11801_v13 = vpack.c.bf16 %v3760_v8, %v3759_v7  ;;  %v11808_v45 = vpack.c.bf16 %v11637_v46, %v3666_v11  ;;  %v3761_v59 = vsel %vm1070_vm4, %v9147_v61, %v11787_v32  ;;  %v3754_v7 = vsel %vm999_vm2, %v11663_v16, %v11637_v46 }
 0x56f   : > { %8268 = vmatmul.msk.bf16.gmra.mxu3 %vm10280_vm6, %v11792_v23 }
 0x570   : > { %4485 = vmatmul.bf16.vlgmr.msra.gmra.mxu1 %v11801_v13  ;;  %4446 = vmatmul.bf16.gmra.mxu0 %v11808_v45  ;;  %v3654_v22 = vpop.permute.xlu2 %3653 }
 0x571   : > { %v11888_v11 = vpack.c.bf16 %v3754_v7, %v3654_v22  ;;  %v8032_v7 = vor.u32 %v8890_v54, %v8029_v10  ;;  %v8933_v10 = vld [vmem:[%s13815_s9 + $0x224] sm:$0xf0] }
 0x572   : > { %v11812_v5 = vpop.permute.xlu1 %3700 }
 0x573   : > { %v3648_v3 = vpop.permute.xlu0 %3647  ;;  %v3762_v44 = vsel %vm1070_vm4, %v11637_v46, %v11812_v5 }
 0x574   : > { %v3667_v19 = vsel %vm999_vm2, %v9148_v18, %v3648_v3  ;;  %v11836_v40 = vpack.c.bf16 %v3762_v44, %v3761_v59  ;;  %v3763_v29 = vsel %vm1070_vm4, %v3648_v3, %v11787_v32  ;;  %v8045_v44 = vld [vmem:[%s13815_s9 + $0xf8] sm:$0xf0] }
 0x575   : > { %v11839_v43 = vpack.c.bf16 %v11637_v46, %v3667_v19  ;;  %v8941_v19 = vld [vmem:[%s13815_s9 + $0x264] sm:$0xf0] }
 0x57a   : > { %v11822_v33 = vpop.permute.xlu1 %3704 }
 0x57b   : > { %v3650_v25 = vpop.permute.xlu0 %3649  ;;  %v3764_v61 = vsel %vm1070_vm4, %v11637_v46, %v11822_v33 }
 0x57c   : > { %v4398_v49 = vpop.f32.mrf.mxu3  ;;  %v11832_v27 = vpack.c.bf16 %v3752_v36, %v3650_v25  ;;  %v3668_v8 = vsel %vm999_vm2, %v3650_v25, %v11844_v34  ;;  %v8227_v25 = vld [vmem:[%s13815_s9 + $0x260] sm:$0xf]  ;;  %v11901_v36 = vpack.c.bf16 %v3764_v61, %v3763_v29  ;;  %v3765_v61 = vsel %vm1070_vm4, %v11844_v34, %v11787_v32  ;;  %v7957_v34 = vld [vmem:[%s13815_s9 + $0x48] sm:$0xf0] }
 0x57d   : > { %v4399_v57 = vadd.f32 %v4398_v49, %v4355_v14  ;;  %v8894_v14 = vld [vmem:[%s13815_s9 + $0xf4] sm:$0xf]  ;;  %v11911_v49 = vpack.c.bf16 %v11637_v46, %v3668_v8 }
 0x57e   : > { %v8048_v3 = vor.u32 %v8894_v14, %v8045_v44  ;;  %v8872_v14 = vld [vmem:[%s13815_s9 + $0x44] sm:$0xf] }
 0x57f   : > { %8272 = vmatmul.msk.bf16.gmra.mxu3 %vm10280_vm6, %v11832_v27  ;;  %v7960_v44 = vor.u32 %v8872_v14, %v7957_v34  ;;  %v8868_v14 = vld [vmem:[%s13815_s9 + $0x24] sm:$0xf]  ;;  %v7941_v34 = vld [vmem:[%s13815_s9 + $0x28] sm:$0xf0] }
 0x580   : > { %4490 = vmatmul.bf16.gmra.mxu1 %v11836_v40  ;;  %4451 = vmatmul.bf16.gmra.mxu0 %v11839_v43 }
 0x581   : > { %4653 = vmatpush.bf16.msrb.mxu1 %v8048_v3  ;;  %v3756_v3 = vsel %vm999_vm2, %v11779_v42, %v11637_v46 }
 0x582   : > { %v9156_v4 = vpop.permute.xlu1 %9155 }
 0x583   : > { %v9158_v63 = vunpack.i.h.bf16 %v9156_v4  ;;  %v9157_v2 = vunpack.i.l.bf16 %v9156_v4  ;;  %v11913_v59 = vpop.permute.xlu0 %3708 }
 0x585   : > { %v3628_v52 = vsel %vm1070_vm4, %v9157_v2, %v9158_v63  ;;  %v3766_v2 = vsel %vm1070_vm4, %v11637_v46, %v11913_v59 }
 0x586   : > { %3661 = vrot.lane.b32.xlu2 %v3628_v52, %s13864_s21  ;;  %3716 = vrot.lane.b32.xlu1 %v3628_v52, %s13866_s27  ;;  %v11870_v35 = vpack.c.bf16 %v3628_v52, %v13834_v20  ;;  %v11974_v8 = vpack.c.bf16 %v3766_v2, %v3765_v61  ;;  %v8886_v2 = vld [vmem:[%s13815_s9 + $0xb4] sm:$0xf] }
 0x588   : > { %4383 = vmatmul.bf16.gmra.mxu2 %v11870_v35  ;;  %v4442_v50 = vpop.f32.mrf.mxu0 }
 0x589   : > { %v11873_v58 = vadd.f32 %v4442_v50, %v4399_v57  ;;  %v8228_v57 = vor.u32 %v8941_v19, %v8227_v25 }
 0x58a   : > { %v3627_v18 = vpop.permute.xlu1 %3626 }
 0x58b   : > { %v11879_v26 = vsel %vm1070_vm4, %v9158_v63, %v3627_v18  ;;  %4522 = vmatpush.bf16.msra.mxu2 %v8228_v57  ;;  %v11932_v41 = vpop.permute.xlu0 %3655  ;;  %v7965_v63 = vld [vmem:[%s13815_s9 + $0x58] sm:$0xf0]  ;;  %v8937_v18 = vld [vmem:[%s13815_s9 + $0x244] sm:$0xf0]  ;;  %v8888_v57 = vld [vmem:[%s13815_s9 + $0xc4] sm:$0xf] }
 0x58c   : > { %3663 = vrot.lane.b32.xlu0 %v11879_v26, %s13864_s21  ;;  %v7968_v52 = vor.u32 %v8874_v56, %v7965_v63  ;;  %v3669_v50 = vsel %vm999_vm2, %v3654_v22, %v11932_v41  ;;  %v8212_v29 = vor.u32 %v8937_v18, %v8211_v38  ;;  %v7949_v56 = vld [vmem:[%s13815_s9 + $0x38] sm:$0xf0]  ;;  %v12033_v18 = vpop.f32.mrf.mxu3 }
 0x58d   : > { %v11977_v22 = vpack.c.bf16 %v11637_v46, %v3669_v50  ;;  %v12031_v50 = vpop.f32.mrf.mxu2 }
 0x58e   : > { %3702 = vrot.lane.b32.xlu2 %v11669_v6, %s13866_s27  ;;  %3698 = vrot.lane.b32.xlu1 %v11646_v37, %s13866_s27  ;;  %v8876_v37 = vld [vmem:[%s13815_s9 + $0x64] sm:$0xf]  ;;  %v7973_v6 = vld [vmem:[%s13815_s9 + $0x68] sm:$0xf0] }
 0x58f   : > { %8276 = vmatmul.msk.bf16.gmra.mxu3 %vm10280_vm6, %v11888_v11  ;;  %v7976_v39 = vor.u32 %v8876_v37, %v7973_v6  ;;  %13868 = vst [vmem:[#allocation11_spill] sm:$0xff] %v11977_v22  ;;  %v8021_v37 = vld [vmem:[%s13815_s9 + $0xc8] sm:$0xf0] }
 0x590   : > { %4495 = vmatmul.bf16.gmra.mxu1 %v11901_v36  ;;  %4456 = vmatmul.bf16.gmra.mxu0 %v11911_v49  ;;  %v8024_v6 = vor.u32 %v8888_v57, %v8021_v37  ;;  %v8005_v37 = vld [vmem:[%s13815_s9 + $0xa8] sm:$0xf0] }
 0x591   : > { %4610 = vmatpush.bf16.msrb.mxu0 %v7976_v39  ;;  %v8203_v39 = vld [vmem:[%s13815_s9 + $0x230] sm:$0xf] }
 0x594   : > { %3706 = vrot.lane.b32.xlu0 %v11673_v15, %s13866_s27  ;;  %v8892_v15 = vld [vmem:[%s13815_s9 + $0xe4] sm:$0xf] }
 0x595   : > { %v8040_v4 = vor.u32 %v8892_v15, %v8037_v55  ;;  %4611 = vmatpush.bf16.msrb.mxu0 %v7968_v52  ;;  %v8935_v15 = vld [vmem:[%s13815_s9 + $0x234] sm:$0xf0]  ;;  %v8195_v52 = vld [vmem:[%s13815_s9 + $0x220] sm:$0xf]  ;;  %v4359_v57 = vpop.f32.mrf.mxu2 }
 0x596   : > { %3714 = vrot.lane.b32.xlu2 %v11779_v42, %s13866_s27  ;;  %3710 = vrot.lane.b32.xlu1 %v11663_v16, %s13866_s27  ;;  %v8219_v16 = vld [vmem:[%s13815_s9 + $0x250] sm:$0xf]  ;;  %v8243_v42 = vld [vmem:[%s13815_s9 + $0x280] sm:$0xf]  ;;  %v8204_v55 = vor.u32 %v8935_v15, %v8203_v39  ;;  %v8196_v38 = vor.u32 %v8933_v10, %v8195_v52 }
 0x597   : > { %v8220_v60 = vor.u32 %v8939_v51, %v8219_v16  ;;  %4654 = vmatpush.bf16.msrb.mxu1 %v8040_v4  ;;  %v8945_v16 = vld [vmem:[%s13815_s9 + $0x284] sm:$0xf0]  ;;  %v8870_v51 = vld [vmem:[%s13815_s9 + $0x34] sm:$0xf] }
 0x598   : > { %v8244_v4 = vor.u32 %v8945_v16, %v8243_v42  ;;  %v7952_v63 = vor.u32 %v8870_v51, %v7949_v56  ;;  %v8931_v42 = vld [vmem:[%s13815_s9 + $0x214] sm:$0xf0] }
 0x599   : > { %4523 = vmatpush.bf16.msra.mxu2 %v8220_v60  ;;  %4612 = vmatpush.bf16.msrb.mxu0 %v7960_v44  ;;  %v8013_v60 = vld [vmem:[%s13815_s9 + $0xb8] sm:$0xf0] }
 0x59a   : > { %4572 = vmatpush.bf16.msra.mxu3 %v8244_v4  ;;  %v8016_v54 = vor.u32 %v8886_v2, %v8013_v60  ;;  %v8866_v60 = vld [vmem:[%s13815_s9 + $0x14] sm:$0xf] }
 0x59b   : > { %4655 = vmatpush.bf16.msrb.mxu1 %v8032_v7  ;;  %v3767_v7 = vsel %vm1070_vm4, %v11932_v41, %v11787_v32  ;;  %v8884_v41 = vld [vmem:[%s13815_s9 + $0xa4] sm:$0xf] }
 0x59c   : > { %3718 = vrot.lane.b32.xlu0 %v11879_v26, %s13866_s27  ;;  %v8008_v15 = vor.u32 %v8884_v41, %v8005_v37  ;;  %v12101_v41 = vpop.f32.mrf.mxu0 }
 0x59d   : > { %4524 = vmatpush.bf16.msra.mxu2 %v8212_v29  ;;  %4613 = vmatpush.bf16.msrb.mxu0 %v7952_v63  ;;  %v12070_v2 = vpop.f32.mrf.mxu2 }
 0x59f   : > { %4656 = vmatpush.bf16.msrb.mxu1 %v8024_v6  ;;  %v8187_v6 = vld [vmem:[%s13815_s9 + $0x210] sm:$0xf] }
 0x5a0   : > { %4500 = vmatmul.bf16.gmra.mxu1 %v11974_v8  ;;  %4461 = vmatmul.bf16.gmra.mxu0 %v11977_v22  ;;  %v8188_v4 = vor.u32 %v8931_v42, %v8187_v6  ;;  %v8864_v6 = vld [vmem:[%s13815_s9 + $0x4] sm:$0xf] }
 0x5a1   : > { %4525 = vmatpush.bf16.msra.mxu2 %v8204_v55  ;;  %v4360_v55 = vadd.f32 %v4359_v57, %v11820_v17 }
 0x5a3   : > { %4657 = vmatpush.bf16.msrb.mxu1 %v8016_v54  ;;  %v3758_v54 = vsel %vm999_vm2, %v11879_v26, %v11637_v46  ;;  %v8929_v26 = vld [vmem:[%s13815_s9 + $0x204] sm:$0xf0] }
 0x5a5   : > { %4526 = vmatpush.bf16.msra.mxu2 %v8196_v38  ;;  %v8882_v38 = vld [vmem:[%s13815_s9 + $0x94] sm:$0xf]  ;;  %v4364_v57 = vpop.f32.mrf.mxu2 }
 0x5a7   : > { %4658 = vmatpush.bf16.msrb.mxu1 %v8008_v15  ;;  %v7925_v15 = vld [vmem:[%s13815_s9 + $0x8] sm:$0xf0] }
 0x5a9   : > { %4527 = vmatpush.bf16.msra.mxu2 %v8188_v4 }
 0x5b6   : > { %v3658_v25 = vpop.permute.xlu2 %3657 }
 0x5b7   : > { %v11990_v19 = vpack.c.bf16 %v3756_v3, %v3658_v25  ;;  %v7944_v3 = vor.u32 %v8868_v14, %v7941_v34 }
 0x5b9   : > { %8280 = vmatmul.msk.bf16.gmra.mxu3 %vm10280_vm6, %v11990_v19  ;;  %4614 = vmatpush.bf16.msrb.mxu0 %v7944_v3 }
 0x5ce   : > { %v12035_v61 = vpop.permute.xlu1 %3712 }
 0x5cf   : > { %v3768_v29 = vsel %vm1070_vm4, %v11637_v46, %v12035_v61 }
 0x5d0   : > { %v12049_v44 = vpack.c.bf16 %v3768_v29, %v3767_v7  ;;  %v7997_v7 = vld [vmem:[%s13815_s9 + $0x98] sm:$0xf0]  ;;  %v8179_v29 = vld [vmem:[%s13815_s9 + $0x200] sm:$0xf] }
 0x5d1   : > { %v8000_v34 = vor.u32 %v8882_v38, %v7997_v7  ;;  %v8180_v3 = vor.u32 %v8929_v26, %v8179_v29  ;;  %v8910_v38 = vld [vmem:[%s13815_s9 + $0x174] sm:$0xf] }
 0x5d2   : > { %4505 = vmatmul.bf16.gmra.mxu1 %v12049_v44  ;;  %v8926_v26 = vld [vmem:[%s13815_s9 + $0x1f4] sm:$0xf] }
 0x5d3   : > { %4659 = vmatpush.bf16.msrb.mxu1 %v8000_v34  ;;  %4528 = vmatpush.bf16.msra.mxu2 %v8180_v3  ;;  %v8173_v3 = vld [vmem:[%s13815_s9 + $0x1f8] sm:$0xf0] }
 0x5d4   : > { %v3660_v39 = vpop.permute.xlu0 %3659 }
 0x5d5   : > { %v3670_v16 = vsel %vm999_vm2, %v3658_v25, %v3660_v39  ;;  %v7933_v25 = vld [vmem:[%s13815_s9 + $0x18] sm:$0xf0] }
 0x5d6   : > { %v12067_v51 = vpack.c.bf16 %v11637_v46, %v3670_v16  ;;  %v4403_v56 = vpop.f32.mrf.mxu3  ;;  %v7936_v10 = vor.u32 %v8866_v60, %v7933_v25  ;;  %v8880_v60 = vld [vmem:[%s13815_s9 + $0x84] sm:$0xf]  ;;  %v7989_v25 = vld [vmem:[%s13815_s9 + $0x88] sm:$0xf0] }
 0x5d7   : > { %v4404_v63 = vadd.f32 %v4403_v56, %v4360_v55  ;;  %v7928_v55 = vor.u32 %v8864_v6, %v7925_v15  ;;  %v8176_v6 = vor.u32 %v8926_v26, %v8173_v3 }
 0x5d8   : > { %13869 = vst [vmem:[#allocation12_spill] sm:$0xff] %v12067_v51  ;;  %4466 = vmatmul.bf16.gmra.mxu0 %v12067_v51 }
 0x5d9   : > { %4615 = vmatpush.bf16.msrb.mxu0 %v7936_v10  ;;  %v7992_v10 = vor.u32 %v8880_v60, %v7989_v25  ;;  %4741 = vmatpush.bf16.msrb.mxu3 %v8176_v6 }
 0x5db   : > { %4660 = vmatpush.bf16.msrb.mxu1 %v7992_v10 }
 0x5dd   : > { %4616 = vmatpush.bf16.msrb.mxu0 %v7928_v55  ;;  %v3769_v55 = vsel %vm1070_vm4, %v3660_v39, %v11787_v32 }
 0x5de   : > { %v12103_v37 = vpop.f32.mrf.mxu3 }
 0x5e0   : > { %v12078_v52 = vpop.permute.xlu2 %3661 }
 0x5e1   : > { %v12093_v14 = vpack.c.bf16 %v3758_v54, %v12078_v52  ;;  %v12120_v54 = vpop.f32.mrf.mxu2 }
 0x5e3   : > { %8284 = vmatmul.msk.bf16.gmra.mxu3 %vm10280_vm6, %v12093_v14 }
 0x5e9   : > { %v4369_v60 = vpop.f32.mrf.mxu2 }
 0x5ed   : > { %v4486_v42 = vpop.f32.mrf.mxu1  ;;  %v4447_v16 = vpop.f32.mrf.mxu0 }
 0x5ee   : > { %v12112_v4 = vadd.f32 %v4486_v42, %v11873_v58  ;;  %v4448_v56 = vadd.f32 %v4447_v16, %v4404_v63  ;;  %v8109_v58 = vld [vmem:[%s13815_s9 + $0x178] sm:$0xf0]  ;;  %v4365_v63 = vadd.f32 %v4364_v57, %v11820_v17 }
 0x5ef   : > { %v8112_v7 = vor.u32 %v8910_v38, %v8109_v58  ;;  %v8942_v38 = vld [vmem:[%s13815_s9 + $0x274] sm:$0xf]  ;;  %v8237_v58 = vld [vmem:[%s13815_s9 + $0x278] sm:$0xf0] }
 0x5f0   : > { %v8240_v39 = vor.u32 %v8942_v38, %v8237_v58  ;;  %v8908_v38 = vld [vmem:[%s13815_s9 + $0x164] sm:$0xf]  ;;  %v8101_v58 = vld [vmem:[%s13815_s9 + $0x168] sm:$0xf0] }
 0x5f1   : > { %4697 = vmatpush.bf16.msrb.mxu2 %v8112_v7  ;;  %v8253_v7 = vld [vmem:[%s13815_s9 + $0x298] sm:$0xf0] }
 0x5f2   : > { %v4408_v29 = vpop.f32.mrf.mxu3  ;;  %4785 = vmatpush.bf16.msra.mxu0 %v8240_v39  ;;  %v8104_v39 = vor.u32 %v8908_v38, %v8101_v58 }
 0x5f3   : > { %v4409_v34 = vadd.f32 %v4408_v29, %v4365_v63  ;;  %v8946_v63 = vld [vmem:[%s13815_s9 + $0x294] sm:$0xf] }
 0x5f4   : > { %v8256_v26 = vor.u32 %v8946_v63, %v8253_v7  ;;  %v4370_v7 = vadd.f32 %v4369_v60, %v11820_v17  ;;  %v12195_v60 = vpop.f32.mrf.mxu2 }
 0x5f5   : > { %v12135_v15 = vpop.f32.mrf.mxu1  ;;  %v12137_v42 = vpop.f32.mrf.mxu0  ;;  %4698 = vmatpush.bf16.msrb.mxu2 %v8104_v39  ;;  %13872 = vst [vmem:[#allocation15_spill] sm:$0xff] %v12195_v60 }
 0x5f6   : > { %4835 = vmatpush.bf16.msra.mxu1 %v8256_v26 }
 0x5f8   : > { %v12139_v57 = vpop.permute.xlu1 %3716 }
 0x5f9   : > { %v3770_v16 = vsel %vm1070_vm4, %v11637_v46, %v12139_v57 }
 0x5fa   : > { %v12146_v25 = vpack.c.bf16 %v3770_v16, %v3769_v55  ;;  %v12148_v10 = vpop.f32.mrf.mxu3 }
 0x5fc   : > { %13870 = vst [vmem:[#allocation13_spill] sm:$0xff] %v12146_v25  ;;  %4510 = vmatmul.bf16.gmra.mxu1 %v12146_v25 }
 0x5fd   : > { %v4491_v29 = vpop.f32.mrf.mxu1  ;;  %v4452_v3 = vpop.f32.mrf.mxu0 }
 0x5fe   : > { %v12163_v6 = vadd.f32 %v4491_v29, %v4448_v56  ;;  %v3664_v55 = vpop.permute.xlu0 %3663  ;;  %v4453_v16 = vadd.f32 %v4452_v3, %v4409_v34  ;;  %v8924_v56 = vld [vmem:[%s13815_s9 + $0x1e4] sm:$0xf] }
 0x5ff   : > { %v3671_v20 = vsel %vm999_vm2, %v12078_v52, %v3664_v55  ;;  %v8165_v52 = vld [vmem:[%s13815_s9 + $0x1e8] sm:$0xf0]  ;;  %v3771_v58 = vsel %vm1070_vm4, %v3664_v55, %v11787_v32  ;;  %v3703_v55 = vpop.permute.xlu2 %3702 }
 0x600   : > { %v12177_v63 = vpack.c.bf16 %v11637_v46, %v3671_v20  ;;  %v3699_v34 = vpop.permute.xlu1 %3698  ;;  %v8168_v3 = vor.u32 %v8924_v56, %v8165_v52  ;;  %v8940_v56 = vld [vmem:[%s13815_s9 + $0x264] sm:$0xf]  ;;  %v12213_v52 = vsel %vm1070_vm4, %v11637_v46, %v11787_v32  ;;  %v3721_v25 = vsel %vm1070_vm4, %v11812_v5, %v3703_v55  ;;  %v8221_v5 = vld [vmem:[%s13815_s9 + $0x258] sm:$0xf0] }
 0x601   : > { %v3720_v29 = vsel %vm1070_vm4, %v9143_v1, %v3699_v34  ;;  %v12187_v26 = vpack.c.bf16 %v3699_v34, %v11787_v32  ;;  %v8229_v34 = vld [vmem:[%s13815_s9 + $0x268] sm:$0xf0]  ;;  %13873 = vst [vmem:[#allocation16_spill] sm:$0xff] %v12213_v52  ;;  %v12239_v22 = vpack.c.bf16 %v3703_v55, %v11787_v32 }
 0x602   : > { %13871 = vst [vmem:[#allocation14_spill] sm:$0xff] %v12177_v63  ;;  %v12190_v51 = vpack.c.bf16 %v3720_v29, %v11787_v32  ;;  %v4413_v20 = vpop.f32.mrf.mxu3  ;;  %4471 = vmatmul.bf16.gmra.mxu0 %v12177_v63  ;;  %4742 = vmatpush.bf16.msrb.mxu3 %v8168_v3  ;;  %v8232_v39 = vor.u32 %v8940_v56, %v8229_v34  ;;  %v8906_v3 = vld [vmem:[%s13815_s9 + $0x154] sm:$0xf] }
 0x603   : > { %v4414_v38 = vadd.f32 %v4413_v20, %v4370_v7  ;;  %8285 = vmatmul.msk.bf16.vlgmr.msra.gmra.mxu3 %vm1647_vm7, %v12187_v26  ;;  %v12216_v7 = vpack.c.bf16 %v12213_v52, %v3771_v58  ;;  %v8093_v20 = vld [vmem:[%s13815_s9 + $0x158] sm:$0xf0]  ;;  %v8922_v56 = vld [vmem:[%s13815_s9 + $0x1d4] sm:$0xf]  ;;  %v4374_v52 = vpop.f32.mrf.mxu2 }
 0x604   : > { %4529 = vmatmul.bf16.vlgmr.msra.gmra.mxu2 %v12190_v51  ;;  %4786 = vmatpush.bf16.msra.mxu0 %v8232_v39  ;;  %v8096_v34 = vor.u32 %v8906_v3, %v8093_v20  ;;  %v8157_v39 = vld [vmem:[%s13815_s9 + $0x1d8] sm:$0xf0]  ;;  %v4375_v60 = vadd.f32 %v4374_v52, %v11820_v17  ;;  %v12242_v3 = vpack.c.bf16 %v3721_v25, %v11787_v32  ;;  %v8904_v25 = vld [vmem:[%s13815_s9 + $0x144] sm:$0xf] }
 0x605   : > { %v12198_v62 = vpop.f32.mrf.mxu1  ;;  %v12200_v1 = vpop.f32.mrf.mxu0  ;;  %13874 = vst [vmem:[#allocation17_spill] sm:$0xff] %v12216_v7 }
 0x606   : > { %4699 = vmatpush.bf16.msrb.mxu2 %v8096_v34  ;;  %v3707_v55 = vpop.permute.xlu0 %3706  ;;  %v8149_v34 = vld [vmem:[%s13815_s9 + $0x1c8] sm:$0xf0] }
 0x60a   : > { %v12218_v29 = vpop.f32.mrf.mxu3 }
 0x60b   : > { %13875 = vst [vmem:[#allocation18_spill] sm:$0xff] %v12218_v29 }
 0x60c   : > { %4515 = vmatmul.bf16.gmra.mxu1 %v12216_v7  ;;  %v8160_v7 = vor.u32 %v8922_v56, %v8157_v39 }
 0x60d   : > { %v4496_v58 = vpop.f32.mrf.mxu1  ;;  %v4457_v46 = vpop.f32.mrf.mxu0 }
 0x60e   : > { %v12233_v63 = vadd.f32 %v4496_v58, %v4453_v16  ;;  %v4458_v29 = vadd.f32 %v4457_v46, %v4414_v38  ;;  %4743 = vmatpush.bf16.msrb.mxu3 %v8160_v7  ;;  %v8938_v46 = vld [vmem:[%s13815_s9 + $0x254] sm:$0xf]  ;;  %v8920_v58 = vld [vmem:[%s13815_s9 + $0x1c4] sm:$0xf] }
 0x612   : > { %v4418_v20 = vpop.f32.mrf.mxu3  ;;  %4617 = vmatmul.bf16.vlgmr.msrb.gmra.mxu0 %v11499_v12  ;;  %v8224_v12 = vor.u32 %v8938_v46, %v8221_v5  ;;  %v8152_v46 = vor.u32 %v8920_v58, %v8149_v34  ;;  %v3722_v5 = vsel %vm1070_vm4, %v11822_v33, %v3707_v55  ;;  %v8936_v33 = vld [vmem:[%s13815_s9 + $0x244] sm:$0xf]  ;;  %v3711_v34 = vpop.permute.xlu1 %3710 }
 0x613   : > { %v4419_v16 = vadd.f32 %v4418_v20, %v4375_v60  ;;  %8286 = vmatmul.msk.bf16.gmra.mxu3 %vm1647_vm7, %v12239_v22  ;;  %v8085_v60 = vld [vmem:[%s13815_s9 + $0x148] sm:$0xf0] }
 0x614   : > { %4534 = vmatmul.bf16.gmra.mxu2 %v12242_v3  ;;  %v8088_v7 = vor.u32 %v8904_v25, %v8085_v60  ;;  %4787 = vmatpush.bf16.msra.mxu0 %v8224_v12  ;;  %v12283_v12 = vpack.c.bf16 %v3722_v5, %v11787_v32  ;;  %v12315_v5 = vpack.c.bf16 %v3711_v34, %v11787_v32 }
 0x615   : > { %v12257_v38 = vpop.f32.mrf.mxu1  ;;  %v12262_v52 = vpop.f32.mrf.mxu0  ;;  %4744 = vmatpush.bf16.msrb.mxu3 %v8152_v46 }
 0x616   : > { %4700 = vmatpush.bf16.msrb.mxu2 %v8088_v7  ;;  %v8918_v7 = vld [vmem:[%s13815_s9 + $0x1b4] sm:$0xf]  ;;  %v12312_v46 = vpop.f32.mrf.mxu2 }
 0x61c   : > { %8295 = vmatmul.msk.bf16.vlgmr.msrb.gmra.mxu1 %vm10280_vm6, %v11649_v48  ;;  %v12280_v48 = vpack.c.bf16 %v3707_v55, %v11787_v32  ;;  %v8141_v55 = vld [vmem:[%s13815_s9 + $0x1b8] sm:$0xf0] }
 0x61d   : > { %v4501_v56 = vpop.f32.mrf.mxu1  ;;  %v4462_v39 = vpop.f32.mrf.mxu0  ;;  %v8144_v58 = vor.u32 %v8918_v7, %v8141_v55  ;;  %v8900_v7 = vld [vmem:[%s13815_s9 + $0x124] sm:$0xf]  ;;  %v8069_v55 = vld [vmem:[%s13815_s9 + $0x128] sm:$0xf0] }
 0x61e   : > { %v12273_v20 = vadd.f32 %v4501_v56, %v4458_v29  ;;  %v12277_v25 = vadd.f32 %v4462_v39, %v4419_v16  ;;  %v8213_v29 = vld [vmem:[%s13815_s9 + $0x248] sm:$0xf0]  ;;  %v8902_v16 = vld [vmem:[%s13815_s9 + $0x134] sm:$0xf]  ;;  %v3723_v39 = vsel %vm1070_vm4, %v11913_v59, %v3711_v34  ;;  %v8916_v34 = vld [vmem:[%s13815_s9 + $0x1a4] sm:$0xf] }
 0x61f   : > { %v8216_v60 = vor.u32 %v8936_v33, %v8213_v29  ;;  %4745 = vmatpush.bf16.msrb.mxu3 %v8144_v58  ;;  %v12318_v33 = vpack.c.bf16 %v3723_v39, %v11787_v32  ;;  %v8934_v29 = vld [vmem:[%s13815_s9 + $0x234] sm:$0xf]  ;;  %v4379_v58 = vpop.f32.mrf.mxu2  ;;  %v8133_v39 = vld [vmem:[%s13815_s9 + $0x1a8] sm:$0xf0] }
 0x621   : > { %4788 = vmatpush.bf16.msra.mxu0 %v8216_v60  ;;  %v8245_v60 = vld [vmem:[%s13815_s9 + $0x288] sm:$0xf0] }
 0x622   : > { %4622 = vmatmul.bf16.gmra.mxu0 %v11655_v53  ;;  %v8077_v53 = vld [vmem:[%s13815_s9 + $0x138] sm:$0xf0] }
 0x623   : > { %8287 = vmatmul.msk.bf16.gmra.mxu3 %vm1647_vm7, %v12280_v48  ;;  %v8080_v56 = vor.u32 %v8902_v16, %v8077_v53  ;;  %v12329_v16 = vpop.f32.mrf.mxu3 }
 0x624   : > { %4539 = vmatmul.bf16.gmra.mxu2 %v12283_v12 }
 0x625   : > { %4701 = vmatpush.bf16.msrb.mxu2 %v8080_v56  ;;  %v8072_v56 = vor.u32 %v8900_v7, %v8069_v55  ;;  %v8197_v7 = vld [vmem:[%s13815_s9 + $0x228] sm:$0xf0] }
 0x629   : > { %4702 = vmatpush.bf16.msrb.mxu2 %v8072_v56 }
 0x62c   : > { %8299 = vmatmul.msk.bf16.gmra.mxu1 %vm10280_vm6, %v11766_v31  ;;  %v8205_v31 = vld [vmem:[%s13815_s9 + $0x238] sm:$0xf0] }
 0x62d   : > { %v8208_v59 = vor.u32 %v8934_v29, %v8205_v31  ;;  %v8136_v29 = vor.u32 %v8916_v34, %v8133_v39  ;;  %v4380_v31 = vadd.f32 %v4379_v58, %v11820_v17 }
 0x62f   : > { %4789 = vmatpush.bf16.msra.mxu0 %v8208_v59  ;;  %4746 = vmatpush.bf16.msrb.mxu3 %v8136_v29  ;;  %v3715_v59 = vpop.permute.xlu2 %3714  ;;  %v12378_v29 = vpop.f32.mrf.mxu1 }
 0x630   : > { %v3724_v55 = vsel %vm1070_vm4, %v12035_v61, %v3715_v59  ;;  %v12363_v58 = vpack.c.bf16 %v3715_v59, %v11787_v32  ;;  %v8061_v61 = vld [vmem:[%s13815_s9 + $0x118] sm:$0xf0] }
 0x631   : > { %v12366_v34 = vpack.c.bf16 %v3724_v55, %v11787_v32 }
 0x632   : > { %4627 = vmatmul.bf16.gmra.mxu0 %v11684_v28  ;;  %v8944_v28 = vld [vmem:[%s13815_s9 + $0x284] sm:$0xf]  ;;  %13876 = vst [vmem:[#allocation19_spill] sm:$0xff] %v12363_v58 }
 0x633   : > { %8288 = vmatmul.msk.bf16.gmra.mxu3 %vm1647_vm7, %v12315_v5  ;;  %v8248_v53 = vor.u32 %v8944_v28, %v8245_v60 }
 0x634   : > { %4544 = vmatmul.bf16.gmra.mxu2 %v12318_v33 }
 0x635   : > { %4836 = vmatpush.bf16.msra.mxu1 %v8248_v53  ;;  %v8932_v53 = vld [vmem:[%s13815_s9 + $0x224] sm:$0xf] }
 0x636   : > { %v8200_v56 = vor.u32 %v8932_v53, %v8197_v7  ;;  %v12389_v53 = vpop.f32.mrf.mxu0 }
 0x637   : > { %13877 = vst [vmem:[#allocation20_spill] sm:$0xff] %v12389_v53 }
 0x638   : > { %4790 = vmatpush.bf16.msra.mxu0 %v8200_v56  ;;  %v8930_v56 = vld [vmem:[%s13815_s9 + $0x214] sm:$0xf] }
 0x63c   : > { %v4423_v28 = vpop.f32.mrf.mxu3  ;;  %8303 = vmatmul.msk.bf16.gmra.mxu1 %vm10280_vm6, %v11792_v23  ;;  %v8898_v23 = vld [vmem:[%s13815_s9 + $0x114] sm:$0xf] }
 0x63d   : > { %v4424_v60 = vadd.f32 %v4423_v28, %v4380_v31  ;;  %v8064_v39 = vor.u32 %v8898_v23, %v8061_v61  ;;  %v8125_v31 = vld [vmem:[%s13815_s9 + $0x198] sm:$0xf0]  ;;  %v3719_v28 = vpop.permute.xlu0 %3718  ;;  %v8912_v61 = vld [vmem:[%s13815_s9 + $0x184] sm:$0xf] }
 0x63e   : > { %v3725_v7 = vsel %vm1070_vm4, %v12139_v57, %v3719_v28  ;;  %v8189_v23 = vld [vmem:[%s13815_s9 + $0x218] sm:$0xf0]  ;;  %v8117_v57 = vld [vmem:[%s13815_s9 + $0x188] sm:$0xf0] }
 0x63f   : > { %4703 = vmatpush.bf16.msrb.mxu2 %v8064_v39  ;;  %v8192_v39 = vor.u32 %v8930_v56, %v8189_v23  ;;  %v12424_v23 = vpop.f32.mrf.mxu2 }
 0x641   : > { %4791 = vmatpush.bf16.msra.mxu0 %v8192_v39 }
 0x642   : > { %4632 = vmatmul.bf16.gmra.mxu0 %v11705_v24  ;;  %v8914_v24 = vld [vmem:[%s13815_s9 + $0x194] sm:$0xf] }
 0x643   : > { %8289 = vmatmul.msk.bf16.gmra.mxu3 %vm1647_vm7, %v12363_v58  ;;  %v8128_v59 = vor.u32 %v8914_v24, %v8125_v31  ;;  %v8896_v24 = vld [vmem:[%s13815_s9 + $0x104] sm:$0xf]  ;;  %v8053_v31 = vld [vmem:[%s13815_s9 + $0x108] sm:$0xf0]  ;;  %v8120_v58 = vor.u32 %v8912_v61, %v8117_v57 }
 0x644   : > { %4549 = vmatmul.bf16.gmra.mxu2 %v12366_v34  ;;  %v8056_v53 = vor.u32 %v8896_v24, %v8053_v31  ;;  %v12435_v61 = vpop.f32.mrf.mxu3 }
 0x645   : > { %4747 = vmatpush.bf16.msrb.mxu3 %v8128_v59  ;;  %v12415_v59 = vpack.c.bf16 %v3719_v28, %v11787_v32  ;;  %v8181_v28 = vld [vmem:[%s13815_s9 + $0x208] sm:$0xf0] }
 0x646   : > { %4704 = vmatpush.bf16.msrb.mxu2 %v8056_v53 }
 0x649   : > { %4748 = vmatpush.bf16.msrb.mxu3 %v8120_v58  ;;  %v4384_v58 = vpop.f32.mrf.mxu2 }
 0x64c   : > { %8307 = vmatmul.msk.bf16.gmra.mxu1 %vm10280_vm6, %v11832_v27 }
 0x64f   : > { %v4506_v55 = vpop.f32.mrf.mxu1 }
 0x650   : > { %v12403_v27 = vadd.f32 %v4506_v55, %v12277_v25  ;;  %v12418_v25 = vpack.c.bf16 %v3725_v7, %v11787_v32 }
 0x652   : > { %4637 = vmatmul.bf16.gmra.mxu0 %v11712_v0  ;;  %v8928_v0 = vld [vmem:[%s13815_s9 + $0x204] sm:$0xf] }
 0x653   : > { %8290 = vmatmul.msk.bf16.gmra.mxu3 %vm1647_vm7, %v12415_v59  ;;  %v8184_v7 = vor.u32 %v8928_v0, %v8181_v28  ;;  %v4386_v0 = vpop.f32.mrf.mxu2 }
 0x654   : > { %4554 = vmatmul.bf16.gmra.mxu2 %v12418_v25 }
 0x655   : > { %v4467_v55 = vpop.f32.mrf.mxu0  ;;  %4792 = vmatpush.bf16.msra.mxu0 %v8184_v7 }
 0x656   : > { %v4468_v56 = vadd.f32 %v4467_v55, %v4424_v60  ;;  %v12439_v60 = vpack.c.bf16 %v11787_v32, %v11787_v32 }
 0x657   : > { %v12449_v57 = vpop.f32.mrf.mxu1 }
 0x65c   : > { %8311 = vmatmul.msk.bf16.gmra.mxu1 %vm10280_vm6, %v11888_v11  ;;  %v4385_v11 = vadd.f32 %v4384_v58, %v11820_v17 }
 0x662   : > { %4642 = vmatmul.bf16.gmra.mxu0 %v11775_v47  ;;  %v12454_v47 = vpop.f32.mrf.mxu0 }
 0x663   : > { %8291 = vmatmul.msk.bf16.gmra.mxu3 %vm1647_vm7, %v12439_v60 }
 0x664   : > { %4559 = vmatmul.bf16.gmra.mxu2 %v12439_v60 }
 0x666   : > { %v4428_v53 = vpop.f32.mrf.mxu3 }
 0x667   : > { %v4429_v39 = vadd.f32 %v4428_v53, %v4385_v11 }
 0x66c   : > { %8315 = vmatmul.msk.bf16.gmra.mxu1 %vm10280_vm6, %v11990_v19 }
 0x66e   : > { %v4430_v55 = vpop.f32.mrf.mxu3 }
 0x672   : > { %4647 = vmatmul.bf16.gmra.mxu0 %v11870_v35 }
 0x673   : > { %4749 = vmatmul.bf16.vlgmr.msrb.gmra.mxu3 %v11801_v13  ;;  %v8963_v13 = vld [vmem:[%s13817_s11 + $0x78] sm:$0xff] }
 0x674   : > { %4705 = vmatmul.bf16.vlgmr.msrb.gmra.mxu2 %v11690_v21  ;;  %v8955_v21 = vld [vmem:[%s13817_s11 + $0x38] sm:$0xff]  ;;  %5740 = vmatpush.bf16.msra.mxu3 %v8963_v13 }
 0x675   : > { %5661 = vmatpush.bf16.msra.mxu2 %v8955_v21 }
 0x679   : > { %v4511_v24 = vpop.f32.mrf.mxu1 }
 0x67a   : > { %v12456_v31 = vadd.f32 %v4511_v24, %v4468_v56 }
 0x67c   : > { %8319 = vmatmul.msk.bf16.gmra.mxu1 %vm10280_vm6, %v12093_v14 }
 0x67f   : > { %v4472_v19 = vpop.f32.mrf.mxu0 }
 0x680   : > { %v4473_v28 = vadd.f32 %v4472_v19, %v4429_v39 }
 0x681   : > { %v12461_v7 = vpop.f32.mrf.mxu1 }
 0x682   : > { %4793 = vmatmul.bf16.vlgmr.msra.gmra.mxu0 %v12190_v51  ;;  %v4357_v51 = vadd.f32 %v12031_v50, %v11820_v17  ;;  %v8954_v50 = vld [vmem:[%s13817_s11 + $0x30] sm:$0xff] }
 0x683   : > { %4754 = vmatmul.bf16.gmra.mxu3 %v11836_v40  ;;  %5662 = vmatpush.bf16.msra.mxu2 %v8954_v50 }
 0x684   : > { %4710 = vmatmul.bf16.gmra.mxu2 %v11808_v45  ;;  %v4401_v53 = vadd.f32 %v12033_v18, %v4357_v51  ;;  %v4387_v45 = vadd.f32 %v4386_v0, %v11820_v17 }
 0x686   : > { %v4574_v35 = vpop.f32.mrf.mxu3  ;;  %v4445_v40 = vadd.f32 %v12101_v41, %v4401_v53  ;;  %v4431_v18 = vadd.f32 %v4430_v55, %v4387_v45  ;;  %v12500_v55 = vperm.slane %v11817_v30, 1 }
 0x687   : > { %v4474_v14 = vpop.f32.mrf.mxu0  ;;  %v4530_v56 = vpop.f32.mrf.mxu2 }
 0x688   : > { %v4531_v58 = vadd.f32 %v4530_v56, %v12112_v4  ;;  %v4489_v4 = vadd.f32 %v12135_v15, %v4445_v40  ;;  %v8962_v15 = vld [vmem:[%s13817_s11 + $0x70] sm:$0xff] }
 0x689   : > { %v4516_v11 = vpop.f32.mrf.mxu1  ;;  %5741 = vmatpush.bf16.msra.mxu3 %v8962_v15 }
 0x68a   : > { %v12476_v39 = vadd.f32 %v4574_v35, %v4531_v58  ;;  %v12478_v24 = vadd.f32 %v4516_v11, %v4473_v28  ;;  %v4475_v28 = vadd.f32 %v4474_v14, %v4431_v18  ;;  %v4362_v11 = vadd.f32 %v12070_v2, %v11820_v17  ;;  %v8953_v2 = vld [vmem:[%s13817_s11 + $0x28] sm:$0xff] }
 0x68b   : > { %5663 = vmatpush.bf16.msra.mxu2 %v8953_v2 }
 0x68c   : > { %v4873_v19 = vmax.f32 %v12476_v39, 0.0  ;;  %8320 = vmatmul.msk.bf16.vlgmr.msra.gmra.mxu1 %vm1647_vm7, %v12187_v26  ;;  %v4406_v40 = vadd.f32 %v12103_v37, %v4362_v11 }
 0x68e   : > { %v4576_v21 = vpop.f32.mrf.mxu3  ;;  %4929 = vrot.lane.b32.xlu1 %v4873_v19, %s13864_s21  ;;  %v4450_v50 = vadd.f32 %v12137_v42, %v4406_v40 }
 0x68f   : > { %v4532_v41 = vpop.f32.mrf.mxu2  ;;  %v4618_v0 = vpop.f32.mrf.mxu0 }
 0x690   : > { %v4533_v13 = vadd.f32 %v4532_v41, %v4489_v4  ;;  %v4619_v53 = vadd.f32 %v4618_v0, %v12500_v55  ;;  %v4494_v37 = vadd.f32 %v12198_v62, %v4450_v50 }
 0x691   : > { %v4518_v35 = vpop.f32.mrf.mxu1 }
 0x692   : > { %v4577_v56 = vadd.f32 %v4576_v21, %v4533_v13  ;;  %v12492_v26 = vadd.f32 %v4518_v35, %v4475_v28  ;;  %4798 = vmatmul.bf16.gmra.mxu0 %v12242_v3 }
 0x693   : > { %4759 = vmatmul.bf16.gmra.mxu3 %v11901_v36 }
 0x694   : > { %4715 = vmatmul.bf16.gmra.mxu2 %v11839_v43  ;;  %v12503_v51 = vmax.f32 %v4577_v56, 0.0 }
 0x696   : > { %v4579_v14 = vpop.f32.mrf.mxu3  ;;  %4933 = vrot.lane.b32.xlu2 %v12503_v51, %s13864_s21 }
 0x697   : > { %v4535_v58 = vpop.f32.mrf.mxu2  ;;  %v4620_v3 = vpop.f32.mrf.mxu0 }
 0x698   : > { %v4536_v36 = vadd.f32 %v4535_v58, %v12163_v6  ;;  %v8961_v6 = vld [vmem:[%s13817_s11 + $0x68] sm:$0xff] }
 0x699   : > { %v4662_v30 = vpop.f32.mrf.mxu1  ;;  %5742 = vmatpush.bf16.msra.mxu3 %v8961_v6 }
 0x69a   : > { %v4580_v43 = vadd.f32 %v4579_v14, %v4536_v36  ;;  %v12512_v45 = vadd.f32 %v4662_v30, %v4619_v53  ;;  %v4367_v14 = vadd.f32 %v12120_v54, %v11820_v17  ;;  %v8952_v54 = vld [vmem:[%s13817_s11 + $0x20] sm:$0xff] }
 0x69b   : > { %5664 = vmatpush.bf16.msra.mxu2 %v8952_v54 }
 0x69c   : > { %v12515_v4 = vmax.f32 %v4580_v43, 0.0  ;;  %8321 = vmatmul.msk.bf16.gmra.mxu1 %vm1647_vm7, %v12239_v22  ;;  %v4621_v22 = vadd.f32 %v4620_v3, %v12500_v55 }
 0x69e   : > { %v4581_v18 = vpop.f32.mrf.mxu3  ;;  %4937 = vrot.lane.b32.xlu0 %v12515_v4, %s13864_s21 }
 0x69f   : > { %v4537_v42 = vpop.f32.mrf.mxu2  ;;  %v4623_v21 = vpop.f32.mrf.mxu0 }
 0x6a0   : > { %v4538_v41 = vadd.f32 %v4537_v42, %v4494_v37  ;;  %v4624_v58 = vadd.f32 %v4623_v21, %v12500_v55 }
 0x6a1   : > { %v4664_v0 = vpop.f32.mrf.mxu1 }
 0x6a2   : > { %v4582_v28 = vadd.f32 %v4581_v18, %v4538_v41  ;;  %v12529_v13 = vadd.f32 %v4664_v0, %v4621_v22  ;;  %4803 = vmatmul.bf16.gmra.mxu0 %v12283_v12  ;;  %v8951_v18 = vld [vmem:[%s13817_s11 + $0x18] sm:$0xff] }
 0x6a3   : > { %4764 = vmatmul.bf16.gmra.mxu3 %v11974_v8  ;;  %v4411_v8 = vadd.f32 %v12148_v10, %v4367_v14  ;;  %5665 = vmatpush.bf16.msra.mxu2 %v8951_v18 }
 0x6a4   : > { %4720 = vmatmul.bf16.gmra.mxu2 %v11911_v49  ;;  %v12534_v62 = vmax.f32 %v4582_v28, 0.0 }
 0x6a5   : > { %v4455_v53 = vadd.f32 %v12200_v1, %v4411_v8  ;;  %v8949_v8 = vld [vmem:[%s13817_s11 + $0x8] sm:$0xff] }
 0x6a6   : > { %v4584_v35 = vpop.f32.mrf.mxu3  ;;  %4941 = vrot.lane.b32.xlu1 %v12534_v62, %s13864_s21 }
 0x6a7   : > { %v4540_v56 = vpop.f32.mrf.mxu2  ;;  %v4625_v15 = vpop.f32.mrf.mxu0  ;;  %v4499_v10 = vadd.f32 %v12257_v38, %v4455_v53  ;;  %v13878_v38 = vld [vmem:[#allocation11_spill] sm:$0xff] }
 0x6a8   : > { %v4541_v3 = vadd.f32 %v4540_v56, %v12233_v63  ;;  %v8960_v63 = vld [vmem:[%s13817_s11 + $0x60] sm:$0xff]  ;;  %v13880_v56 = vld [vmem:[#allocation18_spill] sm:$0xff] }
 0x6a9   : > { %v4667_v12 = vpop.f32.mrf.mxu1  ;;  %5743 = vmatpush.bf16.msra.mxu3 %v8960_v63 }
 0x6aa   : > { %v4585_v11 = vadd.f32 %v4584_v35, %v4541_v3  ;;  %v12543_v49 = vadd.f32 %v4667_v12, %v4624_v58  ;;  %v8950_v35 = vld [vmem:[%s13817_s11 + $0x10] sm:$0xff] }
 0x6ab   : > { %5666 = vmatpush.bf16.msra.mxu2 %v8950_v35 }
 0x6ac   : > { %v12546_v36 = vmax.f32 %v4585_v11, 0.0  ;;  %8322 = vmatmul.msk.bf16.gmra.mxu1 %vm1647_vm7, %v12280_v48  ;;  %v4626_v48 = vadd.f32 %v4625_v15, %v12500_v55 }
 0x6ae   : > { %v4586_v30 = vpop.f32.mrf.mxu3  ;;  %4945 = vrot.lane.b32.xlu2 %v12546_v36, %s13864_s21 }
 0x6af   : > { %v4542_v1 = vpop.f32.mrf.mxu2  ;;  %v4628_v40 = vpop.f32.mrf.mxu0  ;;  %5667 = vmatpush.bf16.msra.mxu2 %v8949_v8  ;;  %v13886_v8 = vld [vmem:[#allocation14_spill] sm:$0xff] }
 0x6b0   : > { %v4543_v43 = vadd.f32 %v4542_v1, %v4499_v10  ;;  %v8948_v10 = vld [vmem:[%s13817_s11] sm:$0xff]  ;;  %v13881_v1 = vld [vmem:[#allocation13_spill] sm:$0xff] }
 0x6b1   : > { %v4669_v50 = vpop.f32.mrf.mxu1 }
 0x6b2   : > { %v4587_v2 = vadd.f32 %v4586_v30, %v4543_v43  ;;  %v12560_v6 = vadd.f32 %v4669_v50, %v4626_v48  ;;  %4808 = vmatmul.bf16.gmra.mxu0 %v12318_v33  ;;  %v13879_v33 = vld [vmem:[#allocation15_spill] sm:$0xff] }
 0x6b3   : > { %4769 = vmatmul.bf16.gmra.mxu3 %v12049_v44  ;;  %v4372_v41 = vadd.f32 %v13879_v33, %v11820_v17  ;;  %v4629_v44 = vadd.f32 %v4628_v40, %v12500_v55  ;;  %5668 = vmatpush.bf16.msra.mxu2 %v8948_v10 }
 0x6b4   : > { %4725 = vmatmul.bf16.gmra.mxu2 %v13878_v38  ;;  %v12565_v37 = vmax.f32 %v4587_v2, 0.0  ;;  %v4377_v2 = vadd.f32 %v12312_v46, %v11820_v17  ;;  %v8958_v46 = vld [vmem:[%s13817_s11 + $0x50] sm:$0xff] }
 0x6b5   : > { %v4416_v15 = vadd.f32 %v13880_v56, %v4372_v41  ;;  %v13883_v41 = vld [vmem:[#allocation20_spill] sm:$0xff] }
 0x6b6   : > { %v4589_v42 = vpop.f32.mrf.mxu3  ;;  %4949 = vrot.lane.b32.xlu0 %v12565_v37, %s13864_s21 }
 0x6b7   : > { %v4545_v21 = vpop.f32.mrf.mxu2  ;;  %v12572_v22 = vpop.f32.mrf.mxu0  ;;  %v4460_v3 = vadd.f32 %v12262_v52, %v4416_v15 }
 0x6b8   : > { %v4546_v0 = vadd.f32 %v4545_v21, %v12273_v20  ;;  %v8959_v20 = vld [vmem:[%s13817_s11 + $0x58] sm:$0xff] }
 0x6b9   : > { %v4672_v28 = vpop.f32.mrf.mxu1  ;;  %v4504_v11 = vadd.f32 %v12378_v29, %v4460_v3  ;;  %5744 = vmatpush.bf16.msra.mxu3 %v8959_v20  ;;  %v13882_v29 = vld [vmem:[#allocation12_spill] sm:$0xff]  ;;  %v13885_v20 = vld [vmem:[#allocation17_spill] sm:$0xff] }
 0x6ba   : > { %v4590_v14 = vadd.f32 %v4589_v42, %v4546_v0  ;;  %v12582_v58 = vadd.f32 %v4672_v28, %v4629_v44  ;;  %v4421_v42 = vadd.f32 %v12329_v16, %v4377_v2  ;;  %v13884_v28 = vld [vmem:[#allocation19_spill] sm:$0xff] }
 0x6bc   : > { %v12585_v12 = vmax.f32 %v4590_v14, 0.0  ;;  %8323 = vmatmul.msk.bf16.gmra.mxu1 %vm1647_vm7, %v12315_v5  ;;  %v4465_v44 = vadd.f32 %v13883_v41, %v4421_v42 }
 0x6bd   : > { %5745 = vmatpush.bf16.msra.mxu3 %v8958_v46 }
 0x6be   : > { %v4591_v53 = vpop.f32.mrf.mxu3  ;;  %4953 = vrot.lane.b32.xlu1 %v12585_v12, %s13864_s21  ;;  %v4509_v35 = vadd.f32 %v12449_v57, %v4465_v44  ;;  %v8957_v57 = vld [vmem:[%s13817_s11 + $0x48] sm:$0xff] }
 0x6bf   : > { %v4547_v52 = vpop.f32.mrf.mxu2  ;;  %v4633_v54 = vpop.f32.mrf.mxu0 }
 0x6c0   : > { %v4548_v63 = vadd.f32 %v4547_v52, %v4504_v11  ;;  %v4634_v38 = vadd.f32 %v4633_v54, %v12500_v55 }
 0x6c1   : > { %v12598_v5 = vpop.f32.mrf.mxu1  ;;  %5746 = vmatpush.bf16.msra.mxu3 %v8957_v57 }
 0x6c2   : > { %v4592_v30 = vadd.f32 %v4591_v53, %v4548_v63  ;;  %4813 = vmatmul.bf16.gmra.mxu0 %v12366_v34 }
 0x6c3   : > { %4774 = vmatmul.bf16.gmra.mxu3 %v13881_v1 }
 0x6c4   : > { %4730 = vmatmul.bf16.gmra.mxu2 %v13882_v29  ;;  %v12606_v40 = vmax.f32 %v4592_v30, 0.0 }
 0x6c6   : > { %v4594_v48 = vpop.f32.mrf.mxu3  ;;  %4957 = vrot.lane.b32.xlu2 %v12606_v40, %s13864_s21 }
 0x6c7   : > { %v4550_v43 = vpop.f32.mrf.mxu2  ;;  %v12610_v50 = vpop.f32.mrf.mxu0 }
 0x6c8   : > { %v4551_v34 = vadd.f32 %v4550_v43, %v12403_v27 }
 0x6c9   : > { %v4677_v18 = vpop.f32.mrf.mxu1 }
 0x6ca   : > { %v4595_v21 = vadd.f32 %v4594_v48, %v4551_v34  ;;  %v12617_v33 = vadd.f32 %v4677_v18, %v4634_v38  ;;  %v13887_v18 = vmov 0.0  }
 0x6cb   : > { %v5206_v57 = vpack.c.bf16 %v12503_v51, %v13887_v18 }
 0x6cc   : > { %v12620_v0 = vmax.f32 %v4595_v21, 0.0  ;;  %8324 = vmatmul.msk.bf16.gmra.mxu1 %vm1647_vm7, %v13884_v28 }
 0x6ce   : > { %v4596_v27 = vpop.f32.mrf.mxu3  ;;  %4961 = vrot.lane.b32.xlu0 %v12620_v0, %s13864_s21 }
 0x6cf   : > { %v4552_v16 = vpop.f32.mrf.mxu2  ;;  %v4638_v56 = vpop.f32.mrf.mxu0 }
 0x6d0   : > { %v4553_v15 = vadd.f32 %v4552_v16, %v4509_v35  ;;  %v4639_v63 = vadd.f32 %v4638_v56, %v12500_v55 }
 0x6d1   : > { %v12630_v14 = vpop.f32.mrf.mxu1 }
 0x6d2   : > { %v4597_v3 = vadd.f32 %v4596_v27, %v4553_v15  ;;  %4818 = vmatmul.bf16.gmra.mxu0 %v12418_v25  ;;  %v4382_v25 = vadd.f32 %v12424_v23, %v11820_v17 }
 0x6d3   : > { %4779 = vmatmul.bf16.gmra.mxu3 %v13885_v20 }
 0x6d4   : > { %4735 = vmatmul.bf16.gmra.mxu2 %v13886_v8  ;;  %v12635_v11 = vmax.f32 %v4597_v3, 0.0  ;;  %v4426_v1 = vadd.f32 %v12435_v61, %v4382_v25 }
 0x6d6   : > { %v4599_v53 = vpop.f32.mrf.mxu3  ;;  %4965 = vrot.lane.b32.xlu1 %v12635_v11, %s13864_s21  ;;  %v4470_v43 = vadd.f32 %v12454_v47, %v4426_v1  ;;  %v5200_v47 = vpack.c.bf16 %v4873_v19, %v13887_v18 }
 0x6d7   : > { %v4555_v52 = vpop.f32.mrf.mxu2  ;;  %v12642_v54 = vpop.f32.mrf.mxu0 }
 0x6d8   : > { %v4556_v10 = vadd.f32 %v4555_v52, %v12456_v31  ;;  %v4514_v38 = vadd.f32 %v12461_v7, %v4470_v43 }
 0x6d9   : > { %v4682_v30 = vpop.f32.mrf.mxu1 }
 0x6da   : > { %v4600_v29 = vadd.f32 %v4599_v53, %v4556_v10  ;;  %v12649_v48 = vadd.f32 %v4682_v30, %v4639_v63 }
 0x6dc   : > { %v12652_v2 = vmax.f32 %v4600_v29, 0.0  ;;  %8325 = vmatmul.msk.bf16.gmra.mxu1 %vm1647_vm7, %v12415_v59  ;;  %v8956_v59 = vld [vmem:[%s13817_s11 + $0x40] sm:$0xff] }
 0x6dd   : > { %5747 = vmatpush.bf16.msra.mxu3 %v8956_v59 }
 0x6de   : > { %v4601_v17 = vpop.f32.mrf.mxu3  ;;  %4969 = vrot.lane.b32.xlu2 %v12652_v2, %s13864_s21 }
 0x6df   : > { %v4557_v23 = vpop.f32.mrf.mxu2  ;;  %v4643_v31 = vpop.f32.mrf.mxu0 }
 0x6e0   : > { %v4558_v34 = vadd.f32 %v4557_v23, %v4514_v38  ;;  %v4644_v39 = vadd.f32 %v4643_v31, %v12500_v55  ;;  %v5212_v31 = vpack.c.bf16 %v12515_v4, %v13887_v18 }
 0x6e1   : > { %v12659_v61 = vpop.f32.mrf.mxu1 }
 0x6e2   : > { %v4602_v42 = vadd.f32 %v4601_v17, %v4558_v34  ;;  %4823 = vmatmul.bf16.gmra.mxu0 %v12439_v60 }
 0x6e4   : > { %5669 = vmatmul.bf16.vlgmr.msra.gmra.mxu2 %v5200_v47  ;;  %v12668_v7 = vmax.f32 %v4602_v42, 0.0 }
 0x6e6   : > { %v4604_v21 = vpop.f32.mrf.mxu3  ;;  %4973 = vrot.lane.b32.xlu0 %v12668_v7, %s13864_s21 }
 0x6e7   : > { %v4560_v41 = vpop.f32.mrf.mxu2  ;;  %v12672_v44 = vpop.f32.mrf.mxu0 }
 0x6e8   : > { %v4561_v19 = vadd.f32 %v4560_v41, %v12478_v24  ;;  %v8987_v24 = vld [vmem:[%s13817_s11 + $0x138] sm:$0xff] }
 0x6e9   : > { %v4687_v28 = vpop.f32.mrf.mxu1  ;;  %5977 = vmatpush.bf16.msrb.mxu2 %v8987_v24 }
 0x6ea   : > { %v4605_v46 = vadd.f32 %v4604_v21, %v4561_v19  ;;  %v12676_v35 = vadd.f32 %v4687_v28, %v4644_v39 }
 0x6ec   : > { %v12678_v27 = vmax.f32 %v4605_v46, 0.0  ;;  %8326 = vmatmul.msk.bf16.gmra.mxu1 %vm1647_vm7, %v12439_v60 }
 0x6ee   : > { %v4606_v16 = vpop.f32.mrf.mxu3  ;;  %4977 = vrot.lane.b32.xlu1 %v12678_v27, %s13864_s21 }
 0x6ef   : > { %v4562_v56 = vpop.f32.mrf.mxu2  ;;  %v4648_v15 = vpop.f32.mrf.mxu0 }
 0x6f0   : > { %v4563_v3 = vadd.f32 %v4562_v56, %v12492_v26  ;;  %v8989_v26 = vld [vmem:[%s13817_s11 + $0x148] sm:$0xff]  ;;  %v4649_v10 = vadd.f32 %v4648_v15, %v12500_v55  ;;  %v13888_v56 = vld [vmem:[#allocation10_spill] sm:$0xff] }
 0x6f1   : > { %v12688_v20 = vpop.f32.mrf.mxu1  ;;  %6062 = vmatpush.bf16.msrb.mxu3 %v8989_v26 }
 0x6f2   : > { %v4607_v8 = vadd.f32 %v4606_v16, %v4563_v3 }
 0x6f4   : > { %5674 = vmatmul.bf16.gmra.mxu2 %v5206_v57  ;;  %v12692_v53 = vmax.f32 %v4607_v8, 0.0  ;;  %v8986_v57 = vld [vmem:[%s13817_s11 + $0x130] sm:$0xff] }
 0x6f5   : > { %5978 = vmatpush.bf16.msrb.mxu2 %v8986_v57  ;;  %v4631_v57 = vadd.f32 %v12572_v22, %v12500_v55 }
 0x6f6   : > { %v4750_v52 = vpop.f32.mrf.mxu3  ;;  %4981 = vrot.lane.b32.xlu2 %v12692_v53, %s13864_s21 }
 0x6f7   : > { %v12699_v25 = vpop.f32.mrf.mxu0  ;;  %v4706_v63 = vpop.f32.mrf.mxu2 }
 0x6f8   : > { %v4707_v23 = vadd.f32 %v4706_v63, %v12512_v45 }
 0x6f9   : > { %v4692_v30 = vpop.f32.mrf.mxu1 }
 0x6fa   : > { %v12702_v1 = vadd.f32 %v4692_v30, %v4649_v10  ;;  %v4751_v34 = vadd.f32 %v4750_v52, %v4707_v23  ;;  %v5218_v10 = vpack.c.bf16 %v12534_v62, %v13887_v18 }
 0x6fe   : > { %v4752_v29 = vpop.f32.mrf.mxu3 }
 0x6ff   : > { %v4708_v43 = vpop.f32.mrf.mxu2  ;;  %v4794_v38 = vpop.f32.mrf.mxu0 }
 0x700   : > { %v4795_v21 = vadd.f32 %v4794_v38, %v4751_v34  ;;  %v4709_v39 = vadd.f32 %v4708_v43, %v12529_v13  ;;  %v12710_v46 = vpop.permute.xlu1 %4929 }
 0x701   : > { %v12704_v17 = vpop.f32.mrf.mxu1 }
 0x702   : > { %v4753_v16 = vadd.f32 %v4752_v29, %v4709_v39  ;;  %v12729_v39 = vpop.permute.xlu2 %4933 }
 0x704   : > { %5679 = vmatmul.bf16.gmra.mxu2 %v5212_v31 }
 0x706   : > { %v4755_v47 = vpop.f32.mrf.mxu3 }
 0x707   : > { %v4711_v42 = vpop.f32.mrf.mxu2  ;;  %v4796_v59 = vpop.f32.mrf.mxu0 }
 0x708   : > { %v4797_v13 = vadd.f32 %v4796_v59, %v4753_v16  ;;  %v4712_v26 = vadd.f32 %v4711_v42, %v12543_v49 }
 0x709   : > { %v4838_v41 = vpop.f32.mrf.mxu1 }
 0x70a   : > { %v4839_v19 = vadd.f32 %v4838_v41, %v4795_v21  ;;  %v4756_v29 = vadd.f32 %v4755_v47, %v4712_v26 }
 0x70c   : > { %v4874_v28 = vmax.f32 %v4839_v19, 0.0 }
 0x70e   : > { %v5146_v45 = vsel %vm999_vm2, %v4874_v28, %v13888_v56  ;;  %v4757_v15 = vpop.f32.mrf.mxu3  ;;  %4931 = vrot.lane.b32.xlu1 %v4874_v28, %s13864_s21 }
 0x70f   : > { %v8497_v3 = vpack.c.bf16 %v5146_v45, %v12710_v46  ;;  %v4713_v24 = vpop.f32.mrf.mxu2  ;;  %v4799_v8 = vpop.f32.mrf.mxu0 }
 0x710   : > { %v4800_v34 = vadd.f32 %v4799_v8, %v4756_v29  ;;  %v4714_v21 = vadd.f32 %v4713_v24, %v12560_v6 }
 0x711   : > { %v4840_v52 = vpop.f32.mrf.mxu1  ;;  %8498 = vmatmul.msk.bf16.vlgmr.msra.gmra.mxu3 %vm10280_vm6, %v8497_v3 }
 0x712   : > { %v4841_v63 = vadd.f32 %v4840_v52, %v4797_v13  ;;  %v4758_v19 = vadd.f32 %v4757_v15, %v4714_v21  ;;  %v5224_v15 = vpack.c.bf16 %v12546_v36, %v13887_v18 }
 0x714   : > { %v4876_v30 = vmax.f32 %v4841_v63, 0.0  ;;  %5684 = vmatmul.bf16.gmra.mxu2 %v5218_v10 }
 0x716   : > { %v4760_v43 = vpop.f32.mrf.mxu3  ;;  %v9159_v38 = vpack.i.bf16 %v4876_v30, %v12503_v51  ;;  %v5148_v49 = vsel %vm999_vm2, %v4876_v30, %v13888_v56 }
 0x717   : > { %v4716_v23 = vpop.f32.mrf.mxu2  ;;  %v4801_v31 = vpop.f32.mrf.mxu0  ;;  %v8501_v45 = vpack.c.bf16 %v5148_v49, %v12729_v39 }
 0x718   : > { %9160 = vrot.lane.b32.xlu0 %v9159_v38, %s13866_s27  ;;  %v4802_v3 = vadd.f32 %v4801_v31, %v4758_v19  ;;  %v4717_v24 = vadd.f32 %v4716_v23, %v12582_v58  ;;  %v8985_v58 = vld [vmem:[%s13817_s11 + $0x128] sm:$0xff]  ;;  %v12753_v31 = vpop.permute.xlu0 %4937 }
 0x719   : > { %v4843_v59 = vpop.f32.mrf.mxu1  ;;  %5979 = vmatpush.bf16.msrb.mxu2 %v8985_v58 }
 0x71a   : > { %v4844_v41 = vadd.f32 %v4843_v59, %v4800_v34  ;;  %v4761_v13 = vadd.f32 %v4760_v43, %v4717_v24 }
 0x71c   : > { %v4878_v42 = vmax.f32 %v4844_v41, 0.0 }
 0x71e   : > { %v4762_v47 = vpop.f32.mrf.mxu3  ;;  %v9164_v28 = vpack.i.bf16 %v4878_v42, %v12515_v4 }
 0x71f   : > { %v4718_v51 = vpop.f32.mrf.mxu2  ;;  %v4804_v16 = vpop.f32.mrf.mxu0 }
 0x720   : > { %4935 = vrot.lane.b32.xlu0 %v4876_v30, %s13864_s21  ;;  %9165 = vrot.lane.b32.xlu2 %v9164_v28, %s13866_s27  ;;  %v4675_v30 = vadd.f32 %v12598_v5, %v4631_v57  ;;  %v4805_v29 = vadd.f32 %v4804_v16, %v4761_v13  ;;  %v4636_v16 = vadd.f32 %v12610_v50, %v12500_v55 }
 0x721   : > { %v4845_v6 = vpop.f32.mrf.mxu1  ;;  %8502 = vmatmul.msk.bf16.gmra.mxu3 %vm10280_vm6, %v8501_v45 }
 0x722   : > { %v4846_v8 = vadd.f32 %v4845_v6, %v4802_v3  ;;  %v4719_v23 = vadd.f32 %v4718_v51, %v4675_v30 }
 0x724   : > { %v4880_v4 = vmax.f32 %v4846_v8, 0.0  ;;  %5689 = vmatmul.bf16.gmra.mxu2 %v5224_v15  ;;  %v4763_v5 = vadd.f32 %v4762_v47, %v4719_v23  ;;  %v4680_v8 = vadd.f32 %v12630_v14, %v4636_v16 }
 0x726   : > { %v4765_v52 = vpop.f32.mrf.mxu3  ;;  %v9169_v26 = vpack.i.bf16 %v4880_v4, %v12534_v62  ;;  %v5150_v62 = vsel %vm999_vm2, %v4878_v42, %v13888_v56  ;;  %v5152_v50 = vsel %vm999_vm2, %v4880_v4, %v13888_v56 }
 0x727   : > { %v4721_v63 = vpop.f32.mrf.mxu2  ;;  %v4806_v10 = vpop.f32.mrf.mxu0  ;;  %v8505_v59 = vpack.c.bf16 %v5150_v62, %v12753_v31 }
 0x728   : > { %4939 = vrot.lane.b32.xlu2 %v4878_v42, %s13864_s21  ;;  %9170 = vrot.lane.b32.xlu1 %v9169_v26, %s13866_s27  ;;  %v4807_v49 = vadd.f32 %v4806_v10, %v4763_v5  ;;  %v4722_v42 = vadd.f32 %v4721_v63, %v12617_v33 }
 0x729   : > { %v4848_v38 = vpop.f32.mrf.mxu1 }
 0x72a   : > { %v4849_v22 = vadd.f32 %v4848_v38, %v4805_v29  ;;  %v4766_v45 = vadd.f32 %v4765_v52, %v4722_v42  ;;  %v8970_v42 = vld [vmem:[%s13817_s11 + $0xb0] sm:$0xff] }
 0x72c   : > { %v12751_v43 = vmax.f32 %v4849_v22, 0.0  ;;  %v5236_v22 = vpack.c.bf16 %v12585_v12, %v13887_v18 }
 0x72e   : > { %v9174_v34 = vpack.i.bf16 %v12751_v43, %v12546_v36  ;;  %v4767_v19 = vpop.f32.mrf.mxu3  ;;  %v5230_v36 = vpack.c.bf16 %v12565_v37, %v13887_v18  ;;  %v5154_v16 = vsel %vm999_vm2, %v12751_v43, %v13888_v56 }
 0x72f   : > { %v4723_v21 = vpop.f32.mrf.mxu2  ;;  %v4809_v41 = vpop.f32.mrf.mxu0 }
 0x730   : > { %9175 = vrot.lane.b32.xlu0 %v9174_v34, %s13866_s27  ;;  %4943 = vrot.lane.b32.xlu1 %v4880_v4, %s13864_s21  ;;  %v4810_v15 = vadd.f32 %v4809_v41, %v4766_v45  ;;  %v4724_v57 = vadd.f32 %v4723_v21, %v4680_v8  ;;  %v8971_v34 = vld [vmem:[%s13817_s11 + $0xb8] sm:$0xff]  ;;  %v8969_v45 = vld [vmem:[%s13817_s11 + $0xa8] sm:$0xff] }
 0x731   : > { %v4850_v28 = vpop.f32.mrf.mxu1  ;;  %8506 = vmatmul.msk.bf16.gmra.mxu3 %vm10280_vm6, %v8505_v59  ;;  %v4641_v59 = vadd.f32 %v12642_v54, %v12500_v55  ;;  %5819 = vmatpush.bf16.msrb.mxu0 %v8971_v34 }
 0x732   : > { %v4851_v47 = vadd.f32 %v4850_v28, %v4807_v49  ;;  %v4768_v63 = vadd.f32 %v4767_v19, %v4724_v57 }
 0x733   : > { %v4685_v19 = vadd.f32 %v12659_v61, %v4641_v59 }
 0x734   : > { %v12765_v51 = vmax.f32 %v4851_v47, 0.0  ;;  %5694 = vmatmul.bf16.gmra.mxu2 %v5230_v36 }
 0x735   : > { %5820 = vmatpush.bf16.msrb.mxu0 %v8970_v42 }
 0x736   : > { %v9179_v3 = vpack.i.bf16 %v12765_v51, %v12565_v37  ;;  %v4770_v13 = vpop.f32.mrf.mxu3  ;;  %v12779_v37 = vpop.permute.xlu1 %4941 }
 0x737   : > { %v4726_v6 = vpop.f32.mrf.mxu2  ;;  %v4811_v24 = vpop.f32.mrf.mxu0  ;;  %v8509_v29 = vpack.c.bf16 %v5152_v50, %v12779_v37  ;;  %v8979_v50 = vld [vmem:[%s13817_s11 + $0xf8] sm:$0xff] }
 0x738   : > { %4947 = vrot.lane.b32.xlu0 %v12751_v43, %s13864_s21  ;;  %9180 = vrot.lane.b32.xlu2 %v9179_v3, %s13866_s27  ;;  %v4812_v58 = vadd.f32 %v4811_v24, %v4768_v63  ;;  %v4727_v4 = vadd.f32 %v4726_v6, %v12649_v48  ;;  %v8984_v48 = vld [vmem:[%s13817_s11 + $0x120] sm:$0xff]  ;;  %v12819_v3 = vpop.permute.xlu2 %4945 }
 0x739   : > { %v4853_v33 = vpop.f32.mrf.mxu1  ;;  %5980 = vmatpush.bf16.msrb.mxu2 %v8984_v48  ;;  %5821 = vmatpush.bf16.msrb.mxu0 %v8969_v45 }
 0x73a   : > { %v4854_v26 = vadd.f32 %v4853_v33, %v4810_v15  ;;  %v4771_v21 = vadd.f32 %v4770_v13, %v4727_v4  ;;  %v8513_v15 = vpack.c.bf16 %v5154_v16, %v12819_v3  ;;  %5898 = vmatpush.bf16.msrb.mxu1 %v8979_v50  ;;  %v8983_v16 = vld [vmem:[%s13817_s11 + $0x118] sm:$0xff] }
 0x73c   : > { %v12777_v52 = vmax.f32 %v4854_v26, 0.0  ;;  %v8968_v26 = vld [vmem:[%s13817_s11 + $0xa0] sm:$0xff] }
 0x73d   : > { %5822 = vmatpush.bf16.msrb.mxu0 %v8968_v26  ;;  %5981 = vmatpush.bf16.msrb.mxu2 %v8983_v16 }
 0x73e   : > { %v9184_v14 = vpack.i.bf16 %v12777_v52, %v12585_v12  ;;  %v4772_v62 = vpop.f32.mrf.mxu3 }
 0x73f   : > { %v4728_v10 = vpop.f32.mrf.mxu2  ;;  %v4814_v30 = vpop.f32.mrf.mxu0 }
 0x740   : > { %4951 = vrot.lane.b32.xlu2 %v12765_v51, %s13864_s21  ;;  %9185 = vrot.lane.b32.xlu1 %v9184_v14, %s13866_s27  ;;  %v4815_v28 = vadd.f32 %v4814_v30, %v4771_v21  ;;  %v4729_v47 = vadd.f32 %v4728_v10, %v4685_v19  ;;  %v5242_v10 = vpack.c.bf16 %v12606_v40, %v13887_v18  ;;  %v8977_v21 = vld [vmem:[%s13817_s11 + $0xe8] sm:$0xff]  ;;  %v8976_v19 = vld [vmem:[%s13817_s11 + $0xe0] sm:$0xff] }
 0x741   : > { %v4855_v38 = vpop.f32.mrf.mxu1  ;;  %8510 = vmatmul.msk.bf16.gmra.mxu3 %vm10280_vm6, %v8509_v29  ;;  %v8967_v29 = vld [vmem:[%s13817_s11 + $0x98] sm:$0xff] }
 0x742   : > { %v4856_v23 = vadd.f32 %v4855_v38, %v4812_v58  ;;  %v4773_v24 = vadd.f32 %v4772_v62, %v4729_v47  ;;  %v8978_v58 = vld [vmem:[%s13817_s11 + $0xf0] sm:$0xff]  ;;  %5823 = vmatpush.bf16.msrb.mxu0 %v8967_v29  ;;  %v12908_v29 = vpop.permute.xlu1 %4953 }
 0x743   : > { %5899 = vmatpush.bf16.msrb.mxu1 %v8978_v58 }
 0x744   : > { %v12792_v5 = vmax.f32 %v4856_v23, 0.0  ;;  %5699 = vmatmul.bf16.gmra.mxu2 %v5236_v22 }
 0x746   : > { %v9189_v41 = vpack.i.bf16 %v12792_v5, %v12606_v40  ;;  %v4775_v6 = vpop.f32.mrf.mxu3 }
 0x747   : > { %v4731_v12 = vpop.f32.mrf.mxu2  ;;  %v4816_v49 = vpop.f32.mrf.mxu0  ;;  %5900 = vmatpush.bf16.msrb.mxu1 %v8977_v21 }
 0x748   : > { %9190 = vrot.lane.b32.xlu0 %v9189_v41, %s13866_s27  ;;  %4955 = vrot.lane.b32.xlu1 %v12777_v52, %s13864_s21  ;;  %v4817_v13 = vadd.f32 %v4816_v49, %v4773_v24  ;;  %v4732_v63 = vadd.f32 %v4731_v12, %v12676_v35  ;;  %v4646_v35 = vadd.f32 %v12672_v44, %v12500_v55  ;;  %v8966_v44 = vld [vmem:[%s13817_s11 + $0x90] sm:$0xff]  ;;  %v8965_v49 = vld [vmem:[%s13817_s11 + $0x88] sm:$0xff] }
 0x749   : > { %v4858_v54 = vpop.f32.mrf.mxu1  ;;  %5824 = vmatpush.bf16.msrb.mxu0 %v8966_v44  ;;  %v8975_v24 = vld [vmem:[%s13817_s11 + $0xd8] sm:$0xff] }
 0x74a   : > { %v4859_v36 = vadd.f32 %v4858_v54, %v4815_v28  ;;  %v4776_v38 = vadd.f32 %v4775_v6, %v4732_v63  ;;  %v4690_v23 = vadd.f32 %v12688_v20, %v4646_v35  ;;  %v5156_v20 = vsel %vm999_vm2, %v12765_v51, %v13888_v56  ;;  %v12871_v28 = vpop.permute.xlu0 %4949  ;;  %v8964_v6 = vld [vmem:[%s13817_s11 + $0x80] sm:$0xff]  ;;  %v12927_v21 = vpop.permute.xlu1 %4965 }
 0x74b   : > { %5901 = vmatpush.bf16.msrb.mxu1 %v8976_v19 }
 0x74c   : > { %v12814_v61 = vmax.f32 %v4859_v36, 0.0  ;;  %v8517_v36 = vpack.c.bf16 %v5156_v20, %v12871_v28  ;;  %v5254_v20 = vpack.c.bf16 %v12635_v11, %v13887_v18 }
 0x74d   : > { %5825 = vmatpush.bf16.msrb.mxu0 %v8965_v49 }
 0x74e   : > { %v9194_v8 = vpack.i.bf16 %v12814_v61, %v12620_v0  ;;  %v4777_v22 = vpop.f32.mrf.mxu3 }
 0x74f   : > { %v4733_v33 = vpop.f32.mrf.mxu2  ;;  %v4819_v57 = vpop.f32.mrf.mxu0  ;;  %5902 = vmatpush.bf16.msrb.mxu1 %v8975_v24 }
 0x750   : > { %4959 = vrot.lane.b32.xlu0 %v12792_v5, %s13864_s21  ;;  %9195 = vrot.lane.b32.xlu2 %v9194_v8, %s13866_s27  ;;  %v4820_v62 = vadd.f32 %v4819_v57, %v4776_v38  ;;  %v4734_v41 = vadd.f32 %v4733_v33, %v4690_v23  ;;  %v5248_v33 = vpack.c.bf16 %v12620_v0, %v13887_v18  ;;  %v8988_v57 = vld [vmem:[%s13817_s11 + $0x140] sm:$0xff] }
 0x751   : > { %v4860_v43 = vpop.f32.mrf.mxu1  ;;  %8514 = vmatmul.msk.bf16.gmra.mxu3 %vm10280_vm6, %v8513_v15  ;;  %5826 = vmatpush.bf16.msrb.mxu0 %v8964_v6  ;;  %v4651_v0 = vadd.f32 %v12699_v25, %v12500_v55  ;;  %v8973_v55 = vld [vmem:[%s13817_s11 + $0xc8] sm:$0xff] }
 0x752   : > { %v4861_v14 = vadd.f32 %v4860_v43, %v4817_v13  ;;  %v4778_v54 = vadd.f32 %v4777_v22, %v4734_v41  ;;  %6063 = vmatpush.bf16.msrb.mxu3 %v8988_v57  ;;  %v8972_v22 = vld [vmem:[%s13817_s11 + $0xc0] sm:$0xff] }
 0x754   : > { %v12838_v30 = vmax.f32 %v4861_v14, 0.0  ;;  %5704 = vmatmul.bf16.gmra.mxu2 %v5242_v10  ;;  %v4695_v10 = vadd.f32 %v12704_v17, %v4651_v0  ;;  %v5158_v17 = vsel %vm999_vm2, %v12777_v52, %v13888_v56 }
 0x756   : > { %v9199_v40 = vpack.i.bf16 %v12838_v30, %v12635_v11  ;;  %v4780_v13 = vpop.f32.mrf.mxu3  ;;  %v12951_v11 = vpop.permute.xlu2 %4957 }
 0x757   : > { %v4736_v4 = vpop.f32.mrf.mxu2  ;;  %v4821_v34 = vpop.f32.mrf.mxu0 }
 0x758   : > { %4963 = vrot.lane.b32.xlu2 %v12814_v61, %s13864_s21  ;;  %9200 = vrot.lane.b32.xlu1 %v9199_v40, %s13866_s27  ;;  %v4822_v51 = vadd.f32 %v4821_v34, %v4778_v54  ;;  %v4737_v8 = vadd.f32 %v4736_v4, %v12702_v1  ;;  %v8974_v1 = vld [vmem:[%s13817_s11 + $0xd0] sm:$0xff] }
 0x759   : > { %v4863_v59 = vpop.f32.mrf.mxu1  ;;  %5903 = vmatpush.bf16.msrb.mxu1 %v8974_v1 }
 0x75a   : > { %v4864_v48 = vadd.f32 %v4863_v59, %v4820_v62  ;;  %v4781_v50 = vadd.f32 %v4780_v13, %v4737_v8  ;;  %v8521_v59 = vpack.c.bf16 %v5158_v17, %v12908_v29 }
 0x75c   : > { %v12863_v12 = vmax.f32 %v4864_v48, 0.0 }
 0x75d   : > { %5904 = vmatpush.bf16.msrb.mxu1 %v8973_v55  ;;  %v5266_v55 = vpack.c.bf16 %v12668_v7, %v13887_v18 }
 0x75e   : > { %v9204_v42 = vpack.i.bf16 %v12863_v12, %v12652_v2  ;;  %v4782_v4 = vpop.f32.mrf.mxu3 }
 0x75f   : > { %v4738_v47 = vpop.f32.mrf.mxu2  ;;  %v4824_v43 = vpop.f32.mrf.mxu0 }
 0x760   : > { %9205 = vrot.lane.b32.xlu0 %v9204_v42, %s13866_s27  ;;  %4967 = vrot.lane.b32.xlu1 %v12838_v30, %s13864_s21  ;;  %v4825_v58 = vadd.f32 %v4824_v43, %v4781_v50  ;;  %v4739_v35 = vadd.f32 %v4738_v47, %v4695_v10  ;;  %v12942_v42 = vpop.permute.xlu1 %4977  ;;  %v12949_v47 = vpop.permute.xlu0 %4961  ;;  %v5162_v43 = vsel %vm999_vm2, %v12814_v61, %v13888_v56  ;;  %v12993_v10 = vld [vmem:[%s13818_s12] ss:$0 sm:$0xff] }
 0x761   : > { %v4865_v45 = vpop.f32.mrf.mxu1  ;;  %8518 = vmatmul.msk.bf16.gmra.mxu3 %vm10280_vm6, %v8517_v36  ;;  %5905 = vmatpush.bf16.msrb.mxu1 %v8972_v22  ;;  %v5160_v36 = vsel %vm999_vm2, %v12792_v5, %v13888_v56 }
 0x762   : > { %v4866_v15 = vadd.f32 %v4865_v45, %v4822_v51  ;;  %v4783_v62 = vadd.f32 %v4782_v4, %v4739_v35  ;;  %v8982_v51 = vld [vmem:[%s13817_s11 + $0x110] sm:$0xff]  ;;  %v8525_v45 = vpack.c.bf16 %v5160_v36, %v12951_v11 }
 0x763   : > { %5982 = vmatpush.bf16.msrb.mxu2 %v8982_v51  ;;  %v5272_v51 = vpack.c.bf16 %v12678_v27, %v13887_v18 }
 0x764   : > { %v12896_v26 = vmax.f32 %v4866_v15, 0.0  ;;  %5709 = vmatmul.bf16.gmra.mxu2 %v5248_v33  ;;  %v5260_v15 = vpack.c.bf16 %v12652_v2, %v13887_v18  ;;  %v12971_v33 = vpop.permute.xlu2 %4969 }
 0x766   : > { %v9209_v63 = vpack.i.bf16 %v12896_v26, %v12668_v7  ;;  %v8981_v7 = vld [vmem:[%s13817_s11 + $0x108] sm:$0xff] }
 0x767   : > { %v12905_v14 = vpop.f32.mrf.mxu2  ;;  %v4826_v23 = vpop.f32.mrf.mxu0  ;;  %5983 = vmatpush.bf16.msrb.mxu2 %v8981_v7 }
 0x768   : > { %4971 = vrot.lane.b32.xlu0 %v12863_v12, %s13864_s21  ;;  %9210 = vrot.lane.b32.xlu2 %v9209_v63, %s13866_s27  ;;  %v4827_v41 = vadd.f32 %v4826_v23, %v4783_v62  ;;  %v12966_v8 = vpop.permute.xlu0 %4973  ;;  %v8529_v63 = vpack.c.bf16 %v5162_v43, %v12949_v47 }
 0x769   : > { %v4868_v25 = vpop.f32.mrf.mxu1 }
 0x76a   : > { %v4869_v38 = vadd.f32 %v4868_v25, %v4825_v58  ;;  %v5671_v25 = vadd.f32 %v12993_v10, %v12905_v14 }
 0x76c   : > { %v12919_v40 = vmax.f32 %v4869_v38, 0.0  ;;  %v12981_v1 = vpop.permute.xlu2 %4981 }
 0x76e   : > { %v9214_v34 = vpack.i.bf16 %v12919_v40, %v12678_v27 }
 0x76f   : > { %v5672_v44 = vpop.f32.mrf.mxu2 }
 0x770   : > { %4975 = vrot.lane.b32.xlu2 %v12896_v26, %s13864_s21  ;;  %9215 = vrot.lane.b32.xlu1 %v9214_v34, %s13866_s27  ;;  %v5164_v34 = vsel %vm999_vm2, %v12838_v30, %v13888_v56  ;;  %v8980_v30 = vld [vmem:[%s13817_s11 + $0x100] sm:$0xff] }
 0x771   : > { %v4870_v52 = vpop.f32.mrf.mxu1  ;;  %8522 = vmatmul.msk.bf16.gmra.mxu3 %vm10280_vm6, %v8521_v59  ;;  %5984 = vmatpush.bf16.msrb.mxu2 %v8980_v30 }
 0x772   : > { %v4871_v48 = vadd.f32 %v4870_v52, %v4827_v41 }
 0x774   : > { %v12936_v49 = vmax.f32 %v4871_v48, 0.0  ;;  %5714 = vmatmul.bf16.gmra.mxu2 %v5254_v20 }
 0x776   : > { %v9219_v19 = vpack.i.bf16 %v12936_v49, %v12692_v53 }
 0x777   : > { %v12940_v54 = vpop.f32.mrf.mxu2 }
 0x778   : > { %9220 = vrot.lane.b32.xlu0 %v9219_v19, %s13866_s27  ;;  %4983 = vrot.lane.b32.xlu2 %v12936_v49, %s13864_s21  ;;  %s6716_s27 = scalar_lea.hbm %s13820_s14, %s8594_s25 }
 0x779   : > { %4979 = vrot.lane.b32.xlu1 %v12919_v40, %s13864_s21  ;;  %s6720_s17 = sshll.u32 %s6716_s27, 4  ;;  %s6721_s17 = int_to_ptr.hbm [resolvable:$true] %s6720_s17 }
 0x77a   : > { %v13005_v38 = vpop.permute.xlu2 %9165  ;;  %s9352_s15 = sshra.s32 %s6721_s17, 4  ;;  %s9353_s15 = int_to_ptr.hbm [resolvable:$true] %s9352_s15 }
 0x77b   : > { %v9167_v14 = vunpack.i.l.bf16 %v13005_v38  ;;  %s9354_s19 = scalar_lea.hbm %s9353_s15, 8  ;;  %p9359_p1 = scmp.lt.s32.totalorder %s9353_s15, %s13820_s14 }
 0x77c   : > { %p9355_p12 = scmp.ne.s32.totalorder %s9353_s15, %s9354_s19  ;;  %p9360_p2 = scmp.lt.s32.totalorder %s9358_s22, %s9354_s19 }
 0x77d   : > { %v5176_v41 = vsel %vm1070_vm4, %v13888_v56, %v9167_v14 }
 0x77e   : > { %p9356_p13 = pnand %p9355_p12, %p9520_p5  ;;  %p9361_p3 = por %p9360_p2, %p9359_p1 }
 0x77f   : > { %v12959_v16 = vpop.f32.mrf.mxu2 }
 0x780   : > { %v4932_v6 = vpop.permute.xlu1 %4931  ;;  %v5678_v27 = vadd.f32 %v12993_v10, %v12959_v16  ;;  %p9357_p0 = pneg %p9356_p13 }
 0x781   : > { %v4985_v24 = vsel %vm999_vm2, %v12710_v46, %v4932_v6  ;;  %8526 = vmatmul.msk.bf16.gmra.mxu3 %vm10280_vm6, %v8525_v45  ;;  %v5173_v0 = vsel %vm1070_vm4, %v4932_v6, %v11787_v32  ;;  %v5676_v45 = vadd.f32 %v12993_v10, %v12940_v54 }
 0x782   : > { %v5202_v5 = vpack.c.bf16 %v13888_v56, %v4985_v24  ;;  %v4940_v48 = vpop.permute.xlu2 %4939  ;;  %p9362_p4 = pnand %p9361_p3, %p9357_p0 }
 0x783   : > { %v4987_v36 = vsel %vm999_vm2, %v12753_v31, %v4940_v48 }
 0x784   : > { %5719 = vmatmul.bf16.gmra.mxu2 %v5260_v15  ;;  %5827 = vmatmul.bf16.vlgmr.msrb.gmra.mxu0 %v5202_v5  ;;  %v5214_v6 = vpack.c.bf16 %v13888_v56, %v4987_v36 }
 0x787   : > { %v12973_v57 = vpop.f32.mrf.mxu2 }
 0x78a   : > { %v12975_v13 = vpop.permute.xlu0 %9160 }
 0x78b   : > { %v9162_v46 = vunpack.i.l.bf16 %v12975_v13 }
 0x78d   : > { %v5174_v2 = vsel %vm1070_vm4, %v13888_v56, %v9162_v46 }
 0x78e   : > { %v5203_v50 = vpack.c.bf16 %v5174_v2, %v5173_v0  ;;  %v5166_v0 = vsel %vm999_vm2, %v12863_v12, %v13888_v56  ;;  %v5278_v12 = vpack.c.bf16 %v12692_v53, %v13887_v18 }
 0x78f   : > { %v12995_v58 = vpop.f32.mrf.mxu2 }
 0x790   : > { %5906 = vmatmul.bf16.vlgmr.msrb.gmra.mxu1 %v5203_v50  ;;  %v5177_v50 = vsel %vm1070_vm4, %v4940_v48, %v11787_v32  ;;  %v5683_v18 = vadd.f32 %v12993_v10, %v12995_v58 }
 0x791   : > { %8530 = vmatmul.msk.bf16.gmra.mxu3 %vm10280_vm6, %v8529_v63 }
 0x792   : > { %v4936_v61 = vpop.permute.xlu0 %4935 }
 0x793   : > { %v4986_v35 = vsel %vm999_vm2, %v12729_v39, %v4936_v61  ;;  %v5673_v39 = vadd.f32 %v12993_v10, %v5672_v44  ;;  %v5175_v62 = vsel %vm1070_vm4, %v4936_v61, %v11787_v32  ;;  %v8533_v44 = vpack.c.bf16 %v5164_v34, %v12927_v21 }
 0x794   : > { %v5208_v17 = vpack.c.bf16 %v13888_v56, %v4986_v35  ;;  %5724 = vmatmul.bf16.gmra.mxu2 %v5266_v55  ;;  %v5749_v4 = vpop.f32.mrf.mxu3  ;;  %v5209_v20 = vpack.c.bf16 %v5176_v41, %v5175_v62 }
 0x795   : > { %v13008_v23 = vadd.f32 %v5749_v4, %v5671_v25  ;;  %v8537_v25 = vpack.c.bf16 %v5166_v0, %v12971_v33 }
 0x796   : > { %5832 = vmatmul.bf16.gmra.mxu0 %v5208_v17  ;;  %v5681_v17 = vadd.f32 %v12993_v10, %v12973_v57  ;;  %v5168_v57 = vsel %vm999_vm2, %v12896_v26, %v13888_v56 }
 0x797   : > { %v13010_v22 = vpop.f32.mrf.mxu2 }
 0x79a   : > { %v13043_v24 = vpop.permute.xlu1 %9170 }
 0x79b   : > { %v9172_v15 = vunpack.i.l.bf16 %v13043_v24 }
 0x79c   : > { %v5751_v59 = vpop.f32.mrf.mxu3 }
 0x79d   : > { %v13026_v52 = vadd.f32 %v5751_v59, %v5673_v39  ;;  %v5178_v54 = vsel %vm1070_vm4, %v13888_v56, %v9172_v15  ;;  %v9163_v59 = vunpack.i.h.bf16 %v12975_v13 }
 0x79e   : > { %v5215_v55 = vpack.c.bf16 %v5178_v54, %v5177_v50 }
 0x79f   : > { %v13028_v19 = vpop.f32.mrf.mxu2  ;;  %v5093_v58 = vsel %vm1070_vm4, %v9162_v46, %v9163_v59 }
 0x7a0   : > { %5911 = vmatmul.bf16.gmra.mxu1 %v5209_v20  ;;  %v5688_v50 = vadd.f32 %v12993_v10, %v13028_v19 }
 0x7a1   : > { %8534 = vmatmul.msk.bf16.gmra.mxu3 %vm10280_vm6, %v8533_v44 }
 0x7a2   : > { %v4944_v61 = vpop.permute.xlu1 %4943  ;;  %v13074_v4 = vpop.permute.xlu0 %9175 }
 0x7a3   : > { %v4988_v35 = vsel %vm999_vm2, %v12779_v37, %v4944_v61  ;;  %v9177_v37 = vunpack.i.l.bf16 %v13074_v4  ;;  %v5179_v48 = vsel %vm1070_vm4, %v4944_v61, %v11787_v32  ;;  %v5170_v61 = vsel %vm999_vm2, %v12919_v40, %v13888_v56 }
 0x7a4   : > { %5729 = vmatmul.bf16.gmra.mxu2 %v5272_v51  ;;  %v5754_v31 = vpop.f32.mrf.mxu3  ;;  %v5220_v7 = vpack.c.bf16 %v13888_v56, %v4988_v35  ;;  %v8541_v51 = vpack.c.bf16 %v5168_v57, %v12966_v8  ;;  %v9178_v9 = vunpack.i.h.bf16 %v13074_v4 }
 0x7a5   : > { %v13045_v5 = vadd.f32 %v5754_v31, %v5676_v45  ;;  %v5180_v53 = vsel %vm1070_vm4, %v13888_v56, %v9177_v37  ;;  %v5204_v45 = vpack.c.bf16 %v5093_v58, %v11787_v32  ;;  %v13111_v31 = vpop.permute.xlu2 %9180 }
 0x7a6   : > { %5837 = vmatmul.bf16.gmra.mxu0 %v5214_v6  ;;  %v5221_v44 = vpack.c.bf16 %v5180_v53, %v5179_v48  ;;  %v5686_v6 = vadd.f32 %v12993_v10, %v13010_v22 }
 0x7a7   : > { %v13048_v43 = vpop.f32.mrf.mxu2 }
 0x7a8   : > { %v5691_v53 = vadd.f32 %v12993_v10, %v13048_v43 }
 0x7aa   : > { %v4948_v36 = vpop.permute.xlu0 %4947 }
 0x7ab   : > { %v4989_v26 = vsel %vm999_vm2, %v12819_v3, %v4948_v36  ;;  %v9182_v3 = vunpack.i.l.bf16 %v13111_v31  ;;  %v5181_v22 = vsel %vm1070_vm4, %v4948_v36, %v11787_v32  ;;  %v9173_v36 = vunpack.i.h.bf16 %v13043_v24 }
 0x7ac   : > { %v5756_v2 = vpop.f32.mrf.mxu3  ;;  %v5226_v46 = vpack.c.bf16 %v13888_v56, %v4989_v26 }
 0x7ad   : > { %v13061_v63 = vadd.f32 %v5756_v2, %v5678_v27  ;;  %v9168_v2 = vunpack.i.h.bf16 %v13005_v38 }
 0x7af   : > { %v13064_v16 = vpop.f32.mrf.mxu2  ;;  %v5094_v40 = vsel %vm1070_vm4, %v9167_v14, %v9168_v2 }
 0x7b0   : > { %5916 = vmatmul.bf16.gmra.mxu1 %v5215_v55  ;;  %v5693_v58 = vadd.f32 %v12993_v10, %v13064_v16 }
 0x7b1   : > { %8538 = vmatmul.msk.bf16.gmra.mxu3 %vm10280_vm6, %v8537_v25  ;;  %v5182_v25 = vsel %vm1070_vm4, %v13888_v56, %v9182_v3 }
 0x7b4   : > { %5734 = vmatmul.bf16.gmra.mxu2 %v5278_v12  ;;  %v5759_v39 = vpop.f32.mrf.mxu3  ;;  %v4952_v12 = vpop.permute.xlu2 %4951 }
 0x7b5   : > { %v13077_v62 = vadd.f32 %v5759_v39, %v5681_v17  ;;  %v5227_v17 = vpack.c.bf16 %v5182_v25, %v5181_v22  ;;  %v4990_v39 = vsel %vm999_vm2, %v12871_v28, %v4952_v12  ;;  %v5095_v22 = vsel %vm1070_vm4, %v9172_v15, %v9173_v36 }
 0x7b6   : > { %5842 = vmatmul.bf16.gmra.mxu0 %v5220_v7  ;;  %v8545_v7 = vpack.c.bf16 %v5170_v61, %v12942_v42  ;;  %v5232_v57 = vpack.c.bf16 %v13888_v56, %v4990_v39  ;;  %v5216_v61 = vpack.c.bf16 %v5095_v22, %v11787_v32 }
 0x7b7   : > { %v13080_v34 = vpop.f32.mrf.mxu2 }
 0x7ba   : > { %v13185_v25 = vpop.permute.xlu0 %9190 }
 0x7bb   : > { %v9192_v15 = vunpack.i.l.bf16 %v13185_v25 }
 0x7bc   : > { %v5761_v41 = vpop.f32.mrf.mxu3 }
 0x7bd   : > { %v13094_v20 = vadd.f32 %v5761_v41, %v5683_v18  ;;  %v5210_v18 = vpack.c.bf16 %v5094_v40, %v11787_v32  ;;  %v13149_v41 = vpop.permute.xlu1 %9185 }
 0x7be   : > { %v9187_v14 = vunpack.i.l.bf16 %v13149_v41 }
 0x7bf   : > { %v13101_v30 = vpop.f32.mrf.mxu2 }
 0x7c0   : > { %5921 = vmatmul.bf16.gmra.mxu1 %v5221_v44  ;;  %v5184_v43 = vsel %vm1070_vm4, %v13888_v56, %v9187_v14  ;;  %v5698_v40 = vadd.f32 %v12993_v10, %v13101_v30  ;;  %v5096_v30 = vsel %vm1070_vm4, %v9177_v37, %v9178_v9 }
 0x7c1   : > { %8542 = vmatmul.msk.bf16.gmra.mxu3 %vm10280_vm6, %v8541_v51  ;;  %v5172_v51 = vsel %vm999_vm2, %v12936_v49, %v13888_v56 }
 0x7c2   : > { %v8549_v16 = vpack.c.bf16 %v5172_v51, %v12981_v1 }
 0x7c4   : > { %v5764_v27 = vpop.f32.mrf.mxu3  ;;  %5985 = vmatmul.bf16.vlgmr.msrb.gmra.mxu2 %v5204_v45  ;;  %v5183_v45 = vsel %vm1070_vm4, %v4952_v12, %v11787_v32 }
 0x7c5   : > { %v13114_v54 = vadd.f32 %v5764_v27, %v5686_v6  ;;  %v5233_v27 = vpack.c.bf16 %v5184_v43, %v5183_v45 }
 0x7c6   : > { %5847 = vmatmul.bf16.gmra.mxu0 %v5226_v46  ;;  %v4956_v46 = vpop.permute.xlu1 %4955 }
 0x7c7   : > { %v13116_v0 = vpop.f32.mrf.mxu2  ;;  %v4991_v49 = vsel %vm999_vm2, %v12908_v29, %v4956_v46 }
 0x7c8   : > { %v5238_v12 = vpack.c.bf16 %v13888_v56, %v4991_v49  ;;  %v5701_v13 = vadd.f32 %v12993_v10, %v13116_v0 }
 0x7cc   : > { %v5766_v55 = vpop.f32.mrf.mxu3 }
 0x7cd   : > { %v13131_v35 = vadd.f32 %v5766_v55, %v5688_v50  ;;  %v5696_v55 = vadd.f32 %v12993_v10, %v13080_v34  ;;  %v5186_v34 = vsel %vm1070_vm4, %v13888_v56, %v9192_v15 }
 0x7cf   : > { %v13134_v19 = vpop.f32.mrf.mxu2 }
 0x7d0   : > { %5926 = vmatmul.bf16.gmra.mxu1 %v5227_v17  ;;  %v5703_v0 = vadd.f32 %v12993_v10, %v13134_v19 }
 0x7d1   : > { %8546 = vmatmul.msk.bf16.gmra.mxu3 %vm10280_vm6, %v8545_v7 }
 0x7d4   : > { %v5769_v48 = vpop.f32.mrf.mxu3  ;;  %5990 = vmatmul.bf16.gmra.mxu2 %v5210_v18  ;;  %v5185_v18 = vsel %vm1070_vm4, %v4956_v46, %v11787_v32 }
 0x7d5   : > { %v13151_v44 = vadd.f32 %v5769_v48, %v5691_v53  ;;  %v4960_v48 = vpop.permute.xlu0 %4959 }
 0x7d6   : > { %5852 = vmatmul.bf16.gmra.mxu0 %v5232_v57  ;;  %v5239_v57 = vpack.c.bf16 %v5186_v34, %v5185_v18  ;;  %v4992_v51 = vsel %vm999_vm2, %v12951_v11, %v4960_v48  ;;  %v5187_v22 = vsel %vm1070_vm4, %v4960_v48, %v11787_v32  ;;  %v5211_v34 = vpack.c.bf16 %v9168_v2, %v11787_v32 }
 0x7d7   : > { %v13154_v28 = vpop.f32.mrf.mxu2  ;;  %v5244_v45 = vpack.c.bf16 %v13888_v56, %v4992_v51 }
 0x7d8   : > { %v5706_v38 = vadd.f32 %v12993_v10, %v13154_v28 }
 0x7dc   : > { %v5771_v26 = vpop.f32.mrf.mxu3 }
 0x7dd   : > { %v13168_v6 = vadd.f32 %v5771_v26, %v5693_v58  ;;  %v5205_v58 = vpack.c.bf16 %v9163_v59, %v11787_v32  ;;  %v5222_v26 = vpack.c.bf16 %v5096_v30, %v11787_v32  ;;  %v13220_v59 = vpop.permute.xlu2 %9195 }
 0x7de   : > { %v9197_v11 = vunpack.i.l.bf16 %v13220_v59 }
 0x7df   : > { %v13170_v50 = vpop.f32.mrf.mxu2 }
 0x7e0   : > { %5931 = vmatmul.bf16.gmra.mxu1 %v5233_v27  ;;  %v5708_v51 = vadd.f32 %v12993_v10, %v13170_v50 }
 0x7e1   : > { %8550 = vmatmul.msk.bf16.gmra.mxu3 %vm10280_vm6, %v8549_v16  ;;  %v9183_v16 = vunpack.i.h.bf16 %v13111_v31 }
 0x7e3   : > { %v5097_v19 = vsel %vm1070_vm4, %v9182_v3, %v9183_v16 }
 0x7e4   : > { %v5774_v17 = vpop.f32.mrf.mxu3  ;;  %5995 = vmatmul.bf16.gmra.mxu2 %v5216_v61  ;;  %v5188_v61 = vsel %vm1070_vm4, %v13888_v56, %v9197_v11  ;;  %v5228_v18 = vpack.c.bf16 %v5097_v19, %v11787_v32 }
 0x7e5   : > { %v13188_v7 = vadd.f32 %v5774_v17, %v5696_v55  ;;  %v5245_v17 = vpack.c.bf16 %v5188_v61, %v5187_v22 }
 0x7e6   : > { %5857 = vmatmul.bf16.gmra.mxu0 %v5238_v12  ;;  %v4964_v12 = vpop.permute.xlu2 %4963 }
 0x7e7   : > { %v13191_v29 = vpop.f32.mrf.mxu2 }
 0x7e8   : > { %v5711_v24 = vadd.f32 %v12993_v10, %v13191_v29 }
 0x7ec   : > { %v5776_v39 = vpop.f32.mrf.mxu3 }
 0x7ed   : > { %v13202_v53 = vadd.f32 %v5776_v39, %v5698_v40  ;;  %v4993_v39 = vsel %vm999_vm2, %v12949_v47, %v4964_v12  ;;  %v9188_v47 = vunpack.i.h.bf16 %v13149_v41 }
 0x7ee   : > { %v5250_v2 = vpack.c.bf16 %v13888_v56, %v4993_v39 }
 0x7ef   : > { %v13207_v43 = vpop.f32.mrf.mxu2  ;;  %v5098_v50 = vsel %vm1070_vm4, %v9187_v14, %v9188_v47 }
 0x7f0   : > { %5936 = vmatmul.bf16.gmra.mxu1 %v5239_v57  ;;  %v13256_v57 = vpop.permute.xlu1 %9200 }
 0x7f1   : > { %8551 = vmatmul.msk.bf16.vlgmr.msrb.gmra.mxu3 %vm1647_vm7, %v5205_v58  ;;  %v9202_v3 = vunpack.i.l.bf16 %v13256_v57 }
 0x7f3   : > { %v5190_v28 = vsel %vm1070_vm4, %v13888_v56, %v9202_v3 }
 0x7f4   : > { %v5779_v46 = vpop.f32.mrf.mxu3  ;;  %6000 = vmatmul.bf16.gmra.mxu2 %v5222_v26 }
 0x7f5   : > { %v13223_v27 = vadd.f32 %v5779_v46, %v5701_v13  ;;  %v5189_v13 = vsel %vm1070_vm4, %v4964_v12, %v11787_v32  ;;  %v5234_v12 = vpack.c.bf16 %v5098_v50, %v11787_v32 }
 0x7f6   : > { %5862 = vmatmul.bf16.gmra.mxu0 %v5244_v45  ;;  %v5251_v22 = vpack.c.bf16 %v5190_v28, %v5189_v13 }
 0x7f7   : > { %v13225_v37 = vpop.f32.mrf.mxu2 }
 0x7f8   : > { %v4968_v46 = vpop.permute.xlu1 %4967  ;;  %v5716_v4 = vadd.f32 %v12993_v10, %v13225_v37 }
 0x7f9   : > { %v4994_v61 = vsel %vm999_vm2, %v12927_v21, %v4968_v46  ;;  %v9193_v21 = vunpack.i.h.bf16 %v13185_v25 }
 0x7fc   : > { %v5781_v49 = vpop.f32.mrf.mxu3 }
 0x7fd   : > { %v13237_v55 = vadd.f32 %v5781_v49, %v5703_v0  ;;  %v5217_v0 = vpack.c.bf16 %v9173_v36, %v11787_v32  ;;  %v13290_v36 = vpop.permute.xlu0 %9205 }
 0x7fe   : > { %v9207_v14 = vunpack.i.l.bf16 %v13290_v36 }
 0x7ff   : > { %v13242_v40 = vpop.f32.mrf.mxu2 }
 0x800   : > { %5941 = vmatmul.bf16.gmra.mxu1 %v5245_v17  ;;  %v5256_v17 = vpack.c.bf16 %v13888_v56, %v4994_v61  ;;  %v5192_v29 = vsel %vm1070_vm4, %v13888_v56, %v9207_v14  ;;  %v5718_v37 = vadd.f32 %v12993_v10, %v13242_v40 }
 0x801   : > { %8552 = vmatmul.msk.bf16.gmra.mxu3 %vm1647_vm7, %v5211_v34 }
 0x804   : > { %v5784_v48 = vpop.f32.mrf.mxu3  ;;  %6005 = vmatmul.bf16.gmra.mxu2 %v5228_v18  ;;  %v5713_v18 = vadd.f32 %v12993_v10, %v13207_v43  ;;  %v5099_v43 = vsel %vm1070_vm4, %v9192_v15, %v9193_v21 }
 0x805   : > { %v13258_v58 = vadd.f32 %v5784_v48, %v5706_v38  ;;  %v4972_v28 = vpop.permute.xlu0 %4971 }
 0x806   : > { %5867 = vmatmul.bf16.gmra.mxu0 %v5250_v2  ;;  %v5191_v2 = vsel %vm1070_vm4, %v4968_v46, %v11787_v32  ;;  %v4995_v46 = vsel %vm999_vm2, %v12971_v33, %v4972_v28 }
 0x807   : > { %v13261_v30 = vpop.f32.mrf.mxu2 }
 0x808   : > { %v5721_v31 = vadd.f32 %v12993_v10, %v13261_v30 }
 0x80c   : > { %v5786_v26 = vpop.f32.mrf.mxu3 }
 0x80d   : > { %v13272_v45 = vadd.f32 %v5786_v26, %v5708_v51  ;;  %v5257_v51 = vpack.c.bf16 %v5192_v29, %v5191_v2  ;;  %v5223_v26 = vpack.c.bf16 %v9178_v9, %v11787_v32  ;;  %v13325_v9 = vpop.permute.xlu2 %9210  ;;  %v5229_v2 = vpack.c.bf16 %v9183_v16, %v11787_v32 }
 0x80e   : > { %v9212_v33 = vunpack.i.l.bf16 %v13325_v9 }
 0x80f   : > { %v13277_v49 = vpop.f32.mrf.mxu2 }
 0x810   : > { %5946 = vmatmul.bf16.gmra.mxu1 %v5251_v22  ;;  %v5240_v22 = vpack.c.bf16 %v5099_v43, %v11787_v32  ;;  %v13361_v43 = vpop.permute.xlu1 %9215  ;;  %v5723_v30 = vadd.f32 %v12993_v10, %v13277_v49 }
 0x811   : > { %8553 = vmatmul.msk.bf16.gmra.mxu3 %vm1647_vm7, %v5217_v0  ;;  %v5262_v0 = vpack.c.bf16 %v13888_v56, %v4995_v46 }
 0x814   : > { %v5789_v34 = vpop.f32.mrf.mxu3  ;;  %6010 = vmatmul.bf16.gmra.mxu2 %v5234_v12  ;;  %v9198_v12 = vunpack.i.h.bf16 %v13220_v59 }
 0x815   : > { %v13293_v19 = vadd.f32 %v5789_v34, %v5711_v24  ;;  %v5193_v24 = vsel %vm1070_vm4, %v4972_v28, %v11787_v32  ;;  %v5194_v34 = vsel %vm1070_vm4, %v13888_v56, %v9212_v33 }
 0x816   : > { %5872 = vmatmul.bf16.gmra.mxu0 %v5256_v17  ;;  %v5100_v40 = vsel %vm1070_vm4, %v9197_v11, %v9198_v12  ;;  %v13365_v11 = vpop.f32.mrf.mxu0 }
 0x817   : > { %v13296_v39 = vpop.f32.mrf.mxu2 }
 0x81c   : > { %v5791_v38 = vpop.f32.mrf.mxu3 }
 0x81d   : > { %v13307_v48 = vadd.f32 %v5791_v38, %v5713_v18  ;;  %v4976_v18 = vpop.permute.xlu2 %4975  ;;  %v5263_v38 = vpack.c.bf16 %v5194_v34, %v5193_v24 }
 0x81e   : > { %v4996_v28 = vsel %vm999_vm2, %v12966_v8, %v4976_v18  ;;  %v13845_v8 = vunpack.i.l.bf16 %v13361_v43 }
 0x81f   : > { %v13312_v13 = vpop.f32.mrf.mxu2  ;;  %v5268_v16 = vpack.c.bf16 %v13888_v56, %v4996_v28 }
 0x820   : > { %5951 = vmatmul.bf16.gmra.mxu1 %v5257_v51  ;;  %v5196_v24 = vsel %vm1070_vm4, %v13888_v56, %v13845_v8 }
 0x821   : > { %8554 = vmatmul.msk.bf16.gmra.mxu3 %vm1647_vm7, %v5223_v26  ;;  %v5246_v26 = vpack.c.bf16 %v5100_v40, %v11787_v32  ;;  %v5235_v40 = vpack.c.bf16 %v9188_v47, %v11787_v32  ;;  %v5726_v47 = vadd.f32 %v12993_v10, %v13296_v39 }
 0x824   : > { %v5794_v50 = vpop.f32.mrf.mxu3  ;;  %6015 = vmatmul.bf16.gmra.mxu2 %v5240_v22 }
 0x825   : > { %v13328_v61 = vadd.f32 %v5794_v50, %v5716_v4  ;;  %v13368_v4 = vpop.f32.mrf.mxu1  ;;  %v9203_v50 = vunpack.i.h.bf16 %v13256_v57 }
 0x826   : > { %5877 = vmatmul.bf16.gmra.mxu0 %v5262_v0 }
 0x827   : > { %v13330_v15 = vpop.f32.mrf.mxu2  ;;  %v5101_v49 = vsel %vm1070_vm4, %v9202_v3, %v9203_v50 }
 0x828   : > { %v5252_v41 = vpack.c.bf16 %v5101_v49, %v11787_v32  ;;  %v5731_v25 = vadd.f32 %v12993_v10, %v13330_v15 }
 0x82c   : > { %v5796_v17 = vpop.f32.mrf.mxu3 }
 0x82d   : > { %v13342_v29 = vadd.f32 %v5796_v17, %v5718_v37  ;;  %v5195_v17 = vsel %vm1070_vm4, %v4976_v18, %v11787_v32 }
 0x82f   : > { %v13347_v51 = vpop.f32.mrf.mxu2 }
 0x830   : > { %5956 = vmatmul.bf16.gmra.mxu1 %v5263_v38  ;;  %v4980_v38 = vpop.permute.xlu1 %4979 }
 0x831   : > { %8555 = vmatmul.msk.bf16.gmra.mxu3 %vm1647_vm7, %v5229_v2  ;;  %v5269_v2 = vpack.c.bf16 %v5196_v24, %v5195_v17  ;;  %v4997_v18 = vsel %vm999_vm2, %v12942_v42, %v4980_v38  ;;  %v13848_v17 = vunpack.i.h.bf16 %v13290_v36 }
 0x834   : > { %v5799_v46 = vpop.f32.mrf.mxu3  ;;  %6020 = vmatmul.bf16.gmra.mxu2 %v5246_v26  ;;  %v13395_v26 = vpop.f32.mrf.mxu0 }
 0x835   : > { %v13363_v22 = vadd.f32 %v5799_v46, %v5721_v31  ;;  %v13397_v31 = vpop.f32.mrf.mxu1  ;;  %v5274_v46 = vpack.c.bf16 %v13888_v56, %v4997_v18  ;;  %v5197_v18 = vsel %vm1070_vm4, %v4980_v38, %v11787_v32 }
 0x836   : > { %5882 = vmatmul.bf16.gmra.mxu0 %v5268_v16  ;;  %v13403_v16 = vpop.permute.xlu0 %9220 }
 0x837   : > { %v13370_v0 = vpop.f32.mrf.mxu2  ;;  %v13846_v42 = vunpack.i.l.bf16 %v13403_v16 }
 0x839   : > { %v5198_v39 = vsel %vm1070_vm4, %v13888_v56, %v13846_v42  ;;  %v5102_v42 = vsel %vm1070_vm4, %v9207_v14, %v13848_v17 }
 0x83a   : > { %v5258_v38 = vpack.c.bf16 %v5102_v42, %v11787_v32 }
 0x83c   : > { %v5801_v37 = vpop.f32.mrf.mxu3 }
 0x83d   : > { %v13381_v34 = vadd.f32 %v5801_v37, %v5723_v30  ;;  %v13409_v37 = vpop.f32.mrf.mxu0 }
 0x83f   : > { %v13386_v28 = vpop.f32.mrf.mxu2 }
 0x840   : > { %5961 = vmatmul.bf16.gmra.mxu1 %v5269_v2  ;;  %v13416_v2 = vpop.f32.mrf.mxu1 }
 0x841   : > { %8556 = vmatmul.msk.bf16.gmra.mxu3 %vm1647_vm7, %v5235_v40  ;;  %v5728_v40 = vadd.f32 %v12993_v10, %v13312_v13 }
 0x844   : > { %v5804_v3 = vpop.f32.mrf.mxu3  ;;  %6025 = vmatmul.bf16.gmra.mxu2 %v5252_v41 }
 0x845   : > { %v13406_v30 = vadd.f32 %v5804_v3, %v5726_v47  ;;  %v4984_v47 = vpop.permute.xlu2 %4983  ;;  %v5241_v3 = vpack.c.bf16 %v9193_v21, %v11787_v32 }
 0x846   : > { %5887 = vmatmul.bf16.gmra.mxu0 %v5274_v46  ;;  %v5275_v46 = vpack.c.bf16 %v5198_v39, %v5197_v18  ;;  %v4998_v13 = vsel %vm999_vm2, %v12981_v1, %v4984_v47  ;;  %v13436_v39 = vpop.f32.mrf.mxu0  ;;  %v13847_v1 = vunpack.i.h.bf16 %v13325_v9  ;;  %v5199_v42 = vsel %vm1070_vm4, %v4984_v47, %v11787_v32 }
 0x847   : > { %v5986_v24 = vpop.f32.mrf.mxu2  ;;  %v5280_v21 = vpack.c.bf16 %v13888_v56, %v4998_v13  ;;  %v13889_v13 = vld [vmem:[#allocation16_spill] sm:$0xff] }
 0x84c   : > { %v5806_v49 = vpop.f32.mrf.mxu3 }
 0x84d   : > { %v13422_v41 = vadd.f32 %v5806_v49, %v5728_v40  ;;  %v13441_v49 = vpop.f32.mrf.mxu1 }
 0x84f   : > { %v5988_v8 = vpop.f32.mrf.mxu2 }
 0x850   : > { %5966 = vmatmul.bf16.gmra.mxu1 %v5275_v46  ;;  %v5733_v46 = vadd.f32 %v12993_v10, %v13347_v51  ;;  %v5103_v51 = vsel %vm1070_vm4, %v9212_v33, %v13847_v1  ;;  %v9218_v33 = vunpack.i.h.bf16 %v13361_v43 }
 0x851   : > { %8557 = vmatmul.msk.bf16.gmra.mxu3 %vm1647_vm7, %v5241_v3  ;;  %v13452_v3 = vpop.f32.mrf.mxu0  ;;  %v5264_v47 = vpack.c.bf16 %v5103_v51, %v11787_v32 }
 0x854   : > { %v5809_v40 = vpop.f32.mrf.mxu3  ;;  %6030 = vmatmul.bf16.gmra.mxu2 %v5258_v38  ;;  %v5281_v38 = vpack.c.bf16 %v13889_v13, %v5199_v42  ;;  %v5736_v42 = vadd.f32 %v12993_v10, %v13370_v0  ;;  %v5253_v0 = vpack.c.bf16 %v9203_v50, %v11787_v32 }
 0x855   : > { %v13443_v14 = vadd.f32 %v5809_v40, %v5731_v25  ;;  %v5247_v25 = vpack.c.bf16 %v9198_v12, %v11787_v32 }
 0x856   : > { %5892 = vmatmul.bf16.gmra.mxu0 %v5280_v21  ;;  %v13460_v21 = vpop.f32.mrf.mxu1 }
 0x857   : > { %v13445_v18 = vpop.f32.mrf.mxu2 }
 0x85c   : > { %v5811_v15 = vpop.f32.mrf.mxu3 }
 0x85d   : > { %v13454_v56 = vadd.f32 %v5811_v15, %v5733_v46  ;;  %v13475_v46 = vpop.f32.mrf.mxu0 }
 0x85e   : > { %v13479_v13 = vpop.f32.mrf.mxu1 }
 0x85f   : > { %v13462_v40 = vpop.f32.mrf.mxu2 }
 0x860   : > { %5971 = vmatmul.bf16.gmra.mxu1 %v5281_v38  ;;  %v5738_v38 = vadd.f32 %v12993_v10, %v13386_v28 }
 0x861   : > { %8558 = vmatmul.msk.bf16.gmra.mxu3 %vm1647_vm7, %v5247_v25 }
 0x864   : > { %v5814_v59 = vpop.f32.mrf.mxu3  ;;  %6035 = vmatmul.bf16.gmra.mxu2 %v5264_v47  ;;  %v5829_v47 = vadd.f32 %v13365_v11, %v13008_v23 }
 0x865   : > { %v13473_v12 = vadd.f32 %v5814_v59, %v5736_v42  ;;  %v13891_v59 = vunpack.i.l.bf16 %v13361_v43  ;;  %v13499_v28 = vpop.f32.mrf.mxu0 }
 0x866   : > { %v5908_v10 = vadd.f32 %v13368_v4, %v5829_v47  ;;  %v13503_v50 = vpop.f32.mrf.mxu1 }
 0x867   : > { %v13477_v15 = vpop.f32.mrf.mxu2  ;;  %v5104_v1 = vsel %vm1070_vm4, %v13891_v59, %v9218_v33 }
 0x868   : > { %v5270_v57 = vpack.c.bf16 %v5104_v1, %v11787_v32 }
 0x86c   : > { %v5816_v25 = vpop.f32.mrf.mxu3 }
 0x86d   : > { %v13484_v51 = vadd.f32 %v5816_v25, %v5738_v38  ;;  %v5987_v38 = vadd.f32 %v5986_v24, %v5908_v10  ;;  %v5831_v25 = vadd.f32 %v13395_v26, %v13026_v52  ;;  %v13511_v47 = vpop.f32.mrf.mxu0  ;;  %v13892_v52 = vunpack.i.h.bf16 %v13290_v36 }
 0x86e   : > { %v13513_v24 = vpop.f32.mrf.mxu1 }
 0x86f   : > { %13890 = vst [vmem:[#allocation11_spill] sm:$0xff] %v13484_v51  ;;  %v13491_v42 = vpop.f32.mrf.mxu2  ;;  %v5910_v4 = vadd.f32 %v13397_v31, %v5831_v25  ;;  %v5259_v26 = vpack.c.bf16 %v13892_v52, %v11787_v32 }
 0x871   : > { %8559 = vmatmul.msk.bf16.gmra.mxu3 %vm1647_vm7, %v5253_v0  ;;  %v9223_v0 = vunpack.i.h.bf16 %v13403_v16  ;;  %v5989_v1 = vadd.f32 %v5988_v8, %v5910_v4 }
 0x874   : > { %6040 = vmatmul.bf16.gmra.mxu2 %v5270_v57  ;;  %v6065_v23 = vpop.f32.mrf.mxu3 }
 0x875   : > { %v6066_v11 = vadd.f32 %v6065_v23, %v5987_v38  ;;  %v5834_v38 = vadd.f32 %v13409_v37, %v13045_v5  ;;  %v13532_v4 = vpop.f32.mrf.mxu0 }
 0x877   : > { %v8565_v17 = vmul.f32 -1.442695, %v6066_v11  ;;  %v13507_v51 = vpop.f32.mrf.mxu2  ;;  %v5913_v25 = vadd.f32 %v13416_v2, %v5834_v38  ;;  %v13536_v2 = vpop.f32.mrf.mxu1 }
 0x879   : > { %9226 = vpow2.f32 %v8565_v17  ;;  %v13893_v17 = vunpack.i.l.bf16 %v13403_v16  ;;  %v5992_v5 = vadd.f32 %v13445_v18, %v5913_v25 }
 0x87b   : > { %v5105_v23 = vsel %vm1070_vm4, %v13893_v17, %v9223_v0 }
 0x87c   : > { %v6067_v59 = vpop.f32.mrf.mxu3  ;;  %v5276_v36 = vpack.c.bf16 %v5105_v23, %v11787_v32 }
 0x87d   : > { %v6068_v10 = vadd.f32 %v6067_v59, %v5989_v1 }
 0x87f   : > { %v9227_v57 = vpop.eup %9226  ;;  %v8566_v31 = vmul.f32 -1.442695, %v6068_v10  ;;  %v13525_v11 = vpop.f32.mrf.mxu2  ;;  %v5836_v10 = vadd.f32 %v13436_v39, %v13061_v63 }
 0x880   : > { %v6219_v8 = vadd.f32 1.0, %v9227_v57 }
 0x881   : > { %9228 = vpow2.f32 %v8566_v31  ;;  %8560 = vmatmul.msk.bf16.gmra.mxu3 %vm1647_vm7, %v5259_v26  ;;  %v5915_v38 = vadd.f32 %v13441_v49, %v5836_v10  ;;  %v13547_v10 = vpop.f32.mrf.mxu0 }
 0x882   : > { %9230 = vrcp.f32 %v6219_v8  ;;  %v6258_v25 = vand.u32 2147483648, %v6219_v8  ;;  %v6256_v39 = vand.u32 2147483647, %v6219_v8  ;;  %vm6252_vm9 = vweird.f32 %v6219_v8 }
 0x883   : > { %v5994_v17 = vadd.f32 %v13462_v40, %v5915_v38 }
 0x884   : > { %6045 = vmatmul.bf16.gmra.mxu2 %v5276_v36  ;;  %v6070_v37 = vpop.f32.mrf.mxu3  ;;  %vm6257_vm12 = vcmp.eq.f32.partialorder %v6256_v39, 8.507059e+37 }
 0x885   : > { %v6071_v1 = vadd.f32 %v6070_v37, %v5992_v5  ;;  %v5839_v37 = vadd.f32 %v13452_v3, %v13077_v62  ;;  %v6259_v62 = vor.u32 1.1754944e-38, %v6258_v25 }
 0x887   : > { %v9229_v59 = vpop.eup %9228  ;;  %v8567_v57 = vmul.f32 -1.442695, %v6071_v1  ;;  %v13539_v18 = vpop.f32.mrf.mxu2  ;;  %v13894_v1 = vunpack.i.h.bf16 %v13325_v9 }
 0x888   : > { %v9231_v52 = vpop.eup %9230  ;;  %v6220_v26 = vadd.f32 1.0, %v9229_v59  ;;  %v13555_v9 = vpop.f32.mrf.mxu1 }
 0x889   : > { %v6248_v31 = vmul.f32 %v9231_v52, %v6219_v8  ;;  %9232 = vpow2.f32 %v8567_v57  ;;  %vm6253_vm8 = vweird.f32 %v9231_v52  ;;  %v5265_v59 = vpack.c.bf16 %v13894_v1, %v11787_v32 }
 0x88a   : > { %9234 = vrcp.f32 %v6220_v26  ;;  %vm6254_vm10 = vmor %vm6252_vm9, %vm6253_vm8  ;;  %vm6267_vm14 = vweird.f32 %v6220_v26 }
 0x88b   : > { %v6249_v23 = vsub.f32 1.0, %v6248_v31  ;;  %v5918_v31 = vadd.f32 %v13460_v21, %v5839_v37 }
 0x88c   : > { %v6072_v36 = vpop.f32.mrf.mxu3 }
 0x88d   : > { %v6250_v63 = vmul.f32 %v9231_v52, %v6249_v23  ;;  %v6073_v5 = vadd.f32 %v6072_v36, %v5994_v17  ;;  %v5997_v21 = vadd.f32 %v13477_v15, %v5918_v31 }
 0x88f   : > { %v9233_v49 = vpop.eup %9232  ;;  %v6251_v57 = vadd.f32 %v9231_v52, %v6250_v63  ;;  %v8568_v40 = vmul.f32 -1.442695, %v6073_v5  ;;  %v6273_v63 = vand.u32 2147483648, %v6220_v26  ;;  %v13561_v5 = vpop.f32.mrf.mxu2 }
 0x890   : > { %v9235_v38 = vpop.eup %9234  ;;  %v6221_v3 = vadd.f32 1.0, %v9233_v49  ;;  %v5841_v49 = vadd.f32 %v13475_v46, %v13094_v20  ;;  %v13569_v20 = vpop.f32.mrf.mxu1 }
 0x891   : > { %v6255_v17 = vsel %vm6254_vm10, %v9231_v52, %v6251_v57  ;;  %v6263_v23 = vmul.f32 %v9235_v38, %v6220_v26  ;;  %9236 = vpow2.f32 %v8568_v40  ;;  %8561 = vmatmul.msk.bf16.gmra.mxu3 %vm1647_vm7, %v5265_v59  ;;  %vm6268_vm13 = vweird.f32 %v9235_v38 }
 0x892   : > { %v6260_v8 = vsel %vm6257_vm12, %v6259_v62, %v6255_v17  ;;  %9238 = vrcp.f32 %v6221_v3  ;;  %v6271_v52 = vand.u32 2147483647, %v6220_v26  ;;  %v5920_v40 = vadd.f32 %v13479_v13, %v5841_v49  ;;  %vm6269_vm15 = vmor %vm6267_vm14, %vm6268_vm13  ;;  %v13567_v17 = vpop.f32.mrf.mxu0 }
 0x893   : > { %6668 = vst.msk [vmem:[%s13553_s1] sm:$0xff] %vm6667_vm11, %v6260_v8  ;;  %v6264_v36 = vsub.f32 1.0, %v6263_v23  ;;  %v6274_v31 = vor.u32 1.1754944e-38, %v6273_v63  ;;  %v6286_v63 = vand.u32 2147483647, %v6221_v3  ;;  %v5271_v49 = vpack.c.bf16 %v9218_v33, %v11787_v32 }
 0x894   : > { %6050 = vmatmul.bf16.gmra.mxu2 %v12439_v60  ;;  %v6075_v25 = vpop.f32.mrf.mxu3  ;;  %vm6272_vm0 = vcmp.eq.f32.partialorder %v6271_v52, 8.507059e+37  ;;  %v5999_v46 = vadd.f32 %v13491_v42, %v5920_v40  ;;  %vm6282_vm2 = vweird.f32 %v6221_v3 }
 0x895   : > { %v6265_v37 = vmul.f32 %v9235_v38, %v6264_v36  ;;  %v6076_v39 = vadd.f32 %v6075_v25, %v5997_v21  ;;  %v6288_v36 = vand.u32 2147483648, %v6221_v3  ;;  %vm6287_vm4 = vcmp.eq.f32.partialorder %v6286_v63, 8.507059e+37 }
 0x897   : > { %v9237_v1 = vpop.eup %9236  ;;  %v6266_v59 = vadd.f32 %v9235_v38, %v6265_v37  ;;  %v8569_v15 = vmul.f32 -1.442695, %v6076_v39  ;;  %v13576_v52 = vpop.f32.mrf.mxu2  ;;  %v6289_v40 = vor.u32 1.1754944e-38, %v6288_v36  ;;  %v5846_v36 = vadd.f32 %v13511_v47, %v13131_v35 }
 0x898   : > { %v9239_v57 = vpop.eup %9238  ;;  %v6222_v62 = vadd.f32 1.0, %v9237_v1 }
 0x899   : > { %v6270_v23 = vsel %vm6269_vm15, %v9235_v38, %v6266_v59  ;;  %v6278_v8 = vmul.f32 %v9239_v57, %v6221_v3  ;;  %9240 = vpow2.f32 %v8569_v15  ;;  %vm6283_vm1 = vweird.f32 %v9239_v57 }
 0x89a   : > { %v6275_v21 = vsel %vm6272_vm0, %v6274_v31, %v6270_v23  ;;  %9242 = vrcp.f32 %v6222_v62  ;;  %v5844_v38 = vadd.f32 %v13499_v28, %v13114_v54  ;;  %vm6284_vm3 = vmor %vm6282_vm2, %vm6283_vm1  ;;  %v13583_v43 = vpop.f32.mrf.mxu0  ;;  %vm6297_vm6 = vweird.f32 %v6222_v62 }
 0x89b   : > { %6669 = vst.msk [vmem:[%s13553_s1 + $0x8] sm:$0xff] %vm6667_vm11, %v6275_v21  ;;  %v6279_v26 = vsub.f32 1.0, %v6278_v8  ;;  %v6303_v8 = vand.u32 2147483648, %v6222_v62  ;;  %v13588_v21 = vpop.f32.mrf.mxu1 }
 0x89c   : > { %v6077_v13 = vpop.f32.mrf.mxu3  ;;  %v5923_v15 = vadd.f32 %v13503_v50, %v5844_v38 }
 0x89d   : > { %v6280_v25 = vmul.f32 %v9239_v57, %v6279_v26  ;;  %v6078_v37 = vadd.f32 %v6077_v13, %v5999_v46  ;;  %v6304_v38 = vor.u32 1.1754944e-38, %v6303_v8 }
 0x89e   : > { %v6002_v33 = vadd.f32 %v13507_v51, %v5923_v15 }
 0x89f   : > { %v9241_v39 = vpop.eup %9240  ;;  %v6281_v42 = vadd.f32 %v9239_v57, %v6280_v25  ;;  %v8570_v1 = vmul.f32 -1.442695, %v6078_v37  ;;  %v5925_v37 = vadd.f32 %v13513_v24, %v5846_v36 }
 0x8a0   : > { %v9243_v59 = vpop.eup %9242  ;;  %v6223_v31 = vadd.f32 1.0, %v9241_v39 }
 0x8a1   : > { %v6285_v23 = vsel %vm6284_vm3, %v9239_v57, %v6281_v42  ;;  %v6293_v54 = vmul.f32 %v9243_v59, %v6222_v62  ;;  %9244 = vpow2.f32 %v8570_v1  ;;  %8562 = vmatmul.msk.bf16.gmra.mxu3 %vm1647_vm7, %v5271_v49  ;;  %vm6298_vm5 = vweird.f32 %v9243_v59  ;;  %v13593_v49 = vpop.f32.mrf.mxu2 }
 0x8a2   : > { %v6290_v28 = vsel %vm6287_vm4, %v6289_v40, %v6285_v23  ;;  %9246 = vrcp.f32 %v6223_v31  ;;  %v6301_v57 = vand.u32 2147483647, %v6222_v62  ;;  %vm6299_vm8 = vmor %vm6297_vm6, %vm6298_vm5  ;;  %v6004_v35 = vadd.f32 %v13525_v11, %v5925_v37  ;;  %v13598_v23 = vpop.f32.mrf.mxu0 }
 0x8a3   : > { %6670 = vst.msk [vmem:[%s13553_s1 + $0x10] sm:$0xff] %vm6667_vm11, %v6290_v28  ;;  %v6294_v3 = vsub.f32 1.0, %v6293_v54  ;;  %v6318_v62 = vand.u32 2147483648, %v6223_v31  ;;  %v6316_v54 = vand.u32 2147483647, %v6223_v31  ;;  %v13605_v11 = vpop.f32.mrf.mxu1  ;;  %vm6312_vm12 = vweird.f32 %v6223_v31 }
 0x8a4   : > { %v6080_v50 = vpop.f32.mrf.mxu3  ;;  %vm6302_vm9 = vcmp.eq.f32.partialorder %v6301_v57, 8.507059e+37  ;;  %v5851_v37 = vadd.f32 %v13547_v10, %v13168_v6 }
 0x8a5   : > { %v6295_v46 = vmul.f32 %v9243_v59, %v6294_v3  ;;  %v6081_v26 = vadd.f32 %v6080_v50, %v6002_v33  ;;  %v5277_v3 = vpack.c.bf16 %v9223_v0, %v11787_v32  ;;  %vm6317_vm14 = vcmp.eq.f32.partialorder %v6316_v54, 8.507059e+37 }
 0x8a7   : > { %v9245_v13 = vpop.eup %9244  ;;  %v6296_v25 = vadd.f32 %v9243_v59, %v6295_v46  ;;  %v8571_v63 = vmul.f32 -1.442695, %v6081_v26  ;;  %v6319_v26 = vor.u32 1.1754944e-38, %v6318_v62 }
 0x8a8   : > { %v9247_v51 = vpop.eup %9246  ;;  %v6224_v39 = vadd.f32 1.0, %v9245_v13 }
 0x8a9   : > { %v6300_v42 = vsel %vm6299_vm8, %v9243_v59, %v6296_v25  ;;  %v6308_v1 = vmul.f32 %v9247_v51, %v6223_v31  ;;  %9248 = vpow2.f32 %v8571_v63  ;;  %vm6313_vm10 = vweird.f32 %v9247_v51  ;;  %v13609_v32 = vpop.f32.mrf.mxu2 }
 0x8aa   : > { %v6305_v15 = vsel %vm6302_vm9, %v6304_v38, %v6300_v42  ;;  %9250 = vrcp.f32 %v6224_v39  ;;  %v5849_v59 = vadd.f32 %v13532_v4, %v13151_v44  ;;  %vm6314_vm13 = vmor %vm6312_vm12, %vm6313_vm10  ;;  %v6333_v31 = vand.u32 2147483648, %v6224_v39  ;;  %v13616_v42 = vpop.f32.mrf.mxu0 }
 0x8ab   : > { %6671 = vst.msk [vmem:[%s13553_s1 + $0x18] sm:$0xff] %vm6667_vm11, %v6305_v15  ;;  %v6309_v47 = vsub.f32 1.0, %v6308_v1  ;;  %v6331_v63 = vand.u32 2147483647, %v6224_v39  ;;  %vm6327_vm0 = vweird.f32 %v6224_v39 }
 0x8ac   : > { %v6082_v40 = vpop.f32.mrf.mxu3  ;;  %v5928_v57 = vadd.f32 %v13536_v2, %v5849_v59 }
 0x8ad   : > { %v6310_v24 = vmul.f32 %v9247_v51, %v6309_v47  ;;  %v6083_v28 = vadd.f32 %v6082_v40, %v6004_v35  ;;  %v5930_v35 = vadd.f32 %v13555_v9, %v5851_v37  ;;  %v6334_v47 = vor.u32 1.1754944e-38, %v6333_v31  ;;  %v13619_v40 = vpop.f32.mrf.mxu1 }
 0x8ae   : > { %v6007_v0 = vadd.f32 %v13539_v18, %v5928_v57  ;;  %vm6332_vm2 = vcmp.eq.f32.partialorder %v6331_v63, 8.507059e+37 }
 0x8af   : > { %v9249_v33 = vpop.eup %9248  ;;  %v6311_v8 = vadd.f32 %v9247_v51, %v6310_v24  ;;  %v8572_v50 = vmul.f32 -1.442695, %v6083_v28  ;;  %v6009_v10 = vadd.f32 %v13561_v5, %v5930_v35 }
 0x8b0   : > { %v9251_v46 = vpop.eup %9250  ;;  %v6225_v36 = vadd.f32 1.0, %v9249_v33 }
 0x8b1   : > { %v6315_v13 = vsel %vm6314_vm13, %v9247_v51, %v6311_v8  ;;  %v6323_v44 = vmul.f32 %v9251_v46, %v6224_v39  ;;  %9252 = vpow2.f32 %v8572_v50  ;;  %8563 = vmatmul.msk.bf16.gmra.mxu3 %vm1647_vm7, %v5277_v3  ;;  %vm6328_vm15 = vweird.f32 %v9251_v46  ;;  %v13624_v59 = vpop.f32.mrf.mxu2 }
 0x8b2   : > { %v6320_v16 = vsel %vm6317_vm14, %v6319_v26, %v6315_v13  ;;  %9254 = vrcp.f32 %v6225_v36  ;;  %vm6329_vm1 = vmor %vm6327_vm0, %vm6328_vm15  ;;  %v6348_v28 = vand.u32 2147483648, %v6225_v36  ;;  %v6346_v3 = vand.u32 2147483647, %v6225_v36 }
 0x8b3   : > { %6672 = vst.msk [vmem:[%s13553_s1 + $0x20] sm:$0xff] %vm6667_vm11, %v6320_v16  ;;  %v6324_v4 = vsub.f32 1.0, %v6323_v44  ;;  %v5854_v50 = vadd.f32 %v13567_v17, %v13188_v7  ;;  %vm6342_vm4 = vweird.f32 %v6225_v36 }
 0x8b4   : > { %v6085_v2 = vpop.f32.mrf.mxu3  ;;  %v6349_v44 = vor.u32 1.1754944e-38, %v6348_v28  ;;  %vm6347_vm6 = vcmp.eq.f32.partialorder %v6346_v3, 8.507059e+37 }
 0x8b5   : > { %v6325_v25 = vmul.f32 %v9251_v46, %v6324_v4  ;;  %v6086_v51 = vadd.f32 %v6085_v2, %v6007_v0  ;;  %v5933_v13 = vadd.f32 %v13569_v20, %v5854_v50  ;;  %v13629_v0 = vpop.f32.mrf.mxu0  ;;  %v13633_v17 = vpop.f32.mrf.mxu1 }
 0x8b7   : > { %v9253_v38 = vpop.eup %9252  ;;  %v6326_v1 = vadd.f32 %v9251_v46, %v6325_v25  ;;  %v8573_v15 = vmul.f32 -1.442695, %v6086_v51 }
 0x8b8   : > { %v9255_v18 = vpop.eup %9254  ;;  %v6226_v62 = vadd.f32 1.0, %v9253_v38  ;;  %v5856_v38 = vadd.f32 %v13583_v43, %v13202_v53 }
 0x8b9   : > { %v6330_v24 = vsel %vm6329_vm1, %v9251_v46, %v6326_v1  ;;  %v6338_v54 = vmul.f32 %v9255_v18, %v6225_v36  ;;  %9256 = vpow2.f32 %v8573_v15  ;;  %vm6343_vm3 = vweird.f32 %v9255_v18  ;;  %v13640_v1 = vpop.f32.mrf.mxu2 }
 0x8ba   : > { %v6335_v6 = vsel %vm6332_vm2, %v6334_v47, %v6330_v24  ;;  %9258 = vrcp.f32 %v6226_v62  ;;  %vm6344_vm5 = vmor %vm6342_vm4, %vm6343_vm3  ;;  %v6012_v36 = vadd.f32 %v13576_v52, %v5933_v13  ;;  %v6363_v2 = vand.u32 2147483648, %v6226_v62 }
 0x8bb   : > { %6673 = vst.msk [vmem:[%s13553_s1 + $0x28] sm:$0xff] %vm6667_vm11, %v6335_v6  ;;  %v6339_v39 = vsub.f32 1.0, %v6338_v54  ;;  %v6361_v51 = vand.u32 2147483647, %v6226_v62  ;;  %v5935_v35 = vadd.f32 %v13588_v21, %v5856_v38 }
 0x8bc   : > { %v6087_v9 = vpop.f32.mrf.mxu3  ;;  %v6364_v47 = vor.u32 1.1754944e-38, %v6363_v2 }
 0x8bd   : > { %v6340_v33 = vmul.f32 %v9255_v18, %v6339_v39  ;;  %v6088_v8 = vadd.f32 %v6087_v9, %v6009_v10  ;;  %vm6362_vm10 = vcmp.eq.f32.partialorder %v6361_v51, 8.507059e+37  ;;  %v13643_v53 = vpop.f32.mrf.mxu0  ;;  %v6014_v43 = vadd.f32 %v13593_v49, %v5935_v35  ;;  %v13648_v9 = vpop.f32.mrf.mxu1 }
 0x8bf   : > { %v9257_v46 = vpop.eup %9256  ;;  %v6341_v57 = vadd.f32 %v9255_v18, %v6340_v33  ;;  %v8574_v26 = vmul.f32 -1.442695, %v6088_v8  ;;  %v5859_v8 = vadd.f32 %v13598_v23, %v13223_v27 }
 0x8c0   : > { %v9259_v5 = vpop.eup %9258  ;;  %v6227_v16 = vadd.f32 1.0, %v9257_v46 }
 0x8c1   : > { %v6345_v4 = vsel %vm6344_vm5, %v9255_v18, %v6341_v57  ;;  %v6353_v31 = vmul.f32 %v9259_v5, %v6226_v62  ;;  %9260 = vpow2.f32 %v8574_v26  ;;  %8564 = vmatmul.msk.bf16.gmra.mxu3 %vm1647_vm7, %v12439_v60  ;;  %vm6358_vm8 = vweird.f32 %v9259_v5  ;;  %v13653_v13 = vpop.f32.mrf.mxu2 }
 0x8c2   : > { %v6350_v7 = vsel %vm6347_vm6, %v6349_v44, %v6345_v4  ;;  %9262 = vrcp.f32 %v6227_v16  ;;  %vm6357_vm7 = vweird.f32 %v6226_v62  ;;  %v6378_v39 = vand.u32 2147483648, %v6227_v16 }
 0x8c3   : > { %6674 = vst.msk [vmem:[%s13553_s1 + $0x30] sm:$0xff] %vm6667_vm11, %v6350_v7  ;;  %v6354_v20 = vsub.f32 1.0, %v6353_v31  ;;  %vm6359_vm9 = vmor %vm6357_vm7, %vm6358_vm8  ;;  %v6376_v33 = vand.u32 2147483647, %v6227_v16  ;;  %vm6372_vm13 = vweird.f32 %v6227_v16  ;;  %v5938_v26 = vadd.f32 %v13605_v11, %v5859_v8 }
 0x8c4   : > { %v6090_v25 = vpop.f32.mrf.mxu3 }
 0x8c5   : > { %v6355_v63 = vmul.f32 %v9259_v5, %v6354_v20  ;;  %v6091_v37 = vadd.f32 %v6090_v25, %v6012_v36  ;;  %vm6377_vm15 = vcmp.eq.f32.partialorder %v6376_v33, 8.507059e+37  ;;  %v6017_v27 = vadd.f32 %v13609_v32, %v5938_v26  ;;  %v13658_v20 = vpop.f32.mrf.mxu0 }
 0x8c7   : > { %v9261_v60 = vpop.eup %9260  ;;  %v6356_v15 = vadd.f32 %v9259_v5, %v6355_v63  ;;  %v8575_v18 = vmul.f32 -1.442695, %v6091_v37  ;;  %v5861_v63 = vadd.f32 %v13616_v42, %v13237_v55  ;;  %v13662_v37 = vpop.f32.mrf.mxu1 }
 0x8c8   : > { %v9263_v52 = vpop.eup %9262  ;;  %v6228_v24 = vadd.f32 1.0, %v9261_v60 }
 0x8c9   : > { %v6360_v54 = vsel %vm6359_vm9, %v9259_v5, %v6356_v15  ;;  %v6368_v6 = vmul.f32 %v9263_v52, %v6227_v16  ;;  %9264 = vpow2.f32 %v8575_v18  ;;  %vm6373_vm12 = vweird.f32 %v9263_v52 }
 0x8ca   : > { %v6365_v10 = vsel %vm6362_vm10, %v6364_v47, %v6360_v54  ;;  %9266 = vrcp.f32 %v6228_v24  ;;  %vm6374_vm14 = vmor %vm6372_vm13, %vm6373_vm12  ;;  %v6379_v5 = vor.u32 1.1754944e-38, %v6378_v39  ;;  %v6393_v16 = vand.u32 2147483648, %v6228_v24 }
 0x8cb   : > { %6675 = vst.msk [vmem:[%s13553_s1 + $0x38] sm:$0xff] %vm6667_vm11, %v6365_v10  ;;  %v6369_v62 = vsub.f32 1.0, %v6368_v6  ;;  %v6391_v2 = vand.u32 2147483647, %v6228_v24  ;;  %vm6387_vm1 = vweird.f32 %v6228_v24  ;;  %v5940_v15 = vadd.f32 %v13619_v40, %v5861_v63  ;;  %v13665_v6 = vpop.f32.mrf.mxu2 }
 0x8cc   : > { %v6092_v28 = vpop.f32.mrf.mxu3  ;;  %v6394_v18 = vor.u32 1.1754944e-38, %v6393_v16  ;;  %v5864_v39 = vadd.f32 %v13629_v0, %v13258_v58 }
 0x8cd   : > { %v6370_v21 = vmul.f32 %v9263_v52, %v6369_v62  ;;  %v6093_v3 = vadd.f32 %v6092_v28, %v6014_v43  ;;  %vm6392_vm3 = vcmp.eq.f32.partialorder %v6391_v2, 8.507059e+37  ;;  %v6019_v55 = vadd.f32 %v13624_v59, %v5940_v15 }
 0x8ce   : > { %v5943_v8 = vadd.f32 %v13633_v17, %v5864_v39 }
 0x8cf   : > { %v9265_v50 = vpop.eup %9264  ;;  %v6371_v46 = vadd.f32 %v9263_v52, %v6370_v21  ;;  %v8576_v57 = vmul.f32 -1.442695, %v6093_v3  ;;  %v13672_v21 = vpop.f32.mrf.mxu0 }
 0x8d0   : > { %v9267_v49 = vpop.eup %9266  ;;  %v6229_v44 = vadd.f32 1.0, %v9265_v50  ;;  %v6022_v0 = vadd.f32 %v13640_v1, %v5943_v8 }
 0x8d1   : > { %v6375_v4 = vsel %vm6374_vm14, %v9263_v52, %v6371_v46  ;;  %v6383_v31 = vmul.f32 %v9267_v49, %v6228_v24  ;;  %9268 = vpow2.f32 %v8576_v57  ;;  %vm6388_vm0 = vweird.f32 %v9267_v49  ;;  %v13677_v57 = vpop.f32.mrf.mxu1 }
 0x8d2   : > { %v6380_v7 = vsel %vm6377_vm15, %v6379_v5, %v6375_v4  ;;  %9270 = vrcp.f32 %v6229_v44  ;;  %vm6389_vm2 = vmor %vm6387_vm1, %vm6388_vm0  ;;  %v6408_v24 = vand.u32 2147483648, %v6229_v44  ;;  %v6406_v40 = vand.u32 2147483647, %v6229_v44 }
 0x8d3   : > { %6676 = vst.msk [vmem:[%s13553_s1 + $0x40] sm:$0xff] %vm6667_vm11, %v6380_v7  ;;  %v6384_v23 = vsub.f32 1.0, %v6383_v31  ;;  %vm6402_vm5 = vweird.f32 %v6229_v44  ;;  %v13683_v17 = vpop.f32.mrf.mxu2 }
 0x8d4   : > { %v6095_v36 = vpop.f32.mrf.mxu3  ;;  %v6409_v50 = vor.u32 1.1754944e-38, %v6408_v24  ;;  %vm6407_vm8 = vcmp.eq.f32.partialorder %v6406_v40, 8.507059e+37 }
 0x8d5   : > { %v6385_v11 = vmul.f32 %v9267_v49, %v6384_v23  ;;  %v6096_v25 = vadd.f32 %v6095_v36, %v6017_v27  ;;  %v5866_v23 = vadd.f32 %v13643_v53, %v13272_v45 }
 0x8d7   : > { %v9269_v51 = vpop.eup %9268  ;;  %v6386_v38 = vadd.f32 %v9267_v49, %v6385_v11  ;;  %v8577_v32 = vmul.f32 -1.442695, %v6096_v25  ;;  %v5945_v2 = vadd.f32 %v13648_v9, %v5866_v23 }
 0x8d8   : > { %v9271_v60 = vpop.eup %9270  ;;  %v6230_v52 = vadd.f32 1.0, %v9269_v51  ;;  %v13690_v51 = vpop.f32.mrf.mxu0 }
 0x8d9   : > { %v6390_v35 = vsel %vm6389_vm2, %v9267_v49, %v6386_v38  ;;  %v6398_v47 = vmul.f32 %v9271_v60, %v6229_v44  ;;  %9272 = vpow2.f32 %v8577_v32  ;;  %vm6403_vm4 = vweird.f32 %v9271_v60  ;;  %v13698_v53 = vpop.f32.mrf.mxu1 }
 0x8da   : > { %v6395_v54 = vsel %vm6392_vm3, %v6394_v18, %v6390_v35  ;;  %9274 = vrcp.f32 %v6230_v52  ;;  %vm6404_vm6 = vmor %vm6402_vm5, %vm6403_vm4  ;;  %v6423_v44 = vand.u32 2147483648, %v6230_v52  ;;  %v6421_v7 = vand.u32 2147483647, %v6230_v52 }
 0x8db   : > { %6677 = vst.msk [vmem:[%s13553_s1 + $0x48] sm:$0xff] %vm6667_vm11, %v6395_v54  ;;  %v6399_v42 = vsub.f32 1.0, %v6398_v47  ;;  %vm6417_vm9 = vweird.f32 %v6230_v52  ;;  %v6024_v9 = vadd.f32 %v13653_v13, %v5945_v2  ;;  %v5869_v13 = vadd.f32 %v13658_v20, %v13293_v19  ;;  %v13709_v54 = vpop.f32.mrf.mxu2 }
 0x8dc   : > { %v6097_v10 = vpop.f32.mrf.mxu3  ;;  %v6424_v25 = vor.u32 1.1754944e-38, %v6423_v44  ;;  %vm6422_vm12 = vcmp.eq.f32.partialorder %v6421_v7, 8.507059e+37 }
 0x8dd   : > { %v6400_v43 = vmul.f32 %v9271_v60, %v6399_v42  ;;  %v6098_v62 = vadd.f32 %v6097_v10, %v6019_v55 }
 0x8df   : > { %v9273_v28 = vpop.eup %9272  ;;  %v6401_v33 = vadd.f32 %v9271_v60, %v6400_v43  ;;  %v8578_v3 = vmul.f32 -1.442695, %v6098_v62 }
 0x8e0   : > { %v9275_v59 = vpop.eup %9274  ;;  %v13675_v46 = vadd.f32 1.0, %v9273_v28 }
 0x8e1   : > { %v6405_v49 = vsel %vm6404_vm6, %v9271_v60, %v6401_v33  ;;  %v6413_v26 = vmul.f32 %v9275_v59, %v6230_v52  ;;  %9276 = vpow2.f32 %v8578_v3  ;;  %vm6418_vm7 = vweird.f32 %v9275_v59 }
 0x8e2   : > { %v6410_v58 = vsel %vm6407_vm8, %v6409_v50, %v6405_v49  ;;  %9278 = vrcp.f32 %v13675_v46  ;;  %vm6419_vm10 = vmor %vm6417_vm9, %vm6418_vm7  ;;  %v6438_v15 = vand.u32 2147483648, %v13675_v46  ;;  %v6436_v35 = vand.u32 2147483647, %v13675_v46 }
 0x8e3   : > { %6678 = vst.msk [vmem:[%s13553_s1 + $0x50] sm:$0xff] %vm6667_vm11, %v6410_v58  ;;  %v6414_v5 = vsub.f32 1.0, %v6413_v26 }
 0x8e4   : > { %v6100_v4 = vpop.f32.mrf.mxu3 }
 0x8e5   : > { %v6415_v31 = vmul.f32 %v9275_v59, %v6414_v5  ;;  %v6101_v27 = vadd.f32 %v6100_v4, %v6022_v0 }
 0x8e7   : > { %v9277_v16 = vpop.eup %9276  ;;  %v6416_v36 = vadd.f32 %v9275_v59, %v6415_v31  ;;  %v8579_v11 = vmul.f32 -1.442695, %v6101_v27 }
 0x8e8   : > { %v9279_v1 = vpop.eup %9278  ;;  %v13688_v63 = vadd.f32 1.0, %v9277_v16 }
 0x8e9   : > { %v6420_v38 = vsel %vm6419_vm10, %v9275_v59, %v6416_v36  ;;  %v6428_v32 = vmul.f32 %v9279_v1, %v13675_v46  ;;  %9280 = vpow2.f32 %v8579_v11  ;;  %vm6433_vm13 = vweird.f32 %v9279_v1 }
 0x8ea   : > { %v6425_v45 = vsel %vm6422_vm12, %v6424_v25, %v6420_v38  ;;  %9282 = vrcp.f32 %v13688_v63 }
 0x8eb   : > { %6679 = vst.msk [vmem:[%s13553_s1 + $0x58] sm:$0xff] %vm6667_vm11, %v6425_v45  ;;  %v6429_v60 = vsub.f32 1.0, %v6428_v32 }
 0x8ec   : > { %v6102_v18 = vpop.f32.mrf.mxu3 }
 0x8ed   : > { %v6430_v52 = vmul.f32 %v9279_v1, %v6429_v60  ;;  %v6103_v47 = vadd.f32 %v6102_v18, %v6024_v9 }
 0x8ee   : > { %9365 = shalt.err (!%p9362_p4)
}
 0x8ef   : > { %8990 = dma.vmem_to_hbm [thread:$0]  (%p9520_p5), %s6719_s18, 128, %s6721_s17, %s6702_s24   ;;  %v9281_v19 = vpop.eup %9280  ;;  %v6431_v20 = vadd.f32 %v9279_v1, %v6430_v52  ;;  %vm6432_vm14 = vweird.f32 %v13675_v46  ;;  %v8580_v55 = vmul.f32 -1.442695, %v6103_v47  ;;  %v5948_v24 = vadd.f32 %v13662_v37, %v5869_v13  ;;  %v13727_v28 = vpop.f32.mrf.mxu0 }
 0x8f0   : > { %v9283_v42 = vpop.eup %9282  ;;  %vm6434_vm15 = vmor %vm6432_vm14, %vm6433_vm13  ;;  %v6439_v10 = vor.u32 1.1754944e-38, %v6438_v15  ;;  %v6233_v43 = vadd.f32 1.0, %v9281_v19  ;;  %vm6437_vm0 = vcmp.eq.f32.partialorder %v6436_v35, 8.507059e+37  ;;  %v6453_v37 = vand.u32 2147483648, %v13688_v63  ;;  %v13733_v8 = vpop.f32.mrf.mxu1 }
 0x8f1   : > { %v6435_v40 = vsel %vm6434_vm15, %v9279_v1, %v6431_v20  ;;  %v6443_v62 = vmul.f32 %v9283_v42, %v13688_v63  ;;  %9284 = vpow2.f32 %v8580_v55  ;;  %v6027_v33 = vadd.f32 %v13665_v6, %v5948_v24  ;;  %v13740_v31 = vpop.f32.mrf.mxu2 }
 0x8f2   : > { %v6440_v39 = vsel %vm6437_vm0, %v6439_v10, %v6435_v40  ;;  %9286 = vrcp.f32 %v6233_v43  ;;  %vm6448_vm1 = vweird.f32 %v9283_v42  ;;  %v6451_v46 = vand.u32 2147483647, %v13688_v63 }
 0x8f3   : > { %6680 = vst.msk [vmem:[%s13553_s1 + $0x60] sm:$0xff] %vm6667_vm11, %v6440_v39  ;;  %v6444_v3 = vsub.f32 1.0, %v6443_v62  ;;  %v5871_v26 = vadd.f32 %v13672_v21, %v13307_v48  ;;  %vm6447_vm2 = vweird.f32 %v13688_v63  ;;  %v6454_v4 = vor.u32 1.1754944e-38, %v6453_v37 }
 0x8f4   : > { %v6105_v59 = vpop.f32.mrf.mxu3  ;;  %vm6449_vm3 = vmor %vm6447_vm2, %vm6448_vm1  ;;  %vm6452_vm4 = vcmp.eq.f32.partialorder %v6451_v46, 8.507059e+37  ;;  %v6468_v36 = vand.u32 2147483648, %v6233_v43  ;;  %v6466_v2 = vand.u32 2147483647, %v6233_v43  ;;  %v5874_v63 = vadd.f32 %v13690_v51, %v13328_v61 }
 0x8f5   : > { %v6445_v50 = vmul.f32 %v9283_v42, %v6444_v3  ;;  %v6106_v49 = vadd.f32 %v6105_v59, %v6027_v33  ;;  %v5950_v44 = vadd.f32 %v13677_v57, %v5871_v26  ;;  %vm6462_vm6 = vweird.f32 %v6233_v43 }
 0x8f6   : > { %v5953_v60 = vadd.f32 %v13698_v53, %v5874_v63  ;;  %v6469_v15 = vor.u32 1.1754944e-38, %v6468_v36  ;;  %vm6467_vm7 = vcmp.eq.f32.partialorder %v6466_v2, 8.507059e+37  ;;  %v5876_v24 = vadd.f32 %v13727_v28, %v13342_v29 }
 0x8f7   : > { %v9285_v58 = vpop.eup %9284  ;;  %v6446_v0 = vadd.f32 %v9283_v42, %v6445_v50  ;;  %v8581_v6 = vmul.f32 -1.442695, %v6106_v49  ;;  %v6029_v48 = vadd.f32 %v13683_v17, %v5950_v44  ;;  %v5878_v1 = vpop.f32.mrf.mxu0 }
 0x8f8   : > { %v9287_v5 = vpop.eup %9286  ;;  %v6234_v7 = vadd.f32 1.0, %v9285_v58  ;;  %v5957_v32 = vpop.f32.mrf.mxu1  ;;  %v6032_v61 = vadd.f32 %v13709_v54, %v5953_v60  ;;  %v5955_v54 = vadd.f32 %v13733_v8, %v5876_v24 }
 0x8f9   : > { %v6450_v27 = vsel %vm6449_vm3, %v9283_v42, %v6446_v0  ;;  %v6458_v23 = vmul.f32 %v9287_v5, %v6233_v43  ;;  %9288 = vpow2.f32 %v8581_v6  ;;  %vm6463_vm5 = vweird.f32 %v9287_v5  ;;  %v6036_v13 = vpop.f32.mrf.mxu2 }
 0x8fa   : > { %v6455_v16 = vsel %vm6452_vm4, %v6454_v4, %v6450_v27  ;;  %9290 = vrcp.f32 %v6234_v7  ;;  %vm6464_vm8 = vmor %vm6462_vm6, %vm6463_vm5  ;;  %v6483_v19 = vand.u32 2147483648, %v6234_v7  ;;  %v6481_v53 = vand.u32 2147483647, %v6234_v7 }
 0x8fb   : > { %6681 = vst.msk [vmem:[%s13553_s1 + $0x68] sm:$0xff] %vm6667_vm11, %v6455_v16  ;;  %v6459_v21 = vsub.f32 1.0, %v6458_v23  ;;  %vm6477_vm10 = vweird.f32 %v6234_v7  ;;  %v6034_v29 = vadd.f32 %v13740_v31, %v5955_v54 }
 0x8fc   : > { %v6107_v11 = vpop.f32.mrf.mxu3  ;;  %v6484_v33 = vor.u32 1.1754944e-38, %v6483_v19  ;;  %vm6482_vm13 = vcmp.eq.f32.partialorder %v6481_v53, 8.507059e+37 }
 0x8fd   : > { %v6460_v57 = vmul.f32 %v9287_v5, %v6459_v21  ;;  %v6108_v25 = vadd.f32 %v6107_v11, %v6029_v48 }
 0x8ff   : > { %v9289_v38 = vpop.eup %9288  ;;  %v6461_v45 = vadd.f32 %v9287_v5, %v6460_v57  ;;  %v8582_v9 = vmul.f32 -1.442695, %v6108_v25  ;;  %v5880_v43 = vpop.f32.mrf.mxu0 }
 0x900   : > { %v9291_v17 = vpop.eup %9290  ;;  %v6235_v18 = vadd.f32 1.0, %v9289_v38  ;;  %v5959_v37 = vpop.f32.mrf.mxu1 }
 0x901   : > { %v6465_v52 = vsel %vm6464_vm8, %v9287_v5, %v6461_v45  ;;  %v6473_v35 = vmul.f32 %v9291_v17, %v6234_v7  ;;  %9292 = vpow2.f32 %v8582_v9  ;;  %vm6478_vm9 = vweird.f32 %v9291_v17  ;;  %v6038_v49 = vpop.f32.mrf.mxu2 }
 0x902   : > { %v6470_v47 = vsel %vm6467_vm7, %v6469_v15, %v6465_v52  ;;  %9294 = vrcp.f32 %v6235_v18  ;;  %vm6479_vm12 = vmor %vm6477_vm10, %vm6478_vm9  ;;  %v6498_v26 = vand.u32 2147483648, %v6235_v18  ;;  %v6496_v8 = vand.u32 2147483647, %v6235_v18 }
 0x903   : > { %6682 = vst.msk [vmem:[%s13553_s1 + $0x70] sm:$0xff] %vm6667_vm11, %v6470_v47  ;;  %v6474_v51 = vsub.f32 1.0, %v6473_v35  ;;  %v5879_v5 = vadd.f32 %v5878_v1, %v13363_v22  ;;  %vm6492_vm15 = vweird.f32 %v6235_v18  ;;  %v5881_v45 = vadd.f32 %v5880_v43, %v13381_v34 }
 0x904   : > { %v6110_v20 = vpop.f32.mrf.mxu3  ;;  %v6499_v31 = vor.u32 1.1754944e-38, %v6498_v26  ;;  %vm6497_vm1 = vcmp.eq.f32.partialorder %v6496_v8, 8.507059e+37 }
 0x905   : > { %v6475_v55 = vmul.f32 %v9291_v17, %v6474_v51  ;;  %v6111_v42 = vadd.f32 %v6110_v20, %v6032_v61  ;;  %v5958_v23 = vadd.f32 %v5957_v32, %v5879_v5  ;;  %v5960_v52 = vadd.f32 %v5959_v37, %v5881_v45 }
 0x907   : > { %v9293_v10 = vpop.eup %9292  ;;  %v6476_v40 = vadd.f32 %v9291_v17, %v6475_v55  ;;  %v8583_v62 = vmul.f32 -1.442695, %v6111_v42  ;;  %v5883_v48 = vpop.f32.mrf.mxu0  ;;  %v6037_v2 = vadd.f32 %v6036_v13, %v5958_v23  ;;  %v6039_v20 = vadd.f32 %v6038_v49, %v5960_v52 }
 0x908   : > { %v9295_v39 = vpop.eup %9294  ;;  %v6236_v3 = vadd.f32 1.0, %v9293_v10  ;;  %v5962_v57 = vpop.f32.mrf.mxu1 }
 0x909   : > { %v6480_v59 = vsel %vm6479_vm12, %v9291_v17, %v6476_v40  ;;  %v6488_v50 = vmul.f32 %v9295_v39, %v6235_v18  ;;  %9296 = vpow2.f32 %v8583_v62  ;;  %vm6493_vm14 = vweird.f32 %v9295_v39  ;;  %v6041_v9 = vpop.f32.mrf.mxu2 }
 0x90a   : > { %v6485_v46 = vsel %vm6482_vm13, %v6484_v33, %v6480_v59  ;;  %9298 = vrcp.f32 %v6236_v3  ;;  %vm6494_vm0 = vmor %vm6492_vm15, %vm6493_vm14  ;;  %v6513_v1 = vand.u32 2147483648, %v6236_v3  ;;  %v6511_v38 = vand.u32 2147483647, %v6236_v3 }
 0x90b   : > { %6683 = vst.msk [vmem:[%s13553_s1 + $0x78] sm:$0xff] %vm6667_vm11, %v6485_v46  ;;  %v6489_v28 = vsub.f32 1.0, %v6488_v50  ;;  %vm6507_vm3 = vweird.f32 %v6236_v3  ;;  %v5884_v40 = vadd.f32 %v5883_v48, %v13406_v30 }
 0x90c   : > { %v6112_v58 = vpop.f32.mrf.mxu3  ;;  %v6514_v35 = vor.u32 1.1754944e-38, %v6513_v1  ;;  %vm6512_vm5 = vcmp.eq.f32.partialorder %v6511_v38, 8.507059e+37 }
 0x90d   : > { %v6490_v0 = vmul.f32 %v9295_v39, %v6489_v28  ;;  %v6113_v6 = vadd.f32 %v6112_v58, %v6034_v29 }
 0x90f   : > { %v9297_v44 = vpop.eup %9296  ;;  %v6491_v4 = vadd.f32 %v9295_v39, %v6490_v0  ;;  %v8584_v7 = vmul.f32 -1.442695, %v6113_v6  ;;  %v5885_v19 = vpop.f32.mrf.mxu0 }
 0x910   : > { %v9299_v27 = vpop.eup %9298  ;;  %v6237_v16 = vadd.f32 1.0, %v9297_v44  ;;  %v5964_v42 = vpop.f32.mrf.mxu1  ;;  %v5886_v44 = vadd.f32 %v5885_v19, %v13422_v41 }
 0x911   : > { %v6495_v21 = vsel %vm6494_vm0, %v9295_v39, %v6491_v4  ;;  %v6503_v36 = vmul.f32 %v9299_v27, %v6236_v3  ;;  %9300 = vpow2.f32 %v8584_v7  ;;  %vm6508_vm2 = vweird.f32 %v9299_v27  ;;  %v6043_v37 = vpop.f32.mrf.mxu2 }
 0x912   : > { %v6500_v11 = vsel %vm6497_vm1, %v6499_v31, %v6495_v21  ;;  %9302 = vrcp.f32 %v6237_v16  ;;  %vm6509_vm4 = vmor %vm6507_vm3, %vm6508_vm2  ;;  %v6528_v55 = vand.u32 2147483648, %v6237_v16  ;;  %v6526_v10 = vand.u32 2147483647, %v6237_v16 }
 0x913   : > { %6684 = vst.msk [vmem:[%s13553_s1 + $0x80] sm:$0xff] %vm6667_vm11, %v6500_v11  ;;  %v6504_v22 = vsub.f32 1.0, %v6503_v36  ;;  %vm6522_vm8 = vweird.f32 %v6237_v16  ;;  %v5963_v3 = vadd.f32 %v5962_v57, %v5884_v40 }
 0x914   : > { %v6115_v25 = vpop.f32.mrf.mxu3  ;;  %v6529_v59 = vor.u32 1.1754944e-38, %v6528_v55  ;;  %vm6527_vm9 = vcmp.eq.f32.partialorder %v6526_v10, 8.507059e+37 }
 0x915   : > { %v6505_v63 = vmul.f32 %v9299_v27, %v6504_v22  ;;  %v6116_v32 = vadd.f32 %v6115_v25, %v6037_v2  ;;  %v6042_v49 = vadd.f32 %v6041_v9, %v5963_v3 }
 0x917   : > { %v9301_v17 = vpop.eup %9300  ;;  %v6506_v60 = vadd.f32 %v9299_v27, %v6505_v63  ;;  %v8585_v15 = vmul.f32 -1.442695, %v6116_v32  ;;  %v5888_v0 = vpop.f32.mrf.mxu0 }
 0x918   : > { %v9303_v18 = vpop.eup %9302  ;;  %v6238_v47 = vadd.f32 1.0, %v9301_v17  ;;  %v5967_v7 = vpop.f32.mrf.mxu1  ;;  %v5889_v45 = vadd.f32 %v5888_v0, %v13443_v14 }
 0x919   : > { %v6510_v13 = vsel %vm6509_vm4, %v9299_v27, %v6506_v60  ;;  %v6518_v61 = vmul.f32 %v9303_v18, %v6237_v16  ;;  %9304 = vpow2.f32 %v8585_v15  ;;  %vm6523_vm6 = vweird.f32 %v9303_v18  ;;  %v6046_v57 = vpop.f32.mrf.mxu2 }
 0x91a   : > { %v6515_v51 = vsel %vm6512_vm5, %v6514_v35, %v6510_v13  ;;  %9306 = vrcp.f32 %v6238_v47  ;;  %vm6524_vm7 = vmor %vm6522_vm8, %vm6523_vm6  ;;  %v6543_v26 = vand.u32 2147483648, %v6238_v47  ;;  %v6541_v6 = vand.u32 2147483647, %v6238_v47 }
 0x91b   : > { %6685 = vst.msk [vmem:[%s13553_s1 + $0x88] sm:$0xff] %vm6667_vm11, %v6515_v51  ;;  %v6519_v34 = vsub.f32 1.0, %v6518_v61  ;;  %vm6537_vm12 = vweird.f32 %v6238_v47  ;;  %v5965_v16 = vadd.f32 %v5964_v42, %v5886_v44  ;;  %v5968_v52 = vadd.f32 %v5967_v7, %v5889_v45 }
 0x91c   : > { %v6117_v53 = vpop.f32.mrf.mxu3  ;;  %v6544_v48 = vor.u32 1.1754944e-38, %v6543_v26  ;;  %vm6542_vm14 = vcmp.eq.f32.partialorder %v6541_v6, 8.507059e+37 }
 0x91d   : > { %v6520_v24 = vmul.f32 %v9303_v18, %v6519_v34  ;;  %v6118_v43 = vadd.f32 %v6117_v53, %v6039_v20  ;;  %v6044_v22 = vadd.f32 %v6043_v37, %v5965_v16  ;;  %v6047_v20 = vadd.f32 %v6046_v57, %v5968_v52 }
 0x91f   : > { %v9305_v62 = vpop.eup %9304  ;;  %v6521_v39 = vadd.f32 %v9303_v18, %v6520_v24  ;;  %v8586_v54 = vmul.f32 -1.442695, %v6118_v43  ;;  %v5890_v17 = vpop.f32.mrf.mxu0 }
 0x920   : > { %v9307_v33 = vpop.eup %9306  ;;  %v6239_v50 = vadd.f32 1.0, %v9305_v62  ;;  %v5969_v13 = vpop.f32.mrf.mxu1  ;;  %v5891_v43 = vadd.f32 %v5890_v17, %v13454_v56 }
 0x921   : > { %v6525_v46 = vsel %vm6524_vm7, %v9303_v18, %v6521_v39  ;;  %v6533_v29 = vmul.f32 %v9307_v33, %v6238_v47  ;;  %9308 = vpow2.f32 %v8586_v54  ;;  %vm6538_vm10 = vweird.f32 %v9307_v33  ;;  %v6048_v34 = vpop.f32.mrf.mxu2 }
 0x922   : > { %v6530_v28 = vsel %vm6527_vm9, %v6529_v59, %v6525_v46  ;;  %9310 = vrcp.f32 %v6239_v50  ;;  %vm6539_vm13 = vmor %vm6537_vm12, %vm6538_vm10  ;;  %v6558_v1 = vand.u32 2147483648, %v6239_v50  ;;  %v6556_v38 = vand.u32 2147483647, %v6239_v50 }
 0x923   : > { %6686 = vst.msk [vmem:[%s13553_s1 + $0x90] sm:$0xff] %vm6667_vm11, %v6530_v28  ;;  %v6534_v30 = vsub.f32 1.0, %v6533_v29  ;;  %vm6552_vm0 = vweird.f32 %v6239_v50 }
 0x924   : > { %v6120_v58 = vpop.f32.mrf.mxu3  ;;  %v6559_v35 = vor.u32 1.1754944e-38, %v6558_v1  ;;  %vm6557_vm2 = vcmp.eq.f32.partialorder %v6556_v38, 8.507059e+37  ;;  %v13897_v38 = vld [vmem:[#allocation11_spill] sm:$0xff] }
 0x925   : > { %v6535_v8 = vmul.f32 %v9307_v33, %v6534_v30  ;;  %v6121_v5 = vadd.f32 %v6120_v58, %v6042_v49 }
 0x927   : > { %v9309_v4 = vpop.eup %9308  ;;  %v6536_v27 = vadd.f32 %v9307_v33, %v6535_v8  ;;  %v8587_v23 = vmul.f32 -1.442695, %v6121_v5  ;;  %v5893_v59 = vpop.f32.mrf.mxu0 }
 0x928   : > { %v9311_v31 = vpop.eup %9310  ;;  %v6240_v21 = vadd.f32 1.0, %v9309_v4  ;;  %v5972_v28 = vpop.f32.mrf.mxu1  ;;  %v5894_v6 = vadd.f32 %v5893_v59, %v13473_v12 }
 0x929   : > { %v6540_v36 = vsel %vm6539_vm13, %v9307_v33, %v6536_v27  ;;  %v6548_v11 = vmul.f32 %v9311_v31, %v6239_v50  ;;  %9312 = vpow2.f32 %v8587_v23  ;;  %vm6553_vm15 = vweird.f32 %v9311_v31  ;;  %v6051_v5 = vpop.f32.mrf.mxu2 }
 0x92a   : > { %v6545_v2 = vsel %vm6542_vm14, %v6544_v48, %v6540_v36  ;;  %9314 = vrcp.f32 %v6240_v21  ;;  %vm6554_vm1 = vmor %vm6552_vm0, %vm6553_vm15  ;;  %v6573_v55 = vand.u32 2147483648, %v6240_v21  ;;  %v6571_v24 = vand.u32 2147483647, %v6240_v21 }
 0x92b   : > { %6687 = vst.msk [vmem:[%s13553_s1 + $0x98] sm:$0xff] %vm6667_vm11, %v6545_v2  ;;  %v6549_v41 = vsub.f32 1.0, %v6548_v11  ;;  %vm6567_vm4 = vweird.f32 %v6240_v21  ;;  %v5970_v33 = vadd.f32 %v5969_v13, %v5891_v43  ;;  %v5973_v23 = vadd.f32 %v5972_v28, %v5894_v6 }
 0x92c   : > { %v6122_v25 = vpop.f32.mrf.mxu3  ;;  %v6574_v3 = vor.u32 1.1754944e-38, %v6573_v55  ;;  %vm6572_vm6 = vcmp.eq.f32.partialorder %v6571_v24, 8.507059e+37 }
 0x92d   : > { %v6550_v63 = vmul.f32 %v9311_v31, %v6549_v41  ;;  %v6123_v32 = vadd.f32 %v6122_v25, %v6044_v22  ;;  %v6049_v49 = vadd.f32 %v6048_v34, %v5970_v33  ;;  %v6052_v57 = vadd.f32 %v6051_v5, %v5973_v23 }
 0x92f   : > { %v9313_v9 = vpop.eup %9312  ;;  %v6551_v60 = vadd.f32 %v9311_v31, %v6550_v63  ;;  %v8588_v15 = vmul.f32 -1.442695, %v6123_v32  ;;  %v5895_v11 = vpop.f32.mrf.mxu0 }
 0x930   : > { %v9315_v18 = vpop.eup %9314  ;;  %v6241_v47 = vadd.f32 1.0, %v9313_v9  ;;  %v5974_v41 = vpop.f32.mrf.mxu1  ;;  %v5896_v32 = vadd.f32 %v5895_v11, %v13897_v38 }
 0x931   : > { %v6555_v61 = vsel %vm6554_vm1, %v9311_v31, %v6551_v60  ;;  %v6563_v51 = vmul.f32 %v9315_v18, %v6240_v21  ;;  %9316 = vpow2.f32 %v8588_v15  ;;  %vm6568_vm3 = vweird.f32 %v9315_v18 }
 0x932   : > { %v6560_v19 = vsel %vm6557_vm2, %v6559_v35, %v6555_v61  ;;  %9318 = vrcp.f32 %v6241_v47  ;;  %vm6569_vm5 = vmor %vm6567_vm4, %vm6568_vm3  ;;  %v6588_v30 = vand.u32 2147483648, %v6241_v47  ;;  %v6586_v0 = vand.u32 2147483647, %v6241_v47 }
 0x933   : > { %6688 = vst.msk [vmem:[%s13553_s1 + $0xa0] sm:$0xff] %vm6667_vm11, %v6560_v19  ;;  %v6564_v14 = vsub.f32 1.0, %v6563_v51  ;;  %vm6582_vm7 = vweird.f32 %v6241_v47  ;;  %v5975_v15 = vadd.f32 %v5974_v41, %v5896_v32 }
 0x934   : > { %v6125_v53 = vpop.f32.mrf.mxu3  ;;  %v6589_v31 = vor.u32 1.1754944e-38, %v6588_v30  ;;  %vm6587_vm10 = vcmp.eq.f32.partialorder %v6586_v0, 8.507059e+37 }
 0x935   : > { %v6565_v42 = vmul.f32 %v9315_v18, %v6564_v14  ;;  %v6126_v10 = vadd.f32 %v6125_v53, %v6047_v20 }
 0x937   : > { %v9317_v40 = vpop.eup %9316  ;;  %v6566_v62 = vadd.f32 %v9315_v18, %v6565_v42  ;;  %v8589_v39 = vmul.f32 -1.442695, %v6126_v10 }
 0x938   : > { %v9319_v54 = vpop.eup %9318  ;;  %v6242_v37 = vadd.f32 1.0, %v9317_v40 }
 0x939   : > { %v6570_v50 = vsel %vm6569_vm5, %v9315_v18, %v6566_v62  ;;  %v6578_v46 = vmul.f32 %v9319_v54, %v6241_v47  ;;  %9320 = vpow2.f32 %v8589_v39  ;;  %vm6583_vm8 = vweird.f32 %v9319_v54  ;;  %v6053_v18 = vpop.f32.mrf.mxu2 }
 0x93a   : > { %v6575_v29 = vsel %vm6572_vm6, %v6574_v3, %v6570_v50  ;;  %9322 = vrcp.f32 %v6242_v37  ;;  %vm6584_vm9 = vmor %vm6582_vm7, %vm6583_vm8  ;;  %v6603_v2 = vand.u32 2147483648, %v6242_v37  ;;  %v6601_v25 = vand.u32 2147483647, %v6242_v37 }
 0x93b   : > { %6689 = vst.msk [vmem:[%s13553_s1 + $0xa8] sm:$0xff] %vm6667_vm11, %v6575_v29  ;;  %v6579_v56 = vsub.f32 1.0, %v6578_v46  ;;  %vm6597_vm13 = vweird.f32 %v6242_v37  ;;  %v6054_v51 = vadd.f32 %v6053_v18, %v5975_v15 }
 0x93c   : > { %v6127_v26 = vpop.f32.mrf.mxu3  ;;  %v6604_v52 = vor.u32 1.1754944e-38, %v6603_v2  ;;  %vm6602_vm15 = vcmp.eq.f32.partialorder %v6601_v25, 8.507059e+37 }
 0x93d   : > { %v6580_v58 = vmul.f32 %v9319_v54, %v6579_v56  ;;  %v6128_v8 = vadd.f32 %v6127_v26, %v6049_v49 }
 0x93f   : > { %v9321_v44 = vpop.eup %9320  ;;  %v6581_v4 = vadd.f32 %v9319_v54, %v6580_v58  ;;  %v8590_v7 = vmul.f32 -1.442695, %v6128_v8 }
 0x940   : > { %v9323_v27 = vpop.eup %9322  ;;  %v6243_v16 = vadd.f32 1.0, %v9321_v44 }
 0x941   : > { %v6585_v48 = vsel %vm6584_vm9, %v9319_v54, %v6581_v4  ;;  %v6593_v21 = vmul.f32 %v9323_v27, %v6242_v37  ;;  %9324 = vpow2.f32 %v8590_v7  ;;  %vm6598_vm12 = vweird.f32 %v9323_v27 }
 0x942   : > { %v6590_v36 = vsel %vm6587_vm10, %v6589_v31, %v6585_v48  ;;  %9326 = vrcp.f32 %v6243_v16  ;;  %vm6599_vm14 = vmor %vm6597_vm13, %vm6598_vm12  ;;  %v6618_v20 = vand.u32 2147483648, %v6243_v16  ;;  %v6616_v55 = vand.u32 2147483647, %v6243_v16 }
 0x943   : > { %6690 = vst.msk [vmem:[%s13553_s1 + $0xb0] sm:$0xff] %vm6667_vm11, %v6590_v36  ;;  %v6594_v12 = vsub.f32 1.0, %v6593_v21  ;;  %vm6612_vm1 = vweird.f32 %v6243_v16 }
 0x944   : > { %v6130_v22 = vpop.f32.mrf.mxu3  ;;  %v6619_v40 = vor.u32 1.1754944e-38, %v6618_v20  ;;  %vm6617_vm3 = vcmp.eq.f32.partialorder %v6616_v55, 8.507059e+37 }
 0x945   : > { %v6595_v1 = vmul.f32 %v9323_v27, %v6594_v12  ;;  %v6131_v63 = vadd.f32 %v6130_v22, %v6052_v57 }
 0x947   : > { %v9325_v45 = vpop.eup %9324  ;;  %v6596_v9 = vadd.f32 %v9323_v27, %v6595_v1  ;;  %v8591_v17 = vmul.f32 -1.442695, %v6131_v63 }
 0x948   : > { %v9327_v60 = vpop.eup %9326  ;;  %v6244_v35 = vadd.f32 1.0, %v9325_v45 }
 0x949   : > { %v6600_v47 = vsel %vm6599_vm14, %v9323_v27, %v6596_v9  ;;  %v6608_v13 = vmul.f32 %v9327_v60, %v6243_v16  ;;  %9328 = vpow2.f32 %v8591_v17  ;;  %vm6613_vm0 = vweird.f32 %v9327_v60 }
 0x94a   : > { %v6605_v61 = vsel %vm6602_vm15, %v6604_v52, %v6600_v47  ;;  %9330 = vrcp.f32 %v6244_v35  ;;  %vm6614_vm2 = vmor %vm6612_vm1, %vm6613_vm0  ;;  %v6633_v37 = vand.u32 2147483648, %v6244_v35  ;;  %v6631_v50 = vand.u32 2147483647, %v6244_v35 }
 0x94b   : > { %6691 = vst.msk [vmem:[%s13553_s1 + $0xb8] sm:$0xff] %vm6667_vm11, %v6605_v61  ;;  %v6609_v19 = vsub.f32 1.0, %v6608_v13  ;;  %vm6627_vm5 = vweird.f32 %v6244_v35 }
 0x94c   : > { %v6132_v14 = vpop.f32.mrf.mxu3  ;;  %v6634_v49 = vor.u32 1.1754944e-38, %v6633_v37  ;;  %vm6632_vm8 = vcmp.eq.f32.partialorder %v6631_v50, 8.507059e+37 }
 0x94d   : > { %v6610_v34 = vmul.f32 %v9327_v60, %v6609_v19  ;;  %v6133_v53 = vadd.f32 %v6132_v14, %v6054_v51 }
 0x94f   : > { %v9329_v42 = vpop.eup %9328  ;;  %v6611_v24 = vadd.f32 %v9327_v60, %v6610_v34  ;;  %v8592_v10 = vmul.f32 -1.442695, %v6133_v53 }
 0x950   : > { %v9331_v43 = vpop.eup %9330  ;;  %v6245_v62 = vadd.f32 1.0, %v9329_v42 }
 0x951   : > { %v6615_v39 = vsel %vm6614_vm2, %v9327_v60, %v6611_v24  ;;  %v6623_v54 = vmul.f32 %v9331_v43, %v6244_v35  ;;  %9332 = vpow2.f32 %v8592_v10  ;;  %vm6628_vm4 = vweird.f32 %v9331_v43 }
 0x952   : > { %v6620_v33 = vsel %vm6617_vm3, %v6619_v40, %v6615_v39  ;;  %9334 = vrcp.f32 %v6245_v62  ;;  %vm6629_vm6 = vmor %vm6627_vm5, %vm6628_vm4  ;;  %v6648_v8 = vand.u32 2147483648, %v6245_v62  ;;  %v6646_v5 = vand.u32 2147483647, %v6245_v62 }
 0x953   : > { %6692 = vst.msk [vmem:[%s13553_s1 + $0xc0] sm:$0xff] %vm6667_vm11, %v6620_v33  ;;  %v6624_v3 = vsub.f32 1.0, %v6623_v54  ;;  %vm6642_vm9 = vweird.f32 %v6245_v62 }
 0x954   : > { %v6649_v7 = vor.u32 1.1754944e-38, %v6648_v8  ;;  %vm6647_vm12 = vcmp.eq.f32.partialorder %v6646_v5, 8.507059e+37 }
 0x955   : > { %v6625_v59 = vmul.f32 %v9331_v43, %v6624_v3 }
 0x957   : > { %v9333_v46 = vpop.eup %9332  ;;  %v6626_v29 = vadd.f32 %v9331_v43, %v6625_v59 }
 0x958   : > { %v9335_v28 = vpop.eup %9334  ;;  %v6246_v56 = vadd.f32 1.0, %v9333_v46 }
 0x959   : > { %v6630_v30 = vsel %vm6629_vm6, %v9331_v43, %v6626_v29  ;;  %v6638_v26 = vmul.f32 %v9335_v28, %v6245_v62  ;;  %vm6643_vm7 = vweird.f32 %v9335_v28 }
 0x95a   : > { %v6635_v58 = vsel %vm6632_vm8, %v6634_v49, %v6630_v30  ;;  %9336 = vrcp.f32 %v6246_v56  ;;  %vm6644_vm10 = vmor %vm6642_vm9, %vm6643_vm7  ;;  %v6663_v48 = vand.u32 2147483648, %v6246_v56  ;;  %v6661_v36 = vand.u32 2147483647, %v6246_v56 }
 0x95b   : > { %6693 = vst.msk [vmem:[%s13553_s1 + $0xc8] sm:$0xff] %vm6667_vm11, %v6635_v58  ;;  %v6639_v0 = vsub.f32 1.0, %v6638_v26  ;;  %vm6657_vm14 = vweird.f32 %v6246_v56 }
 0x95c   : > { %v6664_v57 = vor.u32 1.1754944e-38, %v6663_v48  ;;  %vm6662_vm0 = vcmp.eq.f32.partialorder %v6661_v36, 8.507059e+37 }
 0x95d   : > { %v6640_v6 = vmul.f32 %v9335_v28, %v6639_v0 }
 0x95f   : > { %v6641_v44 = vadd.f32 %v9335_v28, %v6640_v6 }
 0x960   : > { %v9337_v4 = vpop.eup %9336 }
 0x961   : > { %v6645_v27 = vsel %vm6644_vm10, %v9335_v28, %v6641_v44  ;;  %v6653_v23 = vmul.f32 %v9337_v4, %v6246_v56  ;;  %vm6658_vm13 = vweird.f32 %v9337_v4 }
 0x962   : > { %v6650_v31 = vsel %vm6647_vm12, %v6649_v7, %v6645_v27  ;;  %vm6659_vm15 = vmor %vm6657_vm14, %vm6658_vm13 }
 0x963   : > { %6694 = vst.msk [vmem:[%s13553_s1 + $0xd0] sm:$0xff] %vm6667_vm11, %v6650_v31  ;;  %v6654_v16 = vsub.f32 1.0, %v6653_v23 }
 0x965   : > { %v6655_v21 = vmul.f32 %v9337_v4, %v6654_v16 }
 0x967   : > { %v6656_v11 = vadd.f32 %v9337_v4, %v6655_v21 }
 0x969   : > { %v6660_v12 = vsel %vm6659_vm15, %v9337_v4, %v6656_v11 }
 0x96a   : > { %v6665_v2 = vsel %vm6662_vm0, %v6664_v57, %v6660_v12 }
 0x96b   : > { %6695 = vst.msk [vmem:[%s13553_s1 + $0xd8] sm:$0xff] %vm6667_vm11, %v6665_v2 }
 0x96c PF: > { %s13898_s23 = sld [smem:[#allocation5_spill]]  ;;  %p8996_p5 = scmp.ge.s32.totalorder %s9400_s16, 2 }
 0x96e   : > { %p8993_p7 = pnand %p8996_p5, %p9524_p6 }
 0x970   : > { %p8994_p8 = pneg %p8993_p7 }
 0x972   : > { %s6740_s27 = sand.u32 1, %s13898_s23  }
 0x973   : > { %s6741_s0 = scalar_lea.sflag [#allocation3], %s6740_s27 }
 0x974   : > { %9383 = dma.done.wait (%p8994_p8), %s6741_s0, 128  }
 0x975   : > { %9385 = vsyncadd (%p8994_p8), %s6741_s0, 4294967168  ;;  %s13900_s16 = sld [smem:[#allocation7_spill]]  ;;  %s13903_s29 = smov %s9392_s30 }
 0x976   : > { %s13901_s18 = sld [smem:[#allocation6_spill]] }
 0x977   : > { %s13902_s15 = sld [smem:[#allocation8_spill]] }
 0x97b   : > { %p25_p9 = scmp.ge.s32.totalorder %s13900_s16, 4  }
 0x97c   : > { %s13904_s30 = smov %s13901_s18 }
 0x97d   :  { %27 = sbr.rel (!%p25_p9) target bundleno = 6 (0x6), region = 119 }
 0x982   :  { %6747 = vsyncpa [#allocation3], 1 }
 0x983   :  { %6749 = vsyncpa [#allocation3 + $0x1], 1 }

</bundles_post_ra>
